<compile_context>
chip_gen: v7x
topology: tpu7x:2x2x1
jax: 0.10.0
libtpu: 0.0.40
codegen_flags: <defaults>
</compile_context>

<pallas_src>
import functools

import jax
import jax.numpy as jnp
from jax.experimental import pallas as pl
from jax.experimental.pallas import tpu as pltpu


# ---------------------------------------------------------------------------
# Kernel 1: streaming K-reduction of linear1's encoder part.
#   partial[c] = x[:, c-th K shard] @ W1_enc^T[c-th K shard, :]
# Leading grid axis is "parallel" so v7x's two TensorCores each stream half of
# W1^T; the inner "arbitrary" axis is the per-core K reduction.
# ---------------------------------------------------------------------------
def _linear1_reduce_kernel(x_ref, w1t_ref, part_ref, acc_ref):
    k = pl.program_id(1)

    @pl.when(k == 0)
    def _():
        acc_ref[...] = jnp.zeros_like(acc_ref)

    # (1, tk) @ (tk, L1) bf16 matvec with f32 accumulation on the MXU.
    acc_ref[...] += jnp.dot(x_ref[...], w1t_ref[...],
                            preferred_element_type=jnp.float32)

    @pl.when(k == pl.num_programs(1) - 1)
    def _():
        part_ref[...] = acc_ref[...][None]            # (1, 1, L1)


# ---------------------------------------------------------------------------
# Kernel 2: tiny epilogue -- combine K-shard partials, add hidden contribution
# and bias, tanh, linear2, tanh, softmax, broadcast multiply with encoder map.
# Single invocation; everything resident in VMEM (< 1 MiB total).
# ---------------------------------------------------------------------------
def _epilogue_kernel(part_ref, hid_ref, w1h_ref, b1_ref, w2t_ref, b2_ref,
                     enc_ref, out_ref):
    acc = jnp.sum(part_ref[...], axis=0)              # (1, L1): combine shards
    acc = acc + jnp.dot(hid_ref[...], w1h_ref[...],
                        preferred_element_type=jnp.float32)
    l1 = jnp.tanh(acc + b1_ref[...])                  # (1, L1)
    l2 = jnp.tanh(jnp.dot(l1, w2t_ref[...],
                          preferred_element_type=jnp.float32) + b2_ref[...])
    # softmax over the full vector (torch F.softmax default dim=0 on 1-D input)
    m = jnp.max(l2, axis=-1, keepdims=True)
    e = jnp.exp(l2 - m)
    attn = e / jnp.sum(e, axis=-1, keepdims=True)     # (1, L2)
    # output = attn_weights * encoder_outputs.view(1, 512, -1)   (broadcast)
    out_ref[...] = enc_ref[...] * attn                # (512, L2)


def preprocess_params(params, hidden_size, *, w1_dtype=jnp.bfloat16):
    """One-time weight preprocessing (hoisted out of the per-call path).

    Splits W1 into encoder / hidden column blocks and pre-transposes both.
    The encoder block (the ~33-67 MB stream) is stored in `w1_dtype`
    (bf16 default -> halves HBM traffic; f32 accumulation stays in-kernel).
    """
    w1 = params["w1"]
    L1, k_total = w1.shape
    flattened_size = k_total - hidden_size
    L2 = params["w2"].shape[0]

    # Pad the tiny hidden block to 128 rows (zero rows contribute nothing) so
    # the epilogue's (1, hp) @ (hp, L1) matvec has a friendly MXU shape.
    hp = max(128, ((hidden_size + 127) // 128) * 128)
    w1_hid_t = jnp.zeros((hp, L1), jnp.float32)
    w1_hid_t = w1_hid_t.at[:hidden_size].set(
        w1[:, flattened_size:].T.astype(jnp.float32))

    return {
        "w1_enc_t": jnp.asarray(w1[:, :flattened_size].T, w1_dtype),  # (F, L1)
        "w1_hid_t": w1_hid_t,                                         # (hp, L1)
        "b1": params["b1"].reshape(1, L1).astype(jnp.float32),
        "w2_t": params["w2"].T.astype(jnp.float32),                   # (L1, L2)
        "b2": params["b2"].reshape(1, L2).astype(jnp.float32),
    }


@functools.partial(jax.jit, static_argnames=("tk", "num_core_splits"))
def attention_model_forward(encoder_outputs, hidden, prep, *, tk=16384,
                            num_core_splits=2):
    """Pallas equivalent of AttentionModel.forward.

    encoder_outputs: (D, W, H) float32, hidden: (hidden_size,) float32,
    prep: output of preprocess_params().  Returns (1, 512, D*W*H // 512) f32.
    """
    D, W, H = encoder_outputs.shape
    flattened_size = D * W * H
    L1 = prep["w1_enc_t"].shape[1]
    L2 = prep["w2_t"].shape[1]
    hp = prep["w1_hid_t"].shape[0]
    hidden_size = hidden.shape[0]
    w1_dtype = prep["w1_enc_t"].dtype

    # Module-level assumptions baked into torch's `.view(1, 512, -1)` broadcast.
    assert flattened_size % 512 == 0, "flattened_size must be divisible by 512"
    assert flattened_size // 512 == L2, (
        "encoder_outputs.view(1, 512, -1) must broadcast against the softmax "
        "vector: need flattened_size // 512 == max(128, W*H)")
    assert prep["w1_enc_t"].shape[0] == flattened_size

    # Largest tk that divides flattened_size exactly (no padded reduction).
    tk = min(tk, flattened_size)
    while flattened_size % tk:
        tk //= 2
    assert tk % 128 == 0 and tk >= 2048, (
        f"chosen reduction tile tk={tk} is too small; per-step pipeline "
        f"overhead would dominate (flattened_size={flattened_size})")
    n_k = flattened_size // tk

    # Split the K reduction across TensorCores when it divides evenly
    # (2 TCs on v7x; serial & harmless on single-TC v5e/v6e).
    nc = num_core_splits if (num_core_splits > 1
                             and n_k % num_core_splits == 0) else 1
    kpc = n_k // nc

    # Per-call glue: cheap views + a bf16 cast of the 256 KiB encoder flat view
    # (done once here so there is no per-step astype inside the kernel).
    x = encoder_outputs.reshape(1, flattened_size).astype(w1_dtype)
    enc2d = encoder_outputs.reshape(512, L2)            # torch .view(1,512,-1)
    hid = jnp.zeros((1, hp), jnp.float32).at[0, :hidden_size].set(hidden)

    w1_bytes = prep["w1_enc_t"].size * prep["w1_enc_t"].dtype.itemsize
    cost = pl.CostEstimate(
        flops=int(2 * flattened_size * L1),
        transcendentals=0,
        bytes_accessed=int(w1_bytes + x.size * x.dtype.itemsize
                           + nc * L1 * 4),
    )

    partials = pl.pallas_call(
        _linear1_reduce_kernel,
        out_shape=jax.ShapeDtypeStruct((nc, 1, L1), jnp.float32),
        grid_spec=pltpu.PrefetchScalarGridSpec(
            num_scalar_prefetch=0,
            grid=(nc, kpc),
            in_specs=[
                pl.BlockSpec((1, tk), lambda c, k: (0, c * kpc + k)),   # x slab
                pl.BlockSpec((tk, L1), lambda c, k: (c * kpc + k, 0)),  # W1^T
            ],
            out_specs=pl.BlockSpec((1, 1, L1), lambda c, k: (c, 0, 0)),
            scratch_shapes=[pltpu.VMEM((1, L1), jnp.float32)],
        ),
        compiler_params=pltpu.CompilerParams(
            dimension_semantics=("parallel", "arbitrary"),
            vmem_limit_bytes=32 * 1024 * 1024),
        cost_estimate=cost,
    )(x, prep["w1_enc_t"])

    # Tiny epilogue kernel: everything fits VMEM, single invocation.
    out2d = pl.pallas_call(
        _epilogue_kernel,
        out_shape=jax.ShapeDtypeStruct((512, L2), jnp.float32),
    )(partials, hid, prep["w1_hid_t"], prep["b1"], prep["w2_t"],
      prep["b2"], enc2d)

    return out2d.reshape(1, 512, L2)


def init_params(key, hidden_size, output_depth, output_width, output_height):
    """Deterministic init matching nn.Linear default (U(-1/sqrt(fan_in), +))."""
    flattened_size = output_depth * output_width * output_height
    wh = output_width * output_height
    l1_out = max(256, wh)
    l2_out = max(128, wh)
    l1_in = hidden_size + flattened_size
    l2_in = l1_out

    k1, k2, k3, k4 = jax.random.split(key, 4)
    s1 = 1.0 / jnp.sqrt(l1_in)
    s2 = 1.0 / jnp.sqrt(l2_in)
    return {
        "w1": jax.random.uniform(k1, (l1_out, l1_in), jnp.float32, -s1, s1),
        "b1": jax.random.uniform(k2, (l1_out,), jnp.float32, -s1, s1),
        "w2": jax.random.uniform(k3, (l2_out, l2_in), jnp.float32, -s2, s2),
        "b2": jax.random.uniform(k4, (l2_out,), jnp.float32, -s2, s2),
    }


def reference_forward(encoder_outputs, hidden, params, *,
                      stream_dtype=jnp.float32):
    """Pure-JAX reference mirroring the PyTorch forward.

    With stream_dtype=float32 this is the exact model; with bfloat16 it
    quantizes the streamed operands (W1 encoder block + flattened encoder
    input) the same way the kernel does, keeping f32 accumulation.
    """
    flat = encoder_outputs.reshape(-1)
    fsz = flat.shape[0]
    w1 = params["w1"]
    enc_term = jnp.dot(flat.astype(stream_dtype),
                       w1[:, :fsz].T.astype(stream_dtype),
                       preferred_element_type=jnp.float32)
    hid_term = jnp.dot(hidden, w1[:, fsz:].T)
    l1 = jnp.tanh(enc_term + hid_term + params["b1"])
    l2 = jnp.tanh(params["w2"] @ l1 + params["b2"])
    attn = jax.nn.softmax(l2, axis=0)
    return attn * encoder_outputs.reshape(1, 512, -1)


if __name__ == "__main__":
    # Smallest config consistent with the module's hardcoded view(1, 512, -1):
    hidden_size = 32
    output_depth, output_width, output_height = 512, 8, 16

    key = jax.random.PRNGKey(0)
    kp, ke, kh = jax.random.split(key, 3)

    params = init_params(kp, hidden_size, output_depth, output_width,
                         output_height)
    # One-time weight preprocessing; bf16 stream for W1's encoder block.
    prep = preprocess_params(params, hidden_size)

    encoder_outputs = jax.random.normal(
        ke, (output_depth, output_width, output_height), jnp.float32)
    hidden = jax.random.normal(kh, (hidden_size,), jnp.float32)

    out = attention_model_forward(encoder_outputs, hidden, prep)
    out = jax.block_until_ready(out)
    assert out.shape == (1, 512, 128), out.shape

    # Tight check vs. a reference that quantizes the streamed operands to bf16
    # the same way (f32 accumulation on both sides -> only summation-order noise).
    ref_bf16 = reference_forward(encoder_outputs, hidden, params,
                                 stream_dtype=jnp.bfloat16)
    err_bf16 = float(jnp.max(jnp.abs(out - ref_bf16)))
    assert jnp.allclose(out, ref_bf16, atol=2e-4, rtol=5e-3), err_bf16

    # Loose sanity bound vs. the exact f32 model (difference == bf16 weight /
    # input quantization of the K=65536 matvec; well under 1% of the output).
    ref_f32 = reference_forward(encoder_outputs, hidden, params,
                                stream_dtype=jnp.float32)
    err_f32 = float(jnp.max(jnp.abs(out - ref_f32)))
    assert jnp.allclose(out, ref_f32, atol=2e-3, rtol=5e-2), err_f32

    print("KERNEL_OK")
</pallas_src>

<mosaic_0001>
module attributes {stable_mosaic.version = 11 : i64} {
  func.func @_linear1_reduce_kernel(%arg0: i32, %arg1: i32, %arg2: memref<1x16384xbf16, #tpu.memory_space<vmem>>, %arg3: memref<16384x256xbf16, #tpu.memory_space<vmem>>, %arg4: memref<1x1x256xf32, #tpu.memory_space<vmem>>, %arg5: memref<1x256xf32, #tpu.memory_space<vmem>>) attributes {dimension_semantics = [#tpu.dimension_semantics<parallel>, #tpu.dimension_semantics<arbitrary>], iteration_bounds = array<i64: 2, 2>, scalar_prefetch = 0 : i64, scratch_operands = 1 : i64, tpu.core_type = #tpu.core_type<tc>, window_params = [{transform_indices = @transform_0, window_bounds = array<i64: 1, 16384>}, {transform_indices = @transform_1, window_bounds = array<i64: 16384, 256>}, {transform_indices = @transform_2, window_bounds = array<i64: 1, 1, 256>}]} {
    %c0_i32 = arith.constant 0 : i32
    %0 = arith.cmpi eq, %arg1, %c0_i32 : i32
    %1 = arith.extui %0 : i1 to i32
    %c0_i32_0 = arith.constant 0 : i32
    %2 = arith.cmpi ne, %1, %c0_i32_0 : i32
    scf.if %2 {
      %cst_9 = arith.constant 0.000000e+00 : f32
      %12 = vector.broadcast %cst_9 : f32 to vector<1x256xf32>
      %c0_10 = arith.constant 0 : index
      %c0_11 = arith.constant 0 : index
      %13 = vector.load %arg5[%c0_10, %c0_11] : memref<1x256xf32, #tpu.memory_space<vmem>>, vector<1x256xf32>
      tpu.vector_store %arg5[%c0_10, %c0_11], %12 {strides = array<i32>} : memref<1x256xf32, #tpu.memory_space<vmem>>, vector<1x256xf32>,
    } else {
    }
    %c0 = arith.constant 0 : index
    %c0_1 = arith.constant 0 : index
    %3 = vector.load %arg5[%c0, %c0_1] : memref<1x256xf32, #tpu.memory_space<vmem>>, vector<1x256xf32>
    %c0_2 = arith.constant 0 : index
    %c0_3 = arith.constant 0 : index
    %4 = vector.load %arg2[%c0_2, %c0_3] : memref<1x16384xbf16, #tpu.memory_space<vmem>>, vector<1x16384xbf16>
    %c0_4 = arith.constant 0 : index
    %c0_5 = arith.constant 0 : index
    %5 = vector.load %arg3[%c0_4, %c0_5] : memref<16384x256xbf16, #tpu.memory_space<vmem>>, vector<16384x256xbf16>
    %cst = arith.constant dense<0.000000e+00> : vector<1x256xf32>
    %6 = tpu.matmul %4, %5, %cst {dimension_numbers = #tpu.dot_dimension_numbers<[1], [0], [0], [1], [0, 0, 1, 1], [], []>} : vector<1x16384xbf16>, vector<16384x256xbf16>, vector<1x256xf32> -> vector<1x256xf32>
    %7 = arith.addf %3, %6 : vector<1x256xf32>
    %c0_6 = arith.constant 0 : index
    %c0_7 = arith.constant 0 : index
    %8 = vector.load %arg5[%c0_6, %c0_7] : memref<1x256xf32, #tpu.memory_space<vmem>>, vector<1x256xf32>
    tpu.vector_store %arg5[%c0_6, %c0_7], %7 {strides = array<i32>} : memref<1x256xf32, #tpu.memory_space<vmem>>, vector<1x256xf32>,
    %c1_i32 = arith.constant 1 : i32
    %9 = arith.cmpi eq, %arg1, %c1_i32 : i32
    %10 = arith.extui %9 : i1 to i32
    %c0_i32_8 = arith.constant 0 : i32
    %11 = arith.cmpi ne, %10, %c0_i32_8 : i32
    scf.if %11 {
      %c0_9 = arith.constant 0 : index
      %c0_10 = arith.constant 0 : index
      %12 = vector.load %arg5[%c0_9, %c0_10] : memref<1x256xf32, #tpu.memory_space<vmem>>, vector<1x256xf32>
      %13 = vector.shape_cast %12 : vector<1x256xf32> to vector<1x1x256xf32>
      %c0_11 = arith.constant 0 : index
      %c0_12 = arith.constant 0 : index
      %c0_13 = arith.constant 0 : index
      %14 = vector.load %arg4[%c0_11, %c0_12, %c0_13] : memref<1x1x256xf32, #tpu.memory_space<vmem>>, vector<1x1x256xf32>
      tpu.vector_store %arg4[%c0_11, %c0_12, %c0_13], %13 {strides = array<i32>} : memref<1x1x256xf32, #tpu.memory_space<vmem>>, vector<1x1x256xf32>,
    } else {
    }
    return
  }
  func.func @transform_0(%arg0: i32, %arg1: i32) -> (i32, i32) {
    %c2_i32 = arith.constant 2 : i32
    %0 = arith.muli %arg0, %c2_i32 : i32
    %1 = arith.addi %0, %arg1 : i32
    %c0_i32 = arith.constant 0 : i32
    %c0_i32_0 = arith.constant 0 : i32
    return %c0_i32, %1 : i32, i32
  }
  func.func @transform_1(%arg0: i32, %arg1: i32) -> (i32, i32) {
    %c2_i32 = arith.constant 2 : i32
    %0 = arith.muli %arg0, %c2_i32 : i32
    %1 = arith.addi %0, %arg1 : i32
    %c0_i32 = arith.constant 0 : i32
    %c0_i32_0 = arith.constant 0 : i32
    return %1, %c0_i32 : i32, i32
  }
  func.func @transform_2(%arg0: i32, %arg1: i32) -> (i32, i32, i32) {
    %c0_i32 = arith.constant 0 : i32
    %c0_i32_0 = arith.constant 0 : i32
    %c0_i32_1 = arith.constant 0 : i32
    return %arg0, %c0_i32, %c0_i32_0 : i32, i32, i32
  }
}

module attributes {stable_mosaic.version = 11 : i64} {
  func.func @_epilogue_kernel(%arg0: memref<2x1x256xf32, #tpu.memory_space<vmem>>, %arg1: memref<1x128xf32, #tpu.memory_space<vmem>>, %arg2: memref<128x256xf32, #tpu.memory_space<vmem>>, %arg3: memref<1x256xf32, #tpu.memory_space<vmem>>, %arg4: memref<256x128xf32, #tpu.memory_space<vmem>>, %arg5: memref<1x128xf32, #tpu.memory_space<vmem>>, %arg6: memref<512x128xf32, #tpu.memory_space<vmem>>, %arg7: memref<512x128xf32, #tpu.memory_space<vmem>>) attributes {dimension_semantics = [], scalar_prefetch = 0 : i64, scratch_operands = 0 : i64, tpu.core_type = #tpu.core_type<tc>} {
    %c0 = arith.constant 0 : index
    %c0_0 = arith.constant 0 : index
    %c0_1 = arith.constant 0 : index
    %0 = vector.load %arg0[%c0, %c0_0, %c0_1] : memref<2x1x256xf32, #tpu.memory_space<vmem>>, vector<2x1x256xf32>
    %cst = arith.constant dense<0.000000e+00> : vector<1x256xf32>
    %1 = vector.multi_reduction <add>, %0, %cst [0] : vector<2x1x256xf32> to vector<1x256xf32>
    %c0_2 = arith.constant 0 : index
    %c0_3 = arith.constant 0 : index
    %2 = vector.load %arg1[%c0_2, %c0_3] : memref<1x128xf32, #tpu.memory_space<vmem>>, vector<1x128xf32>
    %c0_4 = arith.constant 0 : index
    %c0_5 = arith.constant 0 : index
    %3 = vector.load %arg2[%c0_4, %c0_5] : memref<128x256xf32, #tpu.memory_space<vmem>>, vector<128x256xf32>
    %cst_6 = arith.constant dense<0.000000e+00> : vector<1x256xf32>
    %4 = tpu.matmul %2, %3, %cst_6 {dimension_numbers = #tpu.dot_dimension_numbers<[1], [0], [0], [1], [0, 0, 1, 1], [], []>} : vector<1x128xf32>, vector<128x256xf32>, vector<1x256xf32> -> vector<1x256xf32>
    %5 = arith.addf %1, %4 : vector<1x256xf32>
    %c0_7 = arith.constant 0 : index
    %c0_8 = arith.constant 0 : index
    %6 = vector.load %arg3[%c0_7, %c0_8] : memref<1x256xf32, #tpu.memory_space<vmem>>, vector<1x256xf32>
    %7 = arith.addf %5, %6 : vector<1x256xf32>
    %8 = math.tanh %7 : vector<1x256xf32>
    %c0_9 = arith.constant 0 : index
    %c0_10 = arith.constant 0 : index
    %9 = vector.load %arg4[%c0_9, %c0_10] : memref<256x128xf32, #tpu.memory_space<vmem>>, vector<256x128xf32>
    %cst_11 = arith.constant dense<0.000000e+00> : vector<1x128xf32>
    %10 = tpu.matmul %8, %9, %cst_11 {dimension_numbers = #tpu.dot_dimension_numbers<[1], [0], [0], [1], [0, 0, 1, 1], [], []>} : vector<1x256xf32>, vector<256x128xf32>, vector<1x128xf32> -> vector<1x128xf32>
    %c0_12 = arith.constant 0 : index
    %c0_13 = arith.constant 0 : index
    %11 = vector.load %arg5[%c0_12, %c0_13] : memref<1x128xf32, #tpu.memory_space<vmem>>, vector<1x128xf32>
    %12 = arith.addf %10, %11 : vector<1x128xf32>
    %13 = math.tanh %12 : vector<1x128xf32>
    %cst_14 = arith.constant dense<0xFF800000> : vector<1xf32>
    %14 = vector.multi_reduction <maximumf>, %13, %cst_14 [1] : vector<1x128xf32> to vector<1xf32>
    %15 = vector.shape_cast %14 : vector<1xf32> to vector<1x1xf32>
    %16 = vector.broadcast %15 : vector<1x1xf32> to vector<1x128xf32>
    %17 = arith.subf %13, %16 : vector<1x128xf32>
    %18 = math.exp %17 : vector<1x128xf32>
    %cst_15 = arith.constant dense<0.000000e+00> : vector<1xf32>
    %19 = vector.multi_reduction <add>, %18, %cst_15 [1] : vector<1x128xf32> to vector<1xf32>
    %20 = vector.shape_cast %19 : vector<1xf32> to vector<1x1xf32>
    %21 = vector.broadcast %20 : vector<1x1xf32> to vector<1x128xf32>
    %22 = arith.divf %18, %21 : vector<1x128xf32>
    %c0_16 = arith.constant 0 : index
    %c0_17 = arith.constant 0 : index
    %23 = vector.load %arg6[%c0_16, %c0_17] : memref<512x128xf32, #tpu.memory_space<vmem>>, vector<512x128xf32>
    %24 = vector.broadcast %22 : vector<1x128xf32> to vector<512x128xf32>
    %25 = arith.mulf %23, %24 : vector<512x128xf32>
    %c0_18 = arith.constant 0 : index
    %c0_19 = arith.constant 0 : index
    %26 = vector.load %arg7[%c0_18, %c0_19] : memref<512x128xf32, #tpu.memory_space<vmem>>, vector<512x128xf32>
    tpu.vector_store %arg7[%c0_18, %c0_19], %25 {strides = array<i32>} : memref<512x128xf32, #tpu.memory_space<vmem>>, vector<512x128xf32>,
    return
  }
}

</mosaic_0001>

<bundles_post_ra>
// kernel: attention_model_forward.3
= control target key start
LH: loop header
LB: loop body
LE: loop exit
PB: predicated region body
PF: predicated region fallthrough
CT: control target
= control target key end

     0   :  { %v644_v7 = vmov 0.0   ;;  %s1178_s0 = inlined_call_operand.vmem [shape: f32[2,1,256], index: 0, kind: input, shape index: {}]   ;;  %s1179_s1 = inlined_call_operand.vmem [shape: f32[1,128], index: 1, kind: input, shape index: {}]   ;;  %s1180_s2 = inlined_call_operand.vmem [shape: f32[128,256], index: 2, kind: input, shape index: {}]   ;;  %s1181_s3 = inlined_call_operand.vmem [shape: f32[1,256], index: 3, kind: input, shape index: {}]   ;;  %s1182_s4 = inlined_call_operand.vmem [shape: f32[256,128], index: 4, kind: input, shape index: {}]   ;;  %s1183_s5 = inlined_call_operand.vmem [shape: f32[1,128], index: 5, kind: input, shape index: {}]   ;;  %s1184_s6 = inlined_call_operand.vmem [shape: f32[512,128], index: 6, kind: input, shape index: {}]   ;;  %s1185_s7 = inlined_call_operand.hbm [shape: f32[512,128], index: 7, kind: output, shape index: {}]  }
   0x1   :  { %v60_v0 = vld [vmem:[%s1180_s2 + $0x8] sm:$0xff]  ;;  %v62_v1 = vld [vmem:[%s1180_s2 + $0x18] sm:$0xff]  ;;  %v59_v2 = vld [vmem:[%s1180_s2] sm:$0xff]  ;;  %155 = vmatprep.mubr.f32.mxu0 %v644_v7 }
   0x2   :  { %v542_v3 = vpack.c.bf16 %v62_v1, %v60_v0  ;;  %v61_v4 = vld [vmem:[%s1180_s2 + $0x10] sm:$0xff]  ;;  %v64_v5 = vld [vmem:[%s1180_s2 + $0x28] sm:$0xff]  ;;  %v66_v6 = vld [vmem:[%s1180_s2 + $0x38] sm:$0xff] }
   0x3   :  { %v544_v8 = vpack.c.bf16 %v61_v4, %v59_v2  ;;  %v546_v9 = vpack.c.bf16 %v66_v6, %v64_v5  ;;  %v63_v10 = vld [vmem:[%s1180_s2 + $0x20] sm:$0xff]  ;;  %v65_v11 = vld [vmem:[%s1180_s2 + $0x30] sm:$0xff]  ;;  %v68_v12 = vld [vmem:[%s1180_s2 + $0x48] sm:$0xff] }
   0x4   :  { %543 = vmatprep.subr.bf16.mxu0 %v542_v3  ;;  %v70_v13 = vld [vmem:[%s1180_s2 + $0x58] sm:$0xff]  ;;  %v548_v14 = vpack.c.bf16 %v65_v11, %v63_v10  ;;  %v67_v16 = vld [vmem:[%s1180_s2 + $0x40] sm:$0xff]  ;;  %v69_v17 = vld [vmem:[%s1180_s2 + $0x50] sm:$0xff] }
   0x5   :  { %545 = vmatpush1.bf16.msra.mxu0 %v544_v8  ;;  %v550_v15 = vpack.c.bf16 %v70_v13, %v68_v12  ;;  %v72_v18 = vld [vmem:[%s1180_s2 + $0x68] sm:$0xff]  ;;  %v74_v19 = vld [vmem:[%s1180_s2 + $0x78] sm:$0xff]  ;;  %v552_v20 = vpack.c.bf16 %v69_v17, %v67_v16  ;;  %v71_v22 = vld [vmem:[%s1180_s2 + $0x60] sm:$0xff] }
   0x6   :  { %547 = vmatprep.subr.bf16.mxu0 %v546_v9  ;;  %v554_v21 = vpack.c.bf16 %v74_v19, %v72_v18  ;;  %v73_v23 = vld [vmem:[%s1180_s2 + $0x70] sm:$0xff]  ;;  %v76_v24 = vld [vmem:[%s1180_s2 + $0x88] sm:$0xff]  ;;  %v78_v25 = vld [vmem:[%s1180_s2 + $0x98] sm:$0xff] }
   0x7   :  { %v75_v26 = vld [vmem:[%s1180_s2 + $0x80] sm:$0xff]  ;;  %v77_v27 = vld [vmem:[%s1180_s2 + $0x90] sm:$0xff]  ;;  %v197_v29 = vld [vmem:[%s1182_s4 + $0x88] sm:$0xff]  ;;  %v556_v31 = vpack.c.bf16 %v73_v23, %v71_v22  ;;  %v558_v36 = vpack.c.bf16 %v78_v25, %v76_v24 }
   0x8   :  { %v196_v28 = vld [vmem:[%s1182_s4 + $0x80] sm:$0xff]  ;;  %v181_v33 = vld [vmem:[%s1182_s4 + $0x8] sm:$0xff]  ;;  %v198_v34 = vld [vmem:[%s1182_s4 + $0x90] sm:$0xff]  ;;  %v560_v47 = vpack.c.bf16 %v77_v27, %v75_v26 }
   0x9   :  { %549 = vmatpush1.bf16.msra.mxu0 %v548_v14  ;;  %v180_v30 = vld [vmem:[%s1182_s4] sm:$0xff]  ;;  %v574_v32 = vpack.c.bf16 %v197_v29, %v196_v28  ;;  %v199_v35 = vld [vmem:[%s1182_s4 + $0x98] sm:$0xff]  ;;  %v182_v39 = vld [vmem:[%s1182_s4 + $0x10] sm:$0xff] }
   0xa   :  { %551 = vmatprep.subr.bf16.mxu0 %v550_v15  ;;  %v576_v37 = vpack.c.bf16 %v181_v33, %v180_v30  ;;  %v578_v38 = vpack.c.bf16 %v199_v35, %v198_v34  ;;  %v183_v40 = vld [vmem:[%s1182_s4 + $0x18] sm:$0xff]  ;;  %v200_v41 = vld [vmem:[%s1182_s4 + $0xa0] sm:$0xff]  ;;  %v80_v42 = vld [vmem:[%s1180_s2 + $0xa8] sm:$0xff] }
   0xb   :  { %v82_v43 = vld [vmem:[%s1180_s2 + $0xb8] sm:$0xff]  ;;  %575 = vmatprep.subr.bf16.mxu1 %v574_v32  ;;  %v201_v44 = vld [vmem:[%s1182_s4 + $0xa8] sm:$0xff]  ;;  %v79_v45 = vld [vmem:[%s1180_s2 + $0xa0] sm:$0xff]  ;;  %v580_v46 = vpack.c.bf16 %v183_v40, %v182_v39 }
   0xc   :  { %577 = vmatpush3.bf16.msra.mxu1 %v576_v37  ;;  %v81_v48 = vld [vmem:[%s1180_s2 + $0xb0] sm:$0xff]  ;;  %v582_v49 = vpack.c.bf16 %v201_v44, %v200_v41  ;;  %v184_v50 = vld [vmem:[%s1182_s4 + $0x20] sm:$0xff]  ;;  %v185_v51 = vld [vmem:[%s1182_s4 + $0x28] sm:$0xff]  ;;  %v562_v52 = vpack.c.bf16 %v82_v43, %v80_v42 }
   0xd   :  { %553 = vmatpush1.bf16.msra.mxu0 %v552_v20  ;;  %579 = vmatprep.subr.bf16.mxu1 %v578_v38  ;;  %v202_v53 = vld [vmem:[%s1182_s4 + $0xb0] sm:$0xff]  ;;  %v203_v54 = vld [vmem:[%s1182_s4 + $0xb8] sm:$0xff] }
   0xe   :  { %555 = vmatprep.subr.bf16.mxu0 %v554_v21 }
  0x11   :  { %557 = vmatpush1.bf16.msra.mxu0 %v556_v31 }
  0x12   :  { %559 = vmatprep.subr.bf16.mxu0 %v558_v36 }
  0x13   :  { %12 = vsyncpa [#allocation3], 0  ;;  %v84_v55 = vld [vmem:[%s1180_s2 + $0xc8] sm:$0xff]  ;;  %v86_v56 = vld [vmem:[%s1180_s2 + $0xd8] sm:$0xff]  ;;  %581 = vmatpush3.bf16.msra.mxu1 %v580_v46  ;;  %v584_v57 = vpack.c.bf16 %v185_v51, %v184_v50  ;;  %v564_v58 = vpack.c.bf16 %v81_v48, %v79_v45  ;;  %v586_v59 = vpack.c.bf16 %v203_v54, %v202_v53  ;;  %v31_v34 = vlaneseq  ;;  %s645_s22 = smov [#allocation2]  }
  0x14   :  { %583 = vmatprep.subr.bf16.mxu1 %v582_v49  ;;  %v186_v60 = vld [vmem:[%s1182_s4 + $0x30] sm:$0xff]  ;;  %v187_v61 = vld [vmem:[%s1182_s4 + $0x38] sm:$0xff]  ;;  %v566_v62 = vpack.c.bf16 %v86_v56, %v84_v55  ;;  %v83_v63 = vld [vmem:[%s1180_s2 + $0xc0] sm:$0xff]  ;;  %vm51_vm0 = vcmask 1040384   ;;  %s496_s23 = sshll.u32 %s645_s22, 4  ;;  %s1155_s23 = int_to_ptr.vmem [resolvable:$true] %s496_s23 }
  0x15   :  { %561 = vmatpush1.bf16.msra.mxu0 %v560_v47  ;;  %v85_v0 = vld [vmem:[%s1180_s2 + $0xd0] sm:$0xff]  ;;  %v88_v1 = vld [vmem:[%s1180_s2 + $0xe8] sm:$0xff]  ;;  %v90_v2 = vld [vmem:[%s1180_s2 + $0xf8] sm:$0xff]  ;;  %v588_v3 = vpack.c.bf16 %v187_v61, %v186_v60  ;;  %v32_v35 = vshrl.u32 %v31_v34, 7  ;;  %p625_p1 = scmp.lt.s32.totalorder %s1155_s23, %s1155_s23 }
  0x16   :  { %563 = vmatprep.subr.bf16.mxu0 %v562_v52  ;;  %v568_v4 = vpack.c.bf16 %v85_v0, %v83_v63  ;;  %v570_v5 = vpack.c.bf16 %v90_v2, %v88_v1  ;;  %v87_v6 = vld [vmem:[%s1180_s2 + $0xe0] sm:$0xff]  ;;  %v89_v7 = vld [vmem:[%s1180_s2 + $0xf0] sm:$0xff]  ;;  %v205_v11 = vld [vmem:[%s1182_s4 + $0xc8] sm:$0xff] }
  0x17   :  { %585 = vmatpush3.bf16.msra.mxu1 %v584_v57  ;;  %v572_v8 = vpack.c.bf16 %v89_v7, %v87_v6  ;;  %v58_v9 = vld [vmem:[%s1179_s1] sm:$0x1]  ;;  %v189_v14 = vld [vmem:[%s1182_s4 + $0x48] sm:$0xff]  ;;  %v206_v16 = vld [vmem:[%s1182_s4 + $0xd0] sm:$0xff]  ;;  %v33_v36 = vsub.s32 0, %v32_v35  ;;  %v37_v39 = vsub.s32 1, %v32_v35 }
  0x18   :  { %587 = vmatprep.subr.bf16.mxu1 %v586_v59  ;;  %v204_v10 = vld [vmem:[%s1182_s4 + $0xc0] sm:$0xff]  ;;  %v207_v17 = vld [vmem:[%s1182_s4 + $0xd8] sm:$0xff]  ;;  %v190_v19 = vld [vmem:[%s1182_s4 + $0x50] sm:$0xff] }
  0x19   :  { %565 = vmatpush1.bf16.msra.mxu0 %v564_v58  ;;  %v590_v12 = vpack.c.bf16 %v205_v11, %v204_v10  ;;  %v188_v13 = vld [vmem:[%s1182_s4 + $0x40] sm:$0xff]  ;;  %v594_v18 = vpack.c.bf16 %v207_v17, %v206_v16  ;;  %v191_v20 = vld [vmem:[%s1182_s4 + $0x58] sm:$0xff]  ;;  %v209_v23 = vld [vmem:[%s1182_s4 + $0xe8] sm:$0xff] }
  0x1a   :  { %567 = vmatprep.subr.bf16.mxu0 %v566_v62  ;;  %v592_v15 = vpack.c.bf16 %v189_v14, %v188_v13  ;;  %v596_v21 = vpack.c.bf16 %v191_v20, %v190_v19  ;;  %v208_v22 = vld [vmem:[%s1182_s4 + $0xe0] sm:$0xff]  ;;  %v193_v26 = vld [vmem:[%s1182_s4 + $0x68] sm:$0xff]  ;;  %v210_v27 = vld [vmem:[%s1182_s4 + $0xf0] sm:$0xff] }
  0x1b   :  { %589 = vmatpush3.bf16.msra.mxu1 %v588_v3  ;;  %v192_v24 = vld [vmem:[%s1182_s4 + $0x60] sm:$0xff]  ;;  %v598_v25 = vpack.c.bf16 %v209_v23, %v208_v22  ;;  %v211_v28 = vld [vmem:[%s1182_s4 + $0xf8] sm:$0xff]  ;;  %v194_v31 = vld [vmem:[%s1182_s4 + $0x70] sm:$0xff] }
  0x1c   :  { %591 = vmatprep.subr.bf16.mxu1 %v590_v12  ;;  %v600_v29 = vpack.c.bf16 %v193_v26, %v192_v24  ;;  %v602_v30 = vpack.c.bf16 %v211_v28, %v210_v27  ;;  %v195_v32 = vld [vmem:[%s1182_s4 + $0x78] sm:$0xff]  ;;  %v27_v37 = vld [vmem:[%s1178_s0] sm:$0x3]  ;;  %v28_v38 = vld [vmem:[%s1178_s0 + $0x2] sm:$0x3] }
  0x1d   :  { %569 = vmatpush1.bf16.msra.mxu0 %v568_v4  ;;  %v604_v33 = vpack.c.bf16 %v195_v32, %v194_v31  ;;  %v34_v40 = vrot.slane %v27_v37, %v33_v36  ;;  %v42_v41 = vrot.slane %v28_v38, %v33_v36  ;;  %v38_v42 = vrot.slane %v27_v37, %v37_v39  ;;  %v164_v48 = vld [vmem:[%s1181_s3] sm:$0x3]  ;;  %v296_v12 = vld [vmem:[%s1184_s6 + $0x8] sm:$0xff]  ;;  %v297_v13 = vld [vmem:[%s1184_s6 + $0x10] sm:$0xff] }
  0x1e   :  { %571 = vmatprep.subr.bf16.mxu0 %v570_v5  ;;  %v46_v43 = vrot.slane %v28_v38, %v37_v39  ;;  %v169_v51 = vrot.slane %v164_v48, %v33_v36  ;;  %v173_v53 = vrot.slane %v164_v48, %v37_v39  ;;  %v212_v62 = vld [vmem:[%s1183_s5] sm:$0x1]  ;;  %v298_v14 = vld [vmem:[%s1184_s6 + $0x18] sm:$0xff]  ;;  %v300_v17 = vld [vmem:[%s1184_s6 + $0x28] sm:$0xff] }
  0x1f   :  { %593 = vmatpush3.bf16.msra.mxu1 %v592_v15  ;;  %v52_v44 = vsel %vm51_vm0, %v34_v40, 0.0  ;;  %v53_v45 = vsel %vm51_vm0, %v42_v41, 0.0  ;;  %v55_v46 = vsel %vm51_vm0, %v38_v42, 0.0  ;;  %v295_v11 = vld [vmem:[%s1184_s6] sm:$0xff]  ;;  %v302_v19 = vld [vmem:[%s1184_s6 + $0x38] sm:$0xff]  ;;  %v305_v22 = vld [vmem:[%s1184_s6 + $0x50] sm:$0xff] }
  0x20   :  { %595 = vmatprep.subr.bf16.mxu1 %v594_v18  ;;  %v56_v47 = vsel %vm51_vm0, %v46_v43, 0.0  ;;  %v54_v49 = vadd.f32 %v53_v45, %v52_v44  ;;  %v299_v16 = vld [vmem:[%s1184_s6 + $0x20] sm:$0xff]  ;;  %v301_v18 = vld [vmem:[%s1184_s6 + $0x30] sm:$0xff]  ;;  %v306_v23 = vld [vmem:[%s1184_s6 + $0x58] sm:$0xff] }
  0x21   :  { %573 = vmatpush1.bf16.msra.mxu0 %v572_v8  ;;  %v57_v50 = vadd.f32 %v56_v47, %v55_v46  ;;  %v303_v20 = vld [vmem:[%s1184_s6 + $0x40] sm:$0xff]  ;;  %v308_v26 = vld [vmem:[%s1184_s6 + $0x68] sm:$0xff]  ;;  %v309_v27 = vld [vmem:[%s1184_s6 + $0x70] sm:$0xff] }
  0x22   :  { %v310_v28 = vld [vmem:[%s1184_s6 + $0x78] sm:$0xff]  ;;  %v313_v31 = vld [vmem:[%s1184_s6 + $0x90] sm:$0xff]  ;;  %v316_v34 = vld [vmem:[%s1184_s6 + $0xa8] sm:$0xff] }
  0x23   :  { %597 = vmatpush3.bf16.msra.mxu1 %v596_v21  ;;  %v304_v21 = vld [vmem:[%s1184_s6 + $0x48] sm:$0xff]  ;;  %v314_v32 = vld [vmem:[%s1184_s6 + $0x98] sm:$0xff]  ;;  %v317_v35 = vld [vmem:[%s1184_s6 + $0xb0] sm:$0xff] }
  0x24   :  { %156 = vmatmul.mubr.f32.vlgmr.msra.gmra.mrb[0].mxu0 %v58_v9  ;;  %599 = vmatprep.subr.bf16.mxu1 %v598_v25  ;;  %v307_v25 = vld [vmem:[%s1184_s6 + $0x60] sm:$0xff]  ;;  %v320_v42 = vld [vmem:[%s1184_s6 + $0xc8] sm:$0xff]  ;;  %v321_v43 = vld [vmem:[%s1184_s6 + $0xd0] sm:$0xff] }
  0x25   :  { %v319_v41 = vld [vmem:[%s1184_s6 + $0xc0] sm:$0xff]  ;;  %v322_v44 = vld [vmem:[%s1184_s6 + $0xd8] sm:$0xff] }
  0x27   :  { %601 = vmatpush3.bf16.msra.mxu1 %v600_v29  ;;  %v311_v29 = vld [vmem:[%s1184_s6 + $0x80] sm:$0xff] }
  0x28   :  { %603 = vmatprep.subr.bf16.mxu1 %v602_v30  ;;  %v312_v30 = vld [vmem:[%s1184_s6 + $0x88] sm:$0xff] }
  0x2b   :  { %605 = vmatpush3.bf16.msra.mxu1 %v604_v33  ;;  %v315_v33 = vld [vmem:[%s1184_s6 + $0xa0] sm:$0xff] }
  0xf7   :  { %v157_v52 = vpop.f32.mrb[0].mxu0 }
  0xf8   :  { %v162_v54 = vadd.f32 %v157_v52, %v54_v49  ;;  %v159_v55 = vpop.f32.mrb[1].mxu0  ;;  %v323_v49 = vld [vmem:[%s1184_s6 + $0xe0] sm:$0xff]  ;;  %v326_v52 = vld [vmem:[%s1184_s6 + $0xf8] sm:$0xff] }
  0xf9   :  { %v163_v56 = vadd.f32 %v159_v55, %v57_v50  ;;  %v324_v50 = vld [vmem:[%s1184_s6 + $0xe8] sm:$0xff] }
  0xfa   :  { %v176_v57 = vadd.f32 %v169_v51, %v162_v54  ;;  %v325_v51 = vld [vmem:[%s1184_s6 + $0xf0] sm:$0xff] }
  0xfb   :  { %v177_v58 = vadd.f32 %v173_v53, %v163_v56 }
  0xfd   :  { %610 = vtanh.f32 %v177_v58  ;;  %v328_v58 = vld [vmem:[%s1184_s6 + $0x108] sm:$0xff] }
  0xfe   :  { %612 = vtanh.f32 %v176_v57  ;;  %v327_v57 = vld [vmem:[%s1184_s6 + $0x100] sm:$0xff] }
 0x107   :  { %v611_v59 = vpop.eup %610 }
 0x108   :  { %v613_v60 = vpop.eup %612  ;;  %277 = vmatprep.mubr.f32.mxu1 %v611_v59  ;;  %v329_v59 = vld [vmem:[%s1184_s6 + $0x110] sm:$0xff] }
 0x109   :  { %278 = vmatmul.mubr.f32.vlgmr.msra.gmra.mrb[0].mxu1 %v613_v60  ;;  %v330_v60 = vld [vmem:[%s1184_s6 + $0x118] sm:$0xff] }
 0x1dc   :  { %v539_v61 = vpop.f32.mrb[0].mxu1 }
 0x1dd   :  { %v540_v63 = vpop.f32.mrb[1].mxu1 }
 0x1de   :  { %v541_v0 = vadd.f32 %v540_v63, %v539_v61 }
 0x1e0   :  { %v280_v1 = vadd.f32 %v541_v0, %v212_v62 }
 0x1e2   :  { %614 = vtanh.f32 %v280_v1  ;;  %v331_v1 = vld [vmem:[%s1184_s6 + $0x120] sm:$0xff] }
 0x1ec   :  { %v615_v2 = vpop.eup %614 }
 0x1ed   :  { %v284_v3 = vsel %vm51_vm0, %v615_v2, -inf }
 0x1ee   :  { %285 = vmax.xlane.f32.xlu0 %v284_v3  ;;  %v333_v3 = vld [vmem:[%s1184_s6 + $0x130] sm:$0xff] }
 0x27b   :  { %v286_v4 = vpop.xlane.xlu0 %285 }
 0x27c   :  { %v287_v5 = vsub.f32 %v615_v2, %v286_v4  ;;  %v332_v2 = vld [vmem:[%s1184_s6 + $0x128] sm:$0xff]  ;;  %v334_v4 = vld [vmem:[%s1184_s6 + $0x138] sm:$0xff] }
 0x27e   :  { %v288_v6 = vmul.f32 1.442695, %v287_v5 }
 0x280   :  { %616 = vpow2.f32 %v288_v6 }
 0x28a   :  { %v617_v7 = vpop.eup %616 }
 0x28b   :  { %v290_v8 = vsel %vm51_vm0, %v617_v7, 0.0 }
 0x28c   :  { %291 = vadd.xlane.f32.xlu0 %v290_v8 }
 0x319   :  { %v292_v9 = vpop.xlane.xlu0 %291 }
 0x31a   :  { %618 = vrcp.f32 %v292_v9  ;;  %v335_v9 = vld [vmem:[%s1184_s6 + $0x140] sm:$0xff] }
 0x324   :  { %v619_v10 = vpop.eup %618 }
 0x325   :  { %v294_v15 = vmul.f32 %v619_v10, %v617_v7  ;;  %v336_v10 = vld [vmem:[%s1184_s6 + $0x148] sm:$0xff] }
 0x327   :  { %v937_v24 = vrot.slane %v294_v15, %v33_v36  ;;  %v318_v36 = vld [vmem:[%s1184_s6 + $0xb8] sm:$0xff] }
 0x329   :  { %v363_v37 = vmul.f32 %v937_v24, %v295_v11  ;;  %v364_v38 = vmul.f32 %v937_v24, %v296_v12  ;;  %v365_v39 = vmul.f32 %v937_v24, %v297_v13  ;;  %v366_v40 = vmul.f32 %v937_v24, %v298_v14  ;;  %v337_v11 = vld [vmem:[%s1184_s6 + $0x150] sm:$0xff] }
 0x32a   :  { %v367_v45 = vmul.f32 %v937_v24, %v299_v16  ;;  %v368_v46 = vmul.f32 %v937_v24, %v300_v17  ;;  %v369_v47 = vmul.f32 %v937_v24, %v301_v18  ;;  %v370_v48 = vmul.f32 %v937_v24, %v302_v19  ;;  %v338_v16 = vld [vmem:[%s1184_s6 + $0x158] sm:$0xff]  ;;  %v339_v17 = vld [vmem:[%s1184_s6 + $0x160] sm:$0xff]  ;;  %v340_v18 = vld [vmem:[%s1184_s6 + $0x168] sm:$0xff] }
 0x32b   :  { %v371_v53 = vmul.f32 %v937_v24, %v303_v20  ;;  %v372_v54 = vmul.f32 %v937_v24, %v304_v21  ;;  %v373_v55 = vmul.f32 %v937_v24, %v305_v22  ;;  %v374_v56 = vmul.f32 %v937_v24, %v306_v23  ;;  %427 = vst [vmem:[#allocation2] sm:$0xff] %v363_v37  ;;  %v341_v23 = vld [vmem:[%s1184_s6 + $0x170] sm:$0xff] }
 0x32c   :  { %428 = vst [vmem:[#allocation2 + $0x8] sm:$0xff] %v364_v38  ;;  %429 = vst [vmem:[#allocation2 + $0x10] sm:$0xff] %v365_v39  ;;  %v375_v61 = vmul.f32 %v937_v24, %v307_v25  ;;  %v376_v62 = vmul.f32 %v937_v24, %v308_v26  ;;  %v377_v63 = vmul.f32 %v937_v24, %v309_v27  ;;  %v342_v25 = vld [vmem:[%s1184_s6 + $0x178] sm:$0xff]  ;;  %v343_v26 = vld [vmem:[%s1184_s6 + $0x180] sm:$0xff] }
 0x32d   :  { %430 = vst [vmem:[#allocation2 + $0x18] sm:$0xff] %v366_v40  ;;  %v378_v0 = vmul.f32 %v937_v24, %v310_v28  ;;  %431 = vst [vmem:[#allocation2 + $0x20] sm:$0xff] %v367_v45  ;;  %v379_v5 = vmul.f32 %v937_v24, %v311_v29  ;;  %v380_v6 = vmul.f32 %v937_v24, %v312_v30  ;;  %v347_v38 = vld [vmem:[%s1184_s6 + $0x1a0] sm:$0xff]  ;;  %v348_v39 = vld [vmem:[%s1184_s6 + $0x1a8] sm:$0xff] }
 0x32e   :  { %432 = vst [vmem:[#allocation2 + $0x28] sm:$0xff] %v368_v46  ;;  %433 = vst [vmem:[#allocation2 + $0x30] sm:$0xff] %v369_v47  ;;  %v381_v7 = vmul.f32 %v937_v24, %v313_v31  ;;  %v382_v8 = vmul.f32 %v937_v24, %v314_v32  ;;  %v383_v12 = vmul.f32 %v937_v24, %v315_v33  ;;  %v344_v31 = vld [vmem:[%s1184_s6 + $0x188] sm:$0xff]  ;;  %v345_v32 = vld [vmem:[%s1184_s6 + $0x190] sm:$0xff] }
 0x32f   :  { %434 = vst [vmem:[#allocation2 + $0x38] sm:$0xff] %v370_v48  ;;  %435 = vst [vmem:[#allocation2 + $0x40] sm:$0xff] %v371_v53  ;;  %v384_v13 = vmul.f32 %v937_v24, %v316_v34  ;;  %v385_v14 = vmul.f32 %v937_v24, %v317_v35  ;;  %v386_v15 = vmul.f32 %v937_v24, %v318_v36  ;;  %v346_v33 = vld [vmem:[%s1184_s6 + $0x198] sm:$0xff]  ;;  %v349_v40 = vld [vmem:[%s1184_s6 + $0x1b0] sm:$0xff] }
 0x330   :  { %436 = vst [vmem:[#allocation2 + $0x48] sm:$0xff] %v372_v54  ;;  %437 = vst [vmem:[#allocation2 + $0x50] sm:$0xff] %v373_v55  ;;  %v387_v19 = vmul.f32 %v937_v24, %v319_v41  ;;  %v388_v20 = vmul.f32 %v937_v24, %v320_v42  ;;  %v389_v21 = vmul.f32 %v937_v24, %v321_v43  ;;  %v350_v45 = vld [vmem:[%s1184_s6 + $0x1b8] sm:$0xff]  ;;  %v351_v46 = vld [vmem:[%s1184_s6 + $0x1c0] sm:$0xff] }
 0x331   :  { %438 = vst [vmem:[#allocation2 + $0x58] sm:$0xff] %v374_v56  ;;  %439 = vst [vmem:[#allocation2 + $0x60] sm:$0xff] %v375_v61  ;;  %v390_v22 = vmul.f32 %v937_v24, %v322_v44  ;;  %v391_v27 = vmul.f32 %v937_v24, %v323_v49  ;;  %v392_v28 = vmul.f32 %v937_v24, %v324_v50  ;;  %v352_v47 = vld [vmem:[%s1184_s6 + $0x1c8] sm:$0xff]  ;;  %v354_v53 = vld [vmem:[%s1184_s6 + $0x1d8] sm:$0xff] }
 0x332   :  { %440 = vst [vmem:[#allocation2 + $0x68] sm:$0xff] %v376_v62  ;;  %441 = vst [vmem:[#allocation2 + $0x70] sm:$0xff] %v377_v63  ;;  %v393_v29 = vmul.f32 %v937_v24, %v325_v51  ;;  %v394_v30 = vmul.f32 %v937_v24, %v326_v52  ;;  %v395_v34 = vmul.f32 %v937_v24, %v327_v57  ;;  %v353_v52 = vld [vmem:[%s1184_s6 + $0x1d0] sm:$0xff]  ;;  %v355_v54 = vld [vmem:[%s1184_s6 + $0x1e0] sm:$0xff] }
 0x333   :  { %442 = vst [vmem:[#allocation2 + $0x78] sm:$0xff] %v378_v0  ;;  %443 = vst [vmem:[#allocation2 + $0x80] sm:$0xff] %v379_v5  ;;  %v396_v35 = vmul.f32 %v937_v24, %v328_v58  ;;  %v397_v36 = vmul.f32 %v937_v24, %v329_v59  ;;  %v398_v37 = vmul.f32 %v937_v24, %v330_v60  ;;  %v356_v59 = vld [vmem:[%s1184_s6 + $0x1e8] sm:$0xff]  ;;  %v357_v60 = vld [vmem:[%s1184_s6 + $0x1f0] sm:$0xff] }
 0x334   :  { %444 = vst [vmem:[#allocation2 + $0x88] sm:$0xff] %v380_v6  ;;  %445 = vst [vmem:[#allocation2 + $0x90] sm:$0xff] %v381_v7  ;;  %v399_v41 = vmul.f32 %v937_v24, %v331_v1  ;;  %v400_v42 = vmul.f32 %v937_v24, %v332_v2  ;;  %v401_v43 = vmul.f32 %v937_v24, %v333_v3  ;;  %v358_v61 = vld [vmem:[%s1184_s6 + $0x1f8] sm:$0xff]  ;;  %s620_s6 = scalar_lea.vmem %s1155_s23, 8192 }
 0x335   :  { %446 = vst [vmem:[#allocation2 + $0x98] sm:$0xff] %v382_v8  ;;  %447 = vst [vmem:[#allocation2 + $0xa0] sm:$0xff] %v383_v12  ;;  %v402_v44 = vmul.f32 %v937_v24, %v334_v4  ;;  %v403_v48 = vmul.f32 %v937_v24, %v335_v9  ;;  %v404_v49 = vmul.f32 %v937_v24, %v336_v10  ;;  %p621_p0 = scmp.ne.s32.totalorder %s1155_s23, %s620_s6  ;;  %p626_p2 = scmp.lt.s32.totalorder %s620_s6, %s620_s6 }
 0x336   :  { %448 = vst [vmem:[#allocation2 + $0xa8] sm:$0xff] %v384_v13  ;;  %449 = vst [vmem:[#allocation2 + $0xb0] sm:$0xff] %v385_v14  ;;  %v405_v50 = vmul.f32 %v937_v24, %v337_v11  ;;  %v406_v51 = vmul.f32 %v937_v24, %v338_v16  ;;  %v407_v55 = vmul.f32 %v937_v24, %v339_v17 }
 0x337   :  { %450 = vst [vmem:[#allocation2 + $0xb8] sm:$0xff] %v386_v15  ;;  %451 = vst [vmem:[#allocation2 + $0xc0] sm:$0xff] %v387_v19  ;;  %v408_v56 = vmul.f32 %v937_v24, %v340_v18  ;;  %v409_v57 = vmul.f32 %v937_v24, %v341_v23  ;;  %v410_v58 = vmul.f32 %v937_v24, %v342_v25  ;;  %p627_p3 = por %p626_p2, %p625_p1 }
 0x338   :  { %452 = vst [vmem:[#allocation2 + $0xc8] sm:$0xff] %v388_v20  ;;  %453 = vst [vmem:[#allocation2 + $0xd0] sm:$0xff] %v389_v21  ;;  %v411_v62 = vmul.f32 %v937_v24, %v343_v26  ;;  %v412_v63 = vmul.f32 %v937_v24, %v344_v31  ;;  %v413_v0 = vmul.f32 %v937_v24, %v345_v32 }
 0x339   :  { %454 = vst [vmem:[#allocation2 + $0xd8] sm:$0xff] %v390_v22  ;;  %455 = vst [vmem:[#allocation2 + $0xe0] sm:$0xff] %v391_v27  ;;  %v414_v1 = vmul.f32 %v937_v24, %v346_v33  ;;  %v415_v2 = vmul.f32 %v937_v24, %v347_v38  ;;  %v416_v3 = vmul.f32 %v937_v24, %v348_v39  ;;  %p628_p4 = pnand %p627_p3, %p621_p0 }
 0x33a   :  { %456 = vst [vmem:[#allocation2 + $0xe8] sm:$0xff] %v392_v28  ;;  %457 = vst [vmem:[#allocation2 + $0xf0] sm:$0xff] %v393_v29  ;;  %v417_v4 = vmul.f32 %v937_v24, %v349_v40  ;;  %v418_v5 = vmul.f32 %v937_v24, %v350_v45  ;;  %v419_v6 = vmul.f32 %v937_v24, %v351_v46 }
 0x33b   :  { %458 = vst [vmem:[#allocation2 + $0xf8] sm:$0xff] %v394_v30  ;;  %459 = vst [vmem:[#allocation2 + $0x100] sm:$0xff] %v395_v34  ;;  %v420_v7 = vmul.f32 %v937_v24, %v352_v47  ;;  %v421_v8 = vmul.f32 %v937_v24, %v353_v52  ;;  %v422_v9 = vmul.f32 %v937_v24, %v354_v53 }
 0x33c   :  { %460 = vst [vmem:[#allocation2 + $0x108] sm:$0xff] %v396_v35  ;;  %461 = vst [vmem:[#allocation2 + $0x110] sm:$0xff] %v397_v36  ;;  %v423_v10 = vmul.f32 %v937_v24, %v355_v54  ;;  %v424_v11 = vmul.f32 %v937_v24, %v356_v59  ;;  %v425_v12 = vmul.f32 %v937_v24, %v357_v60 }
 0x33d   :  { %462 = vst [vmem:[#allocation2 + $0x118] sm:$0xff] %v398_v37  ;;  %463 = vst [vmem:[#allocation2 + $0x120] sm:$0xff] %v399_v41  ;;  %v426_v13 = vmul.f32 %v937_v24, %v358_v61 }
 0x33e   :  { %464 = vst [vmem:[#allocation2 + $0x128] sm:$0xff] %v400_v42  ;;  %465 = vst [vmem:[#allocation2 + $0x130] sm:$0xff] %v401_v43 }
 0x33f   :  { %466 = vst [vmem:[#allocation2 + $0x138] sm:$0xff] %v402_v44  ;;  %467 = vst [vmem:[#allocation2 + $0x140] sm:$0xff] %v403_v48 }
 0x340   :  { %468 = vst [vmem:[#allocation2 + $0x148] sm:$0xff] %v404_v49  ;;  %469 = vst [vmem:[#allocation2 + $0x150] sm:$0xff] %v405_v50 }
 0x341   :  { %470 = vst [vmem:[#allocation2 + $0x158] sm:$0xff] %v406_v51  ;;  %471 = vst [vmem:[#allocation2 + $0x160] sm:$0xff] %v407_v55 }
 0x342   :  { %472 = vst [vmem:[#allocation2 + $0x168] sm:$0xff] %v408_v56  ;;  %473 = vst [vmem:[#allocation2 + $0x170] sm:$0xff] %v409_v57 }
 0x343   :  { %474 = vst [vmem:[#allocation2 + $0x178] sm:$0xff] %v410_v58  ;;  %475 = vst [vmem:[#allocation2 + $0x180] sm:$0xff] %v411_v62 }
 0x344   :  { %476 = vst [vmem:[#allocation2 + $0x188] sm:$0xff] %v412_v63  ;;  %477 = vst [vmem:[#allocation2 + $0x190] sm:$0xff] %v413_v0 }
 0x345   :  { %478 = vst [vmem:[#allocation2 + $0x198] sm:$0xff] %v414_v1  ;;  %479 = vst [vmem:[#allocation2 + $0x1a0] sm:$0xff] %v415_v2 }
 0x346   :  { %480 = vst [vmem:[#allocation2 + $0x1a8] sm:$0xff] %v416_v3  ;;  %481 = vst [vmem:[#allocation2 + $0x1b0] sm:$0xff] %v417_v4 }
 0x347   :  { %482 = vst [vmem:[#allocation2 + $0x1b8] sm:$0xff] %v418_v5  ;;  %483 = vst [vmem:[#allocation2 + $0x1c0] sm:$0xff] %v419_v6 }
 0x348   :  { %484 = vst [vmem:[#allocation2 + $0x1c8] sm:$0xff] %v420_v7  ;;  %485 = vst [vmem:[#allocation2 + $0x1d0] sm:$0xff] %v421_v8 }
 0x349   :  { %486 = vst [vmem:[#allocation2 + $0x1d8] sm:$0xff] %v422_v9  ;;  %487 = vst [vmem:[#allocation2 + $0x1e0] sm:$0xff] %v423_v10 }
 0x34a   :  { %488 = vst [vmem:[#allocation2 + $0x1e8] sm:$0xff] %v424_v11  ;;  %489 = vst [vmem:[#allocation2 + $0x1f0] sm:$0xff] %v425_v12 }
 0x34b   :  { %490 = vst [vmem:[#allocation2 + $0x1f8] sm:$0xff] %v426_v13 }
 0x34c   :  { %631 = shalt.err (!%p628_p4)
}
 0x34d   :  { %s632_s9 = scalar_lea.hbm %s1185_s7, 8192 }
 0x34e   :  { %p633_p5 = scmp.ne.s32.totalorder %s1185_s7, %s632_s9  ;;  %p636_p6 = scmp.lt.u32.totalorder %s632_s9, %s1185_s7 }
 0x350   :  { %p638_p7 = pnand %p636_p6, %p633_p5 }
 0x352   :  { %641 = shalt.err (!%p638_p7)
}
 0x353   :  { %s646_s13 = smov 128   ;;  %s647_s1 = smov 8  }
 0x354   :  { %502 = dma.vmem_to_hbm [thread:$0]  %s1155_s23, 8192, %s1185_s7, [#allocation3], %s646_s13, %s646_s13, %s647_s1  }
 0x355   :  { %642 = dma.done.wait [#allocation3], 8192  }
 0x356   :  { %643 = vsyncadd [#allocation3], 4294959104 }
 0x357   :  { %506 = vsyncpa [#allocation3], 1 }

// kernel: attention_model_forward.2
= control target key start
LH: loop header
LB: loop body
LE: loop exit
PB: predicated region body
PF: predicated region fallthrough
CT: control target
= control target key end

     0   :  { %7 = vsyncpa [#allocation4], 0  ;;  %s24650_s0 = inlined_call_operand.vmem [shape: bf16[1,65536], index: 0, kind: input, shape index: {}]   ;;  %s24651_s1 = inlined_call_operand.hbm [shape: bf16[65536,256], index: 1, kind: input, shape index: {}]   ;;  %s24652_s2 = inlined_call_operand.vmem [shape: f32[2,1,256], index: 2, kind: output, shape index: {}]  }
   0x1   :  { %9 = vsyncpa [#allocation4 + $0x1], 0  ;;  %s21815_s9 = smov 0   ;;  %s21817_s10 = smov 0  }
   0x2   :  { %s21819_s11 = smov 0   ;;  %s21821_s12 = smov 0  }
   0x3   :  { %s21823_s13 = smov 0   ;;  %s21825_s14 = smov 0  }
   0x4   :  { %s21827_s15 = smov 0   ;;  %s21829_s16 = smov 0  }
   0x5 LB: > { %s16200_s17 = sadd.s32 4294967295, %s21793_s16   ;;  %s24_s18 = sadd.s32 1, %s21785_s14  ;;  %s21793_s16 = sphi %s21829_s16, %s15_s16   ;;  %s21789_s15 = sphi %s21827_s15, %s24662_s15   ;;  %s21785_s14 = sphi %s21825_s14, %s24661_s14   ;;  %s21781_s13 = sphi %s21823_s13, %s24660_s13   ;;  %s21777_s12 = sphi %s21821_s12, %s24659_s12   ;;  %s21773_s11 = sphi %s21819_s11, %s24658_s11   ;;  %s21769_s10 = sphi %s21817_s10, %s24657_s10   ;;  %s21765_s9 = sphi %s21815_s9, %s24656_s9  }
   0x6   : > { %p25_p0 = scmp.ge.s32.totalorder %s24_s18, 2  ;;  %s27_s19 = sadd.s32 1, %s21789_s15 }
   0x7   : > { %s16204_s20 = sshll.u32 %s21789_s15, 1  ;;  %s68_s21 = sadd.s32 1, %s21773_s11 }
   0x8   : > { %s24664_s18 = smov (%p25_p0, %s24_s18), 0  ;;  %s24666_s19 = smov (!%p25_p0, %s27_s19), %s21789_s15 }
   0x9   : > { %s62_s22 = sadd.s32 %s21785_s14, %s16204_s20  ;;  %p75_p1 = scmp.ne.s32.totalorder %s21773_s11, %s21769_s10 }
   0xa   : > { %p29_p2 = scmp.ge.s32.totalorder %s24666_s19, 2  ;;  %p76_p3 = scmp.eq.s32.totalorder %s21793_s16, 0 }
   0xb   : > { %p81_p4 = scmp.ne.s32.totalorder %s21769_s10, %s21765_s9  ;;  %p82_p5 = scmp.eq.s32.totalorder %s16200_s17, 0 }
   0xc   : > { %s24668_s19 = smov (%p29_p2, %s24666_s19), 0  ;;  %p21868_p6 = por %p76_p3, %p75_p1 }
   0xd   : > { %p21872_p7 = por %p82_p5, %p81_p4  ;;  %s16205_s25 = sshll.u32 %s24668_s19, 1 }
   0xe   : > { %s64_s26 = sadd.s32 %s16205_s25, %s24664_s18  ;;  %p18528_p8 = scmp.lt.s32.totalorder %s21793_s16, 4 }
   0xf   : > { %s65_s27 = ssub.s32 %s62_s22, %s64_s26  ;;  %s143_s28 = sand.u32 1, %s21773_s11  }
  0x10   : > { %p66_p9 = scmp.eq.s32.totalorder %s65_s27, 0  ;;  %s16208_s29 = sshll.u32 %s143_s28, 14 }
  0x11   : > { %s18271_s30 = sshll.u32 %s62_s22, 18  ;;  %s147_s7 = scalar_lea.vmem [#allocation3], %s16208_s29 }
  0x12   : > { %s21881_s3 = scalar_select %p66_p9, %s21773_s11, %s68_s21  }
  0x13   : > { %s21886_s6 = scalar_lea.hbm %s24651_s1, %s18271_s30  ;;  %s157_s8 = sshll.u32 %s147_s7, 4  ;;  %s21894_s8 = int_to_ptr.vmem [resolvable:$true] %s157_s8 }
  0x14   : > { %p21890_p10 = pnand %p18528_p8, %p21868_p6  ;;  %s21896_s17 = scalar_lea.sflag [#allocation4], %s143_s28 }
  0x15   : > { %s21697_s20 = scalar_lea.hbm %s21886_s6, 262144  ;;  %s21702_s23 = scalar_lea.hbm %s24651_s1, 1048576 }
  0x16   : > { %p21698_p11 = scmp.ne.s32.totalorder %s21886_s6, %s21697_s20  ;;  %p21699_p12 = pneg %p21890_p10 }
  0x17   : > { %p21703_p1 = scmp.lt.u32.totalorder %s21886_s6, %s24651_s1  ;;  %p21704_p2 = scmp.lt.u32.totalorder %s21702_s23, %s21697_s20 }
  0x18   : > { %p21700_p13 = pnand %p21699_p12, %p21698_p11  ;;  %p21706_p4 = scmp.lt.u32.totalorder %s21697_s20, %s21886_s6 }
  0x19   : > { %p21705_p3 = por %p21704_p2, %p21703_p1 }
  0x1a   : > { %p21701_p0 = pneg %p21700_p13 }
  0x1b   : > { %p21707_p5 = por %p21706_p4, %p21705_p3 }
  0x1d   : > { %p21708_p6 = pnand %p21707_p5, %p21701_p0 }
  0x1f   : > { %21711 = shalt.err (!%p21708_p6)
}
  0x20   : > { %s21712_s27 = scalar_lea.vmem %s21894_s8, 262144  ;;  %s21795_s28 = smov [#allocation3]  }
  0x21   : > { %p21713_p8 = scmp.ne.s32.totalorder %s21894_s8, %s21712_s27  ;;  %s21717_s29 = sshll.u32 %s21795_s28, 4  ;;  %s21718_s29 = int_to_ptr.vmem [resolvable:$false] %s21717_s29 }
  0x22   : > { %s21719_s30 = scalar_lea.vmem %s21718_s29, 524288  ;;  %p21720_p13 = scmp.lt.s32.totalorder %s21894_s8, %s21718_s29 }
  0x23   : > { %p21715_p9 = pnand %p21713_p8, %p21699_p12  ;;  %p21721_p1 = scmp.lt.s32.totalorder %s21719_s30, %s21712_s27 }
  0x25   : > { %p21716_p11 = pneg %p21715_p9  ;;  %p21722_p2 = por %p21721_p1, %p21720_p13 }
  0x27   : > { %p21723_p3 = pnand %p21722_p2, %p21716_p11 }
  0x29   : > { %21726 = shalt.err (!%p21723_p3)
}
  0x2a   : > { %s21796_s4 = smov 128   ;;  %s21797_s5 = smov 8  }
  0x2b   : > { %18527 = dma.hbm_to_vmem [thread:$0]  (!%p21890_p10), %s21886_s6, 262144, %s21894_s8, %s21896_s17, %s21796_s4, %s21796_s4, %s21797_s5  }
  0x2c   : > { %p16213_p12 = scmp.ge.s32.totalorder %s21793_s16, 1  ;;  %p165_p0 = scmp.lt.s32.totalorder %s21793_s16, 5 }
  0x2e   : > { %p166_p4 = pnand %p16213_p12, %p165_p0 }
  0x2f   : > { %s171_s7 = sand.u32 (!%p166_p4), 1, %s21769_s10  }
  0x30   : > { %169 = sbr.rel (%p166_p4) target bundleno = 2349 (0x92d), region = 28  ;;  %s16214_s20 = sshll.u32 (!%p166_p4), %s171_s7, 14 }
  0x31   : > { %s172_s21 = scalar_lea.sflag (!%p166_p4), [#allocation4], %s171_s7  ;;  %s21927_s22 = scalar_lea.vmem (!%p166_p4), [#allocation3], %s16214_s20 }
  0x37   : > { %21760 = dma.done.wait (%p21872_p7), %s172_s21, 262144  }
  0x38   : > { %21762 = vsyncadd (%p21872_p7), %s172_s21, 4294705152  ;;  %s16215_s6 = sshll.u32 %s21781_s13, 1  ;;  %p213_p10 = scmp.lt.s32.totalorder %s21781_s13, 1 }
  0x39   : > { %s202_s8 = sadd.s32 %s21777_s12, %s16215_s6  ;;  %p16218_p7 = scmp.ne.s32.totalorder %s21777_s12, 0 }
  0x3a   : > { %s16216_s9 = sshll.u32 %s202_s8, 7  ;;  %s24670_s13 = smov (!%p213_p10, %s21781_s13), 1  ;;  %v221_v0 = vlaneseq (!%p16218_p7)  ;;  %v21798_v1 = vmov (!%p16218_p7), 0.0  }
  0x3b   : > { %p204_p5 = scmp.lt.s32.totalorder %s16216_s9, 511  ;;  %s16217_s17 = sshll.u32 %s24670_s13, 1 }
  0x3c   : > { %s21945_s28 = scalar_lea.vmem %s24652_s2, %s16217_s17  ;;  %220 = sbr.rel (%p16218_p7) target bundleno = 67 (0x43), region = 36  ;;  %vm223_vm0 = vcmp.lt.s32.totalorder (!%p16218_p7), %v221_v0, 256 }
  0x3d   : > { %s24672_s9 = smov (!%p204_p5, %s16216_s9), 511  ;;  %225 = vst.msk [vmem:[#allocation2] sm:$0x3] (!%p16218_p7), %vm223_vm0, %v21798_v1 }
  0x3e   : > { %s21940_s26 = scalar_lea.vmem %s24650_s0, %s24672_s9 }
  0x43 PF: > { %v18597_v2 = vld [vmem:[%s21927_s22 + $0x4] ss:$8 sps:$4 sm:$0xff]   ;;  %v18601_v4 = vld [vmem:[%s21927_s22] ss:$8 sps:$4 sm:$0xff]   ;;  %v18603_v6 = vld [vmem:[%s21927_s22 + $0x14] ss:$8 sps:$4 sm:$0xff]   ;;  %v2311_v40 = vlaneseq }
  0x44   : > { %v18599_v3 = vld [vmem:[%s21927_s22 + $0x2004] ss:$8 sps:$4 sm:$0xff]   ;;  %13459 = vmatprep.subr.bf16.mxu1 %v18597_v2  ;;  %v18602_v5 = vld [vmem:[%s21927_s22 + $0x2000] ss:$8 sps:$4 sm:$0xff]   ;;  %v18605_v7 = vld [vmem:[%s21927_s22 + $0x2014] ss:$8 sps:$4 sm:$0xff]  }
  0x45   : > { %14771 = vmatprep.subr.bf16.mxu0 %v18599_v3  ;;  %13460 = vmatpush1.bf16.msra.mxu1 %v18601_v4  ;;  %v18607_v8 = vld [vmem:[%s21927_s22 + $0x10] ss:$8 sps:$4 sm:$0xff]   ;;  %v18609_v10 = vld [vmem:[%s21927_s22 + $0x24] ss:$8 sps:$4 sm:$0xff]   ;;  %v18613_v12 = vld [vmem:[%s21927_s22 + $0x20] ss:$8 sps:$4 sm:$0xff]  }
  0x46   : > { %14772 = vmatpush1.bf16.msra.mxu0 %v18602_v5  ;;  %13461 = vmatprep.subr.bf16.mxu1 %v18603_v6  ;;  %v18608_v9 = vld [vmem:[%s21927_s22 + $0x2010] ss:$8 sps:$4 sm:$0xff]   ;;  %v18611_v11 = vld [vmem:[%s21927_s22 + $0x2024] ss:$8 sps:$4 sm:$0xff]   ;;  %v18614_v13 = vld [vmem:[%s21927_s22 + $0x2020] ss:$8 sps:$4 sm:$0xff]  }
  0x47   : > { %14773 = vmatprep.subr.bf16.mxu0 %v18605_v7  ;;  %v18615_v14 = vld [vmem:[%s21927_s22 + $0x34] ss:$8 sps:$4 sm:$0xff]   ;;  %v18619_v16 = vld [vmem:[%s21927_s22 + $0x30] ss:$8 sps:$4 sm:$0xff]   ;;  %v18621_v18 = vld [vmem:[%s21927_s22 + $0x44] ss:$8 sps:$4 sm:$0xff]  }
  0x48   : > { %v18617_v15 = vld [vmem:[%s21927_s22 + $0x2034] ss:$8 sps:$4 sm:$0xff]   ;;  %v18620_v17 = vld [vmem:[%s21927_s22 + $0x2030] ss:$8 sps:$4 sm:$0xff]   ;;  %v18623_v19 = vld [vmem:[%s21927_s22 + $0x2044] ss:$8 sps:$4 sm:$0xff]  }
  0x49   : > { %13462 = vmatpush1.bf16.msra.mxu1 %v18607_v8  ;;  %v18625_v20 = vld [vmem:[%s21927_s22 + $0x40] ss:$8 sps:$4 sm:$0xff]   ;;  %v18627_v22 = vld [vmem:[%s21927_s22 + $0x54] ss:$8 sps:$4 sm:$0xff]   ;;  %v18631_v24 = vld [vmem:[%s21927_s22 + $0x50] ss:$8 sps:$4 sm:$0xff]  }
  0x4a   : > { %14774 = vmatpush1.bf16.msra.mxu0 %v18608_v9  ;;  %13463 = vmatprep.subr.bf16.mxu1 %v18609_v10  ;;  %v18626_v21 = vld [vmem:[%s21927_s22 + $0x2040] ss:$8 sps:$4 sm:$0xff]   ;;  %v18629_v23 = vld [vmem:[%s21927_s22 + $0x2054] ss:$8 sps:$4 sm:$0xff]   ;;  %v18632_v25 = vld [vmem:[%s21927_s22 + $0x2050] ss:$8 sps:$4 sm:$0xff]  }
  0x4b   : > { %14775 = vmatprep.subr.bf16.mxu0 %v18611_v11  ;;  %v18633_v26 = vld [vmem:[%s21927_s22 + $0x64] ss:$8 sps:$4 sm:$0xff]   ;;  %v18637_v28 = vld [vmem:[%s21927_s22 + $0x60] ss:$8 sps:$4 sm:$0xff]   ;;  %v18639_v30 = vld [vmem:[%s21927_s22 + $0x74] ss:$8 sps:$4 sm:$0xff]  }
  0x4c   : > { %v18635_v27 = vld [vmem:[%s21927_s22 + $0x2064] ss:$8 sps:$4 sm:$0xff]   ;;  %v18638_v29 = vld [vmem:[%s21927_s22 + $0x2060] ss:$8 sps:$4 sm:$0xff]   ;;  %v18641_v31 = vld [vmem:[%s21927_s22 + $0x2074] ss:$8 sps:$4 sm:$0xff]  }
  0x4d   : > { %13464 = vmatpush1.bf16.msra.mxu1 %v18613_v12  ;;  %v18643_v32 = vld [vmem:[%s21927_s22 + $0x70] ss:$8 sps:$4 sm:$0xff]   ;;  %v18645_v34 = vld [vmem:[%s21927_s22 + $0x84] ss:$8 sps:$4 sm:$0xff]   ;;  %v18649_v36 = vld [vmem:[%s21927_s22 + $0x80] ss:$8 sps:$4 sm:$0xff]  }
  0x4e   : > { %14776 = vmatpush1.bf16.msra.mxu0 %v18614_v13  ;;  %13465 = vmatprep.subr.bf16.mxu1 %v18615_v14  ;;  %v18644_v33 = vld [vmem:[%s21927_s22 + $0x2070] ss:$8 sps:$4 sm:$0xff]   ;;  %v18647_v35 = vld [vmem:[%s21927_s22 + $0x2084] ss:$8 sps:$4 sm:$0xff]   ;;  %v18650_v37 = vld [vmem:[%s21927_s22 + $0x2080] ss:$8 sps:$4 sm:$0xff]  }
  0x4f   : > { %14777 = vmatprep.subr.bf16.mxu0 %v18617_v15  ;;  %v21799_v38 = vmov 1966171168   ;;  %v18651_v41 = vld [vmem:[%s21927_s22 + $0x94] ss:$8 sps:$4 sm:$0xff]   ;;  %v18655_v43 = vld [vmem:[%s21927_s22 + $0x90] ss:$8 sps:$4 sm:$0xff]  }
  0x50   : > { %v2309_v39 = vunpack.c.l.s4 %v21799_v38  ;;  %v18653_v42 = vld [vmem:[%s21927_s22 + $0x2094] ss:$8 sps:$4 sm:$0xff]   ;;  %v2312_v45 = vshrl.u32 %v2311_v40, 7  ;;  %v18656_v46 = vld [vmem:[%s21927_s22 + $0x2090] ss:$8 sps:$4 sm:$0xff]   ;;  %vm16104_vm1 = vcmp.lt.s32.totalorder %v2311_v40, 256 }
  0x51   : > { %13466 = vmatpush1.bf16.msra.mxu1 %v18619_v16  ;;  %v18657_v47 = vld [vmem:[%s21927_s22 + $0xa4] ss:$8 sps:$4 sm:$0xff]   ;;  %v18661_v49 = vld [vmem:[%s21927_s22 + $0xa0] ss:$8 sps:$4 sm:$0xff]   ;;  %v18663_v52 = vld [vmem:[%s21927_s22 + $0xb4] ss:$8 sps:$4 sm:$0xff]  }
  0x52   : > { %14778 = vmatpush1.bf16.msra.mxu0 %v18620_v17  ;;  %13467 = vmatprep.subr.bf16.mxu1 %v18621_v18  ;;  %v2310_v44 = vunpack.c.0.s8 %v2309_v39  ;;  %v18659_v48 = vld [vmem:[%s21927_s22 + $0x20a4] ss:$8 sps:$4 sm:$0xff]   ;;  %v18662_v50 = vld [vmem:[%s21927_s22 + $0x20a0] ss:$8 sps:$4 sm:$0xff]   ;;  %v18665_v53 = vld [vmem:[%s21927_s22 + $0x20b4] ss:$8 sps:$4 sm:$0xff]  }
  0x53   : > { %14779 = vmatprep.subr.bf16.mxu0 %v18623_v19  ;;  %v21998_v54 = vld [vmem:[%s21940_s26] sm:$0xff]  ;;  %v18667_v55 = vld [vmem:[%s21927_s22 + $0xb0] ss:$8 sps:$4 sm:$0xff]   ;;  %p18267_p6 = scmp.ne.s32.totalorder %s21777_s12, 1 }
  0x54   : > { %v21993_v51 = vsub.s32 %v2310_v44, %v2312_v45  ;;  %v18668_v57 = vld [vmem:[%s21927_s22 + $0x20b0] ss:$8 sps:$4 sm:$0xff]   ;;  %v22005_v58 = vld [vmem:[%s21940_s26 + $0x40] sm:$0xff] }
  0x55   : > { %13468 = vmatpush1.bf16.msra.mxu1 %v18625_v20  ;;  %v18669_v59 = vld [vmem:[%s21927_s22 + $0xc4] ss:$8 sps:$4 sm:$0xff]   ;;  %v18673_v1 = vld [vmem:[%s21927_s22 + $0xc0] ss:$8 sps:$4 sm:$0xff]   ;;  %v18675_v3 = vld [vmem:[%s21927_s22 + $0xd4] ss:$8 sps:$4 sm:$0xff]  }
  0x56   : > { %14780 = vmatpush1.bf16.msra.mxu0 %v18626_v21  ;;  %13469 = vmatprep.subr.bf16.mxu1 %v18627_v22  ;;  %v2314_v56 = vrot.slane %v21998_v54, %v21993_v51  ;;  %v18671_v60 = vld [vmem:[%s21927_s22 + $0x20c4] ss:$8 sps:$4 sm:$0xff]   ;;  %v2706_v62 = vrot.slane %v22005_v58, %v21993_v51  ;;  %v18674_v2 = vld [vmem:[%s21927_s22 + $0x20c0] ss:$8 sps:$4 sm:$0xff]   ;;  %v18677_v4 = vld [vmem:[%s21927_s22 + $0x20d4] ss:$8 sps:$4 sm:$0xff]  }
  0x57   : > { %14781 = vmatprep.subr.bf16.mxu0 %v18629_v23  ;;  %v18679_v6 = vld [vmem:[%s21927_s22 + $0xd0] ss:$8 sps:$4 sm:$0xff]   ;;  %v18681_v8 = vld [vmem:[%s21927_s22 + $0xe4] ss:$8 sps:$4 sm:$0xff]   ;;  %v18685_v10 = vld [vmem:[%s21927_s22 + $0xe0] ss:$8 sps:$4 sm:$0xff]  }
  0x58   : > { %v2322_v61 = vcombine.high %v2314_v56, %v2314_v56  ;;  %v2714_v0 = vcombine.high %v2706_v62, %v2706_v62  ;;  %v18680_v7 = vld [vmem:[%s21927_s22 + $0x20d0] ss:$8 sps:$4 sm:$0xff]   ;;  %v18683_v9 = vld [vmem:[%s21927_s22 + $0x20e4] ss:$8 sps:$4 sm:$0xff]   ;;  %v18686_v11 = vld [vmem:[%s21927_s22 + $0x20e0] ss:$8 sps:$4 sm:$0xff]   ;;  %v22030_v18 = vrot.slane %v2314_v56, %v21993_v51  ;;  %v22033_v19 = vrot.slane %v2706_v62, %v21993_v51 }
  0x59   : > { %13470 = vmatpush1.bf16.msra.mxu1 %v18631_v24  ;;  %v18687_v12 = vld [vmem:[%s21927_s22 + $0xf4] ss:$8 sps:$4 sm:$0xff]   ;;  %v18691_v14 = vld [vmem:[%s21927_s22 + $0xf0] ss:$8 sps:$4 sm:$0xff]   ;;  %v18696_v16 = vld [vmem:[%s21927_s22 + $0x104] ss:$8 sps:$4 sm:$0xff]  }
  0x5a   : > { %14782 = vmatpush1.bf16.msra.mxu0 %v18632_v25  ;;  %13471 = vmatprep.subr.bf16.mxu1 %v18633_v26  ;;  %v2344_v63 = vrot.slane %v2322_v61, %v21993_v51  ;;  %v2736_v5 = vrot.slane %v2714_v0, %v21993_v51  ;;  %v18689_v13 = vld [vmem:[%s21927_s22 + $0x20f4] ss:$8 sps:$4 sm:$0xff]   ;;  %v18692_v15 = vld [vmem:[%s21927_s22 + $0x20f0] ss:$8 sps:$4 sm:$0xff]   ;;  %v18700_v17 = vld [vmem:[%s21927_s22 + $0x2104] ss:$8 sps:$4 sm:$0xff]  }
  0x5b   : > { %14783 = vmatprep.subr.bf16.mxu0 %v18635_v27  ;;  %v18694_v20 = vld [vmem:[%s21927_s22 + $0x100] ss:$8 sps:$4 sm:$0xff]   ;;  %v18703_v22 = vld [vmem:[%s21927_s22 + $0x114] ss:$8 sps:$4 sm:$0xff]   ;;  %v18701_v26 = vld [vmem:[%s21927_s22 + $0x110] ss:$8 sps:$4 sm:$0xff]  }
  0x5c   : > { %13491 = vmatprep.mubr.bf16.mxu1 %v2344_v63  ;;  %14803 = vmatprep.mubr.bf16.mxu0 %v2736_v5  ;;  %v18698_v21 = vld [vmem:[%s21927_s22 + $0x2100] ss:$8 sps:$4 sm:$0xff]   ;;  %v18706_v23 = vld [vmem:[%s21927_s22 + $0x2114] ss:$8 sps:$4 sm:$0xff]   ;;  %v2354_v24 = vcombine.high %v2344_v63, %v2344_v63  ;;  %v2746_v25 = vcombine.high %v2736_v5, %v2736_v5  ;;  %v18704_v27 = vld [vmem:[%s21927_s22 + $0x2110] ss:$8 sps:$4 sm:$0xff]  }
  0x5d   : > { %13472 = vmatpush1.bf16.msra.mxu1 %v18637_v28  ;;  %v18709_v28 = vld [vmem:[%s21927_s22 + $0x124] ss:$8 sps:$4 sm:$0xff]   ;;  %v18719_v38 = vld [vmem:[%s21927_s22 + $0x140] ss:$8 sps:$4 sm:$0xff]   ;;  %v18728_v44 = vld [vmem:[%s21927_s22 + $0x2150] ss:$8 sps:$4 sm:$0xff]  }
  0x5e   : > { %14784 = vmatpush1.bf16.msra.mxu0 %v18638_v29  ;;  %13473 = vmatprep.subr.bf16.mxu1 %v18639_v30  ;;  %v18712_v29 = vld [vmem:[%s21927_s22 + $0x2124] ss:$8 sps:$4 sm:$0xff]   ;;  %v18707_v30 = vld [vmem:[%s21927_s22 + $0x120] ss:$8 sps:$4 sm:$0xff]   ;;  %v18754_v61 = vld [vmem:[%s21927_s22 + $0x2194] ss:$8 sps:$4 sm:$0xff]  }
  0x5f   : > { %14785 = vmatprep.subr.bf16.mxu0 %v18641_v31  ;;  %v18710_v31 = vld [vmem:[%s21927_s22 + $0x2120] ss:$8 sps:$4 sm:$0xff]   ;;  %v18733_v45 = vld [vmem:[%s21927_s22 + $0x164] ss:$8 sps:$4 sm:$0xff]   ;;  %v18749_v62 = vld [vmem:[%s21927_s22 + $0x190] ss:$8 sps:$4 sm:$0xff]  }
  0x60   : > { %v18722_v39 = vld [vmem:[%s21927_s22 + $0x2140] ss:$8 sps:$4 sm:$0xff]   ;;  %v18748_v56 = vld [vmem:[%s21927_s22 + $0x2184] ss:$8 sps:$4 sm:$0xff]   ;;  %v18752_v63 = vld [vmem:[%s21927_s22 + $0x2190] ss:$8 sps:$4 sm:$0xff]  }
  0x61   : > { %13474 = vmatpush1.bf16.msra.mxu1 %v18643_v32  ;;  %v18715_v32 = vld [vmem:[%s21927_s22 + $0x134] ss:$8 sps:$4 sm:$0xff]   ;;  %v18757_v0 = vld [vmem:[%s21927_s22 + $0x1a4] ss:$8 sps:$4 sm:$0xff]  }
  0x62   : > { %14786 = vmatpush1.bf16.msra.mxu0 %v18644_v33  ;;  %13475 = vmatprep.subr.bf16.mxu1 %v18645_v34  ;;  %v18718_v33 = vld [vmem:[%s21927_s22 + $0x2134] ss:$8 sps:$4 sm:$0xff]   ;;  %v18713_v34 = vld [vmem:[%s21927_s22 + $0x130] ss:$8 sps:$4 sm:$0xff]  }
  0x63   : > { %14787 = vmatprep.subr.bf16.mxu0 %v18647_v35  ;;  %v18716_v35 = vld [vmem:[%s21927_s22 + $0x2130] ss:$8 sps:$4 sm:$0xff]   ;;  %v18766_v5 = vld [vmem:[%s21927_s22 + $0x21b4] ss:$8 sps:$4 sm:$0xff]  }
  0x65   : > { %13476 = vmatpush1.bf16.msra.mxu1 %v18649_v36  ;;  %v18721_v36 = vld [vmem:[%s21927_s22 + $0x144] ss:$8 sps:$4 sm:$0xff]  }
  0x66   : > { %14788 = vmatpush1.bf16.msra.mxu0 %v18650_v37  ;;  %13477 = vmatprep.subr.bf16.mxu1 %v18651_v41  ;;  %v18724_v37 = vld [vmem:[%s21927_s22 + $0x2144] ss:$8 sps:$4 sm:$0xff]   ;;  %v18727_v41 = vld [vmem:[%s21927_s22 + $0x154] ss:$8 sps:$4 sm:$0xff]  }
  0x67   : > { %14789 = vmatprep.subr.bf16.mxu0 %v18653_v42  ;;  %v18730_v42 = vld [vmem:[%s21927_s22 + $0x2154] ss:$8 sps:$4 sm:$0xff]  }
  0x69   : > { %13478 = vmatpush1.bf16.msra.mxu1 %v18655_v43  ;;  %v18725_v43 = vld [vmem:[%s21927_s22 + $0x150] ss:$8 sps:$4 sm:$0xff]  }
  0x6a   : > { %14790 = vmatpush1.bf16.msra.mxu0 %v18656_v46  ;;  %13479 = vmatprep.subr.bf16.mxu1 %v18657_v47  ;;  %v18736_v46 = vld [vmem:[%s21927_s22 + $0x2164] ss:$8 sps:$4 sm:$0xff]   ;;  %v18731_v47 = vld [vmem:[%s21927_s22 + $0x160] ss:$8 sps:$4 sm:$0xff]  }
  0x6b   : > { %14791 = vmatprep.subr.bf16.mxu0 %v18659_v48  ;;  %v18734_v48 = vld [vmem:[%s21927_s22 + $0x2160] ss:$8 sps:$4 sm:$0xff]  }
  0x6d   : > { %13480 = vmatpush1.bf16.msra.mxu1 %v18661_v49  ;;  %v18739_v49 = vld [vmem:[%s21927_s22 + $0x174] ss:$8 sps:$4 sm:$0xff]  }
  0x6e   : > { %14792 = vmatpush1.bf16.msra.mxu0 %v18662_v50  ;;  %13481 = vmatprep.subr.bf16.mxu1 %v18663_v52  ;;  %v18742_v50 = vld [vmem:[%s21927_s22 + $0x2174] ss:$8 sps:$4 sm:$0xff]   ;;  %v18737_v52 = vld [vmem:[%s21927_s22 + $0x170] ss:$8 sps:$4 sm:$0xff]  }
  0x6f   : > { %14793 = vmatprep.subr.bf16.mxu0 %v18665_v53  ;;  %v18740_v53 = vld [vmem:[%s21927_s22 + $0x2170] ss:$8 sps:$4 sm:$0xff]  }
  0x71   : > { %13482 = vmatpush1.bf16.msra.mxu1 %v18667_v55  ;;  %v18745_v55 = vld [vmem:[%s21927_s22 + $0x184] ss:$8 sps:$4 sm:$0xff]  }
  0x72   : > { %14794 = vmatpush1.bf16.msra.mxu0 %v18668_v57  ;;  %13483 = vmatprep.subr.bf16.mxu1 %v18669_v59  ;;  %v18743_v57 = vld [vmem:[%s21927_s22 + $0x180] ss:$8 sps:$4 sm:$0xff]  }
  0x73   : > { %14795 = vmatprep.subr.bf16.mxu0 %v18671_v60  ;;  %v18746_v59 = vld [vmem:[%s21927_s22 + $0x2180] ss:$8 sps:$4 sm:$0xff]   ;;  %v18751_v60 = vld [vmem:[%s21927_s22 + $0x194] ss:$8 sps:$4 sm:$0xff]  }
  0x75   : > { %13484 = vmatpush1.bf16.msra.mxu1 %v18673_v1  ;;  %v18760_v1 = vld [vmem:[%s21927_s22 + $0x21a4] ss:$8 sps:$4 sm:$0xff]  }
  0x76   : > { %14796 = vmatpush1.bf16.msra.mxu0 %v18674_v2  ;;  %13485 = vmatprep.subr.bf16.mxu1 %v18675_v3  ;;  %v18755_v2 = vld [vmem:[%s21927_s22 + $0x1a0] ss:$8 sps:$4 sm:$0xff]  }
  0x77   : > { %14797 = vmatprep.subr.bf16.mxu0 %v18677_v4  ;;  %v18758_v3 = vld [vmem:[%s21927_s22 + $0x21a0] ss:$8 sps:$4 sm:$0xff]   ;;  %v18763_v4 = vld [vmem:[%s21927_s22 + $0x1b4] ss:$8 sps:$4 sm:$0xff]  }
  0x79   : > { %13486 = vmatpush1.bf16.msra.mxu1 %v18679_v6  ;;  %v18761_v6 = vld [vmem:[%s21927_s22 + $0x1b0] ss:$8 sps:$4 sm:$0xff]  }
  0x7a   : > { %14798 = vmatpush1.bf16.msra.mxu0 %v18680_v7  ;;  %13487 = vmatprep.subr.bf16.mxu1 %v18681_v8  ;;  %v18764_v7 = vld [vmem:[%s21927_s22 + $0x21b0] ss:$8 sps:$4 sm:$0xff]   ;;  %v18769_v8 = vld [vmem:[%s21927_s22 + $0x1c4] ss:$8 sps:$4 sm:$0xff]  }
  0x7b   : > { %14799 = vmatprep.subr.bf16.mxu0 %v18683_v9  ;;  %v18772_v9 = vld [vmem:[%s21927_s22 + $0x21c4] ss:$8 sps:$4 sm:$0xff]  }
  0x7d   : > { %13488 = vmatpush1.bf16.msra.mxu1 %v18685_v10  ;;  %v18767_v10 = vld [vmem:[%s21927_s22 + $0x1c0] ss:$8 sps:$4 sm:$0xff]  }
  0x7e   : > { %14800 = vmatpush1.bf16.msra.mxu0 %v18686_v11  ;;  %13489 = vmatprep.subr.bf16.mxu1 %v18687_v12  ;;  %v18770_v11 = vld [vmem:[%s21927_s22 + $0x21c0] ss:$8 sps:$4 sm:$0xff]   ;;  %v18775_v12 = vld [vmem:[%s21927_s22 + $0x1d4] ss:$8 sps:$4 sm:$0xff]  }
  0x7f   : > { %14801 = vmatprep.subr.bf16.mxu0 %v18689_v13  ;;  %v18778_v13 = vld [vmem:[%s21927_s22 + $0x21d4] ss:$8 sps:$4 sm:$0xff]  }
  0x81   : > { %13490 = vmatpush1.bf16.msra.mxu1 %v18691_v14  ;;  %v18773_v14 = vld [vmem:[%s21927_s22 + $0x1d0] ss:$8 sps:$4 sm:$0xff]  }
  0x82   : > { %14802 = vmatpush1.bf16.msra.mxu0 %v18692_v15  ;;  %13500 = vmatprep.subr.bf16.mxu1 %v18696_v16  ;;  %v18776_v15 = vld [vmem:[%s21927_s22 + $0x21d0] ss:$8 sps:$4 sm:$0xff]   ;;  %v18781_v16 = vld [vmem:[%s21927_s22 + $0x1e4] ss:$8 sps:$4 sm:$0xff]  }
  0x83   : > { %14812 = vmatprep.subr.bf16.mxu0 %v18700_v17  ;;  %v18784_v17 = vld [vmem:[%s21927_s22 + $0x21e4] ss:$8 sps:$4 sm:$0xff]  }
  0x84   : > { %13492 = vmatmul.mubr.bf16.vlgmr.msra.gmra.mrb[0].mxu1 %v22030_v18 }
  0x85   : > { %14804 = vmatmul.mubr.bf16.vlgmr.msra.gmra.mrb[0].mxu0 %v22033_v19  ;;  %13501 = vmatpush1.bf16.msra.mxu1 %v18694_v20  ;;  %v2307_v20 = vcombine.high %v21998_v54, %v21998_v54  ;;  %v18785_v54 = vld [vmem:[%s21927_s22 + $0x1f0] ss:$8 sps:$4 sm:$0xff]  }
  0x86   : > { %14813 = vmatpush1.bf16.msra.mxu0 %v18698_v21  ;;  %13502 = vmatprep.subr.bf16.mxu1 %v18703_v22  ;;  %v2699_v21 = vcombine.high %v22005_v58, %v22005_v58  ;;  %v18779_v22 = vld [vmem:[%s21927_s22 + $0x1e0] ss:$8 sps:$4 sm:$0xff]   ;;  %v18788_v58 = vld [vmem:[%s21927_s22 + $0x21f0] ss:$8 sps:$4 sm:$0xff]  }
  0x87   : > { %14814 = vmatprep.subr.bf16.mxu0 %v18706_v23  ;;  %13532 = vmatprep.mubr.bf16.mxu1 %v2354_v24  ;;  %v18782_v23 = vld [vmem:[%s21927_s22 + $0x21e0] ss:$8 sps:$4 sm:$0xff]   ;;  %v18787_v24 = vld [vmem:[%s21927_s22 + $0x1f4] ss:$8 sps:$4 sm:$0xff]  }
  0x88   : > { %14844 = vmatprep.mubr.bf16.mxu0 %v2746_v25  ;;  %v18790_v25 = vld [vmem:[%s21927_s22 + $0x21f4] ss:$8 sps:$4 sm:$0xff]  }
  0x89   : > { %13503 = vmatpush1.bf16.msra.mxu1 %v18701_v26  ;;  %v22102_v26 = vrot.slane %v2307_v20, %v21993_v51  ;;  %v18857_v20 = vld [vmem:[%s21927_s22 + $0x2b0] ss:$8 sps:$4 sm:$0xff]  }
  0x8a   : > { %14815 = vmatpush1.bf16.msra.mxu0 %v18704_v27  ;;  %13504 = vmatprep.subr.bf16.mxu1 %v18709_v28  ;;  %v22105_v27 = vrot.slane %v2699_v21, %v21993_v51  ;;  %v18793_v28 = vld [vmem:[%s21927_s22 + $0x204] ss:$8 sps:$4 sm:$0xff]   ;;  %v18860_v21 = vld [vmem:[%s21927_s22 + $0x22b0] ss:$8 sps:$4 sm:$0xff]  }
  0x8b   : > { %14816 = vmatprep.subr.bf16.mxu0 %v18712_v29  ;;  %v18796_v29 = vld [vmem:[%s21927_s22 + $0x2204] ss:$8 sps:$4 sm:$0xff]  }
  0x8d   : > { %13505 = vmatpush1.bf16.msra.mxu1 %v18707_v30  ;;  %v2323_v30 = vcombine.high %v22102_v26, %v22102_v26 }
  0x8e   : > { %14817 = vmatpush1.bf16.msra.mxu0 %v18710_v31  ;;  %13506 = vmatprep.subr.bf16.mxu1 %v18715_v32  ;;  %v2715_v31 = vcombine.high %v22105_v27, %v22105_v27  ;;  %v2352_v32 = vcombine.high %v22030_v18, %v22030_v18 }
  0x8f   : > { %14818 = vmatprep.subr.bf16.mxu0 %v18718_v33  ;;  %v2744_v33 = vcombine.high %v22033_v19, %v22033_v19  ;;  %v18797_v19 = vld [vmem:[%s21927_s22 + $0x210] ss:$8 sps:$4 sm:$0xff]  }
  0x90   : > { %v22127_v18 = vrot.slane %v2715_v31, %v21993_v51  ;;  %v18880_v31 = vld [vmem:[%s21927_s22 + $0x22e4] ss:$8 sps:$4 sm:$0xff]  }
  0x91   : > { %13507 = vmatpush1.bf16.msra.mxu1 %v18713_v34  ;;  %v18791_v34 = vld [vmem:[%s21927_s22 + $0x200] ss:$8 sps:$4 sm:$0xff]  }
  0x92   : > { %14819 = vmatpush1.bf16.msra.mxu0 %v18716_v35  ;;  %13508 = vmatprep.subr.bf16.mxu1 %v18721_v36  ;;  %v18794_v35 = vld [vmem:[%s21927_s22 + $0x2200] ss:$8 sps:$4 sm:$0xff]   ;;  %v18799_v36 = vld [vmem:[%s21927_s22 + $0x214] ss:$8 sps:$4 sm:$0xff]  }
  0x93   : > { %14820 = vmatprep.subr.bf16.mxu0 %v18724_v37  ;;  %v18802_v37 = vld [vmem:[%s21927_s22 + $0x2214] ss:$8 sps:$4 sm:$0xff]  }
  0x95   : > { %13509 = vmatpush1.bf16.msra.mxu1 %v18719_v38  ;;  %v22124_v38 = vrot.slane %v2323_v30, %v21993_v51  ;;  %v18877_v30 = vld [vmem:[%s21927_s22 + $0x2e4] ss:$8 sps:$4 sm:$0xff]  }
  0x96   : > { %14821 = vmatpush1.bf16.msra.mxu0 %v18722_v39  ;;  %13510 = vmatprep.subr.bf16.mxu1 %v18727_v41  ;;  %v18800_v39 = vld [vmem:[%s21927_s22 + $0x2210] ss:$8 sps:$4 sm:$0xff]   ;;  %v18805_v41 = vld [vmem:[%s21927_s22 + $0x224] ss:$8 sps:$4 sm:$0xff]  }
  0x97   : > { %14822 = vmatprep.subr.bf16.mxu0 %v18730_v42  ;;  %v18808_v42 = vld [vmem:[%s21927_s22 + $0x2224] ss:$8 sps:$4 sm:$0xff]  }
  0x99   : > { %13511 = vmatpush1.bf16.msra.mxu1 %v18725_v43  ;;  %v18803_v43 = vld [vmem:[%s21927_s22 + $0x220] ss:$8 sps:$4 sm:$0xff]  }
  0x9a   : > { %14823 = vmatpush1.bf16.msra.mxu0 %v18728_v44  ;;  %13512 = vmatprep.subr.bf16.mxu1 %v18733_v45  ;;  %v18806_v44 = vld [vmem:[%s21927_s22 + $0x2220] ss:$8 sps:$4 sm:$0xff]   ;;  %v18811_v45 = vld [vmem:[%s21927_s22 + $0x234] ss:$8 sps:$4 sm:$0xff]  }
  0x9b   : > { %14824 = vmatprep.subr.bf16.mxu0 %v18736_v46  ;;  %v18814_v46 = vld [vmem:[%s21927_s22 + $0x2234] ss:$8 sps:$4 sm:$0xff]  }
  0x9d   : > { %13513 = vmatpush1.bf16.msra.mxu1 %v18731_v47  ;;  %v18809_v47 = vld [vmem:[%s21927_s22 + $0x230] ss:$8 sps:$4 sm:$0xff]  }
  0x9e   : > { %14825 = vmatpush1.bf16.msra.mxu0 %v18734_v48  ;;  %13514 = vmatprep.subr.bf16.mxu1 %v18739_v49  ;;  %v18812_v48 = vld [vmem:[%s21927_s22 + $0x2230] ss:$8 sps:$4 sm:$0xff]   ;;  %v18817_v49 = vld [vmem:[%s21927_s22 + $0x244] ss:$8 sps:$4 sm:$0xff]  }
  0x9f   : > { %14826 = vmatprep.subr.bf16.mxu0 %v18742_v50  ;;  %v18820_v50 = vld [vmem:[%s21927_s22 + $0x2244] ss:$8 sps:$4 sm:$0xff]  }
  0xa1   : > { %13515 = vmatpush1.bf16.msra.mxu1 %v18737_v52  ;;  %v18815_v52 = vld [vmem:[%s21927_s22 + $0x240] ss:$8 sps:$4 sm:$0xff]  }
  0xa2   : > { %14827 = vmatpush1.bf16.msra.mxu0 %v18740_v53  ;;  %13516 = vmatprep.subr.bf16.mxu1 %v18745_v55  ;;  %v18818_v53 = vld [vmem:[%s21927_s22 + $0x2240] ss:$8 sps:$4 sm:$0xff]   ;;  %v18823_v55 = vld [vmem:[%s21927_s22 + $0x254] ss:$8 sps:$4 sm:$0xff]  }
  0xa3   : > { %14828 = vmatprep.subr.bf16.mxu0 %v18748_v56  ;;  %v18826_v56 = vld [vmem:[%s21927_s22 + $0x2254] ss:$8 sps:$4 sm:$0xff]  }
  0xa5   : > { %13517 = vmatpush1.bf16.msra.mxu1 %v18743_v57  ;;  %v18821_v57 = vld [vmem:[%s21927_s22 + $0x250] ss:$8 sps:$4 sm:$0xff]  }
  0xa6   : > { %14829 = vmatpush1.bf16.msra.mxu0 %v18746_v59  ;;  %13518 = vmatprep.subr.bf16.mxu1 %v18751_v60  ;;  %v18824_v59 = vld [vmem:[%s21927_s22 + $0x2250] ss:$8 sps:$4 sm:$0xff]   ;;  %v18829_v60 = vld [vmem:[%s21927_s22 + $0x264] ss:$8 sps:$4 sm:$0xff]  }
  0xa7   : > { %14830 = vmatprep.subr.bf16.mxu0 %v18754_v61  ;;  %v18832_v61 = vld [vmem:[%s21927_s22 + $0x2264] ss:$8 sps:$4 sm:$0xff]  }
  0xa9   : > { %13519 = vmatpush1.bf16.msra.mxu1 %v18749_v62  ;;  %v18827_v62 = vld [vmem:[%s21927_s22 + $0x260] ss:$8 sps:$4 sm:$0xff]  }
  0xaa   : > { %14831 = vmatpush1.bf16.msra.mxu0 %v18752_v63  ;;  %13520 = vmatprep.subr.bf16.mxu1 %v18757_v0  ;;  %v18830_v63 = vld [vmem:[%s21927_s22 + $0x2260] ss:$8 sps:$4 sm:$0xff]   ;;  %v18835_v0 = vld [vmem:[%s21927_s22 + $0x274] ss:$8 sps:$4 sm:$0xff]  }
  0xab   : > { %14832 = vmatprep.subr.bf16.mxu0 %v18760_v1  ;;  %v18838_v1 = vld [vmem:[%s21927_s22 + $0x2274] ss:$8 sps:$4 sm:$0xff]  }
  0xad   : > { %13521 = vmatpush1.bf16.msra.mxu1 %v18755_v2  ;;  %v18833_v2 = vld [vmem:[%s21927_s22 + $0x270] ss:$8 sps:$4 sm:$0xff]  }
  0xae   : > { %14833 = vmatpush1.bf16.msra.mxu0 %v18758_v3  ;;  %13522 = vmatprep.subr.bf16.mxu1 %v18763_v4  ;;  %v18836_v3 = vld [vmem:[%s21927_s22 + $0x2270] ss:$8 sps:$4 sm:$0xff]   ;;  %v18841_v4 = vld [vmem:[%s21927_s22 + $0x284] ss:$8 sps:$4 sm:$0xff]  }
  0xaf   : > { %14834 = vmatprep.subr.bf16.mxu0 %v18766_v5  ;;  %v18844_v5 = vld [vmem:[%s21927_s22 + $0x2284] ss:$8 sps:$4 sm:$0xff]  }
  0xb1   : > { %13523 = vmatpush1.bf16.msra.mxu1 %v18761_v6  ;;  %v18839_v6 = vld [vmem:[%s21927_s22 + $0x280] ss:$8 sps:$4 sm:$0xff]  }
  0xb2   : > { %14835 = vmatpush1.bf16.msra.mxu0 %v18764_v7  ;;  %13524 = vmatprep.subr.bf16.mxu1 %v18769_v8  ;;  %v18842_v7 = vld [vmem:[%s21927_s22 + $0x2280] ss:$8 sps:$4 sm:$0xff]   ;;  %v18847_v8 = vld [vmem:[%s21927_s22 + $0x294] ss:$8 sps:$4 sm:$0xff]  }
  0xb3   : > { %14836 = vmatprep.subr.bf16.mxu0 %v18772_v9  ;;  %v18850_v9 = vld [vmem:[%s21927_s22 + $0x2294] ss:$8 sps:$4 sm:$0xff]  }
  0xb5   : > { %13525 = vmatpush1.bf16.msra.mxu1 %v18767_v10  ;;  %v18845_v10 = vld [vmem:[%s21927_s22 + $0x290] ss:$8 sps:$4 sm:$0xff]  }
  0xb6   : > { %14837 = vmatpush1.bf16.msra.mxu0 %v18770_v11  ;;  %13526 = vmatprep.subr.bf16.mxu1 %v18775_v12  ;;  %v18848_v11 = vld [vmem:[%s21927_s22 + $0x2290] ss:$8 sps:$4 sm:$0xff]   ;;  %v18853_v12 = vld [vmem:[%s21927_s22 + $0x2a4] ss:$8 sps:$4 sm:$0xff]  }
  0xb7   : > { %14838 = vmatprep.subr.bf16.mxu0 %v18778_v13  ;;  %v18856_v13 = vld [vmem:[%s21927_s22 + $0x22a4] ss:$8 sps:$4 sm:$0xff]  }
  0xb9   : > { %13527 = vmatpush1.bf16.msra.mxu1 %v18773_v14  ;;  %v18851_v14 = vld [vmem:[%s21927_s22 + $0x2a0] ss:$8 sps:$4 sm:$0xff]  }
  0xba   : > { %14839 = vmatpush1.bf16.msra.mxu0 %v18776_v15  ;;  %13528 = vmatprep.subr.bf16.mxu1 %v18781_v16  ;;  %v18854_v15 = vld [vmem:[%s21927_s22 + $0x22a0] ss:$8 sps:$4 sm:$0xff]   ;;  %v18859_v16 = vld [vmem:[%s21927_s22 + $0x2b4] ss:$8 sps:$4 sm:$0xff]  }
  0xbb   : > { %14840 = vmatprep.subr.bf16.mxu0 %v18784_v17  ;;  %v18862_v17 = vld [vmem:[%s21927_s22 + $0x22b4] ss:$8 sps:$4 sm:$0xff]  }
  0xbd   : > { %13529 = vmatpush1.bf16.msra.mxu1 %v18779_v22  ;;  %v18865_v22 = vld [vmem:[%s21927_s22 + $0x2c4] ss:$8 sps:$4 sm:$0xff]  }
  0xbe   : > { %14841 = vmatpush1.bf16.msra.mxu0 %v18782_v23  ;;  %13530 = vmatprep.subr.bf16.mxu1 %v18787_v24  ;;  %v18868_v23 = vld [vmem:[%s21927_s22 + $0x22c4] ss:$8 sps:$4 sm:$0xff]   ;;  %v18863_v24 = vld [vmem:[%s21927_s22 + $0x2c0] ss:$8 sps:$4 sm:$0xff]  }
  0xbf   : > { %14842 = vmatprep.subr.bf16.mxu0 %v18790_v25  ;;  %v18866_v25 = vld [vmem:[%s21927_s22 + $0x22c0] ss:$8 sps:$4 sm:$0xff]  }
  0xc1   : > { %13531 = vmatpush1.bf16.msra.mxu1 %v18785_v54  ;;  %v18871_v54 = vld [vmem:[%s21927_s22 + $0x2d4] ss:$8 sps:$4 sm:$0xff]  }
  0xc2   : > { %14843 = vmatpush1.bf16.msra.mxu0 %v18788_v58  ;;  %13541 = vmatprep.subr.bf16.mxu1 %v18793_v28  ;;  %v18874_v58 = vld [vmem:[%s21927_s22 + $0x22d4] ss:$8 sps:$4 sm:$0xff]   ;;  %v18869_v28 = vld [vmem:[%s21927_s22 + $0x2d0] ss:$8 sps:$4 sm:$0xff]  }
  0xc3   : > { %14853 = vmatprep.subr.bf16.mxu0 %v18796_v29  ;;  %v18872_v29 = vld [vmem:[%s21927_s22 + $0x22d0] ss:$8 sps:$4 sm:$0xff]  }
  0xc4   : > { %13533 = vmatmul.mubr.bf16.vlgmr.msra.gmra.mrb[0].mxu1 %v2352_v32  ;;  %v18875_v32 = vld [vmem:[%s21927_s22 + $0x2e0] ss:$8 sps:$4 sm:$0xff]  }
  0xc5   : > { %14845 = vmatmul.mubr.bf16.vlgmr.msra.gmra.mrb[0].mxu0 %v2744_v33  ;;  %13542 = vmatpush1.bf16.msra.mxu1 %v18791_v34  ;;  %v18878_v33 = vld [vmem:[%s21927_s22 + $0x22e0] ss:$8 sps:$4 sm:$0xff]   ;;  %v18883_v34 = vld [vmem:[%s21927_s22 + $0x2f4] ss:$8 sps:$4 sm:$0xff]  }
  0xc6   : > { %14854 = vmatpush1.bf16.msra.mxu0 %v18794_v35  ;;  %13543 = vmatprep.subr.bf16.mxu1 %v18799_v36  ;;  %v18886_v35 = vld [vmem:[%s21927_s22 + $0x22f4] ss:$8 sps:$4 sm:$0xff]   ;;  %v18881_v36 = vld [vmem:[%s21927_s22 + $0x2f0] ss:$8 sps:$4 sm:$0xff]  }
  0xc7   : > { %14855 = vmatprep.subr.bf16.mxu0 %v18802_v37  ;;  %13573 = vmatprep.mubr.bf16.mxu1 %v22124_v38  ;;  %v18884_v37 = vld [vmem:[%s21927_s22 + $0x22f0] ss:$8 sps:$4 sm:$0xff]  }
  0xc8   : > { %14885 = vmatprep.mubr.bf16.mxu0 %v22127_v18 }
  0xc9   : > { %13544 = vmatpush1.bf16.msra.mxu1 %v18797_v19  ;;  %v18889_v19 = vld [vmem:[%s21927_s22 + $0x304] ss:$8 sps:$4 sm:$0xff]  }
  0xca   : > { %14856 = vmatpush1.bf16.msra.mxu0 %v18800_v39  ;;  %13545 = vmatprep.subr.bf16.mxu1 %v18805_v41  ;;  %v18892_v39 = vld [vmem:[%s21927_s22 + $0x2304] ss:$8 sps:$4 sm:$0xff]   ;;  %v22193_v41 = vrot.slane %v22102_v26, %v21993_v51  ;;  %v2355_v26 = vcombine.high %v22124_v38, %v22124_v38 }
  0xcb   : > { %14857 = vmatprep.subr.bf16.mxu0 %v18808_v42  ;;  %v22197_v42 = vrot.slane %v22105_v27, %v21993_v51  ;;  %v18893_v27 = vld [vmem:[%s21927_s22 + $0x310] ss:$8 sps:$4 sm:$0xff]   ;;  %v18901_v38 = vld [vmem:[%s21927_s22 + $0x324] ss:$8 sps:$4 sm:$0xff]  }
  0xcd   : > { %13546 = vmatpush1.bf16.msra.mxu1 %v18803_v43  ;;  %v18887_v43 = vld [vmem:[%s21927_s22 + $0x300] ss:$8 sps:$4 sm:$0xff]  }
  0xce   : > { %14858 = vmatpush1.bf16.msra.mxu0 %v18806_v44  ;;  %13547 = vmatprep.subr.bf16.mxu1 %v18811_v45  ;;  %v18890_v44 = vld [vmem:[%s21927_s22 + $0x2300] ss:$8 sps:$4 sm:$0xff]   ;;  %v18895_v45 = vld [vmem:[%s21927_s22 + $0x314] ss:$8 sps:$4 sm:$0xff]  }
  0xcf   : > { %14859 = vmatprep.subr.bf16.mxu0 %v18814_v46  ;;  %v18898_v46 = vld [vmem:[%s21927_s22 + $0x2314] ss:$8 sps:$4 sm:$0xff]  }
  0xd1   : > { %13548 = vmatpush1.bf16.msra.mxu1 %v18809_v47  ;;  %v2747_v47 = vcombine.high %v22127_v18, %v22127_v18  ;;  %v18899_v18 = vld [vmem:[%s21927_s22 + $0x320] ss:$8 sps:$4 sm:$0xff]  }
  0xd2   : > { %14860 = vmatpush1.bf16.msra.mxu0 %v18812_v48  ;;  %13549 = vmatprep.subr.bf16.mxu1 %v18817_v49  ;;  %v18896_v48 = vld [vmem:[%s21927_s22 + $0x2310] ss:$8 sps:$4 sm:$0xff]   ;;  %v18904_v49 = vld [vmem:[%s21927_s22 + $0x2324] ss:$8 sps:$4 sm:$0xff]  }
  0xd3   : > { %14861 = vmatprep.subr.bf16.mxu0 %v18820_v50  ;;  %v18902_v50 = vld [vmem:[%s21927_s22 + $0x2320] ss:$8 sps:$4 sm:$0xff]  }
  0xd5   : > { %13550 = vmatpush1.bf16.msra.mxu1 %v18815_v52  ;;  %v18907_v52 = vld [vmem:[%s21927_s22 + $0x334] ss:$8 sps:$4 sm:$0xff]  }
  0xd6   : > { %14862 = vmatpush1.bf16.msra.mxu0 %v18818_v53  ;;  %13551 = vmatprep.subr.bf16.mxu1 %v18823_v55  ;;  %v18910_v53 = vld [vmem:[%s21927_s22 + $0x2334] ss:$8 sps:$4 sm:$0xff]   ;;  %v18905_v55 = vld [vmem:[%s21927_s22 + $0x330] ss:$8 sps:$4 sm:$0xff]  }
  0xd7   : > { %14863 = vmatprep.subr.bf16.mxu0 %v18826_v56  ;;  %v18908_v56 = vld [vmem:[%s21927_s22 + $0x2330] ss:$8 sps:$4 sm:$0xff]  }
  0xd9   : > { %13552 = vmatpush1.bf16.msra.mxu1 %v18821_v57  ;;  %v18913_v57 = vld [vmem:[%s21927_s22 + $0x344] ss:$8 sps:$4 sm:$0xff]  }
  0xda   : > { %14864 = vmatpush1.bf16.msra.mxu0 %v18824_v59  ;;  %13553 = vmatprep.subr.bf16.mxu1 %v18829_v60  ;;  %v18916_v59 = vld [vmem:[%s21927_s22 + $0x2344] ss:$8 sps:$4 sm:$0xff]   ;;  %v18911_v60 = vld [vmem:[%s21927_s22 + $0x340] ss:$8 sps:$4 sm:$0xff]  }
  0xdb   : > { %14865 = vmatprep.subr.bf16.mxu0 %v18832_v61  ;;  %v18914_v61 = vld [vmem:[%s21927_s22 + $0x2340] ss:$8 sps:$4 sm:$0xff]  }
  0xdd   : > { %13554 = vmatpush1.bf16.msra.mxu1 %v18827_v62  ;;  %v18919_v62 = vld [vmem:[%s21927_s22 + $0x354] ss:$8 sps:$4 sm:$0xff]  }
  0xde   : > { %14866 = vmatpush1.bf16.msra.mxu0 %v18830_v63  ;;  %13555 = vmatprep.subr.bf16.mxu1 %v18835_v0  ;;  %v18922_v63 = vld [vmem:[%s21927_s22 + $0x2354] ss:$8 sps:$4 sm:$0xff]   ;;  %v18917_v0 = vld [vmem:[%s21927_s22 + $0x350] ss:$8 sps:$4 sm:$0xff]  }
  0xdf   : > { %14867 = vmatprep.subr.bf16.mxu0 %v18838_v1  ;;  %v18920_v1 = vld [vmem:[%s21927_s22 + $0x2350] ss:$8 sps:$4 sm:$0xff]  }
  0xe1   : > { %13556 = vmatpush1.bf16.msra.mxu1 %v18833_v2  ;;  %v18925_v2 = vld [vmem:[%s21927_s22 + $0x364] ss:$8 sps:$4 sm:$0xff]  }
  0xe2   : > { %14868 = vmatpush1.bf16.msra.mxu0 %v18836_v3  ;;  %13557 = vmatprep.subr.bf16.mxu1 %v18841_v4  ;;  %v18928_v3 = vld [vmem:[%s21927_s22 + $0x2364] ss:$8 sps:$4 sm:$0xff]   ;;  %v18923_v4 = vld [vmem:[%s21927_s22 + $0x360] ss:$8 sps:$4 sm:$0xff]  }
  0xe3   : > { %14869 = vmatprep.subr.bf16.mxu0 %v18844_v5  ;;  %v18926_v5 = vld [vmem:[%s21927_s22 + $0x2360] ss:$8 sps:$4 sm:$0xff]  }
  0xe5   : > { %13558 = vmatpush1.bf16.msra.mxu1 %v18839_v6  ;;  %v18931_v6 = vld [vmem:[%s21927_s22 + $0x374] ss:$8 sps:$4 sm:$0xff]  }
  0xe6   : > { %14870 = vmatpush1.bf16.msra.mxu0 %v18842_v7  ;;  %13559 = vmatprep.subr.bf16.mxu1 %v18847_v8  ;;  %v18934_v7 = vld [vmem:[%s21927_s22 + $0x2374] ss:$8 sps:$4 sm:$0xff]   ;;  %v18929_v8 = vld [vmem:[%s21927_s22 + $0x370] ss:$8 sps:$4 sm:$0xff]  }
  0xe7   : > { %14871 = vmatprep.subr.bf16.mxu0 %v18850_v9  ;;  %v18932_v9 = vld [vmem:[%s21927_s22 + $0x2370] ss:$8 sps:$4 sm:$0xff]  }
  0xe9   : > { %13560 = vmatpush1.bf16.msra.mxu1 %v18845_v10  ;;  %v18937_v10 = vld [vmem:[%s21927_s22 + $0x384] ss:$8 sps:$4 sm:$0xff]  }
  0xea   : > { %14872 = vmatpush1.bf16.msra.mxu0 %v18848_v11  ;;  %13561 = vmatprep.subr.bf16.mxu1 %v18853_v12  ;;  %v18940_v11 = vld [vmem:[%s21927_s22 + $0x2384] ss:$8 sps:$4 sm:$0xff]   ;;  %v18935_v12 = vld [vmem:[%s21927_s22 + $0x380] ss:$8 sps:$4 sm:$0xff]  }
  0xeb   : > { %14873 = vmatprep.subr.bf16.mxu0 %v18856_v13  ;;  %v18938_v13 = vld [vmem:[%s21927_s22 + $0x2380] ss:$8 sps:$4 sm:$0xff]  }
  0xed   : > { %13562 = vmatpush1.bf16.msra.mxu1 %v18851_v14  ;;  %v18943_v14 = vld [vmem:[%s21927_s22 + $0x394] ss:$8 sps:$4 sm:$0xff]  }
  0xee   : > { %14874 = vmatpush1.bf16.msra.mxu0 %v18854_v15  ;;  %13563 = vmatprep.subr.bf16.mxu1 %v18859_v16  ;;  %v18946_v15 = vld [vmem:[%s21927_s22 + $0x2394] ss:$8 sps:$4 sm:$0xff]   ;;  %v18941_v16 = vld [vmem:[%s21927_s22 + $0x390] ss:$8 sps:$4 sm:$0xff]  }
  0xef   : > { %14875 = vmatprep.subr.bf16.mxu0 %v18862_v17  ;;  %v18944_v17 = vld [vmem:[%s21927_s22 + $0x2390] ss:$8 sps:$4 sm:$0xff]  }
  0xf1   : > { %13564 = vmatpush1.bf16.msra.mxu1 %v18857_v20  ;;  %v18949_v20 = vld [vmem:[%s21927_s22 + $0x3a4] ss:$8 sps:$4 sm:$0xff]  }
  0xf2   : > { %14876 = vmatpush1.bf16.msra.mxu0 %v18860_v21  ;;  %13565 = vmatprep.subr.bf16.mxu1 %v18865_v22  ;;  %v18952_v21 = vld [vmem:[%s21927_s22 + $0x23a4] ss:$8 sps:$4 sm:$0xff]   ;;  %v18947_v22 = vld [vmem:[%s21927_s22 + $0x3a0] ss:$8 sps:$4 sm:$0xff]  }
  0xf3   : > { %14877 = vmatprep.subr.bf16.mxu0 %v18868_v23  ;;  %v18950_v23 = vld [vmem:[%s21927_s22 + $0x23a0] ss:$8 sps:$4 sm:$0xff]  }
  0xf5   : > { %13566 = vmatpush1.bf16.msra.mxu1 %v18863_v24  ;;  %v18955_v24 = vld [vmem:[%s21927_s22 + $0x3b4] ss:$8 sps:$4 sm:$0xff]  }
  0xf6   : > { %14878 = vmatpush1.bf16.msra.mxu0 %v18866_v25  ;;  %13567 = vmatprep.subr.bf16.mxu1 %v18871_v54  ;;  %v18958_v25 = vld [vmem:[%s21927_s22 + $0x23b4] ss:$8 sps:$4 sm:$0xff]   ;;  %v18953_v54 = vld [vmem:[%s21927_s22 + $0x3b0] ss:$8 sps:$4 sm:$0xff]  }
  0xf7   : > { %14879 = vmatprep.subr.bf16.mxu0 %v18874_v58  ;;  %v18956_v58 = vld [vmem:[%s21927_s22 + $0x23b0] ss:$8 sps:$4 sm:$0xff]  }
  0xf9   : > { %13568 = vmatpush1.bf16.msra.mxu1 %v18869_v28  ;;  %v18961_v28 = vld [vmem:[%s21927_s22 + $0x3c4] ss:$8 sps:$4 sm:$0xff]  }
  0xfa   : > { %14880 = vmatpush1.bf16.msra.mxu0 %v18872_v29  ;;  %13569 = vmatprep.subr.bf16.mxu1 %v18877_v30  ;;  %v18964_v29 = vld [vmem:[%s21927_s22 + $0x23c4] ss:$8 sps:$4 sm:$0xff]   ;;  %v18959_v30 = vld [vmem:[%s21927_s22 + $0x3c0] ss:$8 sps:$4 sm:$0xff]  }
  0xfb   : > { %14881 = vmatprep.subr.bf16.mxu0 %v18880_v31  ;;  %v18962_v31 = vld [vmem:[%s21927_s22 + $0x23c0] ss:$8 sps:$4 sm:$0xff]  }
  0xfd   : > { %13570 = vmatpush1.bf16.msra.mxu1 %v18875_v32  ;;  %v18967_v32 = vld [vmem:[%s21927_s22 + $0x3d4] ss:$8 sps:$4 sm:$0xff]  }
  0xfe   : > { %14882 = vmatpush1.bf16.msra.mxu0 %v18878_v33  ;;  %13571 = vmatprep.subr.bf16.mxu1 %v18883_v34  ;;  %v18970_v33 = vld [vmem:[%s21927_s22 + $0x23d4] ss:$8 sps:$4 sm:$0xff]   ;;  %v18965_v34 = vld [vmem:[%s21927_s22 + $0x3d0] ss:$8 sps:$4 sm:$0xff]  }
  0xff   : > { %14883 = vmatprep.subr.bf16.mxu0 %v18886_v35  ;;  %v18968_v35 = vld [vmem:[%s21927_s22 + $0x23d0] ss:$8 sps:$4 sm:$0xff]  }
 0x101   : > { %13572 = vmatpush1.bf16.msra.mxu1 %v18881_v36  ;;  %v18973_v36 = vld [vmem:[%s21927_s22 + $0x3e4] ss:$8 sps:$4 sm:$0xff]  }
 0x102   : > { %14884 = vmatpush1.bf16.msra.mxu0 %v18884_v37  ;;  %13582 = vmatprep.subr.bf16.mxu1 %v18889_v19  ;;  %v18976_v37 = vld [vmem:[%s21927_s22 + $0x23e4] ss:$8 sps:$4 sm:$0xff]   ;;  %v18971_v19 = vld [vmem:[%s21927_s22 + $0x3e0] ss:$8 sps:$4 sm:$0xff]  }
 0x103   : > { %14894 = vmatprep.subr.bf16.mxu0 %v18892_v39  ;;  %v18974_v39 = vld [vmem:[%s21927_s22 + $0x23e0] ss:$8 sps:$4 sm:$0xff]  }
 0x104   : > { %13574 = vmatmul.mubr.bf16.vlgmr.msra.gmra.mrb[0].mxu1 %v22193_v41 }
 0x105   : > { %14886 = vmatmul.mubr.bf16.vlgmr.msra.gmra.mrb[0].mxu0 %v22197_v42  ;;  %13583 = vmatpush1.bf16.msra.mxu1 %v18887_v43  ;;  %v22264_v43 = vld.sshfl [vmem:[%s21940_s26 + $0x8] sm:$0xff pattern:$0x75316420] }
 0x106   : > { %14895 = vmatpush1.bf16.msra.mxu0 %v18890_v44  ;;  %13584 = vmatprep.subr.bf16.mxu1 %v18895_v45  ;;  %v22267_v44 = vld.sshfl [vmem:[%s21940_s26 + $0x48] sm:$0xff pattern:$0x75316420]  ;;  %v18979_v45 = vld [vmem:[%s21927_s22 + $0x3f4] ss:$8 sps:$4 sm:$0xff]  }
 0x107   : > { %14896 = vmatprep.subr.bf16.mxu0 %v18898_v46  ;;  %13614 = vmatprep.mubr.bf16.mxu1 %v2355_v26  ;;  %v18982_v46 = vld [vmem:[%s21927_s22 + $0x23f4] ss:$8 sps:$4 sm:$0xff]   ;;  %v18977_v26 = vld [vmem:[%s21927_s22 + $0x3f0] ss:$8 sps:$4 sm:$0xff]  }
 0x108   : > { %14926 = vmatprep.mubr.bf16.mxu0 %v2747_v47  ;;  %v18980_v47 = vld [vmem:[%s21927_s22 + $0x23f0] ss:$8 sps:$4 sm:$0xff]  }
 0x109   : > { %13585 = vmatpush1.bf16.msra.mxu1 %v18893_v27  ;;  %v18985_v27 = vld [vmem:[%s21927_s22 + $0x404] ss:$8 sps:$4 sm:$0xff]  }
 0x10a   : > { %14897 = vmatpush1.bf16.msra.mxu0 %v18896_v48  ;;  %13586 = vmatprep.subr.bf16.mxu1 %v18901_v38  ;;  %v18988_v48 = vld [vmem:[%s21927_s22 + $0x2404] ss:$8 sps:$4 sm:$0xff]   ;;  %v2371_v38 = vcombine.high %v22264_v43, %v22264_v43 }
 0x10b   : > { %14898 = vmatprep.subr.bf16.mxu0 %v18904_v49  ;;  %v2763_v49 = vcombine.high %v22267_v44, %v22267_v44 }
 0x10d   : > { %13587 = vmatpush1.bf16.msra.mxu1 %v18899_v18  ;;  %v18983_v18 = vld [vmem:[%s21927_s22 + $0x400] ss:$8 sps:$4 sm:$0xff]  }
 0x10e   : > { %14899 = vmatpush1.bf16.msra.mxu0 %v18902_v50  ;;  %13588 = vmatprep.subr.bf16.mxu1 %v18907_v52  ;;  %v18986_v50 = vld [vmem:[%s21927_s22 + $0x2400] ss:$8 sps:$4 sm:$0xff]   ;;  %v2353_v52 = vcombine.high %v22193_v41, %v22193_v41  ;;  %v18989_v41 = vld [vmem:[%s21927_s22 + $0x410] ss:$8 sps:$4 sm:$0xff]  }
 0x10f   : > { %14900 = vmatprep.subr.bf16.mxu0 %v18910_v53  ;;  %v2745_v53 = vcombine.high %v22197_v42, %v22197_v42  ;;  %v18992_v42 = vld [vmem:[%s21927_s22 + $0x2410] ss:$8 sps:$4 sm:$0xff]  }
 0x111   : > { %13589 = vmatpush1.bf16.msra.mxu1 %v18905_v55  ;;  %v18991_v55 = vld [vmem:[%s21927_s22 + $0x414] ss:$8 sps:$4 sm:$0xff]  }
 0x112   : > { %14901 = vmatpush1.bf16.msra.mxu0 %v18908_v56  ;;  %13590 = vmatprep.subr.bf16.mxu1 %v18913_v57  ;;  %v18994_v56 = vld [vmem:[%s21927_s22 + $0x2414] ss:$8 sps:$4 sm:$0xff]   ;;  %v22288_v57 = vrot.slane %v2371_v38, %v21993_v51  ;;  %v19069_v38 = vld [vmem:[%s21927_s22 + $0x4e4] ss:$8 sps:$4 sm:$0xff]  }
 0x113   : > { %14902 = vmatprep.subr.bf16.mxu0 %v18916_v59  ;;  %v22291_v59 = vrot.slane %v2763_v49, %v21993_v51  ;;  %v19072_v49 = vld [vmem:[%s21927_s22 + $0x24e4] ss:$8 sps:$4 sm:$0xff]  }
 0x115   : > { %13591 = vmatpush1.bf16.msra.mxu1 %v18911_v60  ;;  %v18997_v60 = vld [vmem:[%s21927_s22 + $0x424] ss:$8 sps:$4 sm:$0xff]  }
 0x116   : > { %14903 = vmatpush1.bf16.msra.mxu0 %v18914_v61  ;;  %13592 = vmatprep.subr.bf16.mxu1 %v18919_v62  ;;  %v19000_v61 = vld [vmem:[%s21927_s22 + $0x2424] ss:$8 sps:$4 sm:$0xff]   ;;  %v18995_v62 = vld [vmem:[%s21927_s22 + $0x420] ss:$8 sps:$4 sm:$0xff]  }
 0x117   : > { %14904 = vmatprep.subr.bf16.mxu0 %v18922_v63  ;;  %v18998_v63 = vld [vmem:[%s21927_s22 + $0x2420] ss:$8 sps:$4 sm:$0xff]  }
 0x119   : > { %13593 = vmatpush1.bf16.msra.mxu1 %v18917_v0  ;;  %v19003_v0 = vld [vmem:[%s21927_s22 + $0x434] ss:$8 sps:$4 sm:$0xff]  }
 0x11a   : > { %14905 = vmatpush1.bf16.msra.mxu0 %v18920_v1  ;;  %13594 = vmatprep.subr.bf16.mxu1 %v18925_v2  ;;  %v19006_v1 = vld [vmem:[%s21927_s22 + $0x2434] ss:$8 sps:$4 sm:$0xff]   ;;  %v19001_v2 = vld [vmem:[%s21927_s22 + $0x430] ss:$8 sps:$4 sm:$0xff]  }
 0x11b   : > { %14906 = vmatprep.subr.bf16.mxu0 %v18928_v3  ;;  %v19004_v3 = vld [vmem:[%s21927_s22 + $0x2430] ss:$8 sps:$4 sm:$0xff]  }
 0x11d   : > { %13595 = vmatpush1.bf16.msra.mxu1 %v18923_v4  ;;  %v19009_v4 = vld [vmem:[%s21927_s22 + $0x444] ss:$8 sps:$4 sm:$0xff]  }
 0x11e   : > { %14907 = vmatpush1.bf16.msra.mxu0 %v18926_v5  ;;  %13596 = vmatprep.subr.bf16.mxu1 %v18931_v6  ;;  %v19012_v5 = vld [vmem:[%s21927_s22 + $0x2444] ss:$8 sps:$4 sm:$0xff]   ;;  %v19007_v6 = vld [vmem:[%s21927_s22 + $0x440] ss:$8 sps:$4 sm:$0xff]  }
 0x11f   : > { %14908 = vmatprep.subr.bf16.mxu0 %v18934_v7  ;;  %v19010_v7 = vld [vmem:[%s21927_s22 + $0x2440] ss:$8 sps:$4 sm:$0xff]  }
 0x121   : > { %13597 = vmatpush1.bf16.msra.mxu1 %v18929_v8  ;;  %v19015_v8 = vld [vmem:[%s21927_s22 + $0x454] ss:$8 sps:$4 sm:$0xff]  }
 0x122   : > { %14909 = vmatpush1.bf16.msra.mxu0 %v18932_v9  ;;  %13598 = vmatprep.subr.bf16.mxu1 %v18937_v10  ;;  %v19018_v9 = vld [vmem:[%s21927_s22 + $0x2454] ss:$8 sps:$4 sm:$0xff]   ;;  %v19013_v10 = vld [vmem:[%s21927_s22 + $0x450] ss:$8 sps:$4 sm:$0xff]  }
 0x123   : > { %14910 = vmatprep.subr.bf16.mxu0 %v18940_v11  ;;  %v19016_v11 = vld [vmem:[%s21927_s22 + $0x2450] ss:$8 sps:$4 sm:$0xff]  }
 0x125   : > { %13599 = vmatpush1.bf16.msra.mxu1 %v18935_v12  ;;  %v19021_v12 = vld [vmem:[%s21927_s22 + $0x464] ss:$8 sps:$4 sm:$0xff]  }
 0x126   : > { %14911 = vmatpush1.bf16.msra.mxu0 %v18938_v13  ;;  %13600 = vmatprep.subr.bf16.mxu1 %v18943_v14  ;;  %v19024_v13 = vld [vmem:[%s21927_s22 + $0x2464] ss:$8 sps:$4 sm:$0xff]   ;;  %v19019_v14 = vld [vmem:[%s21927_s22 + $0x460] ss:$8 sps:$4 sm:$0xff]  }
 0x127   : > { %14912 = vmatprep.subr.bf16.mxu0 %v18946_v15  ;;  %v19022_v15 = vld [vmem:[%s21927_s22 + $0x2460] ss:$8 sps:$4 sm:$0xff]  }
 0x129   : > { %13601 = vmatpush1.bf16.msra.mxu1 %v18941_v16  ;;  %v19027_v16 = vld [vmem:[%s21927_s22 + $0x474] ss:$8 sps:$4 sm:$0xff]  }
 0x12a   : > { %14913 = vmatpush1.bf16.msra.mxu0 %v18944_v17  ;;  %13602 = vmatprep.subr.bf16.mxu1 %v18949_v20  ;;  %v19030_v17 = vld [vmem:[%s21927_s22 + $0x2474] ss:$8 sps:$4 sm:$0xff]   ;;  %v19025_v20 = vld [vmem:[%s21927_s22 + $0x470] ss:$8 sps:$4 sm:$0xff]  }
 0x12b   : > { %14914 = vmatprep.subr.bf16.mxu0 %v18952_v21  ;;  %v19028_v21 = vld [vmem:[%s21927_s22 + $0x2470] ss:$8 sps:$4 sm:$0xff]  }
 0x12d   : > { %13603 = vmatpush1.bf16.msra.mxu1 %v18947_v22  ;;  %v19033_v22 = vld [vmem:[%s21927_s22 + $0x484] ss:$8 sps:$4 sm:$0xff]  }
 0x12e   : > { %14915 = vmatpush1.bf16.msra.mxu0 %v18950_v23  ;;  %13604 = vmatprep.subr.bf16.mxu1 %v18955_v24  ;;  %v19036_v23 = vld [vmem:[%s21927_s22 + $0x2484] ss:$8 sps:$4 sm:$0xff]   ;;  %v19031_v24 = vld [vmem:[%s21927_s22 + $0x480] ss:$8 sps:$4 sm:$0xff]  }
 0x12f   : > { %14916 = vmatprep.subr.bf16.mxu0 %v18958_v25  ;;  %v19034_v25 = vld [vmem:[%s21927_s22 + $0x2480] ss:$8 sps:$4 sm:$0xff]  }
 0x131   : > { %13605 = vmatpush1.bf16.msra.mxu1 %v18953_v54  ;;  %v19039_v54 = vld [vmem:[%s21927_s22 + $0x494] ss:$8 sps:$4 sm:$0xff]  }
 0x132   : > { %14917 = vmatpush1.bf16.msra.mxu0 %v18956_v58  ;;  %13606 = vmatprep.subr.bf16.mxu1 %v18961_v28  ;;  %v19042_v58 = vld [vmem:[%s21927_s22 + $0x2494] ss:$8 sps:$4 sm:$0xff]   ;;  %v19037_v28 = vld [vmem:[%s21927_s22 + $0x490] ss:$8 sps:$4 sm:$0xff]  }
 0x133   : > { %14918 = vmatprep.subr.bf16.mxu0 %v18964_v29  ;;  %v19040_v29 = vld [vmem:[%s21927_s22 + $0x2490] ss:$8 sps:$4 sm:$0xff]  }
 0x135   : > { %13607 = vmatpush1.bf16.msra.mxu1 %v18959_v30  ;;  %v19045_v30 = vld [vmem:[%s21927_s22 + $0x4a4] ss:$8 sps:$4 sm:$0xff]  }
 0x136   : > { %14919 = vmatpush1.bf16.msra.mxu0 %v18962_v31  ;;  %13608 = vmatprep.subr.bf16.mxu1 %v18967_v32  ;;  %v19048_v31 = vld [vmem:[%s21927_s22 + $0x24a4] ss:$8 sps:$4 sm:$0xff]   ;;  %v19043_v32 = vld [vmem:[%s21927_s22 + $0x4a0] ss:$8 sps:$4 sm:$0xff]  }
 0x137   : > { %14920 = vmatprep.subr.bf16.mxu0 %v18970_v33  ;;  %v19046_v33 = vld [vmem:[%s21927_s22 + $0x24a0] ss:$8 sps:$4 sm:$0xff]  }
 0x139   : > { %13609 = vmatpush1.bf16.msra.mxu1 %v18965_v34  ;;  %v19051_v34 = vld [vmem:[%s21927_s22 + $0x4b4] ss:$8 sps:$4 sm:$0xff]  }
 0x13a   : > { %14921 = vmatpush1.bf16.msra.mxu0 %v18968_v35  ;;  %13610 = vmatprep.subr.bf16.mxu1 %v18973_v36  ;;  %v19054_v35 = vld [vmem:[%s21927_s22 + $0x24b4] ss:$8 sps:$4 sm:$0xff]   ;;  %v19049_v36 = vld [vmem:[%s21927_s22 + $0x4b0] ss:$8 sps:$4 sm:$0xff]  }
 0x13b   : > { %14922 = vmatprep.subr.bf16.mxu0 %v18976_v37  ;;  %v19052_v37 = vld [vmem:[%s21927_s22 + $0x24b0] ss:$8 sps:$4 sm:$0xff]  }
 0x13d   : > { %13611 = vmatpush1.bf16.msra.mxu1 %v18971_v19  ;;  %v19057_v19 = vld [vmem:[%s21927_s22 + $0x4c4] ss:$8 sps:$4 sm:$0xff]  }
 0x13e   : > { %14923 = vmatpush1.bf16.msra.mxu0 %v18974_v39  ;;  %13612 = vmatprep.subr.bf16.mxu1 %v18979_v45  ;;  %v19060_v39 = vld [vmem:[%s21927_s22 + $0x24c4] ss:$8 sps:$4 sm:$0xff]   ;;  %v19055_v45 = vld [vmem:[%s21927_s22 + $0x4c0] ss:$8 sps:$4 sm:$0xff]  }
 0x13f   : > { %14924 = vmatprep.subr.bf16.mxu0 %v18982_v46  ;;  %v19058_v46 = vld [vmem:[%s21927_s22 + $0x24c0] ss:$8 sps:$4 sm:$0xff]  }
 0x141   : > { %13613 = vmatpush1.bf16.msra.mxu1 %v18977_v26  ;;  %v19063_v26 = vld [vmem:[%s21927_s22 + $0x4d4] ss:$8 sps:$4 sm:$0xff]  }
 0x142   : > { %14925 = vmatpush1.bf16.msra.mxu0 %v18980_v47  ;;  %13623 = vmatprep.subr.bf16.mxu1 %v18985_v27  ;;  %v19066_v47 = vld [vmem:[%s21927_s22 + $0x24d4] ss:$8 sps:$4 sm:$0xff]   ;;  %v19061_v27 = vld [vmem:[%s21927_s22 + $0x4d0] ss:$8 sps:$4 sm:$0xff]  }
 0x143   : > { %14935 = vmatprep.subr.bf16.mxu0 %v18988_v48  ;;  %v19064_v48 = vld [vmem:[%s21927_s22 + $0x24d0] ss:$8 sps:$4 sm:$0xff]  }
 0x144   : > { %13615 = vmatmul.mubr.bf16.vlgmr.msra.gmra.mrb[0].mxu1 %v2353_v52  ;;  %v19075_v52 = vld [vmem:[%s21927_s22 + $0x4f4] ss:$8 sps:$4 sm:$0xff]  }
 0x145   : > { %14927 = vmatmul.mubr.bf16.vlgmr.msra.gmra.mrb[0].mxu0 %v2745_v53  ;;  %13624 = vmatpush1.bf16.msra.mxu1 %v18983_v18  ;;  %v19067_v18 = vld [vmem:[%s21927_s22 + $0x4e0] ss:$8 sps:$4 sm:$0xff]   ;;  %v19078_v53 = vld [vmem:[%s21927_s22 + $0x24f4] ss:$8 sps:$4 sm:$0xff]  }
 0x146   : > { %14936 = vmatpush1.bf16.msra.mxu0 %v18986_v50  ;;  %13625 = vmatprep.subr.bf16.mxu1 %v18991_v55  ;;  %v19070_v50 = vld [vmem:[%s21927_s22 + $0x24e0] ss:$8 sps:$4 sm:$0xff]   ;;  %v19073_v55 = vld [vmem:[%s21927_s22 + $0x4f0] ss:$8 sps:$4 sm:$0xff]  }
 0x147   : > { %14937 = vmatprep.subr.bf16.mxu0 %v18994_v56  ;;  %13655 = vmatprep.mubr.bf16.mxu1 %v22288_v57  ;;  %v19076_v56 = vld [vmem:[%s21927_s22 + $0x24f0] ss:$8 sps:$4 sm:$0xff]  }
 0x148   : > { %14967 = vmatprep.mubr.bf16.mxu0 %v22291_v59 }
 0x149   : > { %13626 = vmatpush1.bf16.msra.mxu1 %v18989_v41  ;;  %v19081_v41 = vld [vmem:[%s21927_s22 + $0x504] ss:$8 sps:$4 sm:$0xff]  }
 0x14a   : > { %14938 = vmatpush1.bf16.msra.mxu0 %v18992_v42  ;;  %13627 = vmatprep.subr.bf16.mxu1 %v18997_v60  ;;  %v19084_v42 = vld [vmem:[%s21927_s22 + $0x2504] ss:$8 sps:$4 sm:$0xff]   ;;  %v22357_v60 = vrot.slane %v22264_v43, %v21993_v51  ;;  %v2403_v43 = vcombine.high %v22288_v57, %v22288_v57 }
 0x14b   : > { %14939 = vmatprep.subr.bf16.mxu0 %v19000_v61  ;;  %v22361_v61 = vrot.slane %v22267_v44, %v21993_v51  ;;  %v19085_v44 = vld [vmem:[%s21927_s22 + $0x510] ss:$8 sps:$4 sm:$0xff]   ;;  %v19093_v57 = vld [vmem:[%s21927_s22 + $0x524] ss:$8 sps:$4 sm:$0xff]  }
 0x14d   : > { %13628 = vmatpush1.bf16.msra.mxu1 %v18995_v62  ;;  %v19079_v62 = vld [vmem:[%s21927_s22 + $0x500] ss:$8 sps:$4 sm:$0xff]  }
 0x14e   : > { %14940 = vmatpush1.bf16.msra.mxu0 %v18998_v63  ;;  %13629 = vmatprep.subr.bf16.mxu1 %v19003_v0  ;;  %v19082_v63 = vld [vmem:[%s21927_s22 + $0x2500] ss:$8 sps:$4 sm:$0xff]   ;;  %v19087_v0 = vld [vmem:[%s21927_s22 + $0x514] ss:$8 sps:$4 sm:$0xff]  }
 0x14f   : > { %14941 = vmatprep.subr.bf16.mxu0 %v19006_v1  ;;  %v19090_v1 = vld [vmem:[%s21927_s22 + $0x2514] ss:$8 sps:$4 sm:$0xff]  }
 0x151   : > { %13630 = vmatpush1.bf16.msra.mxu1 %v19001_v2  ;;  %v2795_v2 = vcombine.high %v22291_v59, %v22291_v59  ;;  %v19091_v59 = vld [vmem:[%s21927_s22 + $0x520] ss:$8 sps:$4 sm:$0xff]  }
 0x152   : > { %14942 = vmatpush1.bf16.msra.mxu0 %v19004_v3  ;;  %13631 = vmatprep.subr.bf16.mxu1 %v19009_v4  ;;  %v19088_v3 = vld [vmem:[%s21927_s22 + $0x2510] ss:$8 sps:$4 sm:$0xff]   ;;  %v19096_v4 = vld [vmem:[%s21927_s22 + $0x2524] ss:$8 sps:$4 sm:$0xff]  }
 0x153   : > { %14943 = vmatprep.subr.bf16.mxu0 %v19012_v5  ;;  %v19094_v5 = vld [vmem:[%s21927_s22 + $0x2520] ss:$8 sps:$4 sm:$0xff]  }
 0x155   : > { %13632 = vmatpush1.bf16.msra.mxu1 %v19007_v6  ;;  %v19099_v6 = vld [vmem:[%s21927_s22 + $0x534] ss:$8 sps:$4 sm:$0xff]  }
 0x156   : > { %14944 = vmatpush1.bf16.msra.mxu0 %v19010_v7  ;;  %13633 = vmatprep.subr.bf16.mxu1 %v19015_v8  ;;  %v19102_v7 = vld [vmem:[%s21927_s22 + $0x2534] ss:$8 sps:$4 sm:$0xff]   ;;  %v19097_v8 = vld [vmem:[%s21927_s22 + $0x530] ss:$8 sps:$4 sm:$0xff]  }
 0x157   : > { %14945 = vmatprep.subr.bf16.mxu0 %v19018_v9  ;;  %v19100_v9 = vld [vmem:[%s21927_s22 + $0x2530] ss:$8 sps:$4 sm:$0xff]  }
 0x159   : > { %13634 = vmatpush1.bf16.msra.mxu1 %v19013_v10  ;;  %v19105_v10 = vld [vmem:[%s21927_s22 + $0x544] ss:$8 sps:$4 sm:$0xff]  }
 0x15a   : > { %14946 = vmatpush1.bf16.msra.mxu0 %v19016_v11  ;;  %13635 = vmatprep.subr.bf16.mxu1 %v19021_v12  ;;  %v19108_v11 = vld [vmem:[%s21927_s22 + $0x2544] ss:$8 sps:$4 sm:$0xff]   ;;  %v19103_v12 = vld [vmem:[%s21927_s22 + $0x540] ss:$8 sps:$4 sm:$0xff]  }
 0x15b   : > { %14947 = vmatprep.subr.bf16.mxu0 %v19024_v13  ;;  %v19106_v13 = vld [vmem:[%s21927_s22 + $0x2540] ss:$8 sps:$4 sm:$0xff]  }
 0x15d   : > { %13636 = vmatpush1.bf16.msra.mxu1 %v19019_v14  ;;  %v19111_v14 = vld [vmem:[%s21927_s22 + $0x554] ss:$8 sps:$4 sm:$0xff]  }
 0x15e   : > { %14948 = vmatpush1.bf16.msra.mxu0 %v19022_v15  ;;  %13637 = vmatprep.subr.bf16.mxu1 %v19027_v16  ;;  %v19114_v15 = vld [vmem:[%s21927_s22 + $0x2554] ss:$8 sps:$4 sm:$0xff]   ;;  %v19109_v16 = vld [vmem:[%s21927_s22 + $0x550] ss:$8 sps:$4 sm:$0xff]  }
 0x15f   : > { %14949 = vmatprep.subr.bf16.mxu0 %v19030_v17  ;;  %v19112_v17 = vld [vmem:[%s21927_s22 + $0x2550] ss:$8 sps:$4 sm:$0xff]  }
 0x161   : > { %13638 = vmatpush1.bf16.msra.mxu1 %v19025_v20  ;;  %v19117_v20 = vld [vmem:[%s21927_s22 + $0x564] ss:$8 sps:$4 sm:$0xff]  }
 0x162   : > { %14950 = vmatpush1.bf16.msra.mxu0 %v19028_v21  ;;  %13639 = vmatprep.subr.bf16.mxu1 %v19033_v22  ;;  %v19120_v21 = vld [vmem:[%s21927_s22 + $0x2564] ss:$8 sps:$4 sm:$0xff]   ;;  %v19115_v22 = vld [vmem:[%s21927_s22 + $0x560] ss:$8 sps:$4 sm:$0xff]  }
 0x163   : > { %14951 = vmatprep.subr.bf16.mxu0 %v19036_v23  ;;  %v19118_v23 = vld [vmem:[%s21927_s22 + $0x2560] ss:$8 sps:$4 sm:$0xff]  }
 0x165   : > { %13640 = vmatpush1.bf16.msra.mxu1 %v19031_v24  ;;  %v19123_v24 = vld [vmem:[%s21927_s22 + $0x574] ss:$8 sps:$4 sm:$0xff]  }
 0x166   : > { %14952 = vmatpush1.bf16.msra.mxu0 %v19034_v25  ;;  %13641 = vmatprep.subr.bf16.mxu1 %v19039_v54  ;;  %v19126_v25 = vld [vmem:[%s21927_s22 + $0x2574] ss:$8 sps:$4 sm:$0xff]   ;;  %v19121_v54 = vld [vmem:[%s21927_s22 + $0x570] ss:$8 sps:$4 sm:$0xff]  }
 0x167   : > { %14953 = vmatprep.subr.bf16.mxu0 %v19042_v58  ;;  %v19124_v58 = vld [vmem:[%s21927_s22 + $0x2570] ss:$8 sps:$4 sm:$0xff]  }
 0x169   : > { %13642 = vmatpush1.bf16.msra.mxu1 %v19037_v28  ;;  %v19129_v28 = vld [vmem:[%s21927_s22 + $0x584] ss:$8 sps:$4 sm:$0xff]  }
 0x16a   : > { %14954 = vmatpush1.bf16.msra.mxu0 %v19040_v29  ;;  %13643 = vmatprep.subr.bf16.mxu1 %v19045_v30  ;;  %v19132_v29 = vld [vmem:[%s21927_s22 + $0x2584] ss:$8 sps:$4 sm:$0xff]   ;;  %v19127_v30 = vld [vmem:[%s21927_s22 + $0x580] ss:$8 sps:$4 sm:$0xff]  }
 0x16b   : > { %14955 = vmatprep.subr.bf16.mxu0 %v19048_v31  ;;  %v19130_v31 = vld [vmem:[%s21927_s22 + $0x2580] ss:$8 sps:$4 sm:$0xff]  }
 0x16d   : > { %13644 = vmatpush1.bf16.msra.mxu1 %v19043_v32  ;;  %v19135_v32 = vld [vmem:[%s21927_s22 + $0x594] ss:$8 sps:$4 sm:$0xff]  }
 0x16e   : > { %14956 = vmatpush1.bf16.msra.mxu0 %v19046_v33  ;;  %13645 = vmatprep.subr.bf16.mxu1 %v19051_v34  ;;  %v19138_v33 = vld [vmem:[%s21927_s22 + $0x2594] ss:$8 sps:$4 sm:$0xff]   ;;  %v19133_v34 = vld [vmem:[%s21927_s22 + $0x590] ss:$8 sps:$4 sm:$0xff]  }
 0x16f   : > { %14957 = vmatprep.subr.bf16.mxu0 %v19054_v35  ;;  %v19136_v35 = vld [vmem:[%s21927_s22 + $0x2590] ss:$8 sps:$4 sm:$0xff]  }
 0x171   : > { %13646 = vmatpush1.bf16.msra.mxu1 %v19049_v36  ;;  %v19141_v36 = vld [vmem:[%s21927_s22 + $0x5a4] ss:$8 sps:$4 sm:$0xff]  }
 0x172   : > { %14958 = vmatpush1.bf16.msra.mxu0 %v19052_v37  ;;  %13647 = vmatprep.subr.bf16.mxu1 %v19057_v19  ;;  %v19144_v37 = vld [vmem:[%s21927_s22 + $0x25a4] ss:$8 sps:$4 sm:$0xff]   ;;  %v19139_v19 = vld [vmem:[%s21927_s22 + $0x5a0] ss:$8 sps:$4 sm:$0xff]  }
 0x173   : > { %14959 = vmatprep.subr.bf16.mxu0 %v19060_v39  ;;  %v19142_v39 = vld [vmem:[%s21927_s22 + $0x25a0] ss:$8 sps:$4 sm:$0xff]  }
 0x175   : > { %13648 = vmatpush1.bf16.msra.mxu1 %v19055_v45  ;;  %v19147_v45 = vld [vmem:[%s21927_s22 + $0x5b4] ss:$8 sps:$4 sm:$0xff]  }
 0x176   : > { %14960 = vmatpush1.bf16.msra.mxu0 %v19058_v46  ;;  %13649 = vmatprep.subr.bf16.mxu1 %v19063_v26  ;;  %v19150_v46 = vld [vmem:[%s21927_s22 + $0x25b4] ss:$8 sps:$4 sm:$0xff]   ;;  %v19145_v26 = vld [vmem:[%s21927_s22 + $0x5b0] ss:$8 sps:$4 sm:$0xff]  }
 0x177   : > { %14961 = vmatprep.subr.bf16.mxu0 %v19066_v47  ;;  %v19148_v47 = vld [vmem:[%s21927_s22 + $0x25b0] ss:$8 sps:$4 sm:$0xff]  }
 0x179   : > { %13650 = vmatpush1.bf16.msra.mxu1 %v19061_v27  ;;  %v19153_v27 = vld [vmem:[%s21927_s22 + $0x5c4] ss:$8 sps:$4 sm:$0xff]  }
 0x17a   : > { %14962 = vmatpush1.bf16.msra.mxu0 %v19064_v48  ;;  %13651 = vmatprep.subr.bf16.mxu1 %v19069_v38  ;;  %v19156_v48 = vld [vmem:[%s21927_s22 + $0x25c4] ss:$8 sps:$4 sm:$0xff]   ;;  %v19151_v38 = vld [vmem:[%s21927_s22 + $0x5c0] ss:$8 sps:$4 sm:$0xff]  }
 0x17b   : > { %14963 = vmatprep.subr.bf16.mxu0 %v19072_v49  ;;  %v19154_v49 = vld [vmem:[%s21927_s22 + $0x25c0] ss:$8 sps:$4 sm:$0xff]  }
 0x17d   : > { %13652 = vmatpush1.bf16.msra.mxu1 %v19067_v18  ;;  %v19159_v18 = vld [vmem:[%s21927_s22 + $0x5d4] ss:$8 sps:$4 sm:$0xff]  }
 0x17e   : > { %14964 = vmatpush1.bf16.msra.mxu0 %v19070_v50  ;;  %13653 = vmatprep.subr.bf16.mxu1 %v19075_v52  ;;  %v19162_v50 = vld [vmem:[%s21927_s22 + $0x25d4] ss:$8 sps:$4 sm:$0xff]   ;;  %v19157_v52 = vld [vmem:[%s21927_s22 + $0x5d0] ss:$8 sps:$4 sm:$0xff]  }
 0x17f   : > { %14965 = vmatprep.subr.bf16.mxu0 %v19078_v53  ;;  %v19160_v53 = vld [vmem:[%s21927_s22 + $0x25d0] ss:$8 sps:$4 sm:$0xff]  }
 0x181   : > { %13654 = vmatpush1.bf16.msra.mxu1 %v19073_v55  ;;  %v19165_v55 = vld [vmem:[%s21927_s22 + $0x5e4] ss:$8 sps:$4 sm:$0xff]  }
 0x182   : > { %14966 = vmatpush1.bf16.msra.mxu0 %v19076_v56  ;;  %13664 = vmatprep.subr.bf16.mxu1 %v19081_v41  ;;  %v19168_v56 = vld [vmem:[%s21927_s22 + $0x25e4] ss:$8 sps:$4 sm:$0xff]  }
 0x183   : > { %14976 = vmatprep.subr.bf16.mxu0 %v19084_v42  ;;  %v21685_v41 = vld [vmem:[%s21940_s26 + $0x8] sm:$0xff] }
 0x184   : > { %13656 = vmatmul.mubr.bf16.vlgmr.msra.gmra.mrb[0].mxu1 %v22357_v60  ;;  %v2356_v42 = vcombine.high %v21685_v41, %v21685_v41  ;;  %v19243_v41 = vld [vmem:[%s21927_s22 + $0x6b4] ss:$8 sps:$4 sm:$0xff]  }
 0x185   : > { %14968 = vmatmul.mubr.bf16.vlgmr.msra.gmra.mrb[0].mxu0 %v22361_v61  ;;  %13665 = vmatpush1.bf16.msra.mxu1 %v19079_v62  ;;  %v21686_v62 = vld [vmem:[%s21940_s26 + $0x48] sm:$0xff] }
 0x186   : > { %14977 = vmatpush1.bf16.msra.mxu0 %v19082_v63  ;;  %13666 = vmatprep.subr.bf16.mxu1 %v19087_v0  ;;  %v2748_v63 = vcombine.high %v21686_v62, %v21686_v62  ;;  %v19163_v0 = vld [vmem:[%s21927_s22 + $0x5e0] ss:$8 sps:$4 sm:$0xff]   ;;  %v19241_v62 = vld [vmem:[%s21927_s22 + $0x6b0] ss:$8 sps:$4 sm:$0xff]  }
 0x187   : > { %14978 = vmatprep.subr.bf16.mxu0 %v19090_v1  ;;  %13696 = vmatprep.mubr.bf16.mxu1 %v2403_v43  ;;  %v19166_v1 = vld [vmem:[%s21927_s22 + $0x25e0] ss:$8 sps:$4 sm:$0xff]   ;;  %v19171_v43 = vld [vmem:[%s21927_s22 + $0x5f4] ss:$8 sps:$4 sm:$0xff]  }
 0x188   : > { %15008 = vmatprep.mubr.bf16.mxu0 %v2795_v2  ;;  %v19174_v2 = vld [vmem:[%s21927_s22 + $0x25f4] ss:$8 sps:$4 sm:$0xff]  }
 0x189   : > { %13667 = vmatpush1.bf16.msra.mxu1 %v19085_v44  ;;  %v22432_v44 = vrot.slane %v2356_v42, %v21993_v51  ;;  %v19246_v42 = vld [vmem:[%s21927_s22 + $0x26b4] ss:$8 sps:$4 sm:$0xff]  }
 0x18a   : > { %14979 = vmatpush1.bf16.msra.mxu0 %v19088_v3  ;;  %13668 = vmatprep.subr.bf16.mxu1 %v19093_v57  ;;  %v22435_v3 = vrot.slane %v2748_v63, %v21993_v51  ;;  %v19169_v57 = vld [vmem:[%s21927_s22 + $0x5f0] ss:$8 sps:$4 sm:$0xff]  }
 0x18b   : > { %14980 = vmatprep.subr.bf16.mxu0 %v19096_v4  ;;  %v19172_v4 = vld [vmem:[%s21927_s22 + $0x25f0] ss:$8 sps:$4 sm:$0xff]  }
 0x18c   : > { %v19244_v63 = vld [vmem:[%s21927_s22 + $0x26b0] ss:$8 sps:$4 sm:$0xff]  }
 0x18d   : > { %13669 = vmatpush1.bf16.msra.mxu1 %v19091_v59  ;;  %v19177_v59 = vld [vmem:[%s21927_s22 + $0x604] ss:$8 sps:$4 sm:$0xff]  }
 0x18e   : > { %14981 = vmatpush1.bf16.msra.mxu0 %v19094_v5  ;;  %13670 = vmatprep.subr.bf16.mxu1 %v19099_v6  ;;  %v19180_v5 = vld [vmem:[%s21927_s22 + $0x2604] ss:$8 sps:$4 sm:$0xff]   ;;  %v2372_v6 = vcombine.high %v22432_v44, %v22432_v44 }
 0x18f   : > { %14982 = vmatprep.subr.bf16.mxu0 %v19102_v7  ;;  %v2764_v7 = vcombine.high %v22435_v3, %v22435_v3 }
 0x191   : > { %13671 = vmatpush1.bf16.msra.mxu1 %v19097_v8  ;;  %v2401_v8 = vcombine.high %v22357_v60, %v22357_v60  ;;  %v22457_v60 = vrot.slane %v2764_v7, %v21993_v51  ;;  %v19264_v7 = vld [vmem:[%s21927_s22 + $0x26e4] ss:$8 sps:$4 sm:$0xff]  }
 0x192   : > { %14983 = vmatpush1.bf16.msra.mxu0 %v19100_v9  ;;  %13672 = vmatprep.subr.bf16.mxu1 %v19105_v10  ;;  %v2793_v9 = vcombine.high %v22361_v61, %v22361_v61  ;;  %v19175_v10 = vld [vmem:[%s21927_s22 + $0x600] ss:$8 sps:$4 sm:$0xff]   ;;  %v19181_v61 = vld [vmem:[%s21927_s22 + $0x610] ss:$8 sps:$4 sm:$0xff]  }
 0x193   : > { %14984 = vmatprep.subr.bf16.mxu0 %v19108_v11  ;;  %v19178_v11 = vld [vmem:[%s21927_s22 + $0x2600] ss:$8 sps:$4 sm:$0xff]  }
 0x195   : > { %13673 = vmatpush1.bf16.msra.mxu1 %v19103_v12  ;;  %v19183_v12 = vld [vmem:[%s21927_s22 + $0x614] ss:$8 sps:$4 sm:$0xff]  }
 0x196   : > { %14985 = vmatpush1.bf16.msra.mxu0 %v19106_v13  ;;  %13674 = vmatprep.subr.bf16.mxu1 %v19111_v14  ;;  %v19186_v13 = vld [vmem:[%s21927_s22 + $0x2614] ss:$8 sps:$4 sm:$0xff]   ;;  %v22454_v14 = vrot.slane %v2372_v6, %v21993_v51  ;;  %v19261_v6 = vld [vmem:[%s21927_s22 + $0x6e4] ss:$8 sps:$4 sm:$0xff]  }
 0x197   : > { %14986 = vmatprep.subr.bf16.mxu0 %v19114_v15  ;;  %v19184_v15 = vld [vmem:[%s21927_s22 + $0x2610] ss:$8 sps:$4 sm:$0xff]  }
 0x199   : > { %13675 = vmatpush1.bf16.msra.mxu1 %v19109_v16  ;;  %v19189_v16 = vld [vmem:[%s21927_s22 + $0x624] ss:$8 sps:$4 sm:$0xff]  }
 0x19a   : > { %14987 = vmatpush1.bf16.msra.mxu0 %v19112_v17  ;;  %13676 = vmatprep.subr.bf16.mxu1 %v19117_v20  ;;  %v19192_v17 = vld [vmem:[%s21927_s22 + $0x2624] ss:$8 sps:$4 sm:$0xff]   ;;  %v19187_v20 = vld [vmem:[%s21927_s22 + $0x620] ss:$8 sps:$4 sm:$0xff]  }
 0x19b   : > { %14988 = vmatprep.subr.bf16.mxu0 %v19120_v21  ;;  %v19190_v21 = vld [vmem:[%s21927_s22 + $0x2620] ss:$8 sps:$4 sm:$0xff]  }
 0x19d   : > { %13677 = vmatpush1.bf16.msra.mxu1 %v19115_v22  ;;  %v19195_v22 = vld [vmem:[%s21927_s22 + $0x634] ss:$8 sps:$4 sm:$0xff]  }
 0x19e   : > { %14989 = vmatpush1.bf16.msra.mxu0 %v19118_v23  ;;  %13678 = vmatprep.subr.bf16.mxu1 %v19123_v24  ;;  %v19198_v23 = vld [vmem:[%s21927_s22 + $0x2634] ss:$8 sps:$4 sm:$0xff]   ;;  %v19193_v24 = vld [vmem:[%s21927_s22 + $0x630] ss:$8 sps:$4 sm:$0xff]  }
 0x19f   : > { %14990 = vmatprep.subr.bf16.mxu0 %v19126_v25  ;;  %v19196_v25 = vld [vmem:[%s21927_s22 + $0x2630] ss:$8 sps:$4 sm:$0xff]  }
 0x1a1   : > { %13679 = vmatpush1.bf16.msra.mxu1 %v19121_v54  ;;  %v19201_v54 = vld [vmem:[%s21927_s22 + $0x644] ss:$8 sps:$4 sm:$0xff]  }
 0x1a2   : > { %14991 = vmatpush1.bf16.msra.mxu0 %v19124_v58  ;;  %13680 = vmatprep.subr.bf16.mxu1 %v19129_v28  ;;  %v19204_v58 = vld [vmem:[%s21927_s22 + $0x2644] ss:$8 sps:$4 sm:$0xff]   ;;  %v19199_v28 = vld [vmem:[%s21927_s22 + $0x640] ss:$8 sps:$4 sm:$0xff]  }
 0x1a3   : > { %14992 = vmatprep.subr.bf16.mxu0 %v19132_v29  ;;  %v19202_v29 = vld [vmem:[%s21927_s22 + $0x2640] ss:$8 sps:$4 sm:$0xff]  }
 0x1a5   : > { %13681 = vmatpush1.bf16.msra.mxu1 %v19127_v30  ;;  %v19207_v30 = vld [vmem:[%s21927_s22 + $0x654] ss:$8 sps:$4 sm:$0xff]  }
 0x1a6   : > { %14993 = vmatpush1.bf16.msra.mxu0 %v19130_v31  ;;  %13682 = vmatprep.subr.bf16.mxu1 %v19135_v32  ;;  %v19210_v31 = vld [vmem:[%s21927_s22 + $0x2654] ss:$8 sps:$4 sm:$0xff]   ;;  %v19205_v32 = vld [vmem:[%s21927_s22 + $0x650] ss:$8 sps:$4 sm:$0xff]  }
 0x1a7   : > { %14994 = vmatprep.subr.bf16.mxu0 %v19138_v33  ;;  %v19208_v33 = vld [vmem:[%s21927_s22 + $0x2650] ss:$8 sps:$4 sm:$0xff]  }
 0x1a9   : > { %13683 = vmatpush1.bf16.msra.mxu1 %v19133_v34  ;;  %v19213_v34 = vld [vmem:[%s21927_s22 + $0x664] ss:$8 sps:$4 sm:$0xff]  }
 0x1aa   : > { %14995 = vmatpush1.bf16.msra.mxu0 %v19136_v35  ;;  %13684 = vmatprep.subr.bf16.mxu1 %v19141_v36  ;;  %v19216_v35 = vld [vmem:[%s21927_s22 + $0x2664] ss:$8 sps:$4 sm:$0xff]   ;;  %v19211_v36 = vld [vmem:[%s21927_s22 + $0x660] ss:$8 sps:$4 sm:$0xff]  }
 0x1ab   : > { %14996 = vmatprep.subr.bf16.mxu0 %v19144_v37  ;;  %v19214_v37 = vld [vmem:[%s21927_s22 + $0x2660] ss:$8 sps:$4 sm:$0xff]  }
 0x1ad   : > { %13685 = vmatpush1.bf16.msra.mxu1 %v19139_v19  ;;  %v19219_v19 = vld [vmem:[%s21927_s22 + $0x674] ss:$8 sps:$4 sm:$0xff]  }
 0x1ae   : > { %14997 = vmatpush1.bf16.msra.mxu0 %v19142_v39  ;;  %13686 = vmatprep.subr.bf16.mxu1 %v19147_v45  ;;  %v19222_v39 = vld [vmem:[%s21927_s22 + $0x2674] ss:$8 sps:$4 sm:$0xff]   ;;  %v19217_v45 = vld [vmem:[%s21927_s22 + $0x670] ss:$8 sps:$4 sm:$0xff]  }
 0x1af   : > { %14998 = vmatprep.subr.bf16.mxu0 %v19150_v46  ;;  %v19220_v46 = vld [vmem:[%s21927_s22 + $0x2670] ss:$8 sps:$4 sm:$0xff]  }
 0x1b1   : > { %13687 = vmatpush1.bf16.msra.mxu1 %v19145_v26  ;;  %v19225_v26 = vld [vmem:[%s21927_s22 + $0x684] ss:$8 sps:$4 sm:$0xff]  }
 0x1b2   : > { %14999 = vmatpush1.bf16.msra.mxu0 %v19148_v47  ;;  %13688 = vmatprep.subr.bf16.mxu1 %v19153_v27  ;;  %v19228_v47 = vld [vmem:[%s21927_s22 + $0x2684] ss:$8 sps:$4 sm:$0xff]   ;;  %v19223_v27 = vld [vmem:[%s21927_s22 + $0x680] ss:$8 sps:$4 sm:$0xff]  }
 0x1b3   : > { %15000 = vmatprep.subr.bf16.mxu0 %v19156_v48  ;;  %v19226_v48 = vld [vmem:[%s21927_s22 + $0x2680] ss:$8 sps:$4 sm:$0xff]  }
 0x1b5   : > { %13689 = vmatpush1.bf16.msra.mxu1 %v19151_v38  ;;  %v19231_v38 = vld [vmem:[%s21927_s22 + $0x694] ss:$8 sps:$4 sm:$0xff]  }
 0x1b6   : > { %15001 = vmatpush1.bf16.msra.mxu0 %v19154_v49  ;;  %13690 = vmatprep.subr.bf16.mxu1 %v19159_v18  ;;  %v19234_v49 = vld [vmem:[%s21927_s22 + $0x2694] ss:$8 sps:$4 sm:$0xff]   ;;  %v19229_v18 = vld [vmem:[%s21927_s22 + $0x690] ss:$8 sps:$4 sm:$0xff]  }
 0x1b7   : > { %15002 = vmatprep.subr.bf16.mxu0 %v19162_v50  ;;  %v19232_v50 = vld [vmem:[%s21927_s22 + $0x2690] ss:$8 sps:$4 sm:$0xff]  }
 0x1b9   : > { %13691 = vmatpush1.bf16.msra.mxu1 %v19157_v52  ;;  %v19237_v52 = vld [vmem:[%s21927_s22 + $0x6a4] ss:$8 sps:$4 sm:$0xff]  }
 0x1ba   : > { %15003 = vmatpush1.bf16.msra.mxu0 %v19160_v53  ;;  %13692 = vmatprep.subr.bf16.mxu1 %v19165_v55  ;;  %v19240_v53 = vld [vmem:[%s21927_s22 + $0x26a4] ss:$8 sps:$4 sm:$0xff]   ;;  %v19235_v55 = vld [vmem:[%s21927_s22 + $0x6a0] ss:$8 sps:$4 sm:$0xff]  }
 0x1bb   : > { %15004 = vmatprep.subr.bf16.mxu0 %v19168_v56  ;;  %v19238_v56 = vld [vmem:[%s21927_s22 + $0x26a0] ss:$8 sps:$4 sm:$0xff]  }
 0x1bd   : > { %13693 = vmatpush1.bf16.msra.mxu1 %v19163_v0  ;;  %v19249_v0 = vld [vmem:[%s21927_s22 + $0x6c4] ss:$8 sps:$4 sm:$0xff]  }
 0x1be   : > { %15005 = vmatpush1.bf16.msra.mxu0 %v19166_v1  ;;  %13694 = vmatprep.subr.bf16.mxu1 %v19171_v43  ;;  %v19252_v1 = vld [vmem:[%s21927_s22 + $0x26c4] ss:$8 sps:$4 sm:$0xff]   ;;  %v19247_v43 = vld [vmem:[%s21927_s22 + $0x6c0] ss:$8 sps:$4 sm:$0xff]  }
 0x1bf   : > { %15006 = vmatprep.subr.bf16.mxu0 %v19174_v2  ;;  %v19250_v2 = vld [vmem:[%s21927_s22 + $0x26c0] ss:$8 sps:$4 sm:$0xff]  }
 0x1c1   : > { %13695 = vmatpush1.bf16.msra.mxu1 %v19169_v57  ;;  %v19255_v57 = vld [vmem:[%s21927_s22 + $0x6d4] ss:$8 sps:$4 sm:$0xff]  }
 0x1c2   : > { %15007 = vmatpush1.bf16.msra.mxu0 %v19172_v4  ;;  %13705 = vmatprep.subr.bf16.mxu1 %v19177_v59  ;;  %v19258_v4 = vld [vmem:[%s21927_s22 + $0x26d4] ss:$8 sps:$4 sm:$0xff]   ;;  %v19253_v59 = vld [vmem:[%s21927_s22 + $0x6d0] ss:$8 sps:$4 sm:$0xff]  }
 0x1c3   : > { %15017 = vmatprep.subr.bf16.mxu0 %v19180_v5  ;;  %v19256_v5 = vld [vmem:[%s21927_s22 + $0x26d0] ss:$8 sps:$4 sm:$0xff]  }
 0x1c4   : > { %13697 = vmatmul.mubr.bf16.vlgmr.msra.gmra.mrb[0].mxu1 %v2401_v8  ;;  %v19259_v8 = vld [vmem:[%s21927_s22 + $0x6e0] ss:$8 sps:$4 sm:$0xff]  }
 0x1c5   : > { %15009 = vmatmul.mubr.bf16.vlgmr.msra.gmra.mrb[0].mxu0 %v2793_v9  ;;  %13706 = vmatpush1.bf16.msra.mxu1 %v19175_v10  ;;  %v19262_v9 = vld [vmem:[%s21927_s22 + $0x26e0] ss:$8 sps:$4 sm:$0xff]   ;;  %v19267_v10 = vld [vmem:[%s21927_s22 + $0x6f4] ss:$8 sps:$4 sm:$0xff]  }
 0x1c6   : > { %15018 = vmatpush1.bf16.msra.mxu0 %v19178_v11  ;;  %13707 = vmatprep.subr.bf16.mxu1 %v19183_v12  ;;  %v19270_v11 = vld [vmem:[%s21927_s22 + $0x26f4] ss:$8 sps:$4 sm:$0xff]   ;;  %v19265_v12 = vld [vmem:[%s21927_s22 + $0x6f0] ss:$8 sps:$4 sm:$0xff]  }
 0x1c7   : > { %15019 = vmatprep.subr.bf16.mxu0 %v19186_v13  ;;  %13737 = vmatprep.mubr.bf16.mxu1 %v22454_v14  ;;  %v19268_v13 = vld [vmem:[%s21927_s22 + $0x26f0] ss:$8 sps:$4 sm:$0xff]  }
 0x1c8   : > { %15049 = vmatprep.mubr.bf16.mxu0 %v22457_v60 }
 0x1c9   : > { %13708 = vmatpush1.bf16.msra.mxu1 %v19181_v61  ;;  %v19274_v61 = vld [vmem:[%s21927_s22 + $0x704] ss:$8 sps:$4 sm:$0xff]  }
 0x1ca   : > { %15020 = vmatpush1.bf16.msra.mxu0 %v19184_v15  ;;  %13709 = vmatprep.subr.bf16.mxu1 %v19189_v16  ;;  %v19278_v15 = vld [vmem:[%s21927_s22 + $0x2704] ss:$8 sps:$4 sm:$0xff]   ;;  %v22523_v16 = vrot.slane %v22432_v44, %v21993_v51  ;;  %v2404_v44 = vcombine.high %v22454_v14, %v22454_v14 }
 0x1cb   : > { %15021 = vmatprep.subr.bf16.mxu0 %v19192_v17  ;;  %v22527_v17 = vrot.slane %v22435_v3, %v21993_v51  ;;  %v19279_v3 = vld [vmem:[%s21927_s22 + $0x710] ss:$8 sps:$4 sm:$0xff]   ;;  %v19287_v14 = vld [vmem:[%s21927_s22 + $0x724] ss:$8 sps:$4 sm:$0xff]  }
 0x1cd   : > { %13710 = vmatpush1.bf16.msra.mxu1 %v19187_v20  ;;  %v19272_v20 = vld [vmem:[%s21927_s22 + $0x700] ss:$8 sps:$4 sm:$0xff]  }
 0x1ce   : > { %15022 = vmatpush1.bf16.msra.mxu0 %v19190_v21  ;;  %13711 = vmatprep.subr.bf16.mxu1 %v19195_v22  ;;  %v19276_v21 = vld [vmem:[%s21927_s22 + $0x2700] ss:$8 sps:$4 sm:$0xff]   ;;  %v19281_v22 = vld [vmem:[%s21927_s22 + $0x714] ss:$8 sps:$4 sm:$0xff]  }
 0x1cf   : > { %15023 = vmatprep.subr.bf16.mxu0 %v19198_v23  ;;  %v19284_v23 = vld [vmem:[%s21927_s22 + $0x2714] ss:$8 sps:$4 sm:$0xff]  }
 0x1d1   : > { %13712 = vmatpush1.bf16.msra.mxu1 %v19193_v24  ;;  %v2796_v24 = vcombine.high %v22457_v60, %v22457_v60  ;;  %v19285_v60 = vld [vmem:[%s21927_s22 + $0x720] ss:$8 sps:$4 sm:$0xff]  }
 0x1d2   : > { %15024 = vmatpush1.bf16.msra.mxu0 %v19196_v25  ;;  %13713 = vmatprep.subr.bf16.mxu1 %v19201_v54  ;;  %v19282_v25 = vld [vmem:[%s21927_s22 + $0x2710] ss:$8 sps:$4 sm:$0xff]   ;;  %v19290_v54 = vld [vmem:[%s21927_s22 + $0x2724] ss:$8 sps:$4 sm:$0xff]  }
 0x1d3   : > { %15025 = vmatprep.subr.bf16.mxu0 %v19204_v58  ;;  %v19288_v58 = vld [vmem:[%s21927_s22 + $0x2720] ss:$8 sps:$4 sm:$0xff]  }
 0x1d5   : > { %13714 = vmatpush1.bf16.msra.mxu1 %v19199_v28  ;;  %v19293_v28 = vld [vmem:[%s21927_s22 + $0x734] ss:$8 sps:$4 sm:$0xff]  }
 0x1d6   : > { %15026 = vmatpush1.bf16.msra.mxu0 %v19202_v29  ;;  %13715 = vmatprep.subr.bf16.mxu1 %v19207_v30  ;;  %v19296_v29 = vld [vmem:[%s21927_s22 + $0x2734] ss:$8 sps:$4 sm:$0xff]   ;;  %v19291_v30 = vld [vmem:[%s21927_s22 + $0x730] ss:$8 sps:$4 sm:$0xff]  }
 0x1d7   : > { %15027 = vmatprep.subr.bf16.mxu0 %v19210_v31  ;;  %v19294_v31 = vld [vmem:[%s21927_s22 + $0x2730] ss:$8 sps:$4 sm:$0xff]  }
 0x1d9   : > { %13716 = vmatpush1.bf16.msra.mxu1 %v19205_v32  ;;  %v19299_v32 = vld [vmem:[%s21927_s22 + $0x744] ss:$8 sps:$4 sm:$0xff]  }
 0x1da   : > { %15028 = vmatpush1.bf16.msra.mxu0 %v19208_v33  ;;  %13717 = vmatprep.subr.bf16.mxu1 %v19213_v34  ;;  %v19302_v33 = vld [vmem:[%s21927_s22 + $0x2744] ss:$8 sps:$4 sm:$0xff]   ;;  %v19297_v34 = vld [vmem:[%s21927_s22 + $0x740] ss:$8 sps:$4 sm:$0xff]  }
 0x1db   : > { %15029 = vmatprep.subr.bf16.mxu0 %v19216_v35  ;;  %v19300_v35 = vld [vmem:[%s21927_s22 + $0x2740] ss:$8 sps:$4 sm:$0xff]  }
 0x1dd   : > { %13718 = vmatpush1.bf16.msra.mxu1 %v19211_v36  ;;  %v19305_v36 = vld [vmem:[%s21927_s22 + $0x754] ss:$8 sps:$4 sm:$0xff]  }
 0x1de   : > { %15030 = vmatpush1.bf16.msra.mxu0 %v19214_v37  ;;  %13719 = vmatprep.subr.bf16.mxu1 %v19219_v19  ;;  %v19308_v37 = vld [vmem:[%s21927_s22 + $0x2754] ss:$8 sps:$4 sm:$0xff]   ;;  %v19303_v19 = vld [vmem:[%s21927_s22 + $0x750] ss:$8 sps:$4 sm:$0xff]  }
 0x1df   : > { %15031 = vmatprep.subr.bf16.mxu0 %v19222_v39  ;;  %v19306_v39 = vld [vmem:[%s21927_s22 + $0x2750] ss:$8 sps:$4 sm:$0xff]  }
 0x1e1   : > { %13720 = vmatpush1.bf16.msra.mxu1 %v19217_v45  ;;  %v19311_v45 = vld [vmem:[%s21927_s22 + $0x764] ss:$8 sps:$4 sm:$0xff]  }
 0x1e2   : > { %15032 = vmatpush1.bf16.msra.mxu0 %v19220_v46  ;;  %13721 = vmatprep.subr.bf16.mxu1 %v19225_v26  ;;  %v19314_v46 = vld [vmem:[%s21927_s22 + $0x2764] ss:$8 sps:$4 sm:$0xff]   ;;  %v19309_v26 = vld [vmem:[%s21927_s22 + $0x760] ss:$8 sps:$4 sm:$0xff]  }
 0x1e3   : > { %15033 = vmatprep.subr.bf16.mxu0 %v19228_v47  ;;  %v19312_v47 = vld [vmem:[%s21927_s22 + $0x2760] ss:$8 sps:$4 sm:$0xff]  }
 0x1e5   : > { %13722 = vmatpush1.bf16.msra.mxu1 %v19223_v27  ;;  %v19317_v27 = vld [vmem:[%s21927_s22 + $0x774] ss:$8 sps:$4 sm:$0xff]  }
 0x1e6   : > { %15034 = vmatpush1.bf16.msra.mxu0 %v19226_v48  ;;  %13723 = vmatprep.subr.bf16.mxu1 %v19231_v38  ;;  %v19320_v48 = vld [vmem:[%s21927_s22 + $0x2774] ss:$8 sps:$4 sm:$0xff]   ;;  %v19315_v38 = vld [vmem:[%s21927_s22 + $0x770] ss:$8 sps:$4 sm:$0xff]  }
 0x1e7   : > { %15035 = vmatprep.subr.bf16.mxu0 %v19234_v49  ;;  %v19318_v49 = vld [vmem:[%s21927_s22 + $0x2770] ss:$8 sps:$4 sm:$0xff]  }
 0x1e9   : > { %13724 = vmatpush1.bf16.msra.mxu1 %v19229_v18  ;;  %v19323_v18 = vld [vmem:[%s21927_s22 + $0x784] ss:$8 sps:$4 sm:$0xff]  }
 0x1ea   : > { %15036 = vmatpush1.bf16.msra.mxu0 %v19232_v50  ;;  %13725 = vmatprep.subr.bf16.mxu1 %v19237_v52  ;;  %v19326_v50 = vld [vmem:[%s21927_s22 + $0x2784] ss:$8 sps:$4 sm:$0xff]   ;;  %v19321_v52 = vld [vmem:[%s21927_s22 + $0x780] ss:$8 sps:$4 sm:$0xff]  }
 0x1eb   : > { %15037 = vmatprep.subr.bf16.mxu0 %v19240_v53  ;;  %v19324_v53 = vld [vmem:[%s21927_s22 + $0x2780] ss:$8 sps:$4 sm:$0xff]  }
 0x1ed   : > { %13726 = vmatpush1.bf16.msra.mxu1 %v19235_v55  ;;  %v19329_v55 = vld [vmem:[%s21927_s22 + $0x794] ss:$8 sps:$4 sm:$0xff]  }
 0x1ee   : > { %15038 = vmatpush1.bf16.msra.mxu0 %v19238_v56  ;;  %13727 = vmatprep.subr.bf16.mxu1 %v19243_v41  ;;  %v19332_v56 = vld [vmem:[%s21927_s22 + $0x2794] ss:$8 sps:$4 sm:$0xff]   ;;  %v19327_v41 = vld [vmem:[%s21927_s22 + $0x790] ss:$8 sps:$4 sm:$0xff]  }
 0x1ef   : > { %15039 = vmatprep.subr.bf16.mxu0 %v19246_v42  ;;  %v19330_v42 = vld [vmem:[%s21927_s22 + $0x2790] ss:$8 sps:$4 sm:$0xff]  }
 0x1f1   : > { %13728 = vmatpush1.bf16.msra.mxu1 %v19241_v62  ;;  %v19335_v62 = vld [vmem:[%s21927_s22 + $0x7a4] ss:$8 sps:$4 sm:$0xff]  }
 0x1f2   : > { %15040 = vmatpush1.bf16.msra.mxu0 %v19244_v63  ;;  %13729 = vmatprep.subr.bf16.mxu1 %v19249_v0  ;;  %v19338_v63 = vld [vmem:[%s21927_s22 + $0x27a4] ss:$8 sps:$4 sm:$0xff]   ;;  %v19333_v0 = vld [vmem:[%s21927_s22 + $0x7a0] ss:$8 sps:$4 sm:$0xff]  }
 0x1f3   : > { %15041 = vmatprep.subr.bf16.mxu0 %v19252_v1  ;;  %v19336_v1 = vld [vmem:[%s21927_s22 + $0x27a0] ss:$8 sps:$4 sm:$0xff]  }
 0x1f5   : > { %13730 = vmatpush1.bf16.msra.mxu1 %v19247_v43  ;;  %v19341_v43 = vld [vmem:[%s21927_s22 + $0x7b4] ss:$8 sps:$4 sm:$0xff]  }
 0x1f6   : > { %15042 = vmatpush1.bf16.msra.mxu0 %v19250_v2  ;;  %13731 = vmatprep.subr.bf16.mxu1 %v19255_v57  ;;  %v19344_v2 = vld [vmem:[%s21927_s22 + $0x27b4] ss:$8 sps:$4 sm:$0xff]   ;;  %v19339_v57 = vld [vmem:[%s21927_s22 + $0x7b0] ss:$8 sps:$4 sm:$0xff]  }
 0x1f7   : > { %15043 = vmatprep.subr.bf16.mxu0 %v19258_v4  ;;  %v19342_v4 = vld [vmem:[%s21927_s22 + $0x27b0] ss:$8 sps:$4 sm:$0xff]  }
 0x1f9   : > { %13732 = vmatpush1.bf16.msra.mxu1 %v19253_v59  ;;  %v19347_v59 = vld [vmem:[%s21927_s22 + $0x7c4] ss:$8 sps:$4 sm:$0xff]  }
 0x1fa   : > { %15044 = vmatpush1.bf16.msra.mxu0 %v19256_v5  ;;  %13733 = vmatprep.subr.bf16.mxu1 %v19261_v6  ;;  %v19350_v5 = vld [vmem:[%s21927_s22 + $0x27c4] ss:$8 sps:$4 sm:$0xff]   ;;  %v19345_v6 = vld [vmem:[%s21927_s22 + $0x7c0] ss:$8 sps:$4 sm:$0xff]  }
 0x1fb   : > { %15045 = vmatprep.subr.bf16.mxu0 %v19264_v7  ;;  %v19348_v7 = vld [vmem:[%s21927_s22 + $0x27c0] ss:$8 sps:$4 sm:$0xff]  }
 0x1fd   : > { %13734 = vmatpush1.bf16.msra.mxu1 %v19259_v8  ;;  %v19353_v8 = vld [vmem:[%s21927_s22 + $0x7d4] ss:$8 sps:$4 sm:$0xff]  }
 0x1fe   : > { %15046 = vmatpush1.bf16.msra.mxu0 %v19262_v9  ;;  %13735 = vmatprep.subr.bf16.mxu1 %v19267_v10  ;;  %v19356_v9 = vld [vmem:[%s21927_s22 + $0x27d4] ss:$8 sps:$4 sm:$0xff]   ;;  %v19351_v10 = vld [vmem:[%s21927_s22 + $0x7d0] ss:$8 sps:$4 sm:$0xff]  }
 0x1ff   : > { %15047 = vmatprep.subr.bf16.mxu0 %v19270_v11  ;;  %v19354_v11 = vld [vmem:[%s21927_s22 + $0x27d0] ss:$8 sps:$4 sm:$0xff]  }
 0x201   : > { %13736 = vmatpush1.bf16.msra.mxu1 %v19265_v12  ;;  %v19359_v12 = vld [vmem:[%s21927_s22 + $0x7e4] ss:$8 sps:$4 sm:$0xff]  }
 0x202   : > { %15048 = vmatpush1.bf16.msra.mxu0 %v19268_v13  ;;  %13746 = vmatprep.subr.bf16.mxu1 %v19274_v61  ;;  %v19362_v13 = vld [vmem:[%s21927_s22 + $0x27e4] ss:$8 sps:$4 sm:$0xff]  }
 0x203   : > { %15058 = vmatprep.subr.bf16.mxu0 %v19278_v15  ;;  %v22592_v61 = vld.sshfl [vmem:[%s21940_s26 + $0x10] sm:$0xff pattern:$0x75316420] }
 0x204   : > { %13738 = vmatmul.mubr.bf16.vlgmr.msra.gmra.mrb[0].mxu1 %v22523_v16  ;;  %v22595_v15 = vld.sshfl [vmem:[%s21940_s26 + $0x50] sm:$0xff pattern:$0x75316420] }
 0x205   : > { %15050 = vmatmul.mubr.bf16.vlgmr.msra.gmra.mrb[0].mxu0 %v22527_v17  ;;  %13747 = vmatpush1.bf16.msra.mxu1 %v19272_v20  ;;  %v19357_v20 = vld [vmem:[%s21927_s22 + $0x7e0] ss:$8 sps:$4 sm:$0xff]  }
 0x206   : > { %15059 = vmatpush1.bf16.msra.mxu0 %v19276_v21  ;;  %13748 = vmatprep.subr.bf16.mxu1 %v19281_v22  ;;  %v19360_v21 = vld [vmem:[%s21927_s22 + $0x27e0] ss:$8 sps:$4 sm:$0xff]   ;;  %v19365_v22 = vld [vmem:[%s21927_s22 + $0x7f4] ss:$8 sps:$4 sm:$0xff]  }
 0x207   : > { %15060 = vmatprep.subr.bf16.mxu0 %v19284_v23  ;;  %13778 = vmatprep.mubr.bf16.mxu1 %v2404_v44  ;;  %v19368_v23 = vld [vmem:[%s21927_s22 + $0x27f4] ss:$8 sps:$4 sm:$0xff]   ;;  %v19363_v44 = vld [vmem:[%s21927_s22 + $0x7f0] ss:$8 sps:$4 sm:$0xff]  }
 0x208   : > { %15090 = vmatprep.mubr.bf16.mxu0 %v2796_v24  ;;  %v19366_v24 = vld [vmem:[%s21927_s22 + $0x27f0] ss:$8 sps:$4 sm:$0xff]  }
 0x209   : > { %13749 = vmatpush1.bf16.msra.mxu1 %v19279_v3  ;;  %v19371_v3 = vld [vmem:[%s21927_s22 + $0x804] ss:$8 sps:$4 sm:$0xff]  }
 0x20a   : > { %15061 = vmatpush1.bf16.msra.mxu0 %v19282_v25  ;;  %13750 = vmatprep.subr.bf16.mxu1 %v19287_v14  ;;  %v19374_v25 = vld [vmem:[%s21927_s22 + $0x2804] ss:$8 sps:$4 sm:$0xff]   ;;  %v2420_v14 = vcombine.high %v22592_v61, %v22592_v61 }
 0x20b   : > { %15062 = vmatprep.subr.bf16.mxu0 %v19290_v54  ;;  %v2812_v54 = vcombine.high %v22595_v15, %v22595_v15 }
 0x20d   : > { %13751 = vmatpush1.bf16.msra.mxu1 %v19285_v60  ;;  %v2402_v60 = vcombine.high %v22523_v16, %v22523_v16  ;;  %v22621_v16 = vrot.slane %v2812_v54, %v21993_v51  ;;  %v19458_v54 = vld [vmem:[%s21927_s22 + $0x28e4] ss:$8 sps:$4 sm:$0xff]  }
 0x20e   : > { %15063 = vmatpush1.bf16.msra.mxu0 %v19288_v58  ;;  %13752 = vmatprep.subr.bf16.mxu1 %v19293_v28  ;;  %v2794_v58 = vcombine.high %v22527_v17, %v22527_v17  ;;  %v19369_v28 = vld [vmem:[%s21927_s22 + $0x800] ss:$8 sps:$4 sm:$0xff]   ;;  %v19375_v17 = vld [vmem:[%s21927_s22 + $0x810] ss:$8 sps:$4 sm:$0xff]  }
 0x20f   : > { %15064 = vmatprep.subr.bf16.mxu0 %v19296_v29  ;;  %v19372_v29 = vld [vmem:[%s21927_s22 + $0x2800] ss:$8 sps:$4 sm:$0xff]  }
 0x211   : > { %13753 = vmatpush1.bf16.msra.mxu1 %v19291_v30  ;;  %v19377_v30 = vld [vmem:[%s21927_s22 + $0x814] ss:$8 sps:$4 sm:$0xff]  }
 0x212   : > { %15065 = vmatpush1.bf16.msra.mxu0 %v19294_v31  ;;  %13754 = vmatprep.subr.bf16.mxu1 %v19299_v32  ;;  %v19380_v31 = vld [vmem:[%s21927_s22 + $0x2814] ss:$8 sps:$4 sm:$0xff]   ;;  %v22618_v32 = vrot.slane %v2420_v14, %v21993_v51  ;;  %v19455_v14 = vld [vmem:[%s21927_s22 + $0x8e4] ss:$8 sps:$4 sm:$0xff]  }
 0x213   : > { %15066 = vmatprep.subr.bf16.mxu0 %v19302_v33  ;;  %v19378_v33 = vld [vmem:[%s21927_s22 + $0x2810] ss:$8 sps:$4 sm:$0xff]  }
 0x215   : > { %13755 = vmatpush1.bf16.msra.mxu1 %v19297_v34  ;;  %v19383_v34 = vld [vmem:[%s21927_s22 + $0x824] ss:$8 sps:$4 sm:$0xff]  }
 0x216   : > { %15067 = vmatpush1.bf16.msra.mxu0 %v19300_v35  ;;  %13756 = vmatprep.subr.bf16.mxu1 %v19305_v36  ;;  %v19386_v35 = vld [vmem:[%s21927_s22 + $0x2824] ss:$8 sps:$4 sm:$0xff]   ;;  %v19381_v36 = vld [vmem:[%s21927_s22 + $0x820] ss:$8 sps:$4 sm:$0xff]  }
 0x217   : > { %15068 = vmatprep.subr.bf16.mxu0 %v19308_v37  ;;  %v19384_v37 = vld [vmem:[%s21927_s22 + $0x2820] ss:$8 sps:$4 sm:$0xff]  }
 0x219   : > { %13757 = vmatpush1.bf16.msra.mxu1 %v19303_v19  ;;  %v19389_v19 = vld [vmem:[%s21927_s22 + $0x834] ss:$8 sps:$4 sm:$0xff]  }
 0x21a   : > { %15069 = vmatpush1.bf16.msra.mxu0 %v19306_v39  ;;  %13758 = vmatprep.subr.bf16.mxu1 %v19311_v45  ;;  %v19392_v39 = vld [vmem:[%s21927_s22 + $0x2834] ss:$8 sps:$4 sm:$0xff]   ;;  %v19387_v45 = vld [vmem:[%s21927_s22 + $0x830] ss:$8 sps:$4 sm:$0xff]  }
 0x21b   : > { %15070 = vmatprep.subr.bf16.mxu0 %v19314_v46  ;;  %v19390_v46 = vld [vmem:[%s21927_s22 + $0x2830] ss:$8 sps:$4 sm:$0xff]  }
 0x21d   : > { %13759 = vmatpush1.bf16.msra.mxu1 %v19309_v26  ;;  %v19395_v26 = vld [vmem:[%s21927_s22 + $0x844] ss:$8 sps:$4 sm:$0xff]  }
 0x21e   : > { %15071 = vmatpush1.bf16.msra.mxu0 %v19312_v47  ;;  %13760 = vmatprep.subr.bf16.mxu1 %v19317_v27  ;;  %v19398_v47 = vld [vmem:[%s21927_s22 + $0x2844] ss:$8 sps:$4 sm:$0xff]   ;;  %v19393_v27 = vld [vmem:[%s21927_s22 + $0x840] ss:$8 sps:$4 sm:$0xff]  }
 0x21f   : > { %15072 = vmatprep.subr.bf16.mxu0 %v19320_v48  ;;  %v19396_v48 = vld [vmem:[%s21927_s22 + $0x2840] ss:$8 sps:$4 sm:$0xff]  }
 0x221   : > { %13761 = vmatpush1.bf16.msra.mxu1 %v19315_v38  ;;  %v19401_v38 = vld [vmem:[%s21927_s22 + $0x854] ss:$8 sps:$4 sm:$0xff]  }
 0x222   : > { %15073 = vmatpush1.bf16.msra.mxu0 %v19318_v49  ;;  %13762 = vmatprep.subr.bf16.mxu1 %v19323_v18  ;;  %v19404_v49 = vld [vmem:[%s21927_s22 + $0x2854] ss:$8 sps:$4 sm:$0xff]   ;;  %v19399_v18 = vld [vmem:[%s21927_s22 + $0x850] ss:$8 sps:$4 sm:$0xff]  }
 0x223   : > { %15074 = vmatprep.subr.bf16.mxu0 %v19326_v50  ;;  %v19402_v50 = vld [vmem:[%s21927_s22 + $0x2850] ss:$8 sps:$4 sm:$0xff]  }
 0x225   : > { %13763 = vmatpush1.bf16.msra.mxu1 %v19321_v52  ;;  %v19407_v52 = vld [vmem:[%s21927_s22 + $0x864] ss:$8 sps:$4 sm:$0xff]  }
 0x226   : > { %15075 = vmatpush1.bf16.msra.mxu0 %v19324_v53  ;;  %13764 = vmatprep.subr.bf16.mxu1 %v19329_v55  ;;  %v19410_v53 = vld [vmem:[%s21927_s22 + $0x2864] ss:$8 sps:$4 sm:$0xff]   ;;  %v19405_v55 = vld [vmem:[%s21927_s22 + $0x860] ss:$8 sps:$4 sm:$0xff]  }
 0x227   : > { %15076 = vmatprep.subr.bf16.mxu0 %v19332_v56  ;;  %v19408_v56 = vld [vmem:[%s21927_s22 + $0x2860] ss:$8 sps:$4 sm:$0xff]  }
 0x229   : > { %13765 = vmatpush1.bf16.msra.mxu1 %v19327_v41  ;;  %v19413_v41 = vld [vmem:[%s21927_s22 + $0x874] ss:$8 sps:$4 sm:$0xff]  }
 0x22a   : > { %15077 = vmatpush1.bf16.msra.mxu0 %v19330_v42  ;;  %13766 = vmatprep.subr.bf16.mxu1 %v19335_v62  ;;  %v19416_v42 = vld [vmem:[%s21927_s22 + $0x2874] ss:$8 sps:$4 sm:$0xff]   ;;  %v19411_v62 = vld [vmem:[%s21927_s22 + $0x870] ss:$8 sps:$4 sm:$0xff]  }
 0x22b   : > { %15078 = vmatprep.subr.bf16.mxu0 %v19338_v63  ;;  %v19414_v63 = vld [vmem:[%s21927_s22 + $0x2870] ss:$8 sps:$4 sm:$0xff]  }
 0x22d   : > { %13767 = vmatpush1.bf16.msra.mxu1 %v19333_v0  ;;  %v19419_v0 = vld [vmem:[%s21927_s22 + $0x884] ss:$8 sps:$4 sm:$0xff]  }
 0x22e   : > { %15079 = vmatpush1.bf16.msra.mxu0 %v19336_v1  ;;  %13768 = vmatprep.subr.bf16.mxu1 %v19341_v43  ;;  %v19422_v1 = vld [vmem:[%s21927_s22 + $0x2884] ss:$8 sps:$4 sm:$0xff]   ;;  %v19417_v43 = vld [vmem:[%s21927_s22 + $0x880] ss:$8 sps:$4 sm:$0xff]  }
 0x22f   : > { %15080 = vmatprep.subr.bf16.mxu0 %v19344_v2  ;;  %v19420_v2 = vld [vmem:[%s21927_s22 + $0x2880] ss:$8 sps:$4 sm:$0xff]  }
 0x231   : > { %13769 = vmatpush1.bf16.msra.mxu1 %v19339_v57  ;;  %v19425_v57 = vld [vmem:[%s21927_s22 + $0x894] ss:$8 sps:$4 sm:$0xff]  }
 0x232   : > { %15081 = vmatpush1.bf16.msra.mxu0 %v19342_v4  ;;  %13770 = vmatprep.subr.bf16.mxu1 %v19347_v59  ;;  %v19428_v4 = vld [vmem:[%s21927_s22 + $0x2894] ss:$8 sps:$4 sm:$0xff]   ;;  %v19423_v59 = vld [vmem:[%s21927_s22 + $0x890] ss:$8 sps:$4 sm:$0xff]  }
 0x233   : > { %15082 = vmatprep.subr.bf16.mxu0 %v19350_v5  ;;  %v19426_v5 = vld [vmem:[%s21927_s22 + $0x2890] ss:$8 sps:$4 sm:$0xff]  }
 0x235   : > { %13771 = vmatpush1.bf16.msra.mxu1 %v19345_v6  ;;  %v19431_v6 = vld [vmem:[%s21927_s22 + $0x8a4] ss:$8 sps:$4 sm:$0xff]  }
 0x236   : > { %15083 = vmatpush1.bf16.msra.mxu0 %v19348_v7  ;;  %13772 = vmatprep.subr.bf16.mxu1 %v19353_v8  ;;  %v19434_v7 = vld [vmem:[%s21927_s22 + $0x28a4] ss:$8 sps:$4 sm:$0xff]   ;;  %v19429_v8 = vld [vmem:[%s21927_s22 + $0x8a0] ss:$8 sps:$4 sm:$0xff]  }
 0x237   : > { %15084 = vmatprep.subr.bf16.mxu0 %v19356_v9  ;;  %v19432_v9 = vld [vmem:[%s21927_s22 + $0x28a0] ss:$8 sps:$4 sm:$0xff]  }
 0x239   : > { %13773 = vmatpush1.bf16.msra.mxu1 %v19351_v10  ;;  %v19437_v10 = vld [vmem:[%s21927_s22 + $0x8b4] ss:$8 sps:$4 sm:$0xff]  }
 0x23a   : > { %15085 = vmatpush1.bf16.msra.mxu0 %v19354_v11  ;;  %13774 = vmatprep.subr.bf16.mxu1 %v19359_v12  ;;  %v19440_v11 = vld [vmem:[%s21927_s22 + $0x28b4] ss:$8 sps:$4 sm:$0xff]   ;;  %v19435_v12 = vld [vmem:[%s21927_s22 + $0x8b0] ss:$8 sps:$4 sm:$0xff]  }
 0x23b   : > { %15086 = vmatprep.subr.bf16.mxu0 %v19362_v13  ;;  %v19438_v13 = vld [vmem:[%s21927_s22 + $0x28b0] ss:$8 sps:$4 sm:$0xff]  }
 0x23d   : > { %13775 = vmatpush1.bf16.msra.mxu1 %v19357_v20  ;;  %v19443_v20 = vld [vmem:[%s21927_s22 + $0x8c4] ss:$8 sps:$4 sm:$0xff]  }
 0x23e   : > { %15087 = vmatpush1.bf16.msra.mxu0 %v19360_v21  ;;  %13776 = vmatprep.subr.bf16.mxu1 %v19365_v22  ;;  %v19446_v21 = vld [vmem:[%s21927_s22 + $0x28c4] ss:$8 sps:$4 sm:$0xff]   ;;  %v19441_v22 = vld [vmem:[%s21927_s22 + $0x8c0] ss:$8 sps:$4 sm:$0xff]  }
 0x23f   : > { %15088 = vmatprep.subr.bf16.mxu0 %v19368_v23  ;;  %v19444_v23 = vld [vmem:[%s21927_s22 + $0x28c0] ss:$8 sps:$4 sm:$0xff]  }
 0x241   : > { %13777 = vmatpush1.bf16.msra.mxu1 %v19363_v44  ;;  %v19449_v44 = vld [vmem:[%s21927_s22 + $0x8d4] ss:$8 sps:$4 sm:$0xff]  }
 0x242   : > { %15089 = vmatpush1.bf16.msra.mxu0 %v19366_v24  ;;  %13787 = vmatprep.subr.bf16.mxu1 %v19371_v3  ;;  %v19452_v24 = vld [vmem:[%s21927_s22 + $0x28d4] ss:$8 sps:$4 sm:$0xff]   ;;  %v19447_v3 = vld [vmem:[%s21927_s22 + $0x8d0] ss:$8 sps:$4 sm:$0xff]  }
 0x243   : > { %15099 = vmatprep.subr.bf16.mxu0 %v19374_v25  ;;  %v19450_v25 = vld [vmem:[%s21927_s22 + $0x28d0] ss:$8 sps:$4 sm:$0xff]  }
 0x244   : > { %13779 = vmatmul.mubr.bf16.vlgmr.msra.gmra.mrb[0].mxu1 %v2402_v60  ;;  %v19453_v60 = vld [vmem:[%s21927_s22 + $0x8e0] ss:$8 sps:$4 sm:$0xff]  }
 0x245   : > { %15091 = vmatmul.mubr.bf16.vlgmr.msra.gmra.mrb[0].mxu0 %v2794_v58  ;;  %13788 = vmatpush1.bf16.msra.mxu1 %v19369_v28  ;;  %v19456_v58 = vld [vmem:[%s21927_s22 + $0x28e0] ss:$8 sps:$4 sm:$0xff]   ;;  %v19461_v28 = vld [vmem:[%s21927_s22 + $0x8f4] ss:$8 sps:$4 sm:$0xff]  }
 0x246   : > { %15100 = vmatpush1.bf16.msra.mxu0 %v19372_v29  ;;  %13789 = vmatprep.subr.bf16.mxu1 %v19377_v30  ;;  %v19464_v29 = vld [vmem:[%s21927_s22 + $0x28f4] ss:$8 sps:$4 sm:$0xff]   ;;  %v19459_v30 = vld [vmem:[%s21927_s22 + $0x8f0] ss:$8 sps:$4 sm:$0xff]  }
 0x247   : > { %15101 = vmatprep.subr.bf16.mxu0 %v19380_v31  ;;  %13819 = vmatprep.mubr.bf16.mxu1 %v22618_v32  ;;  %v19462_v31 = vld [vmem:[%s21927_s22 + $0x28f0] ss:$8 sps:$4 sm:$0xff]  }
 0x248   : > { %15131 = vmatprep.mubr.bf16.mxu0 %v22621_v16 }
 0x249   : > { %13790 = vmatpush1.bf16.msra.mxu1 %v19375_v17  ;;  %v19467_v17 = vld [vmem:[%s21927_s22 + $0x904] ss:$8 sps:$4 sm:$0xff]  }
 0x24a   : > { %15102 = vmatpush1.bf16.msra.mxu0 %v19378_v33  ;;  %13791 = vmatprep.subr.bf16.mxu1 %v19383_v34  ;;  %v19470_v33 = vld [vmem:[%s21927_s22 + $0x2904] ss:$8 sps:$4 sm:$0xff]   ;;  %v22687_v34 = vrot.slane %v22592_v61, %v21993_v51  ;;  %v2452_v61 = vcombine.high %v22618_v32, %v22618_v32 }
 0x24b   : > { %15103 = vmatprep.subr.bf16.mxu0 %v19386_v35  ;;  %v22691_v35 = vrot.slane %v22595_v15, %v21993_v51  ;;  %v19471_v15 = vld [vmem:[%s21927_s22 + $0x910] ss:$8 sps:$4 sm:$0xff]   ;;  %v19479_v32 = vld [vmem:[%s21927_s22 + $0x924] ss:$8 sps:$4 sm:$0xff]  }
 0x24d   : > { %13792 = vmatpush1.bf16.msra.mxu1 %v19381_v36  ;;  %v19465_v36 = vld [vmem:[%s21927_s22 + $0x900] ss:$8 sps:$4 sm:$0xff]  }
 0x24e   : > { %15104 = vmatpush1.bf16.msra.mxu0 %v19384_v37  ;;  %13793 = vmatprep.subr.bf16.mxu1 %v19389_v19  ;;  %v19468_v37 = vld [vmem:[%s21927_s22 + $0x2900] ss:$8 sps:$4 sm:$0xff]   ;;  %v19473_v19 = vld [vmem:[%s21927_s22 + $0x914] ss:$8 sps:$4 sm:$0xff]  }
 0x24f   : > { %15105 = vmatprep.subr.bf16.mxu0 %v19392_v39  ;;  %v19476_v39 = vld [vmem:[%s21927_s22 + $0x2914] ss:$8 sps:$4 sm:$0xff]  }
 0x251   : > { %13794 = vmatpush1.bf16.msra.mxu1 %v19387_v45  ;;  %v2844_v45 = vcombine.high %v22621_v16, %v22621_v16  ;;  %v19477_v16 = vld [vmem:[%s21927_s22 + $0x920] ss:$8 sps:$4 sm:$0xff]  }
 0x252   : > { %15106 = vmatpush1.bf16.msra.mxu0 %v19390_v46  ;;  %13795 = vmatprep.subr.bf16.mxu1 %v19395_v26  ;;  %v19474_v46 = vld [vmem:[%s21927_s22 + $0x2910] ss:$8 sps:$4 sm:$0xff]   ;;  %v19482_v26 = vld [vmem:[%s21927_s22 + $0x2924] ss:$8 sps:$4 sm:$0xff]  }
 0x253   : > { %15107 = vmatprep.subr.bf16.mxu0 %v19398_v47  ;;  %v19480_v47 = vld [vmem:[%s21927_s22 + $0x2920] ss:$8 sps:$4 sm:$0xff]  }
 0x255   : > { %13796 = vmatpush1.bf16.msra.mxu1 %v19393_v27  ;;  %v19485_v27 = vld [vmem:[%s21927_s22 + $0x934] ss:$8 sps:$4 sm:$0xff]  }
 0x256   : > { %15108 = vmatpush1.bf16.msra.mxu0 %v19396_v48  ;;  %13797 = vmatprep.subr.bf16.mxu1 %v19401_v38  ;;  %v19488_v48 = vld [vmem:[%s21927_s22 + $0x2934] ss:$8 sps:$4 sm:$0xff]   ;;  %v19483_v38 = vld [vmem:[%s21927_s22 + $0x930] ss:$8 sps:$4 sm:$0xff]  }
 0x257   : > { %15109 = vmatprep.subr.bf16.mxu0 %v19404_v49  ;;  %v19486_v49 = vld [vmem:[%s21927_s22 + $0x2930] ss:$8 sps:$4 sm:$0xff]  }
 0x259   : > { %13798 = vmatpush1.bf16.msra.mxu1 %v19399_v18  ;;  %v19491_v18 = vld [vmem:[%s21927_s22 + $0x944] ss:$8 sps:$4 sm:$0xff]  }
 0x25a   : > { %15110 = vmatpush1.bf16.msra.mxu0 %v19402_v50  ;;  %13799 = vmatprep.subr.bf16.mxu1 %v19407_v52  ;;  %v19494_v50 = vld [vmem:[%s21927_s22 + $0x2944] ss:$8 sps:$4 sm:$0xff]   ;;  %v19489_v52 = vld [vmem:[%s21927_s22 + $0x940] ss:$8 sps:$4 sm:$0xff]  }
 0x25b   : > { %15111 = vmatprep.subr.bf16.mxu0 %v19410_v53  ;;  %v19492_v53 = vld [vmem:[%s21927_s22 + $0x2940] ss:$8 sps:$4 sm:$0xff]  }
 0x25d   : > { %13800 = vmatpush1.bf16.msra.mxu1 %v19405_v55  ;;  %v19497_v55 = vld [vmem:[%s21927_s22 + $0x954] ss:$8 sps:$4 sm:$0xff]  }
 0x25e   : > { %15112 = vmatpush1.bf16.msra.mxu0 %v19408_v56  ;;  %13801 = vmatprep.subr.bf16.mxu1 %v19413_v41  ;;  %v19500_v56 = vld [vmem:[%s21927_s22 + $0x2954] ss:$8 sps:$4 sm:$0xff]   ;;  %v19495_v41 = vld [vmem:[%s21927_s22 + $0x950] ss:$8 sps:$4 sm:$0xff]  }
 0x25f   : > { %15113 = vmatprep.subr.bf16.mxu0 %v19416_v42  ;;  %v19498_v42 = vld [vmem:[%s21927_s22 + $0x2950] ss:$8 sps:$4 sm:$0xff]  }
 0x261   : > { %13802 = vmatpush1.bf16.msra.mxu1 %v19411_v62  ;;  %v19503_v62 = vld [vmem:[%s21927_s22 + $0x964] ss:$8 sps:$4 sm:$0xff]  }
 0x262   : > { %15114 = vmatpush1.bf16.msra.mxu0 %v19414_v63  ;;  %13803 = vmatprep.subr.bf16.mxu1 %v19419_v0  ;;  %v19506_v63 = vld [vmem:[%s21927_s22 + $0x2964] ss:$8 sps:$4 sm:$0xff]   ;;  %v19501_v0 = vld [vmem:[%s21927_s22 + $0x960] ss:$8 sps:$4 sm:$0xff]  }
 0x263   : > { %15115 = vmatprep.subr.bf16.mxu0 %v19422_v1  ;;  %v19504_v1 = vld [vmem:[%s21927_s22 + $0x2960] ss:$8 sps:$4 sm:$0xff]  }
 0x265   : > { %13804 = vmatpush1.bf16.msra.mxu1 %v19417_v43  ;;  %v19509_v43 = vld [vmem:[%s21927_s22 + $0x974] ss:$8 sps:$4 sm:$0xff]  }
 0x266   : > { %15116 = vmatpush1.bf16.msra.mxu0 %v19420_v2  ;;  %13805 = vmatprep.subr.bf16.mxu1 %v19425_v57  ;;  %v19512_v2 = vld [vmem:[%s21927_s22 + $0x2974] ss:$8 sps:$4 sm:$0xff]   ;;  %v19507_v57 = vld [vmem:[%s21927_s22 + $0x970] ss:$8 sps:$4 sm:$0xff]  }
 0x267   : > { %15117 = vmatprep.subr.bf16.mxu0 %v19428_v4  ;;  %v19510_v4 = vld [vmem:[%s21927_s22 + $0x2970] ss:$8 sps:$4 sm:$0xff]  }
 0x269   : > { %13806 = vmatpush1.bf16.msra.mxu1 %v19423_v59  ;;  %v19515_v59 = vld [vmem:[%s21927_s22 + $0x984] ss:$8 sps:$4 sm:$0xff]  }
 0x26a   : > { %15118 = vmatpush1.bf16.msra.mxu0 %v19426_v5  ;;  %13807 = vmatprep.subr.bf16.mxu1 %v19431_v6  ;;  %v19518_v5 = vld [vmem:[%s21927_s22 + $0x2984] ss:$8 sps:$4 sm:$0xff]   ;;  %v19513_v6 = vld [vmem:[%s21927_s22 + $0x980] ss:$8 sps:$4 sm:$0xff]  }
 0x26b   : > { %15119 = vmatprep.subr.bf16.mxu0 %v19434_v7  ;;  %v19516_v7 = vld [vmem:[%s21927_s22 + $0x2980] ss:$8 sps:$4 sm:$0xff]  }
 0x26d   : > { %13808 = vmatpush1.bf16.msra.mxu1 %v19429_v8  ;;  %v19521_v8 = vld [vmem:[%s21927_s22 + $0x994] ss:$8 sps:$4 sm:$0xff]  }
 0x26e   : > { %15120 = vmatpush1.bf16.msra.mxu0 %v19432_v9  ;;  %13809 = vmatprep.subr.bf16.mxu1 %v19437_v10  ;;  %v19524_v9 = vld [vmem:[%s21927_s22 + $0x2994] ss:$8 sps:$4 sm:$0xff]   ;;  %v19519_v10 = vld [vmem:[%s21927_s22 + $0x990] ss:$8 sps:$4 sm:$0xff]  }
 0x26f   : > { %15121 = vmatprep.subr.bf16.mxu0 %v19440_v11  ;;  %v19522_v11 = vld [vmem:[%s21927_s22 + $0x2990] ss:$8 sps:$4 sm:$0xff]  }
 0x271   : > { %13810 = vmatpush1.bf16.msra.mxu1 %v19435_v12  ;;  %v19527_v12 = vld [vmem:[%s21927_s22 + $0x9a4] ss:$8 sps:$4 sm:$0xff]  }
 0x272   : > { %15122 = vmatpush1.bf16.msra.mxu0 %v19438_v13  ;;  %13811 = vmatprep.subr.bf16.mxu1 %v19443_v20  ;;  %v19530_v13 = vld [vmem:[%s21927_s22 + $0x29a4] ss:$8 sps:$4 sm:$0xff]   ;;  %v19525_v20 = vld [vmem:[%s21927_s22 + $0x9a0] ss:$8 sps:$4 sm:$0xff]  }
 0x273   : > { %15123 = vmatprep.subr.bf16.mxu0 %v19446_v21  ;;  %v19528_v21 = vld [vmem:[%s21927_s22 + $0x29a0] ss:$8 sps:$4 sm:$0xff]  }
 0x275   : > { %13812 = vmatpush1.bf16.msra.mxu1 %v19441_v22  ;;  %v19533_v22 = vld [vmem:[%s21927_s22 + $0x9b4] ss:$8 sps:$4 sm:$0xff]  }
 0x276   : > { %15124 = vmatpush1.bf16.msra.mxu0 %v19444_v23  ;;  %13813 = vmatprep.subr.bf16.mxu1 %v19449_v44  ;;  %v19536_v23 = vld [vmem:[%s21927_s22 + $0x29b4] ss:$8 sps:$4 sm:$0xff]   ;;  %v19531_v44 = vld [vmem:[%s21927_s22 + $0x9b0] ss:$8 sps:$4 sm:$0xff]  }
 0x277   : > { %15125 = vmatprep.subr.bf16.mxu0 %v19452_v24  ;;  %v19534_v24 = vld [vmem:[%s21927_s22 + $0x29b0] ss:$8 sps:$4 sm:$0xff]  }
 0x279   : > { %13814 = vmatpush1.bf16.msra.mxu1 %v19447_v3  ;;  %v19539_v3 = vld [vmem:[%s21927_s22 + $0x9c4] ss:$8 sps:$4 sm:$0xff]  }
 0x27a   : > { %15126 = vmatpush1.bf16.msra.mxu0 %v19450_v25  ;;  %13815 = vmatprep.subr.bf16.mxu1 %v19455_v14  ;;  %v19542_v25 = vld [vmem:[%s21927_s22 + $0x29c4] ss:$8 sps:$4 sm:$0xff]   ;;  %v19537_v14 = vld [vmem:[%s21927_s22 + $0x9c0] ss:$8 sps:$4 sm:$0xff]  }
 0x27b   : > { %15127 = vmatprep.subr.bf16.mxu0 %v19458_v54  ;;  %v19540_v54 = vld [vmem:[%s21927_s22 + $0x29c0] ss:$8 sps:$4 sm:$0xff]  }
 0x27d   : > { %13816 = vmatpush1.bf16.msra.mxu1 %v19453_v60  ;;  %v19545_v60 = vld [vmem:[%s21927_s22 + $0x9d4] ss:$8 sps:$4 sm:$0xff]  }
 0x27e   : > { %15128 = vmatpush1.bf16.msra.mxu0 %v19456_v58  ;;  %13817 = vmatprep.subr.bf16.mxu1 %v19461_v28  ;;  %v19548_v58 = vld [vmem:[%s21927_s22 + $0x29d4] ss:$8 sps:$4 sm:$0xff]   ;;  %v19543_v28 = vld [vmem:[%s21927_s22 + $0x9d0] ss:$8 sps:$4 sm:$0xff]  }
 0x27f   : > { %15129 = vmatprep.subr.bf16.mxu0 %v19464_v29  ;;  %v19546_v29 = vld [vmem:[%s21927_s22 + $0x29d0] ss:$8 sps:$4 sm:$0xff]  }
 0x281   : > { %13818 = vmatpush1.bf16.msra.mxu1 %v19459_v30  ;;  %v19551_v30 = vld [vmem:[%s21927_s22 + $0x9e4] ss:$8 sps:$4 sm:$0xff]  }
 0x282   : > { %15130 = vmatpush1.bf16.msra.mxu0 %v19462_v31  ;;  %13828 = vmatprep.subr.bf16.mxu1 %v19467_v17  ;;  %v19554_v31 = vld [vmem:[%s21927_s22 + $0x29e4] ss:$8 sps:$4 sm:$0xff]  }
 0x283   : > { %15140 = vmatprep.subr.bf16.mxu0 %v19470_v33  ;;  %v21687_v17 = vld [vmem:[%s21940_s26 + $0x10] sm:$0xff] }
 0x284   : > { %13820 = vmatmul.mubr.bf16.vlgmr.msra.gmra.mrb[0].mxu1 %v22687_v34  ;;  %v2405_v33 = vcombine.high %v21687_v17, %v21687_v17  ;;  %v19629_v17 = vld [vmem:[%s21927_s22 + $0xab4] ss:$8 sps:$4 sm:$0xff]  }
 0x285   : > { %15132 = vmatmul.mubr.bf16.vlgmr.msra.gmra.mrb[0].mxu0 %v22691_v35  ;;  %13829 = vmatpush1.bf16.msra.mxu1 %v19465_v36  ;;  %v21688_v36 = vld [vmem:[%s21940_s26 + $0x50] sm:$0xff] }
 0x286   : > { %15141 = vmatpush1.bf16.msra.mxu0 %v19468_v37  ;;  %13830 = vmatprep.subr.bf16.mxu1 %v19473_v19  ;;  %v2797_v37 = vcombine.high %v21688_v36, %v21688_v36  ;;  %v19549_v19 = vld [vmem:[%s21927_s22 + $0x9e0] ss:$8 sps:$4 sm:$0xff]   ;;  %v19627_v36 = vld [vmem:[%s21927_s22 + $0xab0] ss:$8 sps:$4 sm:$0xff]  }
 0x287   : > { %15142 = vmatprep.subr.bf16.mxu0 %v19476_v39  ;;  %13860 = vmatprep.mubr.bf16.mxu1 %v2452_v61  ;;  %v19552_v39 = vld [vmem:[%s21927_s22 + $0x29e0] ss:$8 sps:$4 sm:$0xff]   ;;  %v19557_v61 = vld [vmem:[%s21927_s22 + $0x9f4] ss:$8 sps:$4 sm:$0xff]  }
 0x288   : > { %15172 = vmatprep.mubr.bf16.mxu0 %v2844_v45  ;;  %v19560_v45 = vld [vmem:[%s21927_s22 + $0x29f4] ss:$8 sps:$4 sm:$0xff]  }
 0x289   : > { %13831 = vmatpush1.bf16.msra.mxu1 %v19471_v15  ;;  %v22762_v15 = vrot.slane %v2405_v33, %v21993_v51  ;;  %v19632_v33 = vld [vmem:[%s21927_s22 + $0x2ab4] ss:$8 sps:$4 sm:$0xff]  }
 0x28a   : > { %15143 = vmatpush1.bf16.msra.mxu0 %v19474_v46  ;;  %13832 = vmatprep.subr.bf16.mxu1 %v19479_v32  ;;  %v22765_v46 = vrot.slane %v2797_v37, %v21993_v51  ;;  %v19555_v32 = vld [vmem:[%s21927_s22 + $0x9f0] ss:$8 sps:$4 sm:$0xff]  }
 0x28b   : > { %15144 = vmatprep.subr.bf16.mxu0 %v19482_v26  ;;  %v19558_v26 = vld [vmem:[%s21927_s22 + $0x29f0] ss:$8 sps:$4 sm:$0xff]  }
 0x28c   : > { %v19630_v37 = vld [vmem:[%s21927_s22 + $0x2ab0] ss:$8 sps:$4 sm:$0xff]  }
 0x28d   : > { %13833 = vmatpush1.bf16.msra.mxu1 %v19477_v16  ;;  %v19563_v16 = vld [vmem:[%s21927_s22 + $0xa04] ss:$8 sps:$4 sm:$0xff]  }
 0x28e   : > { %15145 = vmatpush1.bf16.msra.mxu0 %v19480_v47  ;;  %13834 = vmatprep.subr.bf16.mxu1 %v19485_v27  ;;  %v19566_v47 = vld [vmem:[%s21927_s22 + $0x2a04] ss:$8 sps:$4 sm:$0xff]   ;;  %v2421_v27 = vcombine.high %v22762_v15, %v22762_v15 }
 0x28f   : > { %15146 = vmatprep.subr.bf16.mxu0 %v19488_v48  ;;  %v2813_v48 = vcombine.high %v22765_v46, %v22765_v46 }
 0x291   : > { %13835 = vmatpush1.bf16.msra.mxu1 %v19483_v38  ;;  %v2450_v38 = vcombine.high %v22687_v34, %v22687_v34  ;;  %v22787_v34 = vrot.slane %v2813_v48, %v21993_v51  ;;  %v19650_v48 = vld [vmem:[%s21927_s22 + $0x2ae4] ss:$8 sps:$4 sm:$0xff]  }
 0x292   : > { %15147 = vmatpush1.bf16.msra.mxu0 %v19486_v49  ;;  %13836 = vmatprep.subr.bf16.mxu1 %v19491_v18  ;;  %v2842_v49 = vcombine.high %v22691_v35, %v22691_v35  ;;  %v19561_v18 = vld [vmem:[%s21927_s22 + $0xa00] ss:$8 sps:$4 sm:$0xff]   ;;  %v19567_v35 = vld [vmem:[%s21927_s22 + $0xa10] ss:$8 sps:$4 sm:$0xff]  }
 0x293   : > { %15148 = vmatprep.subr.bf16.mxu0 %v19494_v50  ;;  %v19564_v50 = vld [vmem:[%s21927_s22 + $0x2a00] ss:$8 sps:$4 sm:$0xff]  }
 0x295   : > { %13837 = vmatpush1.bf16.msra.mxu1 %v19489_v52  ;;  %v19569_v52 = vld [vmem:[%s21927_s22 + $0xa14] ss:$8 sps:$4 sm:$0xff]  }
 0x296   : > { %15149 = vmatpush1.bf16.msra.mxu0 %v19492_v53  ;;  %13838 = vmatprep.subr.bf16.mxu1 %v19497_v55  ;;  %v19572_v53 = vld [vmem:[%s21927_s22 + $0x2a14] ss:$8 sps:$4 sm:$0xff]   ;;  %v22784_v55 = vrot.slane %v2421_v27, %v21993_v51  ;;  %v19647_v27 = vld [vmem:[%s21927_s22 + $0xae4] ss:$8 sps:$4 sm:$0xff]  }
 0x297   : > { %15150 = vmatprep.subr.bf16.mxu0 %v19500_v56  ;;  %v19570_v56 = vld [vmem:[%s21927_s22 + $0x2a10] ss:$8 sps:$4 sm:$0xff]  }
 0x299   : > { %13839 = vmatpush1.bf16.msra.mxu1 %v19495_v41  ;;  %v19575_v41 = vld [vmem:[%s21927_s22 + $0xa24] ss:$8 sps:$4 sm:$0xff]  }
 0x29a   : > { %15151 = vmatpush1.bf16.msra.mxu0 %v19498_v42  ;;  %13840 = vmatprep.subr.bf16.mxu1 %v19503_v62  ;;  %v19578_v42 = vld [vmem:[%s21927_s22 + $0x2a24] ss:$8 sps:$4 sm:$0xff]   ;;  %v19573_v62 = vld [vmem:[%s21927_s22 + $0xa20] ss:$8 sps:$4 sm:$0xff]  }
 0x29b   : > { %15152 = vmatprep.subr.bf16.mxu0 %v19506_v63  ;;  %v19576_v63 = vld [vmem:[%s21927_s22 + $0x2a20] ss:$8 sps:$4 sm:$0xff]  }
 0x29d   : > { %13841 = vmatpush1.bf16.msra.mxu1 %v19501_v0  ;;  %v19581_v0 = vld [vmem:[%s21927_s22 + $0xa34] ss:$8 sps:$4 sm:$0xff]  }
 0x29e   : > { %15153 = vmatpush1.bf16.msra.mxu0 %v19504_v1  ;;  %13842 = vmatprep.subr.bf16.mxu1 %v19509_v43  ;;  %v19584_v1 = vld [vmem:[%s21927_s22 + $0x2a34] ss:$8 sps:$4 sm:$0xff]   ;;  %v19579_v43 = vld [vmem:[%s21927_s22 + $0xa30] ss:$8 sps:$4 sm:$0xff]  }
 0x29f   : > { %15154 = vmatprep.subr.bf16.mxu0 %v19512_v2  ;;  %v19582_v2 = vld [vmem:[%s21927_s22 + $0x2a30] ss:$8 sps:$4 sm:$0xff]  }
 0x2a1   : > { %13843 = vmatpush1.bf16.msra.mxu1 %v19507_v57  ;;  %v19587_v57 = vld [vmem:[%s21927_s22 + $0xa44] ss:$8 sps:$4 sm:$0xff]  }
 0x2a2   : > { %15155 = vmatpush1.bf16.msra.mxu0 %v19510_v4  ;;  %13844 = vmatprep.subr.bf16.mxu1 %v19515_v59  ;;  %v19590_v4 = vld [vmem:[%s21927_s22 + $0x2a44] ss:$8 sps:$4 sm:$0xff]   ;;  %v19585_v59 = vld [vmem:[%s21927_s22 + $0xa40] ss:$8 sps:$4 sm:$0xff]  }
 0x2a3   : > { %15156 = vmatprep.subr.bf16.mxu0 %v19518_v5  ;;  %v19588_v5 = vld [vmem:[%s21927_s22 + $0x2a40] ss:$8 sps:$4 sm:$0xff]  }
 0x2a5   : > { %13845 = vmatpush1.bf16.msra.mxu1 %v19513_v6  ;;  %v19593_v6 = vld [vmem:[%s21927_s22 + $0xa54] ss:$8 sps:$4 sm:$0xff]  }
 0x2a6   : > { %15157 = vmatpush1.bf16.msra.mxu0 %v19516_v7  ;;  %13846 = vmatprep.subr.bf16.mxu1 %v19521_v8  ;;  %v19596_v7 = vld [vmem:[%s21927_s22 + $0x2a54] ss:$8 sps:$4 sm:$0xff]   ;;  %v19591_v8 = vld [vmem:[%s21927_s22 + $0xa50] ss:$8 sps:$4 sm:$0xff]  }
 0x2a7   : > { %15158 = vmatprep.subr.bf16.mxu0 %v19524_v9  ;;  %v19594_v9 = vld [vmem:[%s21927_s22 + $0x2a50] ss:$8 sps:$4 sm:$0xff]  }
 0x2a9   : > { %13847 = vmatpush1.bf16.msra.mxu1 %v19519_v10  ;;  %v19599_v10 = vld [vmem:[%s21927_s22 + $0xa64] ss:$8 sps:$4 sm:$0xff]  }
 0x2aa   : > { %15159 = vmatpush1.bf16.msra.mxu0 %v19522_v11  ;;  %13848 = vmatprep.subr.bf16.mxu1 %v19527_v12  ;;  %v19602_v11 = vld [vmem:[%s21927_s22 + $0x2a64] ss:$8 sps:$4 sm:$0xff]   ;;  %v19597_v12 = vld [vmem:[%s21927_s22 + $0xa60] ss:$8 sps:$4 sm:$0xff]  }
 0x2ab   : > { %15160 = vmatprep.subr.bf16.mxu0 %v19530_v13  ;;  %v19600_v13 = vld [vmem:[%s21927_s22 + $0x2a60] ss:$8 sps:$4 sm:$0xff]  }
 0x2ad   : > { %13849 = vmatpush1.bf16.msra.mxu1 %v19525_v20  ;;  %v19605_v20 = vld [vmem:[%s21927_s22 + $0xa74] ss:$8 sps:$4 sm:$0xff]  }
 0x2ae   : > { %15161 = vmatpush1.bf16.msra.mxu0 %v19528_v21  ;;  %13850 = vmatprep.subr.bf16.mxu1 %v19533_v22  ;;  %v19608_v21 = vld [vmem:[%s21927_s22 + $0x2a74] ss:$8 sps:$4 sm:$0xff]   ;;  %v19603_v22 = vld [vmem:[%s21927_s22 + $0xa70] ss:$8 sps:$4 sm:$0xff]  }
 0x2af   : > { %15162 = vmatprep.subr.bf16.mxu0 %v19536_v23  ;;  %v19606_v23 = vld [vmem:[%s21927_s22 + $0x2a70] ss:$8 sps:$4 sm:$0xff]  }
 0x2b1   : > { %13851 = vmatpush1.bf16.msra.mxu1 %v19531_v44  ;;  %v19611_v44 = vld [vmem:[%s21927_s22 + $0xa84] ss:$8 sps:$4 sm:$0xff]  }
 0x2b2   : > { %15163 = vmatpush1.bf16.msra.mxu0 %v19534_v24  ;;  %13852 = vmatprep.subr.bf16.mxu1 %v19539_v3  ;;  %v19614_v24 = vld [vmem:[%s21927_s22 + $0x2a84] ss:$8 sps:$4 sm:$0xff]   ;;  %v19609_v3 = vld [vmem:[%s21927_s22 + $0xa80] ss:$8 sps:$4 sm:$0xff]  }
 0x2b3   : > { %15164 = vmatprep.subr.bf16.mxu0 %v19542_v25  ;;  %v19612_v25 = vld [vmem:[%s21927_s22 + $0x2a80] ss:$8 sps:$4 sm:$0xff]  }
 0x2b5   : > { %13853 = vmatpush1.bf16.msra.mxu1 %v19537_v14  ;;  %v19617_v14 = vld [vmem:[%s21927_s22 + $0xa94] ss:$8 sps:$4 sm:$0xff]  }
 0x2b6   : > { %15165 = vmatpush1.bf16.msra.mxu0 %v19540_v54  ;;  %13854 = vmatprep.subr.bf16.mxu1 %v19545_v60  ;;  %v19620_v54 = vld [vmem:[%s21927_s22 + $0x2a94] ss:$8 sps:$4 sm:$0xff]   ;;  %v19615_v60 = vld [vmem:[%s21927_s22 + $0xa90] ss:$8 sps:$4 sm:$0xff]  }
 0x2b7   : > { %15166 = vmatprep.subr.bf16.mxu0 %v19548_v58  ;;  %v19618_v58 = vld [vmem:[%s21927_s22 + $0x2a90] ss:$8 sps:$4 sm:$0xff]  }
 0x2b9   : > { %13855 = vmatpush1.bf16.msra.mxu1 %v19543_v28  ;;  %v19623_v28 = vld [vmem:[%s21927_s22 + $0xaa4] ss:$8 sps:$4 sm:$0xff]  }
 0x2ba   : > { %15167 = vmatpush1.bf16.msra.mxu0 %v19546_v29  ;;  %13856 = vmatprep.subr.bf16.mxu1 %v19551_v30  ;;  %v19626_v29 = vld [vmem:[%s21927_s22 + $0x2aa4] ss:$8 sps:$4 sm:$0xff]   ;;  %v19621_v30 = vld [vmem:[%s21927_s22 + $0xaa0] ss:$8 sps:$4 sm:$0xff]  }
 0x2bb   : > { %15168 = vmatprep.subr.bf16.mxu0 %v19554_v31  ;;  %v19624_v31 = vld [vmem:[%s21927_s22 + $0x2aa0] ss:$8 sps:$4 sm:$0xff]  }
 0x2bd   : > { %13857 = vmatpush1.bf16.msra.mxu1 %v19549_v19  ;;  %v19635_v19 = vld [vmem:[%s21927_s22 + $0xac4] ss:$8 sps:$4 sm:$0xff]  }
 0x2be   : > { %15169 = vmatpush1.bf16.msra.mxu0 %v19552_v39  ;;  %13858 = vmatprep.subr.bf16.mxu1 %v19557_v61  ;;  %v19638_v39 = vld [vmem:[%s21927_s22 + $0x2ac4] ss:$8 sps:$4 sm:$0xff]   ;;  %v19633_v61 = vld [vmem:[%s21927_s22 + $0xac0] ss:$8 sps:$4 sm:$0xff]  }
 0x2bf   : > { %15170 = vmatprep.subr.bf16.mxu0 %v19560_v45  ;;  %v19636_v45 = vld [vmem:[%s21927_s22 + $0x2ac0] ss:$8 sps:$4 sm:$0xff]  }
 0x2c1   : > { %13859 = vmatpush1.bf16.msra.mxu1 %v19555_v32  ;;  %v19641_v32 = vld [vmem:[%s21927_s22 + $0xad4] ss:$8 sps:$4 sm:$0xff]  }
 0x2c2   : > { %15171 = vmatpush1.bf16.msra.mxu0 %v19558_v26  ;;  %13869 = vmatprep.subr.bf16.mxu1 %v19563_v16  ;;  %v19644_v26 = vld [vmem:[%s21927_s22 + $0x2ad4] ss:$8 sps:$4 sm:$0xff]   ;;  %v19639_v16 = vld [vmem:[%s21927_s22 + $0xad0] ss:$8 sps:$4 sm:$0xff]  }
 0x2c3   : > { %15181 = vmatprep.subr.bf16.mxu0 %v19566_v47  ;;  %v19642_v47 = vld [vmem:[%s21927_s22 + $0x2ad0] ss:$8 sps:$4 sm:$0xff]  }
 0x2c4   : > { %13861 = vmatmul.mubr.bf16.vlgmr.msra.gmra.mrb[0].mxu1 %v2450_v38  ;;  %v19645_v38 = vld [vmem:[%s21927_s22 + $0xae0] ss:$8 sps:$4 sm:$0xff]  }
 0x2c5   : > { %15173 = vmatmul.mubr.bf16.vlgmr.msra.gmra.mrb[0].mxu0 %v2842_v49  ;;  %13870 = vmatpush1.bf16.msra.mxu1 %v19561_v18  ;;  %v19648_v49 = vld [vmem:[%s21927_s22 + $0x2ae0] ss:$8 sps:$4 sm:$0xff]   ;;  %v19653_v18 = vld [vmem:[%s21927_s22 + $0xaf4] ss:$8 sps:$4 sm:$0xff]  }
 0x2c6   : > { %15182 = vmatpush1.bf16.msra.mxu0 %v19564_v50  ;;  %13871 = vmatprep.subr.bf16.mxu1 %v19569_v52  ;;  %v19656_v50 = vld [vmem:[%s21927_s22 + $0x2af4] ss:$8 sps:$4 sm:$0xff]   ;;  %v19651_v52 = vld [vmem:[%s21927_s22 + $0xaf0] ss:$8 sps:$4 sm:$0xff]  }
 0x2c7   : > { %15183 = vmatprep.subr.bf16.mxu0 %v19572_v53  ;;  %13901 = vmatprep.mubr.bf16.mxu1 %v22784_v55  ;;  %v19654_v53 = vld [vmem:[%s21927_s22 + $0x2af0] ss:$8 sps:$4 sm:$0xff]  }
 0x2c8   : > { %15213 = vmatprep.mubr.bf16.mxu0 %v22787_v34 }
 0x2c9   : > { %13872 = vmatpush1.bf16.msra.mxu1 %v19567_v35  ;;  %v19660_v35 = vld [vmem:[%s21927_s22 + $0xb04] ss:$8 sps:$4 sm:$0xff]  }
 0x2ca   : > { %15184 = vmatpush1.bf16.msra.mxu0 %v19570_v56  ;;  %13873 = vmatprep.subr.bf16.mxu1 %v19575_v41  ;;  %v19664_v56 = vld [vmem:[%s21927_s22 + $0x2b04] ss:$8 sps:$4 sm:$0xff]   ;;  %v22853_v41 = vrot.slane %v22762_v15, %v21993_v51  ;;  %v2453_v15 = vcombine.high %v22784_v55, %v22784_v55 }
 0x2cb   : > { %15185 = vmatprep.subr.bf16.mxu0 %v19578_v42  ;;  %v22857_v42 = vrot.slane %v22765_v46, %v21993_v51  ;;  %v19665_v46 = vld [vmem:[%s21927_s22 + $0xb10] ss:$8 sps:$4 sm:$0xff]   ;;  %v19673_v55 = vld [vmem:[%s21927_s22 + $0xb24] ss:$8 sps:$4 sm:$0xff]  }
 0x2cd   : > { %13874 = vmatpush1.bf16.msra.mxu1 %v19573_v62  ;;  %v19658_v62 = vld [vmem:[%s21927_s22 + $0xb00] ss:$8 sps:$4 sm:$0xff]  }
 0x2ce   : > { %15186 = vmatpush1.bf16.msra.mxu0 %v19576_v63  ;;  %13875 = vmatprep.subr.bf16.mxu1 %v19581_v0  ;;  %v19662_v63 = vld [vmem:[%s21927_s22 + $0x2b00] ss:$8 sps:$4 sm:$0xff]   ;;  %v19667_v0 = vld [vmem:[%s21927_s22 + $0xb14] ss:$8 sps:$4 sm:$0xff]  }
 0x2cf   : > { %15187 = vmatprep.subr.bf16.mxu0 %v19584_v1  ;;  %v19670_v1 = vld [vmem:[%s21927_s22 + $0x2b14] ss:$8 sps:$4 sm:$0xff]  }
 0x2d1   : > { %13876 = vmatpush1.bf16.msra.mxu1 %v19579_v43  ;;  %v2845_v43 = vcombine.high %v22787_v34, %v22787_v34  ;;  %v19671_v34 = vld [vmem:[%s21927_s22 + $0xb20] ss:$8 sps:$4 sm:$0xff]  }
 0x2d2   : > { %15188 = vmatpush1.bf16.msra.mxu0 %v19582_v2  ;;  %13877 = vmatprep.subr.bf16.mxu1 %v19587_v57  ;;  %v19668_v2 = vld [vmem:[%s21927_s22 + $0x2b10] ss:$8 sps:$4 sm:$0xff]   ;;  %v19676_v57 = vld [vmem:[%s21927_s22 + $0x2b24] ss:$8 sps:$4 sm:$0xff]  }
 0x2d3   : > { %15189 = vmatprep.subr.bf16.mxu0 %v19590_v4  ;;  %v19674_v4 = vld [vmem:[%s21927_s22 + $0x2b20] ss:$8 sps:$4 sm:$0xff]  }
 0x2d5   : > { %13878 = vmatpush1.bf16.msra.mxu1 %v19585_v59  ;;  %v19679_v59 = vld [vmem:[%s21927_s22 + $0xb34] ss:$8 sps:$4 sm:$0xff]  }
 0x2d6   : > { %15190 = vmatpush1.bf16.msra.mxu0 %v19588_v5  ;;  %13879 = vmatprep.subr.bf16.mxu1 %v19593_v6  ;;  %v19682_v5 = vld [vmem:[%s21927_s22 + $0x2b34] ss:$8 sps:$4 sm:$0xff]   ;;  %v19677_v6 = vld [vmem:[%s21927_s22 + $0xb30] ss:$8 sps:$4 sm:$0xff]  }
 0x2d7   : > { %15191 = vmatprep.subr.bf16.mxu0 %v19596_v7  ;;  %v19680_v7 = vld [vmem:[%s21927_s22 + $0x2b30] ss:$8 sps:$4 sm:$0xff]  }
 0x2d9   : > { %13880 = vmatpush1.bf16.msra.mxu1 %v19591_v8  ;;  %v19685_v8 = vld [vmem:[%s21927_s22 + $0xb44] ss:$8 sps:$4 sm:$0xff]  }
 0x2da   : > { %15192 = vmatpush1.bf16.msra.mxu0 %v19594_v9  ;;  %13881 = vmatprep.subr.bf16.mxu1 %v19599_v10  ;;  %v19688_v9 = vld [vmem:[%s21927_s22 + $0x2b44] ss:$8 sps:$4 sm:$0xff]   ;;  %v19683_v10 = vld [vmem:[%s21927_s22 + $0xb40] ss:$8 sps:$4 sm:$0xff]  }
 0x2db   : > { %15193 = vmatprep.subr.bf16.mxu0 %v19602_v11  ;;  %v19686_v11 = vld [vmem:[%s21927_s22 + $0x2b40] ss:$8 sps:$4 sm:$0xff]  }
 0x2dd   : > { %13882 = vmatpush1.bf16.msra.mxu1 %v19597_v12  ;;  %v19691_v12 = vld [vmem:[%s21927_s22 + $0xb54] ss:$8 sps:$4 sm:$0xff]  }
 0x2de   : > { %15194 = vmatpush1.bf16.msra.mxu0 %v19600_v13  ;;  %13883 = vmatprep.subr.bf16.mxu1 %v19605_v20  ;;  %v19694_v13 = vld [vmem:[%s21927_s22 + $0x2b54] ss:$8 sps:$4 sm:$0xff]   ;;  %v19689_v20 = vld [vmem:[%s21927_s22 + $0xb50] ss:$8 sps:$4 sm:$0xff]  }
 0x2df   : > { %15195 = vmatprep.subr.bf16.mxu0 %v19608_v21  ;;  %v19692_v21 = vld [vmem:[%s21927_s22 + $0x2b50] ss:$8 sps:$4 sm:$0xff]  }
 0x2e1   : > { %13884 = vmatpush1.bf16.msra.mxu1 %v19603_v22  ;;  %v19697_v22 = vld [vmem:[%s21927_s22 + $0xb64] ss:$8 sps:$4 sm:$0xff]  }
 0x2e2   : > { %15196 = vmatpush1.bf16.msra.mxu0 %v19606_v23  ;;  %13885 = vmatprep.subr.bf16.mxu1 %v19611_v44  ;;  %v19700_v23 = vld [vmem:[%s21927_s22 + $0x2b64] ss:$8 sps:$4 sm:$0xff]   ;;  %v19695_v44 = vld [vmem:[%s21927_s22 + $0xb60] ss:$8 sps:$4 sm:$0xff]  }
 0x2e3   : > { %15197 = vmatprep.subr.bf16.mxu0 %v19614_v24  ;;  %v19698_v24 = vld [vmem:[%s21927_s22 + $0x2b60] ss:$8 sps:$4 sm:$0xff]  }
 0x2e5   : > { %13886 = vmatpush1.bf16.msra.mxu1 %v19609_v3  ;;  %v19703_v3 = vld [vmem:[%s21927_s22 + $0xb74] ss:$8 sps:$4 sm:$0xff]  }
 0x2e6   : > { %15198 = vmatpush1.bf16.msra.mxu0 %v19612_v25  ;;  %13887 = vmatprep.subr.bf16.mxu1 %v19617_v14  ;;  %v19706_v25 = vld [vmem:[%s21927_s22 + $0x2b74] ss:$8 sps:$4 sm:$0xff]   ;;  %v19701_v14 = vld [vmem:[%s21927_s22 + $0xb70] ss:$8 sps:$4 sm:$0xff]  }
 0x2e7   : > { %15199 = vmatprep.subr.bf16.mxu0 %v19620_v54  ;;  %v19704_v54 = vld [vmem:[%s21927_s22 + $0x2b70] ss:$8 sps:$4 sm:$0xff]  }
 0x2e9   : > { %13888 = vmatpush1.bf16.msra.mxu1 %v19615_v60  ;;  %v19709_v60 = vld [vmem:[%s21927_s22 + $0xb84] ss:$8 sps:$4 sm:$0xff]  }
 0x2ea   : > { %15200 = vmatpush1.bf16.msra.mxu0 %v19618_v58  ;;  %13889 = vmatprep.subr.bf16.mxu1 %v19623_v28  ;;  %v19712_v58 = vld [vmem:[%s21927_s22 + $0x2b84] ss:$8 sps:$4 sm:$0xff]   ;;  %v19707_v28 = vld [vmem:[%s21927_s22 + $0xb80] ss:$8 sps:$4 sm:$0xff]  }
 0x2eb   : > { %15201 = vmatprep.subr.bf16.mxu0 %v19626_v29  ;;  %v19710_v29 = vld [vmem:[%s21927_s22 + $0x2b80] ss:$8 sps:$4 sm:$0xff]  }
 0x2ed   : > { %13890 = vmatpush1.bf16.msra.mxu1 %v19621_v30  ;;  %v19715_v30 = vld [vmem:[%s21927_s22 + $0xb94] ss:$8 sps:$4 sm:$0xff]  }
 0x2ee   : > { %15202 = vmatpush1.bf16.msra.mxu0 %v19624_v31  ;;  %13891 = vmatprep.subr.bf16.mxu1 %v19629_v17  ;;  %v19718_v31 = vld [vmem:[%s21927_s22 + $0x2b94] ss:$8 sps:$4 sm:$0xff]   ;;  %v19713_v17 = vld [vmem:[%s21927_s22 + $0xb90] ss:$8 sps:$4 sm:$0xff]  }
 0x2ef   : > { %15203 = vmatprep.subr.bf16.mxu0 %v19632_v33  ;;  %v19716_v33 = vld [vmem:[%s21927_s22 + $0x2b90] ss:$8 sps:$4 sm:$0xff]  }
 0x2f1   : > { %13892 = vmatpush1.bf16.msra.mxu1 %v19627_v36  ;;  %v19721_v36 = vld [vmem:[%s21927_s22 + $0xba4] ss:$8 sps:$4 sm:$0xff]  }
 0x2f2   : > { %15204 = vmatpush1.bf16.msra.mxu0 %v19630_v37  ;;  %13893 = vmatprep.subr.bf16.mxu1 %v19635_v19  ;;  %v19724_v37 = vld [vmem:[%s21927_s22 + $0x2ba4] ss:$8 sps:$4 sm:$0xff]   ;;  %v19719_v19 = vld [vmem:[%s21927_s22 + $0xba0] ss:$8 sps:$4 sm:$0xff]  }
 0x2f3   : > { %15205 = vmatprep.subr.bf16.mxu0 %v19638_v39  ;;  %v19722_v39 = vld [vmem:[%s21927_s22 + $0x2ba0] ss:$8 sps:$4 sm:$0xff]  }
 0x2f5   : > { %13894 = vmatpush1.bf16.msra.mxu1 %v19633_v61  ;;  %v19727_v61 = vld [vmem:[%s21927_s22 + $0xbb4] ss:$8 sps:$4 sm:$0xff]  }
 0x2f6   : > { %15206 = vmatpush1.bf16.msra.mxu0 %v19636_v45  ;;  %13895 = vmatprep.subr.bf16.mxu1 %v19641_v32  ;;  %v19730_v45 = vld [vmem:[%s21927_s22 + $0x2bb4] ss:$8 sps:$4 sm:$0xff]   ;;  %v19725_v32 = vld [vmem:[%s21927_s22 + $0xbb0] ss:$8 sps:$4 sm:$0xff]  }
 0x2f7   : > { %15207 = vmatprep.subr.bf16.mxu0 %v19644_v26  ;;  %v19728_v26 = vld [vmem:[%s21927_s22 + $0x2bb0] ss:$8 sps:$4 sm:$0xff]  }
 0x2f9   : > { %13896 = vmatpush1.bf16.msra.mxu1 %v19639_v16  ;;  %v19733_v16 = vld [vmem:[%s21927_s22 + $0xbc4] ss:$8 sps:$4 sm:$0xff]  }
 0x2fa   : > { %15208 = vmatpush1.bf16.msra.mxu0 %v19642_v47  ;;  %13897 = vmatprep.subr.bf16.mxu1 %v19647_v27  ;;  %v19736_v47 = vld [vmem:[%s21927_s22 + $0x2bc4] ss:$8 sps:$4 sm:$0xff]   ;;  %v19731_v27 = vld [vmem:[%s21927_s22 + $0xbc0] ss:$8 sps:$4 sm:$0xff]  }
 0x2fb   : > { %15209 = vmatprep.subr.bf16.mxu0 %v19650_v48  ;;  %v19734_v48 = vld [vmem:[%s21927_s22 + $0x2bc0] ss:$8 sps:$4 sm:$0xff]  }
 0x2fd   : > { %13898 = vmatpush1.bf16.msra.mxu1 %v19645_v38  ;;  %v19739_v38 = vld [vmem:[%s21927_s22 + $0xbd4] ss:$8 sps:$4 sm:$0xff]  }
 0x2fe   : > { %15210 = vmatpush1.bf16.msra.mxu0 %v19648_v49  ;;  %13899 = vmatprep.subr.bf16.mxu1 %v19653_v18  ;;  %v19742_v49 = vld [vmem:[%s21927_s22 + $0x2bd4] ss:$8 sps:$4 sm:$0xff]   ;;  %v19737_v18 = vld [vmem:[%s21927_s22 + $0xbd0] ss:$8 sps:$4 sm:$0xff]  }
 0x2ff   : > { %15211 = vmatprep.subr.bf16.mxu0 %v19656_v50  ;;  %v19740_v50 = vld [vmem:[%s21927_s22 + $0x2bd0] ss:$8 sps:$4 sm:$0xff]  }
 0x301   : > { %13900 = vmatpush1.bf16.msra.mxu1 %v19651_v52  ;;  %v19745_v52 = vld [vmem:[%s21927_s22 + $0xbe4] ss:$8 sps:$4 sm:$0xff]  }
 0x302   : > { %15212 = vmatpush1.bf16.msra.mxu0 %v19654_v53  ;;  %13910 = vmatprep.subr.bf16.mxu1 %v19660_v35  ;;  %v19748_v53 = vld [vmem:[%s21927_s22 + $0x2be4] ss:$8 sps:$4 sm:$0xff]   ;;  %v22922_v35 = vld.sshfl [vmem:[%s21940_s26 + $0x18] sm:$0xff pattern:$0x75316420] }
 0x303   : > { %15222 = vmatprep.subr.bf16.mxu0 %v19664_v56  ;;  %v22925_v56 = vld.sshfl [vmem:[%s21940_s26 + $0x58] sm:$0xff pattern:$0x75316420] }
 0x304   : > { %13902 = vmatmul.mubr.bf16.vlgmr.msra.gmra.mrb[0].mxu1 %v22853_v41 }
 0x305   : > { %15214 = vmatmul.mubr.bf16.vlgmr.msra.gmra.mrb[0].mxu0 %v22857_v42  ;;  %13911 = vmatpush1.bf16.msra.mxu1 %v19658_v62  ;;  %v19743_v62 = vld [vmem:[%s21927_s22 + $0xbe0] ss:$8 sps:$4 sm:$0xff]  }
 0x306   : > { %15223 = vmatpush1.bf16.msra.mxu0 %v19662_v63  ;;  %13912 = vmatprep.subr.bf16.mxu1 %v19667_v0  ;;  %v19746_v63 = vld [vmem:[%s21927_s22 + $0x2be0] ss:$8 sps:$4 sm:$0xff]   ;;  %v19751_v0 = vld [vmem:[%s21927_s22 + $0xbf4] ss:$8 sps:$4 sm:$0xff]  }
 0x307   : > { %15224 = vmatprep.subr.bf16.mxu0 %v19670_v1  ;;  %13942 = vmatprep.mubr.bf16.mxu1 %v2453_v15  ;;  %v19754_v1 = vld [vmem:[%s21927_s22 + $0x2bf4] ss:$8 sps:$4 sm:$0xff]   ;;  %v19749_v15 = vld [vmem:[%s21927_s22 + $0xbf0] ss:$8 sps:$4 sm:$0xff]  }
 0x308   : > { %15254 = vmatprep.mubr.bf16.mxu0 %v2845_v43  ;;  %v19752_v43 = vld [vmem:[%s21927_s22 + $0x2bf0] ss:$8 sps:$4 sm:$0xff]  }
 0x309   : > { %13913 = vmatpush1.bf16.msra.mxu1 %v19665_v46  ;;  %v19757_v46 = vld [vmem:[%s21927_s22 + $0xc04] ss:$8 sps:$4 sm:$0xff]  }
 0x30a   : > { %15225 = vmatpush1.bf16.msra.mxu0 %v19668_v2  ;;  %13914 = vmatprep.subr.bf16.mxu1 %v19673_v55  ;;  %v19760_v2 = vld [vmem:[%s21927_s22 + $0x2c04] ss:$8 sps:$4 sm:$0xff]   ;;  %v2469_v55 = vcombine.high %v22922_v35, %v22922_v35 }
 0x30b   : > { %15226 = vmatprep.subr.bf16.mxu0 %v19676_v57  ;;  %v2861_v57 = vcombine.high %v22925_v56, %v22925_v56 }
 0x30d   : > { %13915 = vmatpush1.bf16.msra.mxu1 %v19671_v34  ;;  %v2451_v34 = vcombine.high %v22853_v41, %v22853_v41  ;;  %v22951_v41 = vrot.slane %v2861_v57, %v21993_v51  ;;  %v19844_v57 = vld [vmem:[%s21927_s22 + $0x2ce4] ss:$8 sps:$4 sm:$0xff]  }
 0x30e   : > { %15227 = vmatpush1.bf16.msra.mxu0 %v19674_v4  ;;  %13916 = vmatprep.subr.bf16.mxu1 %v19679_v59  ;;  %v2843_v4 = vcombine.high %v22857_v42, %v22857_v42  ;;  %v19755_v59 = vld [vmem:[%s21927_s22 + $0xc00] ss:$8 sps:$4 sm:$0xff]   ;;  %v19761_v42 = vld [vmem:[%s21927_s22 + $0xc10] ss:$8 sps:$4 sm:$0xff]  }
 0x30f   : > { %15228 = vmatprep.subr.bf16.mxu0 %v19682_v5  ;;  %v19758_v5 = vld [vmem:[%s21927_s22 + $0x2c00] ss:$8 sps:$4 sm:$0xff]  }
 0x311   : > { %13917 = vmatpush1.bf16.msra.mxu1 %v19677_v6  ;;  %v19763_v6 = vld [vmem:[%s21927_s22 + $0xc14] ss:$8 sps:$4 sm:$0xff]  }
 0x312   : > { %15229 = vmatpush1.bf16.msra.mxu0 %v19680_v7  ;;  %13918 = vmatprep.subr.bf16.mxu1 %v19685_v8  ;;  %v19766_v7 = vld [vmem:[%s21927_s22 + $0x2c14] ss:$8 sps:$4 sm:$0xff]   ;;  %v22948_v8 = vrot.slane %v2469_v55, %v21993_v51  ;;  %v19841_v55 = vld [vmem:[%s21927_s22 + $0xce4] ss:$8 sps:$4 sm:$0xff]  }
 0x313   : > { %15230 = vmatprep.subr.bf16.mxu0 %v19688_v9  ;;  %v19764_v9 = vld [vmem:[%s21927_s22 + $0x2c10] ss:$8 sps:$4 sm:$0xff]  }
 0x315   : > { %13919 = vmatpush1.bf16.msra.mxu1 %v19683_v10  ;;  %v19769_v10 = vld [vmem:[%s21927_s22 + $0xc24] ss:$8 sps:$4 sm:$0xff]  }
 0x316   : > { %15231 = vmatpush1.bf16.msra.mxu0 %v19686_v11  ;;  %13920 = vmatprep.subr.bf16.mxu1 %v19691_v12  ;;  %v19772_v11 = vld [vmem:[%s21927_s22 + $0x2c24] ss:$8 sps:$4 sm:$0xff]   ;;  %v19767_v12 = vld [vmem:[%s21927_s22 + $0xc20] ss:$8 sps:$4 sm:$0xff]  }
 0x317   : > { %15232 = vmatprep.subr.bf16.mxu0 %v19694_v13  ;;  %v19770_v13 = vld [vmem:[%s21927_s22 + $0x2c20] ss:$8 sps:$4 sm:$0xff]  }
 0x319   : > { %13921 = vmatpush1.bf16.msra.mxu1 %v19689_v20  ;;  %v19775_v20 = vld [vmem:[%s21927_s22 + $0xc34] ss:$8 sps:$4 sm:$0xff]  }
 0x31a   : > { %15233 = vmatpush1.bf16.msra.mxu0 %v19692_v21  ;;  %13922 = vmatprep.subr.bf16.mxu1 %v19697_v22  ;;  %v19778_v21 = vld [vmem:[%s21927_s22 + $0x2c34] ss:$8 sps:$4 sm:$0xff]   ;;  %v19773_v22 = vld [vmem:[%s21927_s22 + $0xc30] ss:$8 sps:$4 sm:$0xff]  }
 0x31b   : > { %15234 = vmatprep.subr.bf16.mxu0 %v19700_v23  ;;  %v19776_v23 = vld [vmem:[%s21927_s22 + $0x2c30] ss:$8 sps:$4 sm:$0xff]  }
 0x31d   : > { %13923 = vmatpush1.bf16.msra.mxu1 %v19695_v44  ;;  %v19781_v44 = vld [vmem:[%s21927_s22 + $0xc44] ss:$8 sps:$4 sm:$0xff]  }
 0x31e   : > { %15235 = vmatpush1.bf16.msra.mxu0 %v19698_v24  ;;  %13924 = vmatprep.subr.bf16.mxu1 %v19703_v3  ;;  %v19784_v24 = vld [vmem:[%s21927_s22 + $0x2c44] ss:$8 sps:$4 sm:$0xff]   ;;  %v19779_v3 = vld [vmem:[%s21927_s22 + $0xc40] ss:$8 sps:$4 sm:$0xff]  }
 0x31f   : > { %15236 = vmatprep.subr.bf16.mxu0 %v19706_v25  ;;  %v19782_v25 = vld [vmem:[%s21927_s22 + $0x2c40] ss:$8 sps:$4 sm:$0xff]  }
 0x321   : > { %13925 = vmatpush1.bf16.msra.mxu1 %v19701_v14  ;;  %v19787_v14 = vld [vmem:[%s21927_s22 + $0xc54] ss:$8 sps:$4 sm:$0xff]  }
 0x322   : > { %15237 = vmatpush1.bf16.msra.mxu0 %v19704_v54  ;;  %13926 = vmatprep.subr.bf16.mxu1 %v19709_v60  ;;  %v19790_v54 = vld [vmem:[%s21927_s22 + $0x2c54] ss:$8 sps:$4 sm:$0xff]   ;;  %v19785_v60 = vld [vmem:[%s21927_s22 + $0xc50] ss:$8 sps:$4 sm:$0xff]  }
 0x323   : > { %15238 = vmatprep.subr.bf16.mxu0 %v19712_v58  ;;  %v19788_v58 = vld [vmem:[%s21927_s22 + $0x2c50] ss:$8 sps:$4 sm:$0xff]  }
 0x325   : > { %13927 = vmatpush1.bf16.msra.mxu1 %v19707_v28  ;;  %v19793_v28 = vld [vmem:[%s21927_s22 + $0xc64] ss:$8 sps:$4 sm:$0xff]  }
 0x326   : > { %15239 = vmatpush1.bf16.msra.mxu0 %v19710_v29  ;;  %13928 = vmatprep.subr.bf16.mxu1 %v19715_v30  ;;  %v19796_v29 = vld [vmem:[%s21927_s22 + $0x2c64] ss:$8 sps:$4 sm:$0xff]   ;;  %v19791_v30 = vld [vmem:[%s21927_s22 + $0xc60] ss:$8 sps:$4 sm:$0xff]  }
 0x327   : > { %15240 = vmatprep.subr.bf16.mxu0 %v19718_v31  ;;  %v19794_v31 = vld [vmem:[%s21927_s22 + $0x2c60] ss:$8 sps:$4 sm:$0xff]  }
 0x329   : > { %13929 = vmatpush1.bf16.msra.mxu1 %v19713_v17  ;;  %v19799_v17 = vld [vmem:[%s21927_s22 + $0xc74] ss:$8 sps:$4 sm:$0xff]  }
 0x32a   : > { %15241 = vmatpush1.bf16.msra.mxu0 %v19716_v33  ;;  %13930 = vmatprep.subr.bf16.mxu1 %v19721_v36  ;;  %v19802_v33 = vld [vmem:[%s21927_s22 + $0x2c74] ss:$8 sps:$4 sm:$0xff]   ;;  %v19797_v36 = vld [vmem:[%s21927_s22 + $0xc70] ss:$8 sps:$4 sm:$0xff]  }
 0x32b   : > { %15242 = vmatprep.subr.bf16.mxu0 %v19724_v37  ;;  %v19800_v37 = vld [vmem:[%s21927_s22 + $0x2c70] ss:$8 sps:$4 sm:$0xff]  }
 0x32d   : > { %13931 = vmatpush1.bf16.msra.mxu1 %v19719_v19  ;;  %v19805_v19 = vld [vmem:[%s21927_s22 + $0xc84] ss:$8 sps:$4 sm:$0xff]  }
 0x32e   : > { %15243 = vmatpush1.bf16.msra.mxu0 %v19722_v39  ;;  %13932 = vmatprep.subr.bf16.mxu1 %v19727_v61  ;;  %v19808_v39 = vld [vmem:[%s21927_s22 + $0x2c84] ss:$8 sps:$4 sm:$0xff]   ;;  %v19803_v61 = vld [vmem:[%s21927_s22 + $0xc80] ss:$8 sps:$4 sm:$0xff]  }
 0x32f   : > { %15244 = vmatprep.subr.bf16.mxu0 %v19730_v45  ;;  %v19806_v45 = vld [vmem:[%s21927_s22 + $0x2c80] ss:$8 sps:$4 sm:$0xff]  }
 0x331   : > { %13933 = vmatpush1.bf16.msra.mxu1 %v19725_v32  ;;  %v19811_v32 = vld [vmem:[%s21927_s22 + $0xc94] ss:$8 sps:$4 sm:$0xff]  }
 0x332   : > { %15245 = vmatpush1.bf16.msra.mxu0 %v19728_v26  ;;  %13934 = vmatprep.subr.bf16.mxu1 %v19733_v16  ;;  %v19814_v26 = vld [vmem:[%s21927_s22 + $0x2c94] ss:$8 sps:$4 sm:$0xff]   ;;  %v19809_v16 = vld [vmem:[%s21927_s22 + $0xc90] ss:$8 sps:$4 sm:$0xff]  }
 0x333   : > { %15246 = vmatprep.subr.bf16.mxu0 %v19736_v47  ;;  %v19812_v47 = vld [vmem:[%s21927_s22 + $0x2c90] ss:$8 sps:$4 sm:$0xff]  }
 0x335   : > { %13935 = vmatpush1.bf16.msra.mxu1 %v19731_v27  ;;  %v19817_v27 = vld [vmem:[%s21927_s22 + $0xca4] ss:$8 sps:$4 sm:$0xff]  }
 0x336   : > { %15247 = vmatpush1.bf16.msra.mxu0 %v19734_v48  ;;  %13936 = vmatprep.subr.bf16.mxu1 %v19739_v38  ;;  %v19820_v48 = vld [vmem:[%s21927_s22 + $0x2ca4] ss:$8 sps:$4 sm:$0xff]   ;;  %v19815_v38 = vld [vmem:[%s21927_s22 + $0xca0] ss:$8 sps:$4 sm:$0xff]  }
 0x337   : > { %15248 = vmatprep.subr.bf16.mxu0 %v19742_v49  ;;  %v19818_v49 = vld [vmem:[%s21927_s22 + $0x2ca0] ss:$8 sps:$4 sm:$0xff]  }
 0x339   : > { %13937 = vmatpush1.bf16.msra.mxu1 %v19737_v18  ;;  %v19823_v18 = vld [vmem:[%s21927_s22 + $0xcb4] ss:$8 sps:$4 sm:$0xff]  }
 0x33a   : > { %15249 = vmatpush1.bf16.msra.mxu0 %v19740_v50  ;;  %13938 = vmatprep.subr.bf16.mxu1 %v19745_v52  ;;  %v19826_v50 = vld [vmem:[%s21927_s22 + $0x2cb4] ss:$8 sps:$4 sm:$0xff]   ;;  %v19821_v52 = vld [vmem:[%s21927_s22 + $0xcb0] ss:$8 sps:$4 sm:$0xff]  }
 0x33b   : > { %15250 = vmatprep.subr.bf16.mxu0 %v19748_v53  ;;  %v19824_v53 = vld [vmem:[%s21927_s22 + $0x2cb0] ss:$8 sps:$4 sm:$0xff]  }
 0x33d   : > { %13939 = vmatpush1.bf16.msra.mxu1 %v19743_v62  ;;  %v19829_v62 = vld [vmem:[%s21927_s22 + $0xcc4] ss:$8 sps:$4 sm:$0xff]  }
 0x33e   : > { %15251 = vmatpush1.bf16.msra.mxu0 %v19746_v63  ;;  %13940 = vmatprep.subr.bf16.mxu1 %v19751_v0  ;;  %v19832_v63 = vld [vmem:[%s21927_s22 + $0x2cc4] ss:$8 sps:$4 sm:$0xff]   ;;  %v19827_v0 = vld [vmem:[%s21927_s22 + $0xcc0] ss:$8 sps:$4 sm:$0xff]  }
 0x33f   : > { %15252 = vmatprep.subr.bf16.mxu0 %v19754_v1  ;;  %v19830_v1 = vld [vmem:[%s21927_s22 + $0x2cc0] ss:$8 sps:$4 sm:$0xff]  }
 0x341   : > { %13941 = vmatpush1.bf16.msra.mxu1 %v19749_v15  ;;  %v19835_v15 = vld [vmem:[%s21927_s22 + $0xcd4] ss:$8 sps:$4 sm:$0xff]  }
 0x342   : > { %15253 = vmatpush1.bf16.msra.mxu0 %v19752_v43  ;;  %13951 = vmatprep.subr.bf16.mxu1 %v19757_v46  ;;  %v19838_v43 = vld [vmem:[%s21927_s22 + $0x2cd4] ss:$8 sps:$4 sm:$0xff]   ;;  %v19833_v46 = vld [vmem:[%s21927_s22 + $0xcd0] ss:$8 sps:$4 sm:$0xff]  }
 0x343   : > { %15263 = vmatprep.subr.bf16.mxu0 %v19760_v2  ;;  %v19836_v2 = vld [vmem:[%s21927_s22 + $0x2cd0] ss:$8 sps:$4 sm:$0xff]  }
 0x344   : > { %13943 = vmatmul.mubr.bf16.vlgmr.msra.gmra.mrb[0].mxu1 %v2451_v34  ;;  %v19839_v34 = vld [vmem:[%s21927_s22 + $0xce0] ss:$8 sps:$4 sm:$0xff]  }
 0x345   : > { %15255 = vmatmul.mubr.bf16.vlgmr.msra.gmra.mrb[0].mxu0 %v2843_v4  ;;  %13952 = vmatpush1.bf16.msra.mxu1 %v19755_v59  ;;  %v19842_v4 = vld [vmem:[%s21927_s22 + $0x2ce0] ss:$8 sps:$4 sm:$0xff]   ;;  %v19847_v59 = vld [vmem:[%s21927_s22 + $0xcf4] ss:$8 sps:$4 sm:$0xff]  }
 0x346   : > { %15264 = vmatpush1.bf16.msra.mxu0 %v19758_v5  ;;  %13953 = vmatprep.subr.bf16.mxu1 %v19763_v6  ;;  %v19850_v5 = vld [vmem:[%s21927_s22 + $0x2cf4] ss:$8 sps:$4 sm:$0xff]   ;;  %v19845_v6 = vld [vmem:[%s21927_s22 + $0xcf0] ss:$8 sps:$4 sm:$0xff]  }
 0x347   : > { %15265 = vmatprep.subr.bf16.mxu0 %v19766_v7  ;;  %13983 = vmatprep.mubr.bf16.mxu1 %v22948_v8  ;;  %v19848_v7 = vld [vmem:[%s21927_s22 + $0x2cf0] ss:$8 sps:$4 sm:$0xff]  }
 0x348   : > { %15295 = vmatprep.mubr.bf16.mxu0 %v22951_v41 }
 0x349   : > { %13954 = vmatpush1.bf16.msra.mxu1 %v19761_v42  ;;  %v19853_v42 = vld [vmem:[%s21927_s22 + $0xd04] ss:$8 sps:$4 sm:$0xff]  }
 0x34a   : > { %15266 = vmatpush1.bf16.msra.mxu0 %v19764_v9  ;;  %13955 = vmatprep.subr.bf16.mxu1 %v19769_v10  ;;  %v19856_v9 = vld [vmem:[%s21927_s22 + $0x2d04] ss:$8 sps:$4 sm:$0xff]   ;;  %v23017_v10 = vrot.slane %v22922_v35, %v21993_v51  ;;  %v2501_v35 = vcombine.high %v22948_v8, %v22948_v8 }
 0x34b   : > { %15267 = vmatprep.subr.bf16.mxu0 %v19772_v11  ;;  %v23021_v11 = vrot.slane %v22925_v56, %v21993_v51  ;;  %v19857_v56 = vld [vmem:[%s21927_s22 + $0xd10] ss:$8 sps:$4 sm:$0xff]   ;;  %v19865_v8 = vld [vmem:[%s21927_s22 + $0xd24] ss:$8 sps:$4 sm:$0xff]  }
 0x34d   : > { %13956 = vmatpush1.bf16.msra.mxu1 %v19767_v12  ;;  %v19851_v12 = vld [vmem:[%s21927_s22 + $0xd00] ss:$8 sps:$4 sm:$0xff]  }
 0x34e   : > { %15268 = vmatpush1.bf16.msra.mxu0 %v19770_v13  ;;  %13957 = vmatprep.subr.bf16.mxu1 %v19775_v20  ;;  %v19854_v13 = vld [vmem:[%s21927_s22 + $0x2d00] ss:$8 sps:$4 sm:$0xff]   ;;  %v19859_v20 = vld [vmem:[%s21927_s22 + $0xd14] ss:$8 sps:$4 sm:$0xff]  }
 0x34f   : > { %15269 = vmatprep.subr.bf16.mxu0 %v19778_v21  ;;  %v19862_v21 = vld [vmem:[%s21927_s22 + $0x2d14] ss:$8 sps:$4 sm:$0xff]  }
 0x351   : > { %13958 = vmatpush1.bf16.msra.mxu1 %v19773_v22  ;;  %v2893_v22 = vcombine.high %v22951_v41, %v22951_v41  ;;  %v19863_v41 = vld [vmem:[%s21927_s22 + $0xd20] ss:$8 sps:$4 sm:$0xff]  }
 0x352   : > { %15270 = vmatpush1.bf16.msra.mxu0 %v19776_v23  ;;  %13959 = vmatprep.subr.bf16.mxu1 %v19781_v44  ;;  %v19860_v23 = vld [vmem:[%s21927_s22 + $0x2d10] ss:$8 sps:$4 sm:$0xff]   ;;  %v19868_v44 = vld [vmem:[%s21927_s22 + $0x2d24] ss:$8 sps:$4 sm:$0xff]  }
 0x353   : > { %15271 = vmatprep.subr.bf16.mxu0 %v19784_v24  ;;  %v19866_v24 = vld [vmem:[%s21927_s22 + $0x2d20] ss:$8 sps:$4 sm:$0xff]  }
 0x355   : > { %13960 = vmatpush1.bf16.msra.mxu1 %v19779_v3  ;;  %v19871_v3 = vld [vmem:[%s21927_s22 + $0xd34] ss:$8 sps:$4 sm:$0xff]  }
 0x356   : > { %15272 = vmatpush1.bf16.msra.mxu0 %v19782_v25  ;;  %13961 = vmatprep.subr.bf16.mxu1 %v19787_v14  ;;  %v19874_v25 = vld [vmem:[%s21927_s22 + $0x2d34] ss:$8 sps:$4 sm:$0xff]   ;;  %v19869_v14 = vld [vmem:[%s21927_s22 + $0xd30] ss:$8 sps:$4 sm:$0xff]  }
 0x357   : > { %15273 = vmatprep.subr.bf16.mxu0 %v19790_v54  ;;  %v19872_v54 = vld [vmem:[%s21927_s22 + $0x2d30] ss:$8 sps:$4 sm:$0xff]  }
 0x359   : > { %13962 = vmatpush1.bf16.msra.mxu1 %v19785_v60  ;;  %v19877_v60 = vld [vmem:[%s21927_s22 + $0xd44] ss:$8 sps:$4 sm:$0xff]  }
 0x35a   : > { %15274 = vmatpush1.bf16.msra.mxu0 %v19788_v58  ;;  %13963 = vmatprep.subr.bf16.mxu1 %v19793_v28  ;;  %v19880_v58 = vld [vmem:[%s21927_s22 + $0x2d44] ss:$8 sps:$4 sm:$0xff]   ;;  %v19875_v28 = vld [vmem:[%s21927_s22 + $0xd40] ss:$8 sps:$4 sm:$0xff]  }
 0x35b   : > { %15275 = vmatprep.subr.bf16.mxu0 %v19796_v29  ;;  %v19878_v29 = vld [vmem:[%s21927_s22 + $0x2d40] ss:$8 sps:$4 sm:$0xff]  }
 0x35d   : > { %13964 = vmatpush1.bf16.msra.mxu1 %v19791_v30  ;;  %v19883_v30 = vld [vmem:[%s21927_s22 + $0xd54] ss:$8 sps:$4 sm:$0xff]  }
 0x35e   : > { %15276 = vmatpush1.bf16.msra.mxu0 %v19794_v31  ;;  %13965 = vmatprep.subr.bf16.mxu1 %v19799_v17  ;;  %v19886_v31 = vld [vmem:[%s21927_s22 + $0x2d54] ss:$8 sps:$4 sm:$0xff]   ;;  %v19881_v17 = vld [vmem:[%s21927_s22 + $0xd50] ss:$8 sps:$4 sm:$0xff]  }
 0x35f   : > { %15277 = vmatprep.subr.bf16.mxu0 %v19802_v33  ;;  %v19884_v33 = vld [vmem:[%s21927_s22 + $0x2d50] ss:$8 sps:$4 sm:$0xff]  }
 0x361   : > { %13966 = vmatpush1.bf16.msra.mxu1 %v19797_v36  ;;  %v19889_v36 = vld [vmem:[%s21927_s22 + $0xd64] ss:$8 sps:$4 sm:$0xff]  }
 0x362   : > { %15278 = vmatpush1.bf16.msra.mxu0 %v19800_v37  ;;  %13967 = vmatprep.subr.bf16.mxu1 %v19805_v19  ;;  %v19892_v37 = vld [vmem:[%s21927_s22 + $0x2d64] ss:$8 sps:$4 sm:$0xff]   ;;  %v19887_v19 = vld [vmem:[%s21927_s22 + $0xd60] ss:$8 sps:$4 sm:$0xff]  }
 0x363   : > { %15279 = vmatprep.subr.bf16.mxu0 %v19808_v39  ;;  %v19890_v39 = vld [vmem:[%s21927_s22 + $0x2d60] ss:$8 sps:$4 sm:$0xff]  }
 0x365   : > { %13968 = vmatpush1.bf16.msra.mxu1 %v19803_v61  ;;  %v19895_v61 = vld [vmem:[%s21927_s22 + $0xd74] ss:$8 sps:$4 sm:$0xff]  }
 0x366   : > { %15280 = vmatpush1.bf16.msra.mxu0 %v19806_v45  ;;  %13969 = vmatprep.subr.bf16.mxu1 %v19811_v32  ;;  %v19898_v45 = vld [vmem:[%s21927_s22 + $0x2d74] ss:$8 sps:$4 sm:$0xff]   ;;  %v19893_v32 = vld [vmem:[%s21927_s22 + $0xd70] ss:$8 sps:$4 sm:$0xff]  }
 0x367   : > { %15281 = vmatprep.subr.bf16.mxu0 %v19814_v26  ;;  %v19896_v26 = vld [vmem:[%s21927_s22 + $0x2d70] ss:$8 sps:$4 sm:$0xff]  }
 0x369   : > { %13970 = vmatpush1.bf16.msra.mxu1 %v19809_v16  ;;  %v19901_v16 = vld [vmem:[%s21927_s22 + $0xd84] ss:$8 sps:$4 sm:$0xff]  }
 0x36a   : > { %15282 = vmatpush1.bf16.msra.mxu0 %v19812_v47  ;;  %13971 = vmatprep.subr.bf16.mxu1 %v19817_v27  ;;  %v19904_v47 = vld [vmem:[%s21927_s22 + $0x2d84] ss:$8 sps:$4 sm:$0xff]   ;;  %v19899_v27 = vld [vmem:[%s21927_s22 + $0xd80] ss:$8 sps:$4 sm:$0xff]  }
 0x36b   : > { %15283 = vmatprep.subr.bf16.mxu0 %v19820_v48  ;;  %v19902_v48 = vld [vmem:[%s21927_s22 + $0x2d80] ss:$8 sps:$4 sm:$0xff]  }
 0x36d   : > { %13972 = vmatpush1.bf16.msra.mxu1 %v19815_v38  ;;  %v19907_v38 = vld [vmem:[%s21927_s22 + $0xd94] ss:$8 sps:$4 sm:$0xff]  }
 0x36e   : > { %15284 = vmatpush1.bf16.msra.mxu0 %v19818_v49  ;;  %13973 = vmatprep.subr.bf16.mxu1 %v19823_v18  ;;  %v19910_v49 = vld [vmem:[%s21927_s22 + $0x2d94] ss:$8 sps:$4 sm:$0xff]   ;;  %v19905_v18 = vld [vmem:[%s21927_s22 + $0xd90] ss:$8 sps:$4 sm:$0xff]  }
 0x36f   : > { %15285 = vmatprep.subr.bf16.mxu0 %v19826_v50  ;;  %v19908_v50 = vld [vmem:[%s21927_s22 + $0x2d90] ss:$8 sps:$4 sm:$0xff]  }
 0x371   : > { %13974 = vmatpush1.bf16.msra.mxu1 %v19821_v52  ;;  %v19913_v52 = vld [vmem:[%s21927_s22 + $0xda4] ss:$8 sps:$4 sm:$0xff]  }
 0x372   : > { %15286 = vmatpush1.bf16.msra.mxu0 %v19824_v53  ;;  %13975 = vmatprep.subr.bf16.mxu1 %v19829_v62  ;;  %v19916_v53 = vld [vmem:[%s21927_s22 + $0x2da4] ss:$8 sps:$4 sm:$0xff]   ;;  %v19911_v62 = vld [vmem:[%s21927_s22 + $0xda0] ss:$8 sps:$4 sm:$0xff]  }
 0x373   : > { %15287 = vmatprep.subr.bf16.mxu0 %v19832_v63  ;;  %v19914_v63 = vld [vmem:[%s21927_s22 + $0x2da0] ss:$8 sps:$4 sm:$0xff]  }
 0x375   : > { %13976 = vmatpush1.bf16.msra.mxu1 %v19827_v0  ;;  %v19919_v0 = vld [vmem:[%s21927_s22 + $0xdb4] ss:$8 sps:$4 sm:$0xff]  }
 0x376   : > { %15288 = vmatpush1.bf16.msra.mxu0 %v19830_v1  ;;  %13977 = vmatprep.subr.bf16.mxu1 %v19835_v15  ;;  %v19922_v1 = vld [vmem:[%s21927_s22 + $0x2db4] ss:$8 sps:$4 sm:$0xff]   ;;  %v19917_v15 = vld [vmem:[%s21927_s22 + $0xdb0] ss:$8 sps:$4 sm:$0xff]  }
 0x377   : > { %15289 = vmatprep.subr.bf16.mxu0 %v19838_v43  ;;  %v19920_v43 = vld [vmem:[%s21927_s22 + $0x2db0] ss:$8 sps:$4 sm:$0xff]  }
 0x379   : > { %13978 = vmatpush1.bf16.msra.mxu1 %v19833_v46  ;;  %v19925_v46 = vld [vmem:[%s21927_s22 + $0xdc4] ss:$8 sps:$4 sm:$0xff]  }
 0x37a   : > { %15290 = vmatpush1.bf16.msra.mxu0 %v19836_v2  ;;  %13979 = vmatprep.subr.bf16.mxu1 %v19841_v55  ;;  %v19928_v2 = vld [vmem:[%s21927_s22 + $0x2dc4] ss:$8 sps:$4 sm:$0xff]   ;;  %v19923_v55 = vld [vmem:[%s21927_s22 + $0xdc0] ss:$8 sps:$4 sm:$0xff]  }
 0x37b   : > { %15291 = vmatprep.subr.bf16.mxu0 %v19844_v57  ;;  %v19926_v57 = vld [vmem:[%s21927_s22 + $0x2dc0] ss:$8 sps:$4 sm:$0xff]  }
 0x37d   : > { %13980 = vmatpush1.bf16.msra.mxu1 %v19839_v34  ;;  %v19931_v34 = vld [vmem:[%s21927_s22 + $0xdd4] ss:$8 sps:$4 sm:$0xff]  }
 0x37e   : > { %15292 = vmatpush1.bf16.msra.mxu0 %v19842_v4  ;;  %13981 = vmatprep.subr.bf16.mxu1 %v19847_v59  ;;  %v19934_v4 = vld [vmem:[%s21927_s22 + $0x2dd4] ss:$8 sps:$4 sm:$0xff]   ;;  %v19929_v59 = vld [vmem:[%s21927_s22 + $0xdd0] ss:$8 sps:$4 sm:$0xff]  }
 0x37f   : > { %15293 = vmatprep.subr.bf16.mxu0 %v19850_v5  ;;  %v19932_v5 = vld [vmem:[%s21927_s22 + $0x2dd0] ss:$8 sps:$4 sm:$0xff]  }
 0x381   : > { %13982 = vmatpush1.bf16.msra.mxu1 %v19845_v6  ;;  %v19937_v6 = vld [vmem:[%s21927_s22 + $0xde4] ss:$8 sps:$4 sm:$0xff]  }
 0x382   : > { %15294 = vmatpush1.bf16.msra.mxu0 %v19848_v7  ;;  %13992 = vmatprep.subr.bf16.mxu1 %v19853_v42  ;;  %v19940_v7 = vld [vmem:[%s21927_s22 + $0x2de4] ss:$8 sps:$4 sm:$0xff]   ;;  %v21689_v42 = vld [vmem:[%s21940_s26 + $0x18] sm:$0xff] }
 0x383   : > { %15304 = vmatprep.subr.bf16.mxu0 %v19856_v9  ;;  %v2454_v9 = vcombine.high %v21689_v42, %v21689_v42  ;;  %v20015_v42 = vld [vmem:[%s21927_s22 + $0xeb4] ss:$8 sps:$4 sm:$0xff]  }
 0x384   : > { %13984 = vmatmul.mubr.bf16.vlgmr.msra.gmra.mrb[0].mxu1 %v23017_v10 }
 0x385   : > { %15296 = vmatmul.mubr.bf16.vlgmr.msra.gmra.mrb[0].mxu0 %v23021_v11  ;;  %13993 = vmatpush1.bf16.msra.mxu1 %v19851_v12  ;;  %v21690_v12 = vld [vmem:[%s21940_s26 + $0x58] sm:$0xff] }
 0x386   : > { %15305 = vmatpush1.bf16.msra.mxu0 %v19854_v13  ;;  %13994 = vmatprep.subr.bf16.mxu1 %v19859_v20  ;;  %v2846_v13 = vcombine.high %v21690_v12, %v21690_v12  ;;  %v19935_v20 = vld [vmem:[%s21927_s22 + $0xde0] ss:$8 sps:$4 sm:$0xff]   ;;  %v20013_v12 = vld [vmem:[%s21927_s22 + $0xeb0] ss:$8 sps:$4 sm:$0xff]  }
 0x387   : > { %15306 = vmatprep.subr.bf16.mxu0 %v19862_v21  ;;  %14024 = vmatprep.mubr.bf16.mxu1 %v2501_v35  ;;  %v19938_v21 = vld [vmem:[%s21927_s22 + $0x2de0] ss:$8 sps:$4 sm:$0xff]   ;;  %v19943_v35 = vld [vmem:[%s21927_s22 + $0xdf4] ss:$8 sps:$4 sm:$0xff]  }
 0x388   : > { %15336 = vmatprep.mubr.bf16.mxu0 %v2893_v22  ;;  %v19946_v22 = vld [vmem:[%s21927_s22 + $0x2df4] ss:$8 sps:$4 sm:$0xff]  }
 0x389   : > { %13995 = vmatpush1.bf16.msra.mxu1 %v19857_v56  ;;  %v23092_v56 = vrot.slane %v2454_v9, %v21993_v51  ;;  %v20018_v9 = vld [vmem:[%s21927_s22 + $0x2eb4] ss:$8 sps:$4 sm:$0xff]  }
 0x38a   : > { %15307 = vmatpush1.bf16.msra.mxu0 %v19860_v23  ;;  %13996 = vmatprep.subr.bf16.mxu1 %v19865_v8  ;;  %v23095_v23 = vrot.slane %v2846_v13, %v21993_v51  ;;  %v19941_v8 = vld [vmem:[%s21927_s22 + $0xdf0] ss:$8 sps:$4 sm:$0xff]  }
 0x38b   : > { %15308 = vmatprep.subr.bf16.mxu0 %v19868_v44  ;;  %v19944_v44 = vld [vmem:[%s21927_s22 + $0x2df0] ss:$8 sps:$4 sm:$0xff]  }
 0x38c   : > { %v20016_v13 = vld [vmem:[%s21927_s22 + $0x2eb0] ss:$8 sps:$4 sm:$0xff]  }
 0x38d   : > { %13997 = vmatpush1.bf16.msra.mxu1 %v19863_v41  ;;  %v19949_v41 = vld [vmem:[%s21927_s22 + $0xe04] ss:$8 sps:$4 sm:$0xff]  }
 0x38e   : > { %15309 = vmatpush1.bf16.msra.mxu0 %v19866_v24  ;;  %13998 = vmatprep.subr.bf16.mxu1 %v19871_v3  ;;  %v19952_v24 = vld [vmem:[%s21927_s22 + $0x2e04] ss:$8 sps:$4 sm:$0xff]   ;;  %v2470_v3 = vcombine.high %v23092_v56, %v23092_v56 }
 0x38f   : > { %15310 = vmatprep.subr.bf16.mxu0 %v19874_v25  ;;  %v2862_v25 = vcombine.high %v23095_v23, %v23095_v23 }
 0x391   : > { %13999 = vmatpush1.bf16.msra.mxu1 %v19869_v14  ;;  %v2499_v14 = vcombine.high %v23017_v10, %v23017_v10  ;;  %v23117_v10 = vrot.slane %v2862_v25, %v21993_v51  ;;  %v20036_v25 = vld [vmem:[%s21927_s22 + $0x2ee4] ss:$8 sps:$4 sm:$0xff]  }
 0x392   : > { %15311 = vmatpush1.bf16.msra.mxu0 %v19872_v54  ;;  %14000 = vmatprep.subr.bf16.mxu1 %v19877_v60  ;;  %v2891_v54 = vcombine.high %v23021_v11, %v23021_v11  ;;  %v19947_v60 = vld [vmem:[%s21927_s22 + $0xe00] ss:$8 sps:$4 sm:$0xff]   ;;  %v19953_v11 = vld [vmem:[%s21927_s22 + $0xe10] ss:$8 sps:$4 sm:$0xff]  }
 0x393   : > { %15312 = vmatprep.subr.bf16.mxu0 %v19880_v58  ;;  %v19950_v58 = vld [vmem:[%s21927_s22 + $0x2e00] ss:$8 sps:$4 sm:$0xff]  }
 0x395   : > { %14001 = vmatpush1.bf16.msra.mxu1 %v19875_v28  ;;  %v19955_v28 = vld [vmem:[%s21927_s22 + $0xe14] ss:$8 sps:$4 sm:$0xff]  }
 0x396   : > { %15313 = vmatpush1.bf16.msra.mxu0 %v19878_v29  ;;  %14002 = vmatprep.subr.bf16.mxu1 %v19883_v30  ;;  %v19958_v29 = vld [vmem:[%s21927_s22 + $0x2e14] ss:$8 sps:$4 sm:$0xff]   ;;  %v23114_v30 = vrot.slane %v2470_v3, %v21993_v51  ;;  %v20033_v3 = vld [vmem:[%s21927_s22 + $0xee4] ss:$8 sps:$4 sm:$0xff]  }
 0x397   : > { %15314 = vmatprep.subr.bf16.mxu0 %v19886_v31  ;;  %v19956_v31 = vld [vmem:[%s21927_s22 + $0x2e10] ss:$8 sps:$4 sm:$0xff]  }
 0x399   : > { %14003 = vmatpush1.bf16.msra.mxu1 %v19881_v17  ;;  %v19961_v17 = vld [vmem:[%s21927_s22 + $0xe24] ss:$8 sps:$4 sm:$0xff]  }
 0x39a   : > { %15315 = vmatpush1.bf16.msra.mxu0 %v19884_v33  ;;  %14004 = vmatprep.subr.bf16.mxu1 %v19889_v36  ;;  %v19964_v33 = vld [vmem:[%s21927_s22 + $0x2e24] ss:$8 sps:$4 sm:$0xff]   ;;  %v19959_v36 = vld [vmem:[%s21927_s22 + $0xe20] ss:$8 sps:$4 sm:$0xff]  }
 0x39b   : > { %15316 = vmatprep.subr.bf16.mxu0 %v19892_v37  ;;  %v19962_v37 = vld [vmem:[%s21927_s22 + $0x2e20] ss:$8 sps:$4 sm:$0xff]  }
 0x39d   : > { %14005 = vmatpush1.bf16.msra.mxu1 %v19887_v19  ;;  %v19967_v19 = vld [vmem:[%s21927_s22 + $0xe34] ss:$8 sps:$4 sm:$0xff]  }
 0x39e   : > { %15317 = vmatpush1.bf16.msra.mxu0 %v19890_v39  ;;  %14006 = vmatprep.subr.bf16.mxu1 %v19895_v61  ;;  %v19970_v39 = vld [vmem:[%s21927_s22 + $0x2e34] ss:$8 sps:$4 sm:$0xff]   ;;  %v19965_v61 = vld [vmem:[%s21927_s22 + $0xe30] ss:$8 sps:$4 sm:$0xff]  }
 0x39f   : > { %15318 = vmatprep.subr.bf16.mxu0 %v19898_v45  ;;  %v19968_v45 = vld [vmem:[%s21927_s22 + $0x2e30] ss:$8 sps:$4 sm:$0xff]  }
 0x3a1   : > { %14007 = vmatpush1.bf16.msra.mxu1 %v19893_v32  ;;  %v19973_v32 = vld [vmem:[%s21927_s22 + $0xe44] ss:$8 sps:$4 sm:$0xff]  }
 0x3a2   : > { %15319 = vmatpush1.bf16.msra.mxu0 %v19896_v26  ;;  %14008 = vmatprep.subr.bf16.mxu1 %v19901_v16  ;;  %v19976_v26 = vld [vmem:[%s21927_s22 + $0x2e44] ss:$8 sps:$4 sm:$0xff]   ;;  %v19971_v16 = vld [vmem:[%s21927_s22 + $0xe40] ss:$8 sps:$4 sm:$0xff]  }
 0x3a3   : > { %15320 = vmatprep.subr.bf16.mxu0 %v19904_v47  ;;  %v19974_v47 = vld [vmem:[%s21927_s22 + $0x2e40] ss:$8 sps:$4 sm:$0xff]  }
 0x3a5   : > { %14009 = vmatpush1.bf16.msra.mxu1 %v19899_v27  ;;  %v19979_v27 = vld [vmem:[%s21927_s22 + $0xe54] ss:$8 sps:$4 sm:$0xff]  }
 0x3a6   : > { %15321 = vmatpush1.bf16.msra.mxu0 %v19902_v48  ;;  %14010 = vmatprep.subr.bf16.mxu1 %v19907_v38  ;;  %v19982_v48 = vld [vmem:[%s21927_s22 + $0x2e54] ss:$8 sps:$4 sm:$0xff]   ;;  %v19977_v38 = vld [vmem:[%s21927_s22 + $0xe50] ss:$8 sps:$4 sm:$0xff]  }
 0x3a7   : > { %15322 = vmatprep.subr.bf16.mxu0 %v19910_v49  ;;  %v19980_v49 = vld [vmem:[%s21927_s22 + $0x2e50] ss:$8 sps:$4 sm:$0xff]  }
 0x3a9   : > { %14011 = vmatpush1.bf16.msra.mxu1 %v19905_v18  ;;  %v19985_v18 = vld [vmem:[%s21927_s22 + $0xe64] ss:$8 sps:$4 sm:$0xff]  }
 0x3aa   : > { %15323 = vmatpush1.bf16.msra.mxu0 %v19908_v50  ;;  %14012 = vmatprep.subr.bf16.mxu1 %v19913_v52  ;;  %v19988_v50 = vld [vmem:[%s21927_s22 + $0x2e64] ss:$8 sps:$4 sm:$0xff]   ;;  %v19983_v52 = vld [vmem:[%s21927_s22 + $0xe60] ss:$8 sps:$4 sm:$0xff]  }
 0x3ab   : > { %15324 = vmatprep.subr.bf16.mxu0 %v19916_v53  ;;  %v19986_v53 = vld [vmem:[%s21927_s22 + $0x2e60] ss:$8 sps:$4 sm:$0xff]  }
 0x3ad   : > { %14013 = vmatpush1.bf16.msra.mxu1 %v19911_v62  ;;  %v19991_v62 = vld [vmem:[%s21927_s22 + $0xe74] ss:$8 sps:$4 sm:$0xff]  }
 0x3ae   : > { %15325 = vmatpush1.bf16.msra.mxu0 %v19914_v63  ;;  %14014 = vmatprep.subr.bf16.mxu1 %v19919_v0  ;;  %v19994_v63 = vld [vmem:[%s21927_s22 + $0x2e74] ss:$8 sps:$4 sm:$0xff]   ;;  %v19989_v0 = vld [vmem:[%s21927_s22 + $0xe70] ss:$8 sps:$4 sm:$0xff]  }
 0x3af   : > { %15326 = vmatprep.subr.bf16.mxu0 %v19922_v1  ;;  %v19992_v1 = vld [vmem:[%s21927_s22 + $0x2e70] ss:$8 sps:$4 sm:$0xff]  }
 0x3b1   : > { %14015 = vmatpush1.bf16.msra.mxu1 %v19917_v15  ;;  %v19997_v15 = vld [vmem:[%s21927_s22 + $0xe84] ss:$8 sps:$4 sm:$0xff]  }
 0x3b2   : > { %15327 = vmatpush1.bf16.msra.mxu0 %v19920_v43  ;;  %14016 = vmatprep.subr.bf16.mxu1 %v19925_v46  ;;  %v20000_v43 = vld [vmem:[%s21927_s22 + $0x2e84] ss:$8 sps:$4 sm:$0xff]   ;;  %v19995_v46 = vld [vmem:[%s21927_s22 + $0xe80] ss:$8 sps:$4 sm:$0xff]  }
 0x3b3   : > { %15328 = vmatprep.subr.bf16.mxu0 %v19928_v2  ;;  %v19998_v2 = vld [vmem:[%s21927_s22 + $0x2e80] ss:$8 sps:$4 sm:$0xff]  }
 0x3b5   : > { %14017 = vmatpush1.bf16.msra.mxu1 %v19923_v55  ;;  %v20003_v55 = vld [vmem:[%s21927_s22 + $0xe94] ss:$8 sps:$4 sm:$0xff]  }
 0x3b6   : > { %15329 = vmatpush1.bf16.msra.mxu0 %v19926_v57  ;;  %14018 = vmatprep.subr.bf16.mxu1 %v19931_v34  ;;  %v20006_v57 = vld [vmem:[%s21927_s22 + $0x2e94] ss:$8 sps:$4 sm:$0xff]   ;;  %v20001_v34 = vld [vmem:[%s21927_s22 + $0xe90] ss:$8 sps:$4 sm:$0xff]  }
 0x3b7   : > { %15330 = vmatprep.subr.bf16.mxu0 %v19934_v4  ;;  %v20004_v4 = vld [vmem:[%s21927_s22 + $0x2e90] ss:$8 sps:$4 sm:$0xff]  }
 0x3b9   : > { %14019 = vmatpush1.bf16.msra.mxu1 %v19929_v59  ;;  %v20009_v59 = vld [vmem:[%s21927_s22 + $0xea4] ss:$8 sps:$4 sm:$0xff]  }
 0x3ba   : > { %15331 = vmatpush1.bf16.msra.mxu0 %v19932_v5  ;;  %14020 = vmatprep.subr.bf16.mxu1 %v19937_v6  ;;  %v20012_v5 = vld [vmem:[%s21927_s22 + $0x2ea4] ss:$8 sps:$4 sm:$0xff]   ;;  %v20007_v6 = vld [vmem:[%s21927_s22 + $0xea0] ss:$8 sps:$4 sm:$0xff]  }
 0x3bb   : > { %15332 = vmatprep.subr.bf16.mxu0 %v19940_v7  ;;  %v20010_v7 = vld [vmem:[%s21927_s22 + $0x2ea0] ss:$8 sps:$4 sm:$0xff]  }
 0x3bd   : > { %14021 = vmatpush1.bf16.msra.mxu1 %v19935_v20  ;;  %v20021_v20 = vld [vmem:[%s21927_s22 + $0xec4] ss:$8 sps:$4 sm:$0xff]  }
 0x3be   : > { %15333 = vmatpush1.bf16.msra.mxu0 %v19938_v21  ;;  %14022 = vmatprep.subr.bf16.mxu1 %v19943_v35  ;;  %v20024_v21 = vld [vmem:[%s21927_s22 + $0x2ec4] ss:$8 sps:$4 sm:$0xff]   ;;  %v20019_v35 = vld [vmem:[%s21927_s22 + $0xec0] ss:$8 sps:$4 sm:$0xff]  }
 0x3bf   : > { %15334 = vmatprep.subr.bf16.mxu0 %v19946_v22  ;;  %v20022_v22 = vld [vmem:[%s21927_s22 + $0x2ec0] ss:$8 sps:$4 sm:$0xff]  }
 0x3c1   : > { %14023 = vmatpush1.bf16.msra.mxu1 %v19941_v8  ;;  %v20027_v8 = vld [vmem:[%s21927_s22 + $0xed4] ss:$8 sps:$4 sm:$0xff]  }
 0x3c2   : > { %15335 = vmatpush1.bf16.msra.mxu0 %v19944_v44  ;;  %14033 = vmatprep.subr.bf16.mxu1 %v19949_v41  ;;  %v20030_v44 = vld [vmem:[%s21927_s22 + $0x2ed4] ss:$8 sps:$4 sm:$0xff]   ;;  %v20025_v41 = vld [vmem:[%s21927_s22 + $0xed0] ss:$8 sps:$4 sm:$0xff]  }
 0x3c3   : > { %15345 = vmatprep.subr.bf16.mxu0 %v19952_v24  ;;  %v20028_v24 = vld [vmem:[%s21927_s22 + $0x2ed0] ss:$8 sps:$4 sm:$0xff]  }
 0x3c4   : > { %14025 = vmatmul.mubr.bf16.vlgmr.msra.gmra.mrb[0].mxu1 %v2499_v14  ;;  %v20031_v14 = vld [vmem:[%s21927_s22 + $0xee0] ss:$8 sps:$4 sm:$0xff]  }
 0x3c5   : > { %15337 = vmatmul.mubr.bf16.vlgmr.msra.gmra.mrb[0].mxu0 %v2891_v54  ;;  %14034 = vmatpush1.bf16.msra.mxu1 %v19947_v60  ;;  %v20034_v54 = vld [vmem:[%s21927_s22 + $0x2ee0] ss:$8 sps:$4 sm:$0xff]   ;;  %v20039_v60 = vld [vmem:[%s21927_s22 + $0xef4] ss:$8 sps:$4 sm:$0xff]  }
 0x3c6   : > { %15346 = vmatpush1.bf16.msra.mxu0 %v19950_v58  ;;  %14035 = vmatprep.subr.bf16.mxu1 %v19955_v28  ;;  %v20042_v58 = vld [vmem:[%s21927_s22 + $0x2ef4] ss:$8 sps:$4 sm:$0xff]   ;;  %v20037_v28 = vld [vmem:[%s21927_s22 + $0xef0] ss:$8 sps:$4 sm:$0xff]  }
 0x3c7   : > { %15347 = vmatprep.subr.bf16.mxu0 %v19958_v29  ;;  %14065 = vmatprep.mubr.bf16.mxu1 %v23114_v30  ;;  %v20040_v29 = vld [vmem:[%s21927_s22 + $0x2ef0] ss:$8 sps:$4 sm:$0xff]  }
 0x3c8   : > { %15377 = vmatprep.mubr.bf16.mxu0 %v23117_v10 }
 0x3c9   : > { %14036 = vmatpush1.bf16.msra.mxu1 %v19953_v11  ;;  %v20046_v11 = vld [vmem:[%s21927_s22 + $0xf04] ss:$8 sps:$4 sm:$0xff]  }
 0x3ca   : > { %15348 = vmatpush1.bf16.msra.mxu0 %v19956_v31  ;;  %14037 = vmatprep.subr.bf16.mxu1 %v19961_v17  ;;  %v20050_v31 = vld [vmem:[%s21927_s22 + $0x2f04] ss:$8 sps:$4 sm:$0xff]   ;;  %v23183_v17 = vrot.slane %v23092_v56, %v21993_v51  ;;  %v2502_v56 = vcombine.high %v23114_v30, %v23114_v30 }
 0x3cb   : > { %15349 = vmatprep.subr.bf16.mxu0 %v19964_v33  ;;  %v23187_v33 = vrot.slane %v23095_v23, %v21993_v51  ;;  %v20051_v23 = vld [vmem:[%s21927_s22 + $0xf10] ss:$8 sps:$4 sm:$0xff]   ;;  %v20059_v30 = vld [vmem:[%s21927_s22 + $0xf24] ss:$8 sps:$4 sm:$0xff]  }
 0x3cd   : > { %14038 = vmatpush1.bf16.msra.mxu1 %v19959_v36  ;;  %v20044_v36 = vld [vmem:[%s21927_s22 + $0xf00] ss:$8 sps:$4 sm:$0xff]  }
 0x3ce   : > { %15350 = vmatpush1.bf16.msra.mxu0 %v19962_v37  ;;  %14039 = vmatprep.subr.bf16.mxu1 %v19967_v19  ;;  %v20048_v37 = vld [vmem:[%s21927_s22 + $0x2f00] ss:$8 sps:$4 sm:$0xff]   ;;  %v20053_v19 = vld [vmem:[%s21927_s22 + $0xf14] ss:$8 sps:$4 sm:$0xff]  }
 0x3cf   : > { %15351 = vmatprep.subr.bf16.mxu0 %v19970_v39  ;;  %v20056_v39 = vld [vmem:[%s21927_s22 + $0x2f14] ss:$8 sps:$4 sm:$0xff]  }
 0x3d1   : > { %14040 = vmatpush1.bf16.msra.mxu1 %v19965_v61  ;;  %v2894_v61 = vcombine.high %v23117_v10, %v23117_v10  ;;  %v20057_v10 = vld [vmem:[%s21927_s22 + $0xf20] ss:$8 sps:$4 sm:$0xff]  }
 0x3d2   : > { %15352 = vmatpush1.bf16.msra.mxu0 %v19968_v45  ;;  %14041 = vmatprep.subr.bf16.mxu1 %v19973_v32  ;;  %v20054_v45 = vld [vmem:[%s21927_s22 + $0x2f10] ss:$8 sps:$4 sm:$0xff]   ;;  %v20062_v32 = vld [vmem:[%s21927_s22 + $0x2f24] ss:$8 sps:$4 sm:$0xff]  }
 0x3d3   : > { %15353 = vmatprep.subr.bf16.mxu0 %v19976_v26  ;;  %v20060_v26 = vld [vmem:[%s21927_s22 + $0x2f20] ss:$8 sps:$4 sm:$0xff]  }
 0x3d5   : > { %14042 = vmatpush1.bf16.msra.mxu1 %v19971_v16  ;;  %v20065_v16 = vld [vmem:[%s21927_s22 + $0xf34] ss:$8 sps:$4 sm:$0xff]  }
 0x3d6   : > { %15354 = vmatpush1.bf16.msra.mxu0 %v19974_v47  ;;  %14043 = vmatprep.subr.bf16.mxu1 %v19979_v27  ;;  %v20068_v47 = vld [vmem:[%s21927_s22 + $0x2f34] ss:$8 sps:$4 sm:$0xff]   ;;  %v20063_v27 = vld [vmem:[%s21927_s22 + $0xf30] ss:$8 sps:$4 sm:$0xff]  }
 0x3d7   : > { %15355 = vmatprep.subr.bf16.mxu0 %v19982_v48  ;;  %v20066_v48 = vld [vmem:[%s21927_s22 + $0x2f30] ss:$8 sps:$4 sm:$0xff]  }
 0x3d9   : > { %14044 = vmatpush1.bf16.msra.mxu1 %v19977_v38  ;;  %v20071_v38 = vld [vmem:[%s21927_s22 + $0xf44] ss:$8 sps:$4 sm:$0xff]  }
 0x3da   : > { %15356 = vmatpush1.bf16.msra.mxu0 %v19980_v49  ;;  %14045 = vmatprep.subr.bf16.mxu1 %v19985_v18  ;;  %v20074_v49 = vld [vmem:[%s21927_s22 + $0x2f44] ss:$8 sps:$4 sm:$0xff]   ;;  %v20069_v18 = vld [vmem:[%s21927_s22 + $0xf40] ss:$8 sps:$4 sm:$0xff]  }
 0x3db   : > { %15357 = vmatprep.subr.bf16.mxu0 %v19988_v50  ;;  %v20072_v50 = vld [vmem:[%s21927_s22 + $0x2f40] ss:$8 sps:$4 sm:$0xff]  }
 0x3dd   : > { %14046 = vmatpush1.bf16.msra.mxu1 %v19983_v52  ;;  %v20077_v52 = vld [vmem:[%s21927_s22 + $0xf54] ss:$8 sps:$4 sm:$0xff]  }
 0x3de   : > { %15358 = vmatpush1.bf16.msra.mxu0 %v19986_v53  ;;  %14047 = vmatprep.subr.bf16.mxu1 %v19991_v62  ;;  %v20080_v53 = vld [vmem:[%s21927_s22 + $0x2f54] ss:$8 sps:$4 sm:$0xff]   ;;  %v20075_v62 = vld [vmem:[%s21927_s22 + $0xf50] ss:$8 sps:$4 sm:$0xff]  }
 0x3df   : > { %15359 = vmatprep.subr.bf16.mxu0 %v19994_v63  ;;  %v20078_v63 = vld [vmem:[%s21927_s22 + $0x2f50] ss:$8 sps:$4 sm:$0xff]  }
 0x3e1   : > { %14048 = vmatpush1.bf16.msra.mxu1 %v19989_v0  ;;  %v20083_v0 = vld [vmem:[%s21927_s22 + $0xf64] ss:$8 sps:$4 sm:$0xff]  }
 0x3e2   : > { %15360 = vmatpush1.bf16.msra.mxu0 %v19992_v1  ;;  %14049 = vmatprep.subr.bf16.mxu1 %v19997_v15  ;;  %v20086_v1 = vld [vmem:[%s21927_s22 + $0x2f64] ss:$8 sps:$4 sm:$0xff]   ;;  %v20081_v15 = vld [vmem:[%s21927_s22 + $0xf60] ss:$8 sps:$4 sm:$0xff]  }
 0x3e3   : > { %15361 = vmatprep.subr.bf16.mxu0 %v20000_v43  ;;  %v20084_v43 = vld [vmem:[%s21927_s22 + $0x2f60] ss:$8 sps:$4 sm:$0xff]  }
 0x3e5   : > { %14050 = vmatpush1.bf16.msra.mxu1 %v19995_v46  ;;  %v20089_v46 = vld [vmem:[%s21927_s22 + $0xf74] ss:$8 sps:$4 sm:$0xff]  }
 0x3e6   : > { %15362 = vmatpush1.bf16.msra.mxu0 %v19998_v2  ;;  %14051 = vmatprep.subr.bf16.mxu1 %v20003_v55  ;;  %v20092_v2 = vld [vmem:[%s21927_s22 + $0x2f74] ss:$8 sps:$4 sm:$0xff]   ;;  %v20087_v55 = vld [vmem:[%s21927_s22 + $0xf70] ss:$8 sps:$4 sm:$0xff]  }
 0x3e7   : > { %15363 = vmatprep.subr.bf16.mxu0 %v20006_v57  ;;  %v20090_v57 = vld [vmem:[%s21927_s22 + $0x2f70] ss:$8 sps:$4 sm:$0xff]  }
 0x3e9   : > { %14052 = vmatpush1.bf16.msra.mxu1 %v20001_v34  ;;  %v20095_v34 = vld [vmem:[%s21927_s22 + $0xf84] ss:$8 sps:$4 sm:$0xff]  }
 0x3ea   : > { %15364 = vmatpush1.bf16.msra.mxu0 %v20004_v4  ;;  %14053 = vmatprep.subr.bf16.mxu1 %v20009_v59  ;;  %v20098_v4 = vld [vmem:[%s21927_s22 + $0x2f84] ss:$8 sps:$4 sm:$0xff]   ;;  %v20093_v59 = vld [vmem:[%s21927_s22 + $0xf80] ss:$8 sps:$4 sm:$0xff]  }
 0x3eb   : > { %15365 = vmatprep.subr.bf16.mxu0 %v20012_v5  ;;  %v20096_v5 = vld [vmem:[%s21927_s22 + $0x2f80] ss:$8 sps:$4 sm:$0xff]  }
 0x3ed   : > { %14054 = vmatpush1.bf16.msra.mxu1 %v20007_v6  ;;  %v20101_v6 = vld [vmem:[%s21927_s22 + $0xf94] ss:$8 sps:$4 sm:$0xff]  }
 0x3ee   : > { %15366 = vmatpush1.bf16.msra.mxu0 %v20010_v7  ;;  %14055 = vmatprep.subr.bf16.mxu1 %v20015_v42  ;;  %v20104_v7 = vld [vmem:[%s21927_s22 + $0x2f94] ss:$8 sps:$4 sm:$0xff]   ;;  %v20099_v42 = vld [vmem:[%s21927_s22 + $0xf90] ss:$8 sps:$4 sm:$0xff]  }
 0x3ef   : > { %15367 = vmatprep.subr.bf16.mxu0 %v20018_v9  ;;  %v20102_v9 = vld [vmem:[%s21927_s22 + $0x2f90] ss:$8 sps:$4 sm:$0xff]  }
 0x3f1   : > { %14056 = vmatpush1.bf16.msra.mxu1 %v20013_v12  ;;  %v20107_v12 = vld [vmem:[%s21927_s22 + $0xfa4] ss:$8 sps:$4 sm:$0xff]  }
 0x3f2   : > { %15368 = vmatpush1.bf16.msra.mxu0 %v20016_v13  ;;  %14057 = vmatprep.subr.bf16.mxu1 %v20021_v20  ;;  %v20110_v13 = vld [vmem:[%s21927_s22 + $0x2fa4] ss:$8 sps:$4 sm:$0xff]   ;;  %v20105_v20 = vld [vmem:[%s21927_s22 + $0xfa0] ss:$8 sps:$4 sm:$0xff]  }
 0x3f3   : > { %15369 = vmatprep.subr.bf16.mxu0 %v20024_v21  ;;  %v20108_v21 = vld [vmem:[%s21927_s22 + $0x2fa0] ss:$8 sps:$4 sm:$0xff]  }
 0x3f5   : > { %14058 = vmatpush1.bf16.msra.mxu1 %v20019_v35  ;;  %v20113_v35 = vld [vmem:[%s21927_s22 + $0xfb4] ss:$8 sps:$4 sm:$0xff]  }
 0x3f6   : > { %15370 = vmatpush1.bf16.msra.mxu0 %v20022_v22  ;;  %14059 = vmatprep.subr.bf16.mxu1 %v20027_v8  ;;  %v20116_v22 = vld [vmem:[%s21927_s22 + $0x2fb4] ss:$8 sps:$4 sm:$0xff]   ;;  %v20111_v8 = vld [vmem:[%s21927_s22 + $0xfb0] ss:$8 sps:$4 sm:$0xff]  }
 0x3f7   : > { %15371 = vmatprep.subr.bf16.mxu0 %v20030_v44  ;;  %v20114_v44 = vld [vmem:[%s21927_s22 + $0x2fb0] ss:$8 sps:$4 sm:$0xff]  }
 0x3f9   : > { %14060 = vmatpush1.bf16.msra.mxu1 %v20025_v41  ;;  %v20119_v41 = vld [vmem:[%s21927_s22 + $0xfc4] ss:$8 sps:$4 sm:$0xff]  }
 0x3fa   : > { %15372 = vmatpush1.bf16.msra.mxu0 %v20028_v24  ;;  %14061 = vmatprep.subr.bf16.mxu1 %v20033_v3  ;;  %v20122_v24 = vld [vmem:[%s21927_s22 + $0x2fc4] ss:$8 sps:$4 sm:$0xff]   ;;  %v20117_v3 = vld [vmem:[%s21927_s22 + $0xfc0] ss:$8 sps:$4 sm:$0xff]  }
 0x3fb   : > { %15373 = vmatprep.subr.bf16.mxu0 %v20036_v25  ;;  %v20120_v25 = vld [vmem:[%s21927_s22 + $0x2fc0] ss:$8 sps:$4 sm:$0xff]  }
 0x3fd   : > { %14062 = vmatpush1.bf16.msra.mxu1 %v20031_v14  ;;  %v20125_v14 = vld [vmem:[%s21927_s22 + $0xfd4] ss:$8 sps:$4 sm:$0xff]  }
 0x3fe   : > { %15374 = vmatpush1.bf16.msra.mxu0 %v20034_v54  ;;  %14063 = vmatprep.subr.bf16.mxu1 %v20039_v60  ;;  %v20128_v54 = vld [vmem:[%s21927_s22 + $0x2fd4] ss:$8 sps:$4 sm:$0xff]   ;;  %v20123_v60 = vld [vmem:[%s21927_s22 + $0xfd0] ss:$8 sps:$4 sm:$0xff]  }
 0x3ff   : > { %15375 = vmatprep.subr.bf16.mxu0 %v20042_v58  ;;  %v20126_v58 = vld [vmem:[%s21927_s22 + $0x2fd0] ss:$8 sps:$4 sm:$0xff]  }
 0x401   : > { %14064 = vmatpush1.bf16.msra.mxu1 %v20037_v28  ;;  %v20131_v28 = vld [vmem:[%s21927_s22 + $0xfe4] ss:$8 sps:$4 sm:$0xff]  }
 0x402   : > { %15376 = vmatpush1.bf16.msra.mxu0 %v20040_v29  ;;  %14074 = vmatprep.subr.bf16.mxu1 %v20046_v11  ;;  %v20134_v29 = vld [vmem:[%s21927_s22 + $0x2fe4] ss:$8 sps:$4 sm:$0xff]  }
 0x403   : > { %15386 = vmatprep.subr.bf16.mxu0 %v20050_v31  ;;  %v23252_v11 = vld [vmem:[%s21940_s26 + $0x20] sm:$0xff] }
 0x404   : > { %14066 = vmatmul.mubr.bf16.vlgmr.msra.gmra.mrb[0].mxu1 %v23183_v17  ;;  %v23255_v31 = vld [vmem:[%s21940_s26 + $0x60] sm:$0xff] }
 0x405   : > { %15378 = vmatmul.mubr.bf16.vlgmr.msra.gmra.mrb[0].mxu0 %v23187_v33  ;;  %14075 = vmatpush1.bf16.msra.mxu1 %v20044_v36  ;;  %v20129_v36 = vld [vmem:[%s21927_s22 + $0xfe0] ss:$8 sps:$4 sm:$0xff]  }
 0x406   : > { %15387 = vmatpush1.bf16.msra.mxu0 %v20048_v37  ;;  %14076 = vmatprep.subr.bf16.mxu1 %v20053_v19  ;;  %v20132_v37 = vld [vmem:[%s21927_s22 + $0x2fe0] ss:$8 sps:$4 sm:$0xff]   ;;  %v20137_v19 = vld [vmem:[%s21927_s22 + $0xff4] ss:$8 sps:$4 sm:$0xff]  }
 0x407   : > { %15388 = vmatprep.subr.bf16.mxu0 %v20056_v39  ;;  %14106 = vmatprep.mubr.bf16.mxu1 %v2502_v56  ;;  %v20140_v39 = vld [vmem:[%s21927_s22 + $0x2ff4] ss:$8 sps:$4 sm:$0xff]   ;;  %v23263_v56 = vrot.slane %v23252_v11, %v21993_v51 }
 0x408   : > { %15418 = vmatprep.mubr.bf16.mxu0 %v2894_v61  ;;  %v23267_v61 = vrot.slane %v23255_v31, %v21993_v51 }
 0x409   : > { %14077 = vmatpush1.bf16.msra.mxu1 %v20051_v23  ;;  %v20135_v23 = vld [vmem:[%s21927_s22 + $0xff0] ss:$8 sps:$4 sm:$0xff]  }
 0x40a   : > { %15389 = vmatpush1.bf16.msra.mxu0 %v20054_v45  ;;  %14078 = vmatprep.subr.bf16.mxu1 %v20059_v30  ;;  %v20138_v45 = vld [vmem:[%s21927_s22 + $0x2ff0] ss:$8 sps:$4 sm:$0xff]   ;;  %v20143_v30 = vld [vmem:[%s21927_s22 + $0x1004] ss:$8 sps:$4 sm:$0xff]  }
 0x40b   : > { %15390 = vmatprep.subr.bf16.mxu0 %v20062_v32  ;;  %v20146_v32 = vld [vmem:[%s21927_s22 + $0x3004] ss:$8 sps:$4 sm:$0xff]  }
 0x40d   : > { %14079 = vmatpush1.bf16.msra.mxu1 %v20057_v10  ;;  %v2518_v10 = vcombine.high %v23263_v56, %v23263_v56 }
 0x40e   : > { %15391 = vmatpush1.bf16.msra.mxu0 %v20060_v26  ;;  %14080 = vmatprep.subr.bf16.mxu1 %v20065_v16  ;;  %v2910_v26 = vcombine.high %v23267_v61, %v23267_v61  ;;  %v2500_v16 = vcombine.high %v23183_v17, %v23183_v17 }
 0x40f   : > { %15392 = vmatprep.subr.bf16.mxu0 %v20068_v47  ;;  %v2892_v47 = vcombine.high %v23187_v33, %v23187_v33  ;;  %v20147_v33 = vld [vmem:[%s21927_s22 + $0x1010] ss:$8 sps:$4 sm:$0xff]  }
 0x410   : > { %v23289_v17 = vrot.slane %v2910_v26, %v21993_v51  ;;  %v20222_v26 = vld [vmem:[%s21927_s22 + $0x30d0] ss:$8 sps:$4 sm:$0xff]  }
 0x411   : > { %14081 = vmatpush1.bf16.msra.mxu1 %v20063_v27  ;;  %v20141_v27 = vld [vmem:[%s21927_s22 + $0x1000] ss:$8 sps:$4 sm:$0xff]  }
 0x412   : > { %15393 = vmatpush1.bf16.msra.mxu0 %v20066_v48  ;;  %14082 = vmatprep.subr.bf16.mxu1 %v20071_v38  ;;  %v20144_v48 = vld [vmem:[%s21927_s22 + $0x3000] ss:$8 sps:$4 sm:$0xff]   ;;  %v20149_v38 = vld [vmem:[%s21927_s22 + $0x1014] ss:$8 sps:$4 sm:$0xff]  }
 0x413   : > { %15394 = vmatprep.subr.bf16.mxu0 %v20074_v49  ;;  %v20152_v49 = vld [vmem:[%s21927_s22 + $0x3014] ss:$8 sps:$4 sm:$0xff]  }
 0x415   : > { %14083 = vmatpush1.bf16.msra.mxu1 %v20069_v18  ;;  %v23286_v18 = vrot.slane %v2518_v10, %v21993_v51  ;;  %v20219_v10 = vld [vmem:[%s21927_s22 + $0x10d0] ss:$8 sps:$4 sm:$0xff]  }
 0x416   : > { %15395 = vmatpush1.bf16.msra.mxu0 %v20072_v50  ;;  %14084 = vmatprep.subr.bf16.mxu1 %v20077_v52  ;;  %v20150_v50 = vld [vmem:[%s21927_s22 + $0x3010] ss:$8 sps:$4 sm:$0xff]   ;;  %v20155_v52 = vld [vmem:[%s21927_s22 + $0x1024] ss:$8 sps:$4 sm:$0xff]  }
 0x417   : > { %15396 = vmatprep.subr.bf16.mxu0 %v20080_v53  ;;  %v20158_v53 = vld [vmem:[%s21927_s22 + $0x3024] ss:$8 sps:$4 sm:$0xff]  }
 0x419   : > { %14085 = vmatpush1.bf16.msra.mxu1 %v20075_v62  ;;  %v20153_v62 = vld [vmem:[%s21927_s22 + $0x1020] ss:$8 sps:$4 sm:$0xff]  }
 0x41a   : > { %15397 = vmatpush1.bf16.msra.mxu0 %v20078_v63  ;;  %14086 = vmatprep.subr.bf16.mxu1 %v20083_v0  ;;  %v20156_v63 = vld [vmem:[%s21927_s22 + $0x3020] ss:$8 sps:$4 sm:$0xff]   ;;  %v20161_v0 = vld [vmem:[%s21927_s22 + $0x1034] ss:$8 sps:$4 sm:$0xff]  }
 0x41b   : > { %15398 = vmatprep.subr.bf16.mxu0 %v20086_v1  ;;  %v20164_v1 = vld [vmem:[%s21927_s22 + $0x3034] ss:$8 sps:$4 sm:$0xff]  }
 0x41d   : > { %14087 = vmatpush1.bf16.msra.mxu1 %v20081_v15  ;;  %v20159_v15 = vld [vmem:[%s21927_s22 + $0x1030] ss:$8 sps:$4 sm:$0xff]  }
 0x41e   : > { %15399 = vmatpush1.bf16.msra.mxu0 %v20084_v43  ;;  %14088 = vmatprep.subr.bf16.mxu1 %v20089_v46  ;;  %v20162_v43 = vld [vmem:[%s21927_s22 + $0x3030] ss:$8 sps:$4 sm:$0xff]   ;;  %v20167_v46 = vld [vmem:[%s21927_s22 + $0x1044] ss:$8 sps:$4 sm:$0xff]  }
 0x41f   : > { %15400 = vmatprep.subr.bf16.mxu0 %v20092_v2  ;;  %v20170_v2 = vld [vmem:[%s21927_s22 + $0x3044] ss:$8 sps:$4 sm:$0xff]  }
 0x421   : > { %14089 = vmatpush1.bf16.msra.mxu1 %v20087_v55  ;;  %v20165_v55 = vld [vmem:[%s21927_s22 + $0x1040] ss:$8 sps:$4 sm:$0xff]  }
 0x422   : > { %15401 = vmatpush1.bf16.msra.mxu0 %v20090_v57  ;;  %14090 = vmatprep.subr.bf16.mxu1 %v20095_v34  ;;  %v20168_v57 = vld [vmem:[%s21927_s22 + $0x3040] ss:$8 sps:$4 sm:$0xff]   ;;  %v20173_v34 = vld [vmem:[%s21927_s22 + $0x1054] ss:$8 sps:$4 sm:$0xff]  }
 0x423   : > { %15402 = vmatprep.subr.bf16.mxu0 %v20098_v4  ;;  %v20176_v4 = vld [vmem:[%s21927_s22 + $0x3054] ss:$8 sps:$4 sm:$0xff]  }
 0x425   : > { %14091 = vmatpush1.bf16.msra.mxu1 %v20093_v59  ;;  %v20171_v59 = vld [vmem:[%s21927_s22 + $0x1050] ss:$8 sps:$4 sm:$0xff]  }
 0x426   : > { %15403 = vmatpush1.bf16.msra.mxu0 %v20096_v5  ;;  %14092 = vmatprep.subr.bf16.mxu1 %v20101_v6  ;;  %v20174_v5 = vld [vmem:[%s21927_s22 + $0x3050] ss:$8 sps:$4 sm:$0xff]   ;;  %v20179_v6 = vld [vmem:[%s21927_s22 + $0x1064] ss:$8 sps:$4 sm:$0xff]  }
 0x427   : > { %15404 = vmatprep.subr.bf16.mxu0 %v20104_v7  ;;  %v20182_v7 = vld [vmem:[%s21927_s22 + $0x3064] ss:$8 sps:$4 sm:$0xff]  }
 0x429   : > { %14093 = vmatpush1.bf16.msra.mxu1 %v20099_v42  ;;  %v20177_v42 = vld [vmem:[%s21927_s22 + $0x1060] ss:$8 sps:$4 sm:$0xff]  }
 0x42a   : > { %15405 = vmatpush1.bf16.msra.mxu0 %v20102_v9  ;;  %14094 = vmatprep.subr.bf16.mxu1 %v20107_v12  ;;  %v20180_v9 = vld [vmem:[%s21927_s22 + $0x3060] ss:$8 sps:$4 sm:$0xff]   ;;  %v20185_v12 = vld [vmem:[%s21927_s22 + $0x1074] ss:$8 sps:$4 sm:$0xff]  }
 0x42b   : > { %15406 = vmatprep.subr.bf16.mxu0 %v20110_v13  ;;  %v20188_v13 = vld [vmem:[%s21927_s22 + $0x3074] ss:$8 sps:$4 sm:$0xff]  }
 0x42d   : > { %14095 = vmatpush1.bf16.msra.mxu1 %v20105_v20  ;;  %v20183_v20 = vld [vmem:[%s21927_s22 + $0x1070] ss:$8 sps:$4 sm:$0xff]  }
 0x42e   : > { %15407 = vmatpush1.bf16.msra.mxu0 %v20108_v21  ;;  %14096 = vmatprep.subr.bf16.mxu1 %v20113_v35  ;;  %v20186_v21 = vld [vmem:[%s21927_s22 + $0x3070] ss:$8 sps:$4 sm:$0xff]   ;;  %v20191_v35 = vld [vmem:[%s21927_s22 + $0x1084] ss:$8 sps:$4 sm:$0xff]  }
 0x42f   : > { %15408 = vmatprep.subr.bf16.mxu0 %v20116_v22  ;;  %v20194_v22 = vld [vmem:[%s21927_s22 + $0x3084] ss:$8 sps:$4 sm:$0xff]  }
 0x431   : > { %14097 = vmatpush1.bf16.msra.mxu1 %v20111_v8  ;;  %v20189_v8 = vld [vmem:[%s21927_s22 + $0x1080] ss:$8 sps:$4 sm:$0xff]  }
 0x432   : > { %15409 = vmatpush1.bf16.msra.mxu0 %v20114_v44  ;;  %14098 = vmatprep.subr.bf16.mxu1 %v20119_v41  ;;  %v20192_v44 = vld [vmem:[%s21927_s22 + $0x3080] ss:$8 sps:$4 sm:$0xff]   ;;  %v20197_v41 = vld [vmem:[%s21927_s22 + $0x1094] ss:$8 sps:$4 sm:$0xff]  }
 0x433   : > { %15410 = vmatprep.subr.bf16.mxu0 %v20122_v24  ;;  %v20200_v24 = vld [vmem:[%s21927_s22 + $0x3094] ss:$8 sps:$4 sm:$0xff]  }
 0x435   : > { %14099 = vmatpush1.bf16.msra.mxu1 %v20117_v3  ;;  %v20195_v3 = vld [vmem:[%s21927_s22 + $0x1090] ss:$8 sps:$4 sm:$0xff]  }
 0x436   : > { %15411 = vmatpush1.bf16.msra.mxu0 %v20120_v25  ;;  %14100 = vmatprep.subr.bf16.mxu1 %v20125_v14  ;;  %v20198_v25 = vld [vmem:[%s21927_s22 + $0x3090] ss:$8 sps:$4 sm:$0xff]   ;;  %v20203_v14 = vld [vmem:[%s21927_s22 + $0x10a4] ss:$8 sps:$4 sm:$0xff]  }
 0x437   : > { %15412 = vmatprep.subr.bf16.mxu0 %v20128_v54  ;;  %v20206_v54 = vld [vmem:[%s21927_s22 + $0x30a4] ss:$8 sps:$4 sm:$0xff]  }
 0x439   : > { %14101 = vmatpush1.bf16.msra.mxu1 %v20123_v60  ;;  %v20201_v60 = vld [vmem:[%s21927_s22 + $0x10a0] ss:$8 sps:$4 sm:$0xff]  }
 0x43a   : > { %15413 = vmatpush1.bf16.msra.mxu0 %v20126_v58  ;;  %14102 = vmatprep.subr.bf16.mxu1 %v20131_v28  ;;  %v20204_v58 = vld [vmem:[%s21927_s22 + $0x30a0] ss:$8 sps:$4 sm:$0xff]   ;;  %v20209_v28 = vld [vmem:[%s21927_s22 + $0x10b4] ss:$8 sps:$4 sm:$0xff]  }
 0x43b   : > { %15414 = vmatprep.subr.bf16.mxu0 %v20134_v29  ;;  %v20212_v29 = vld [vmem:[%s21927_s22 + $0x30b4] ss:$8 sps:$4 sm:$0xff]  }
 0x43d   : > { %14103 = vmatpush1.bf16.msra.mxu1 %v20129_v36  ;;  %v20207_v36 = vld [vmem:[%s21927_s22 + $0x10b0] ss:$8 sps:$4 sm:$0xff]  }
 0x43e   : > { %15415 = vmatpush1.bf16.msra.mxu0 %v20132_v37  ;;  %14104 = vmatprep.subr.bf16.mxu1 %v20137_v19  ;;  %v20210_v37 = vld [vmem:[%s21927_s22 + $0x30b0] ss:$8 sps:$4 sm:$0xff]   ;;  %v20215_v19 = vld [vmem:[%s21927_s22 + $0x10c4] ss:$8 sps:$4 sm:$0xff]  }
 0x43f   : > { %15416 = vmatprep.subr.bf16.mxu0 %v20140_v39  ;;  %v20218_v39 = vld [vmem:[%s21927_s22 + $0x30c4] ss:$8 sps:$4 sm:$0xff]  }
 0x441   : > { %14105 = vmatpush1.bf16.msra.mxu1 %v20135_v23  ;;  %v20213_v23 = vld [vmem:[%s21927_s22 + $0x10c0] ss:$8 sps:$4 sm:$0xff]  }
 0x442   : > { %15417 = vmatpush1.bf16.msra.mxu0 %v20138_v45  ;;  %14115 = vmatprep.subr.bf16.mxu1 %v20143_v30  ;;  %v20216_v45 = vld [vmem:[%s21927_s22 + $0x30c0] ss:$8 sps:$4 sm:$0xff]   ;;  %v20221_v30 = vld [vmem:[%s21927_s22 + $0x10d4] ss:$8 sps:$4 sm:$0xff]  }
 0x443   : > { %15427 = vmatprep.subr.bf16.mxu0 %v20146_v32  ;;  %v20224_v32 = vld [vmem:[%s21927_s22 + $0x30d4] ss:$8 sps:$4 sm:$0xff]  }
 0x444   : > { %14107 = vmatmul.mubr.bf16.vlgmr.msra.gmra.mrb[0].mxu1 %v2500_v16  ;;  %v20227_v16 = vld [vmem:[%s21927_s22 + $0x10e4] ss:$8 sps:$4 sm:$0xff]  }
 0x445   : > { %15419 = vmatmul.mubr.bf16.vlgmr.msra.gmra.mrb[0].mxu0 %v2892_v47  ;;  %14116 = vmatpush1.bf16.msra.mxu1 %v20141_v27  ;;  %v20230_v47 = vld [vmem:[%s21927_s22 + $0x30e4] ss:$8 sps:$4 sm:$0xff]   ;;  %v20225_v27 = vld [vmem:[%s21927_s22 + $0x10e0] ss:$8 sps:$4 sm:$0xff]  }
 0x446   : > { %15428 = vmatpush1.bf16.msra.mxu0 %v20144_v48  ;;  %14117 = vmatprep.subr.bf16.mxu1 %v20149_v38  ;;  %v20228_v48 = vld [vmem:[%s21927_s22 + $0x30e0] ss:$8 sps:$4 sm:$0xff]   ;;  %v20233_v38 = vld [vmem:[%s21927_s22 + $0x10f4] ss:$8 sps:$4 sm:$0xff]  }
 0x447   : > { %15429 = vmatprep.subr.bf16.mxu0 %v20152_v49  ;;  %14147 = vmatprep.mubr.bf16.mxu1 %v23286_v18  ;;  %v20236_v49 = vld [vmem:[%s21927_s22 + $0x30f4] ss:$8 sps:$4 sm:$0xff]  }
 0x448   : > { %15459 = vmatprep.mubr.bf16.mxu0 %v23289_v17 }
 0x449   : > { %14118 = vmatpush1.bf16.msra.mxu1 %v20147_v33  ;;  %v20231_v33 = vld [vmem:[%s21927_s22 + $0x10f0] ss:$8 sps:$4 sm:$0xff]  }
 0x44a   : > { %15430 = vmatpush1.bf16.msra.mxu0 %v20150_v50  ;;  %14119 = vmatprep.subr.bf16.mxu1 %v20155_v52  ;;  %v20234_v50 = vld [vmem:[%s21927_s22 + $0x30f0] ss:$8 sps:$4 sm:$0xff]   ;;  %v20239_v52 = vld [vmem:[%s21927_s22 + $0x1104] ss:$8 sps:$4 sm:$0xff]  }
 0x44b   : > { %15431 = vmatprep.subr.bf16.mxu0 %v20158_v53  ;;  %v20242_v53 = vld [vmem:[%s21927_s22 + $0x3104] ss:$8 sps:$4 sm:$0xff]  }
 0x44d   : > { %14120 = vmatpush1.bf16.msra.mxu1 %v20153_v62  ;;  %v23355_v62 = vrot.slane %v23263_v56, %v21993_v51  ;;  %v2550_v56 = vcombine.high %v23286_v18, %v23286_v18  ;;  %v20251_v18 = vld [vmem:[%s21927_s22 + $0x1124] ss:$8 sps:$4 sm:$0xff]  }
 0x44e   : > { %15432 = vmatpush1.bf16.msra.mxu0 %v20156_v63  ;;  %14121 = vmatprep.subr.bf16.mxu1 %v20161_v0  ;;  %v23359_v63 = vrot.slane %v23267_v61, %v21993_v51  ;;  %v20237_v0 = vld [vmem:[%s21927_s22 + $0x1100] ss:$8 sps:$4 sm:$0xff]   ;;  %v20243_v61 = vld [vmem:[%s21927_s22 + $0x1110] ss:$8 sps:$4 sm:$0xff]  }
 0x44f   : > { %15433 = vmatprep.subr.bf16.mxu0 %v20164_v1  ;;  %v20240_v1 = vld [vmem:[%s21927_s22 + $0x3100] ss:$8 sps:$4 sm:$0xff]  }
 0x451   : > { %14122 = vmatpush1.bf16.msra.mxu1 %v20159_v15  ;;  %v20245_v15 = vld [vmem:[%s21927_s22 + $0x1114] ss:$8 sps:$4 sm:$0xff]  }
 0x452   : > { %15434 = vmatpush1.bf16.msra.mxu0 %v20162_v43  ;;  %14123 = vmatprep.subr.bf16.mxu1 %v20167_v46  ;;  %v20248_v43 = vld [vmem:[%s21927_s22 + $0x3114] ss:$8 sps:$4 sm:$0xff]   ;;  %v2942_v46 = vcombine.high %v23289_v17, %v23289_v17  ;;  %v20249_v17 = vld [vmem:[%s21927_s22 + $0x1120] ss:$8 sps:$4 sm:$0xff]  }
 0x453   : > { %15435 = vmatprep.subr.bf16.mxu0 %v20170_v2  ;;  %v20246_v2 = vld [vmem:[%s21927_s22 + $0x3110] ss:$8 sps:$4 sm:$0xff]  }
 0x455   : > { %14124 = vmatpush1.bf16.msra.mxu1 %v20165_v55  ;;  %v20254_v55 = vld [vmem:[%s21927_s22 + $0x3124] ss:$8 sps:$4 sm:$0xff]  }
 0x456   : > { %15436 = vmatpush1.bf16.msra.mxu0 %v20168_v57  ;;  %14125 = vmatprep.subr.bf16.mxu1 %v20173_v34  ;;  %v20252_v57 = vld [vmem:[%s21927_s22 + $0x3120] ss:$8 sps:$4 sm:$0xff]   ;;  %v20257_v34 = vld [vmem:[%s21927_s22 + $0x1134] ss:$8 sps:$4 sm:$0xff]  }
 0x457   : > { %15437 = vmatprep.subr.bf16.mxu0 %v20176_v4  ;;  %v20260_v4 = vld [vmem:[%s21927_s22 + $0x3134] ss:$8 sps:$4 sm:$0xff]  }
 0x459   : > { %14126 = vmatpush1.bf16.msra.mxu1 %v20171_v59  ;;  %v20255_v59 = vld [vmem:[%s21927_s22 + $0x1130] ss:$8 sps:$4 sm:$0xff]  }
 0x45a   : > { %15438 = vmatpush1.bf16.msra.mxu0 %v20174_v5  ;;  %14127 = vmatprep.subr.bf16.mxu1 %v20179_v6  ;;  %v20258_v5 = vld [vmem:[%s21927_s22 + $0x3130] ss:$8 sps:$4 sm:$0xff]   ;;  %v20263_v6 = vld [vmem:[%s21927_s22 + $0x1144] ss:$8 sps:$4 sm:$0xff]  }
 0x45b   : > { %15439 = vmatprep.subr.bf16.mxu0 %v20182_v7  ;;  %v20266_v7 = vld [vmem:[%s21927_s22 + $0x3144] ss:$8 sps:$4 sm:$0xff]  }
 0x45d   : > { %14128 = vmatpush1.bf16.msra.mxu1 %v20177_v42  ;;  %v20261_v42 = vld [vmem:[%s21927_s22 + $0x1140] ss:$8 sps:$4 sm:$0xff]  }
 0x45e   : > { %15440 = vmatpush1.bf16.msra.mxu0 %v20180_v9  ;;  %14129 = vmatprep.subr.bf16.mxu1 %v20185_v12  ;;  %v20264_v9 = vld [vmem:[%s21927_s22 + $0x3140] ss:$8 sps:$4 sm:$0xff]   ;;  %v20269_v12 = vld [vmem:[%s21927_s22 + $0x1154] ss:$8 sps:$4 sm:$0xff]  }
 0x45f   : > { %15441 = vmatprep.subr.bf16.mxu0 %v20188_v13  ;;  %v20272_v13 = vld [vmem:[%s21927_s22 + $0x3154] ss:$8 sps:$4 sm:$0xff]  }
 0x461   : > { %14130 = vmatpush1.bf16.msra.mxu1 %v20183_v20  ;;  %v20267_v20 = vld [vmem:[%s21927_s22 + $0x1150] ss:$8 sps:$4 sm:$0xff]  }
 0x462   : > { %15442 = vmatpush1.bf16.msra.mxu0 %v20186_v21  ;;  %14131 = vmatprep.subr.bf16.mxu1 %v20191_v35  ;;  %v20270_v21 = vld [vmem:[%s21927_s22 + $0x3150] ss:$8 sps:$4 sm:$0xff]   ;;  %v20275_v35 = vld [vmem:[%s21927_s22 + $0x1164] ss:$8 sps:$4 sm:$0xff]  }
 0x463   : > { %15443 = vmatprep.subr.bf16.mxu0 %v20194_v22  ;;  %v20278_v22 = vld [vmem:[%s21927_s22 + $0x3164] ss:$8 sps:$4 sm:$0xff]  }
 0x465   : > { %14132 = vmatpush1.bf16.msra.mxu1 %v20189_v8  ;;  %v20273_v8 = vld [vmem:[%s21927_s22 + $0x1160] ss:$8 sps:$4 sm:$0xff]  }
 0x466   : > { %15444 = vmatpush1.bf16.msra.mxu0 %v20192_v44  ;;  %14133 = vmatprep.subr.bf16.mxu1 %v20197_v41  ;;  %v20276_v44 = vld [vmem:[%s21927_s22 + $0x3160] ss:$8 sps:$4 sm:$0xff]   ;;  %v20281_v41 = vld [vmem:[%s21927_s22 + $0x1174] ss:$8 sps:$4 sm:$0xff]  }
 0x467   : > { %15445 = vmatprep.subr.bf16.mxu0 %v20200_v24  ;;  %v20284_v24 = vld [vmem:[%s21927_s22 + $0x3174] ss:$8 sps:$4 sm:$0xff]  }
 0x469   : > { %14134 = vmatpush1.bf16.msra.mxu1 %v20195_v3  ;;  %v20279_v3 = vld [vmem:[%s21927_s22 + $0x1170] ss:$8 sps:$4 sm:$0xff]  }
 0x46a   : > { %15446 = vmatpush1.bf16.msra.mxu0 %v20198_v25  ;;  %14135 = vmatprep.subr.bf16.mxu1 %v20203_v14  ;;  %v20282_v25 = vld [vmem:[%s21927_s22 + $0x3170] ss:$8 sps:$4 sm:$0xff]   ;;  %v20287_v14 = vld [vmem:[%s21927_s22 + $0x1184] ss:$8 sps:$4 sm:$0xff]  }
 0x46b   : > { %15447 = vmatprep.subr.bf16.mxu0 %v20206_v54  ;;  %v20290_v54 = vld [vmem:[%s21927_s22 + $0x3184] ss:$8 sps:$4 sm:$0xff]  }
 0x46d   : > { %14136 = vmatpush1.bf16.msra.mxu1 %v20201_v60  ;;  %v20285_v60 = vld [vmem:[%s21927_s22 + $0x1180] ss:$8 sps:$4 sm:$0xff]  }
 0x46e   : > { %15448 = vmatpush1.bf16.msra.mxu0 %v20204_v58  ;;  %14137 = vmatprep.subr.bf16.mxu1 %v20209_v28  ;;  %v20288_v58 = vld [vmem:[%s21927_s22 + $0x3180] ss:$8 sps:$4 sm:$0xff]   ;;  %v20293_v28 = vld [vmem:[%s21927_s22 + $0x1194] ss:$8 sps:$4 sm:$0xff]  }
 0x46f   : > { %15449 = vmatprep.subr.bf16.mxu0 %v20212_v29  ;;  %v20296_v29 = vld [vmem:[%s21927_s22 + $0x3194] ss:$8 sps:$4 sm:$0xff]  }
 0x471   : > { %14138 = vmatpush1.bf16.msra.mxu1 %v20207_v36  ;;  %v20291_v36 = vld [vmem:[%s21927_s22 + $0x1190] ss:$8 sps:$4 sm:$0xff]  }
 0x472   : > { %15450 = vmatpush1.bf16.msra.mxu0 %v20210_v37  ;;  %14139 = vmatprep.subr.bf16.mxu1 %v20215_v19  ;;  %v20294_v37 = vld [vmem:[%s21927_s22 + $0x3190] ss:$8 sps:$4 sm:$0xff]   ;;  %v20299_v19 = vld [vmem:[%s21927_s22 + $0x11a4] ss:$8 sps:$4 sm:$0xff]  }
 0x473   : > { %15451 = vmatprep.subr.bf16.mxu0 %v20218_v39  ;;  %v20302_v39 = vld [vmem:[%s21927_s22 + $0x31a4] ss:$8 sps:$4 sm:$0xff]  }
 0x475   : > { %14140 = vmatpush1.bf16.msra.mxu1 %v20213_v23  ;;  %v20297_v23 = vld [vmem:[%s21927_s22 + $0x11a0] ss:$8 sps:$4 sm:$0xff]  }
 0x476   : > { %15452 = vmatpush1.bf16.msra.mxu0 %v20216_v45  ;;  %14141 = vmatprep.subr.bf16.mxu1 %v20221_v30  ;;  %v20300_v45 = vld [vmem:[%s21927_s22 + $0x31a0] ss:$8 sps:$4 sm:$0xff]   ;;  %v20305_v30 = vld [vmem:[%s21927_s22 + $0x11b4] ss:$8 sps:$4 sm:$0xff]  }
 0x477   : > { %15453 = vmatprep.subr.bf16.mxu0 %v20224_v32  ;;  %v20308_v32 = vld [vmem:[%s21927_s22 + $0x31b4] ss:$8 sps:$4 sm:$0xff]  }
 0x479   : > { %14142 = vmatpush1.bf16.msra.mxu1 %v20219_v10  ;;  %v20303_v10 = vld [vmem:[%s21927_s22 + $0x11b0] ss:$8 sps:$4 sm:$0xff]  }
 0x47a   : > { %15454 = vmatpush1.bf16.msra.mxu0 %v20222_v26  ;;  %14143 = vmatprep.subr.bf16.mxu1 %v20227_v16  ;;  %v20306_v26 = vld [vmem:[%s21927_s22 + $0x31b0] ss:$8 sps:$4 sm:$0xff]   ;;  %v20311_v16 = vld [vmem:[%s21927_s22 + $0x11c4] ss:$8 sps:$4 sm:$0xff]  }
 0x47b   : > { %15455 = vmatprep.subr.bf16.mxu0 %v20230_v47  ;;  %v20314_v47 = vld [vmem:[%s21927_s22 + $0x31c4] ss:$8 sps:$4 sm:$0xff]  }
 0x47d   : > { %14144 = vmatpush1.bf16.msra.mxu1 %v20225_v27  ;;  %v20309_v27 = vld [vmem:[%s21927_s22 + $0x11c0] ss:$8 sps:$4 sm:$0xff]  }
 0x47e   : > { %15456 = vmatpush1.bf16.msra.mxu0 %v20228_v48  ;;  %14145 = vmatprep.subr.bf16.mxu1 %v20233_v38  ;;  %v20312_v48 = vld [vmem:[%s21927_s22 + $0x31c0] ss:$8 sps:$4 sm:$0xff]   ;;  %v20317_v38 = vld [vmem:[%s21927_s22 + $0x11d4] ss:$8 sps:$4 sm:$0xff]  }
 0x47f   : > { %15457 = vmatprep.subr.bf16.mxu0 %v20236_v49  ;;  %v20320_v49 = vld [vmem:[%s21927_s22 + $0x31d4] ss:$8 sps:$4 sm:$0xff]  }
 0x481   : > { %14146 = vmatpush1.bf16.msra.mxu1 %v20231_v33  ;;  %v20315_v33 = vld [vmem:[%s21927_s22 + $0x11d0] ss:$8 sps:$4 sm:$0xff]  }
 0x482   : > { %15458 = vmatpush1.bf16.msra.mxu0 %v20234_v50  ;;  %14156 = vmatprep.subr.bf16.mxu1 %v20239_v52  ;;  %v20318_v50 = vld [vmem:[%s21927_s22 + $0x31d0] ss:$8 sps:$4 sm:$0xff]   ;;  %v20323_v52 = vld [vmem:[%s21927_s22 + $0x11e4] ss:$8 sps:$4 sm:$0xff]  }
 0x483   : > { %15468 = vmatprep.subr.bf16.mxu0 %v20242_v53  ;;  %v20326_v53 = vld [vmem:[%s21927_s22 + $0x31e4] ss:$8 sps:$4 sm:$0xff]  }
 0x484   : > { %14148 = vmatmul.mubr.bf16.vlgmr.msra.gmra.mrb[0].mxu1 %v23355_v62 }
 0x485   : > { %15460 = vmatmul.mubr.bf16.vlgmr.msra.gmra.mrb[0].mxu0 %v23359_v63  ;;  %14157 = vmatpush1.bf16.msra.mxu1 %v20237_v0  ;;  %v2503_v0 = vcombine.high %v23252_v11, %v23252_v11  ;;  %v20327_v11 = vld [vmem:[%s21927_s22 + $0x11f0] ss:$8 sps:$4 sm:$0xff]  }
 0x486   : > { %15469 = vmatpush1.bf16.msra.mxu0 %v20240_v1  ;;  %14158 = vmatprep.subr.bf16.mxu1 %v20245_v15  ;;  %v2895_v1 = vcombine.high %v23255_v31, %v23255_v31  ;;  %v20321_v15 = vld [vmem:[%s21927_s22 + $0x11e0] ss:$8 sps:$4 sm:$0xff]   ;;  %v20330_v31 = vld [vmem:[%s21927_s22 + $0x31f0] ss:$8 sps:$4 sm:$0xff]  }
 0x487   : > { %15470 = vmatprep.subr.bf16.mxu0 %v20248_v43  ;;  %14188 = vmatprep.mubr.bf16.mxu1 %v2550_v56  ;;  %v20324_v43 = vld [vmem:[%s21927_s22 + $0x31e0] ss:$8 sps:$4 sm:$0xff]   ;;  %v20329_v56 = vld [vmem:[%s21927_s22 + $0x11f4] ss:$8 sps:$4 sm:$0xff]  }
 0x488   : > { %15500 = vmatprep.mubr.bf16.mxu0 %v2942_v46  ;;  %v20332_v46 = vld [vmem:[%s21927_s22 + $0x31f4] ss:$8 sps:$4 sm:$0xff]  }
 0x489   : > { %14159 = vmatpush1.bf16.msra.mxu1 %v20243_v61  ;;  %v23432_v61 = vrot.slane %v2503_v0, %v21993_v51  ;;  %v20399_v0 = vld [vmem:[%s21927_s22 + $0x12b0] ss:$8 sps:$4 sm:$0xff]  }
 0x48a   : > { %15471 = vmatpush1.bf16.msra.mxu0 %v20246_v2  ;;  %14160 = vmatprep.subr.bf16.mxu1 %v20251_v18  ;;  %v23435_v2 = vrot.slane %v2895_v1, %v21993_v51  ;;  %v20335_v18 = vld [vmem:[%s21927_s22 + $0x1204] ss:$8 sps:$4 sm:$0xff]   ;;  %v20402_v1 = vld [vmem:[%s21927_s22 + $0x32b0] ss:$8 sps:$4 sm:$0xff]  }
 0x48b   : > { %15472 = vmatprep.subr.bf16.mxu0 %v20254_v55  ;;  %v20338_v55 = vld [vmem:[%s21927_s22 + $0x3204] ss:$8 sps:$4 sm:$0xff]  }
 0x48d   : > { %14161 = vmatpush1.bf16.msra.mxu1 %v20249_v17  ;;  %v2519_v17 = vcombine.high %v23432_v61, %v23432_v61 }
 0x48e   : > { %15473 = vmatpush1.bf16.msra.mxu0 %v20252_v57  ;;  %14162 = vmatprep.subr.bf16.mxu1 %v20257_v34  ;;  %v2911_v57 = vcombine.high %v23435_v2, %v23435_v2  ;;  %v2548_v34 = vcombine.high %v23355_v62, %v23355_v62 }
 0x48f   : > { %15474 = vmatprep.subr.bf16.mxu0 %v20260_v4  ;;  %v2940_v4 = vcombine.high %v23359_v63, %v23359_v63  ;;  %v20339_v63 = vld [vmem:[%s21927_s22 + $0x1210] ss:$8 sps:$4 sm:$0xff]  }
 0x490   : > { %v23457_v62 = vrot.slane %v2911_v57, %v21993_v51  ;;  %v20422_v57 = vld [vmem:[%s21927_s22 + $0x32e4] ss:$8 sps:$4 sm:$0xff]  }
 0x491   : > { %14163 = vmatpush1.bf16.msra.mxu1 %v20255_v59  ;;  %v20333_v59 = vld [vmem:[%s21927_s22 + $0x1200] ss:$8 sps:$4 sm:$0xff]  }
 0x492   : > { %15475 = vmatpush1.bf16.msra.mxu0 %v20258_v5  ;;  %14164 = vmatprep.subr.bf16.mxu1 %v20263_v6  ;;  %v20336_v5 = vld [vmem:[%s21927_s22 + $0x3200] ss:$8 sps:$4 sm:$0xff]   ;;  %v20341_v6 = vld [vmem:[%s21927_s22 + $0x1214] ss:$8 sps:$4 sm:$0xff]  }
 0x493   : > { %15476 = vmatprep.subr.bf16.mxu0 %v20266_v7  ;;  %v20344_v7 = vld [vmem:[%s21927_s22 + $0x3214] ss:$8 sps:$4 sm:$0xff]  }
 0x495   : > { %14165 = vmatpush1.bf16.msra.mxu1 %v20261_v42  ;;  %v23454_v42 = vrot.slane %v2519_v17, %v21993_v51  ;;  %v20419_v17 = vld [vmem:[%s21927_s22 + $0x12e4] ss:$8 sps:$4 sm:$0xff]  }
 0x496   : > { %15477 = vmatpush1.bf16.msra.mxu0 %v20264_v9  ;;  %14166 = vmatprep.subr.bf16.mxu1 %v20269_v12  ;;  %v20342_v9 = vld [vmem:[%s21927_s22 + $0x3210] ss:$8 sps:$4 sm:$0xff]   ;;  %v20347_v12 = vld [vmem:[%s21927_s22 + $0x1224] ss:$8 sps:$4 sm:$0xff]  }
 0x497   : > { %15478 = vmatprep.subr.bf16.mxu0 %v20272_v13  ;;  %v20350_v13 = vld [vmem:[%s21927_s22 + $0x3224] ss:$8 sps:$4 sm:$0xff]  }
 0x499   : > { %14167 = vmatpush1.bf16.msra.mxu1 %v20267_v20  ;;  %v20345_v20 = vld [vmem:[%s21927_s22 + $0x1220] ss:$8 sps:$4 sm:$0xff]  }
 0x49a   : > { %15479 = vmatpush1.bf16.msra.mxu0 %v20270_v21  ;;  %14168 = vmatprep.subr.bf16.mxu1 %v20275_v35  ;;  %v20348_v21 = vld [vmem:[%s21927_s22 + $0x3220] ss:$8 sps:$4 sm:$0xff]   ;;  %v20353_v35 = vld [vmem:[%s21927_s22 + $0x1234] ss:$8 sps:$4 sm:$0xff]  }
 0x49b   : > { %15480 = vmatprep.subr.bf16.mxu0 %v20278_v22  ;;  %v20356_v22 = vld [vmem:[%s21927_s22 + $0x3234] ss:$8 sps:$4 sm:$0xff]  }
 0x49d   : > { %14169 = vmatpush1.bf16.msra.mxu1 %v20273_v8  ;;  %v20351_v8 = vld [vmem:[%s21927_s22 + $0x1230] ss:$8 sps:$4 sm:$0xff]  }
 0x49e   : > { %15481 = vmatpush1.bf16.msra.mxu0 %v20276_v44  ;;  %14170 = vmatprep.subr.bf16.mxu1 %v20281_v41  ;;  %v20354_v44 = vld [vmem:[%s21927_s22 + $0x3230] ss:$8 sps:$4 sm:$0xff]   ;;  %v20359_v41 = vld [vmem:[%s21927_s22 + $0x1244] ss:$8 sps:$4 sm:$0xff]  }
 0x49f   : > { %15482 = vmatprep.subr.bf16.mxu0 %v20284_v24  ;;  %v20362_v24 = vld [vmem:[%s21927_s22 + $0x3244] ss:$8 sps:$4 sm:$0xff]  }
 0x4a1   : > { %14171 = vmatpush1.bf16.msra.mxu1 %v20279_v3  ;;  %v20357_v3 = vld [vmem:[%s21927_s22 + $0x1240] ss:$8 sps:$4 sm:$0xff]  }
 0x4a2   : > { %15483 = vmatpush1.bf16.msra.mxu0 %v20282_v25  ;;  %14172 = vmatprep.subr.bf16.mxu1 %v20287_v14  ;;  %v20360_v25 = vld [vmem:[%s21927_s22 + $0x3240] ss:$8 sps:$4 sm:$0xff]   ;;  %v20365_v14 = vld [vmem:[%s21927_s22 + $0x1254] ss:$8 sps:$4 sm:$0xff]  }
 0x4a3   : > { %15484 = vmatprep.subr.bf16.mxu0 %v20290_v54  ;;  %v20368_v54 = vld [vmem:[%s21927_s22 + $0x3254] ss:$8 sps:$4 sm:$0xff]  }
 0x4a5   : > { %14173 = vmatpush1.bf16.msra.mxu1 %v20285_v60  ;;  %v20363_v60 = vld [vmem:[%s21927_s22 + $0x1250] ss:$8 sps:$4 sm:$0xff]  }
 0x4a6   : > { %15485 = vmatpush1.bf16.msra.mxu0 %v20288_v58  ;;  %14174 = vmatprep.subr.bf16.mxu1 %v20293_v28  ;;  %v20366_v58 = vld [vmem:[%s21927_s22 + $0x3250] ss:$8 sps:$4 sm:$0xff]   ;;  %v20371_v28 = vld [vmem:[%s21927_s22 + $0x1264] ss:$8 sps:$4 sm:$0xff]  }
 0x4a7   : > { %15486 = vmatprep.subr.bf16.mxu0 %v20296_v29  ;;  %v20374_v29 = vld [vmem:[%s21927_s22 + $0x3264] ss:$8 sps:$4 sm:$0xff]  }
 0x4a9   : > { %14175 = vmatpush1.bf16.msra.mxu1 %v20291_v36  ;;  %v20369_v36 = vld [vmem:[%s21927_s22 + $0x1260] ss:$8 sps:$4 sm:$0xff]  }
 0x4aa   : > { %15487 = vmatpush1.bf16.msra.mxu0 %v20294_v37  ;;  %14176 = vmatprep.subr.bf16.mxu1 %v20299_v19  ;;  %v20372_v37 = vld [vmem:[%s21927_s22 + $0x3260] ss:$8 sps:$4 sm:$0xff]   ;;  %v20377_v19 = vld [vmem:[%s21927_s22 + $0x1274] ss:$8 sps:$4 sm:$0xff]  }
 0x4ab   : > { %15488 = vmatprep.subr.bf16.mxu0 %v20302_v39  ;;  %v20380_v39 = vld [vmem:[%s21927_s22 + $0x3274] ss:$8 sps:$4 sm:$0xff]  }
 0x4ad   : > { %14177 = vmatpush1.bf16.msra.mxu1 %v20297_v23  ;;  %v20375_v23 = vld [vmem:[%s21927_s22 + $0x1270] ss:$8 sps:$4 sm:$0xff]  }
 0x4ae   : > { %15489 = vmatpush1.bf16.msra.mxu0 %v20300_v45  ;;  %14178 = vmatprep.subr.bf16.mxu1 %v20305_v30  ;;  %v20378_v45 = vld [vmem:[%s21927_s22 + $0x3270] ss:$8 sps:$4 sm:$0xff]   ;;  %v20383_v30 = vld [vmem:[%s21927_s22 + $0x1284] ss:$8 sps:$4 sm:$0xff]  }
 0x4af   : > { %15490 = vmatprep.subr.bf16.mxu0 %v20308_v32  ;;  %v20386_v32 = vld [vmem:[%s21927_s22 + $0x3284] ss:$8 sps:$4 sm:$0xff]  }
 0x4b1   : > { %14179 = vmatpush1.bf16.msra.mxu1 %v20303_v10  ;;  %v20381_v10 = vld [vmem:[%s21927_s22 + $0x1280] ss:$8 sps:$4 sm:$0xff]  }
 0x4b2   : > { %15491 = vmatpush1.bf16.msra.mxu0 %v20306_v26  ;;  %14180 = vmatprep.subr.bf16.mxu1 %v20311_v16  ;;  %v20384_v26 = vld [vmem:[%s21927_s22 + $0x3280] ss:$8 sps:$4 sm:$0xff]   ;;  %v20389_v16 = vld [vmem:[%s21927_s22 + $0x1294] ss:$8 sps:$4 sm:$0xff]  }
 0x4b3   : > { %15492 = vmatprep.subr.bf16.mxu0 %v20314_v47  ;;  %v20392_v47 = vld [vmem:[%s21927_s22 + $0x3294] ss:$8 sps:$4 sm:$0xff]  }
 0x4b5   : > { %14181 = vmatpush1.bf16.msra.mxu1 %v20309_v27  ;;  %v20387_v27 = vld [vmem:[%s21927_s22 + $0x1290] ss:$8 sps:$4 sm:$0xff]  }
 0x4b6   : > { %15493 = vmatpush1.bf16.msra.mxu0 %v20312_v48  ;;  %14182 = vmatprep.subr.bf16.mxu1 %v20317_v38  ;;  %v20390_v48 = vld [vmem:[%s21927_s22 + $0x3290] ss:$8 sps:$4 sm:$0xff]   ;;  %v20395_v38 = vld [vmem:[%s21927_s22 + $0x12a4] ss:$8 sps:$4 sm:$0xff]  }
 0x4b7   : > { %15494 = vmatprep.subr.bf16.mxu0 %v20320_v49  ;;  %v20398_v49 = vld [vmem:[%s21927_s22 + $0x32a4] ss:$8 sps:$4 sm:$0xff]  }
 0x4b9   : > { %14183 = vmatpush1.bf16.msra.mxu1 %v20315_v33  ;;  %v20393_v33 = vld [vmem:[%s21927_s22 + $0x12a0] ss:$8 sps:$4 sm:$0xff]  }
 0x4ba   : > { %15495 = vmatpush1.bf16.msra.mxu0 %v20318_v50  ;;  %14184 = vmatprep.subr.bf16.mxu1 %v20323_v52  ;;  %v20396_v50 = vld [vmem:[%s21927_s22 + $0x32a0] ss:$8 sps:$4 sm:$0xff]   ;;  %v20401_v52 = vld [vmem:[%s21927_s22 + $0x12b4] ss:$8 sps:$4 sm:$0xff]  }
 0x4bb   : > { %15496 = vmatprep.subr.bf16.mxu0 %v20326_v53  ;;  %v20404_v53 = vld [vmem:[%s21927_s22 + $0x32b4] ss:$8 sps:$4 sm:$0xff]  }
 0x4bd   : > { %14185 = vmatpush1.bf16.msra.mxu1 %v20321_v15  ;;  %v20407_v15 = vld [vmem:[%s21927_s22 + $0x12c4] ss:$8 sps:$4 sm:$0xff]  }
 0x4be   : > { %15497 = vmatpush1.bf16.msra.mxu0 %v20324_v43  ;;  %14186 = vmatprep.subr.bf16.mxu1 %v20329_v56  ;;  %v20410_v43 = vld [vmem:[%s21927_s22 + $0x32c4] ss:$8 sps:$4 sm:$0xff]   ;;  %v20405_v56 = vld [vmem:[%s21927_s22 + $0x12c0] ss:$8 sps:$4 sm:$0xff]  }
 0x4bf   : > { %15498 = vmatprep.subr.bf16.mxu0 %v20332_v46  ;;  %v20408_v46 = vld [vmem:[%s21927_s22 + $0x32c0] ss:$8 sps:$4 sm:$0xff]  }
 0x4c1   : > { %14187 = vmatpush1.bf16.msra.mxu1 %v20327_v11  ;;  %v20413_v11 = vld [vmem:[%s21927_s22 + $0x12d4] ss:$8 sps:$4 sm:$0xff]  }
 0x4c2   : > { %15499 = vmatpush1.bf16.msra.mxu0 %v20330_v31  ;;  %14197 = vmatprep.subr.bf16.mxu1 %v20335_v18  ;;  %v20416_v31 = vld [vmem:[%s21927_s22 + $0x32d4] ss:$8 sps:$4 sm:$0xff]   ;;  %v20411_v18 = vld [vmem:[%s21927_s22 + $0x12d0] ss:$8 sps:$4 sm:$0xff]  }
 0x4c3   : > { %15509 = vmatprep.subr.bf16.mxu0 %v20338_v55  ;;  %v20414_v55 = vld [vmem:[%s21927_s22 + $0x32d0] ss:$8 sps:$4 sm:$0xff]  }
 0x4c4   : > { %14189 = vmatmul.mubr.bf16.vlgmr.msra.gmra.mrb[0].mxu1 %v2548_v34  ;;  %v20417_v34 = vld [vmem:[%s21927_s22 + $0x12e0] ss:$8 sps:$4 sm:$0xff]  }
 0x4c5   : > { %15501 = vmatmul.mubr.bf16.vlgmr.msra.gmra.mrb[0].mxu0 %v2940_v4  ;;  %14198 = vmatpush1.bf16.msra.mxu1 %v20333_v59  ;;  %v20420_v4 = vld [vmem:[%s21927_s22 + $0x32e0] ss:$8 sps:$4 sm:$0xff]   ;;  %v20425_v59 = vld [vmem:[%s21927_s22 + $0x12f4] ss:$8 sps:$4 sm:$0xff]  }
 0x4c6   : > { %15510 = vmatpush1.bf16.msra.mxu0 %v20336_v5  ;;  %14199 = vmatprep.subr.bf16.mxu1 %v20341_v6  ;;  %v20428_v5 = vld [vmem:[%s21927_s22 + $0x32f4] ss:$8 sps:$4 sm:$0xff]   ;;  %v20423_v6 = vld [vmem:[%s21927_s22 + $0x12f0] ss:$8 sps:$4 sm:$0xff]  }
 0x4c7   : > { %15511 = vmatprep.subr.bf16.mxu0 %v20344_v7  ;;  %14229 = vmatprep.mubr.bf16.mxu1 %v23454_v42  ;;  %v20426_v7 = vld [vmem:[%s21927_s22 + $0x32f0] ss:$8 sps:$4 sm:$0xff]  }
 0x4c8   : > { %15541 = vmatprep.mubr.bf16.mxu0 %v23457_v62 }
 0x4c9   : > { %14200 = vmatpush1.bf16.msra.mxu1 %v20339_v63  ;;  %v20432_v63 = vld [vmem:[%s21927_s22 + $0x1304] ss:$8 sps:$4 sm:$0xff]  }
 0x4ca   : > { %15512 = vmatpush1.bf16.msra.mxu0 %v20342_v9  ;;  %14201 = vmatprep.subr.bf16.mxu1 %v20347_v12  ;;  %v20436_v9 = vld [vmem:[%s21927_s22 + $0x3304] ss:$8 sps:$4 sm:$0xff]   ;;  %v23523_v12 = vrot.slane %v23432_v61, %v21993_v51  ;;  %v2551_v61 = vcombine.high %v23454_v42, %v23454_v42 }
 0x4cb   : > { %15513 = vmatprep.subr.bf16.mxu0 %v20350_v13  ;;  %v23527_v13 = vrot.slane %v23435_v2, %v21993_v51  ;;  %v20437_v2 = vld [vmem:[%s21927_s22 + $0x1310] ss:$8 sps:$4 sm:$0xff]   ;;  %v20445_v42 = vld [vmem:[%s21927_s22 + $0x1324] ss:$8 sps:$4 sm:$0xff]  }
 0x4cd   : > { %14202 = vmatpush1.bf16.msra.mxu1 %v20345_v20  ;;  %v20430_v20 = vld [vmem:[%s21927_s22 + $0x1300] ss:$8 sps:$4 sm:$0xff]  }
 0x4ce   : > { %15514 = vmatpush1.bf16.msra.mxu0 %v20348_v21  ;;  %14203 = vmatprep.subr.bf16.mxu1 %v20353_v35  ;;  %v20434_v21 = vld [vmem:[%s21927_s22 + $0x3300] ss:$8 sps:$4 sm:$0xff]   ;;  %v20439_v35 = vld [vmem:[%s21927_s22 + $0x1314] ss:$8 sps:$4 sm:$0xff]  }
 0x4cf   : > { %15515 = vmatprep.subr.bf16.mxu0 %v20356_v22  ;;  %v20442_v22 = vld [vmem:[%s21927_s22 + $0x3314] ss:$8 sps:$4 sm:$0xff]  }
 0x4d1   : > { %14204 = vmatpush1.bf16.msra.mxu1 %v20351_v8  ;;  %v2943_v8 = vcombine.high %v23457_v62, %v23457_v62  ;;  %v20443_v62 = vld [vmem:[%s21927_s22 + $0x1320] ss:$8 sps:$4 sm:$0xff]  }
 0x4d2   : > { %15516 = vmatpush1.bf16.msra.mxu0 %v20354_v44  ;;  %14205 = vmatprep.subr.bf16.mxu1 %v20359_v41  ;;  %v20440_v44 = vld [vmem:[%s21927_s22 + $0x3310] ss:$8 sps:$4 sm:$0xff]   ;;  %v20448_v41 = vld [vmem:[%s21927_s22 + $0x3324] ss:$8 sps:$4 sm:$0xff]  }
 0x4d3   : > { %15517 = vmatprep.subr.bf16.mxu0 %v20362_v24  ;;  %v20446_v24 = vld [vmem:[%s21927_s22 + $0x3320] ss:$8 sps:$4 sm:$0xff]  }
 0x4d5   : > { %14206 = vmatpush1.bf16.msra.mxu1 %v20357_v3  ;;  %v20451_v3 = vld [vmem:[%s21927_s22 + $0x1334] ss:$8 sps:$4 sm:$0xff]  }
 0x4d6   : > { %15518 = vmatpush1.bf16.msra.mxu0 %v20360_v25  ;;  %14207 = vmatprep.subr.bf16.mxu1 %v20365_v14  ;;  %v20454_v25 = vld [vmem:[%s21927_s22 + $0x3334] ss:$8 sps:$4 sm:$0xff]   ;;  %v20449_v14 = vld [vmem:[%s21927_s22 + $0x1330] ss:$8 sps:$4 sm:$0xff]  }
 0x4d7   : > { %15519 = vmatprep.subr.bf16.mxu0 %v20368_v54  ;;  %v20452_v54 = vld [vmem:[%s21927_s22 + $0x3330] ss:$8 sps:$4 sm:$0xff]  }
 0x4d9   : > { %14208 = vmatpush1.bf16.msra.mxu1 %v20363_v60  ;;  %v20457_v60 = vld [vmem:[%s21927_s22 + $0x1344] ss:$8 sps:$4 sm:$0xff]  }
 0x4da   : > { %15520 = vmatpush1.bf16.msra.mxu0 %v20366_v58  ;;  %14209 = vmatprep.subr.bf16.mxu1 %v20371_v28  ;;  %v20460_v58 = vld [vmem:[%s21927_s22 + $0x3344] ss:$8 sps:$4 sm:$0xff]   ;;  %v20455_v28 = vld [vmem:[%s21927_s22 + $0x1340] ss:$8 sps:$4 sm:$0xff]  }
 0x4db   : > { %15521 = vmatprep.subr.bf16.mxu0 %v20374_v29  ;;  %v20458_v29 = vld [vmem:[%s21927_s22 + $0x3340] ss:$8 sps:$4 sm:$0xff]  }
 0x4dd   : > { %14210 = vmatpush1.bf16.msra.mxu1 %v20369_v36  ;;  %v20463_v36 = vld [vmem:[%s21927_s22 + $0x1354] ss:$8 sps:$4 sm:$0xff]  }
 0x4de   : > { %15522 = vmatpush1.bf16.msra.mxu0 %v20372_v37  ;;  %14211 = vmatprep.subr.bf16.mxu1 %v20377_v19  ;;  %v20466_v37 = vld [vmem:[%s21927_s22 + $0x3354] ss:$8 sps:$4 sm:$0xff]   ;;  %v20461_v19 = vld [vmem:[%s21927_s22 + $0x1350] ss:$8 sps:$4 sm:$0xff]  }
 0x4df   : > { %15523 = vmatprep.subr.bf16.mxu0 %v20380_v39  ;;  %v20464_v39 = vld [vmem:[%s21927_s22 + $0x3350] ss:$8 sps:$4 sm:$0xff]  }
 0x4e1   : > { %14212 = vmatpush1.bf16.msra.mxu1 %v20375_v23  ;;  %v20469_v23 = vld [vmem:[%s21927_s22 + $0x1364] ss:$8 sps:$4 sm:$0xff]  }
 0x4e2   : > { %15524 = vmatpush1.bf16.msra.mxu0 %v20378_v45  ;;  %14213 = vmatprep.subr.bf16.mxu1 %v20383_v30  ;;  %v20472_v45 = vld [vmem:[%s21927_s22 + $0x3364] ss:$8 sps:$4 sm:$0xff]   ;;  %v20467_v30 = vld [vmem:[%s21927_s22 + $0x1360] ss:$8 sps:$4 sm:$0xff]  }
 0x4e3   : > { %15525 = vmatprep.subr.bf16.mxu0 %v20386_v32  ;;  %v20470_v32 = vld [vmem:[%s21927_s22 + $0x3360] ss:$8 sps:$4 sm:$0xff]  }
 0x4e5   : > { %14214 = vmatpush1.bf16.msra.mxu1 %v20381_v10  ;;  %v20475_v10 = vld [vmem:[%s21927_s22 + $0x1374] ss:$8 sps:$4 sm:$0xff]  }
 0x4e6   : > { %15526 = vmatpush1.bf16.msra.mxu0 %v20384_v26  ;;  %14215 = vmatprep.subr.bf16.mxu1 %v20389_v16  ;;  %v20478_v26 = vld [vmem:[%s21927_s22 + $0x3374] ss:$8 sps:$4 sm:$0xff]   ;;  %v20473_v16 = vld [vmem:[%s21927_s22 + $0x1370] ss:$8 sps:$4 sm:$0xff]  }
 0x4e7   : > { %15527 = vmatprep.subr.bf16.mxu0 %v20392_v47  ;;  %v20476_v47 = vld [vmem:[%s21927_s22 + $0x3370] ss:$8 sps:$4 sm:$0xff]  }
 0x4e9   : > { %14216 = vmatpush1.bf16.msra.mxu1 %v20387_v27  ;;  %v20481_v27 = vld [vmem:[%s21927_s22 + $0x1384] ss:$8 sps:$4 sm:$0xff]  }
 0x4ea   : > { %15528 = vmatpush1.bf16.msra.mxu0 %v20390_v48  ;;  %14217 = vmatprep.subr.bf16.mxu1 %v20395_v38  ;;  %v20484_v48 = vld [vmem:[%s21927_s22 + $0x3384] ss:$8 sps:$4 sm:$0xff]   ;;  %v20479_v38 = vld [vmem:[%s21927_s22 + $0x1380] ss:$8 sps:$4 sm:$0xff]  }
 0x4eb   : > { %15529 = vmatprep.subr.bf16.mxu0 %v20398_v49  ;;  %v20482_v49 = vld [vmem:[%s21927_s22 + $0x3380] ss:$8 sps:$4 sm:$0xff]  }
 0x4ed   : > { %14218 = vmatpush1.bf16.msra.mxu1 %v20393_v33  ;;  %v20487_v33 = vld [vmem:[%s21927_s22 + $0x1394] ss:$8 sps:$4 sm:$0xff]  }
 0x4ee   : > { %15530 = vmatpush1.bf16.msra.mxu0 %v20396_v50  ;;  %14219 = vmatprep.subr.bf16.mxu1 %v20401_v52  ;;  %v20490_v50 = vld [vmem:[%s21927_s22 + $0x3394] ss:$8 sps:$4 sm:$0xff]   ;;  %v20485_v52 = vld [vmem:[%s21927_s22 + $0x1390] ss:$8 sps:$4 sm:$0xff]  }
 0x4ef   : > { %15531 = vmatprep.subr.bf16.mxu0 %v20404_v53  ;;  %v20488_v53 = vld [vmem:[%s21927_s22 + $0x3390] ss:$8 sps:$4 sm:$0xff]  }
 0x4f1   : > { %14220 = vmatpush1.bf16.msra.mxu1 %v20399_v0  ;;  %v20493_v0 = vld [vmem:[%s21927_s22 + $0x13a4] ss:$8 sps:$4 sm:$0xff]  }
 0x4f2   : > { %15532 = vmatpush1.bf16.msra.mxu0 %v20402_v1  ;;  %14221 = vmatprep.subr.bf16.mxu1 %v20407_v15  ;;  %v20496_v1 = vld [vmem:[%s21927_s22 + $0x33a4] ss:$8 sps:$4 sm:$0xff]   ;;  %v20491_v15 = vld [vmem:[%s21927_s22 + $0x13a0] ss:$8 sps:$4 sm:$0xff]  }
 0x4f3   : > { %15533 = vmatprep.subr.bf16.mxu0 %v20410_v43  ;;  %v20494_v43 = vld [vmem:[%s21927_s22 + $0x33a0] ss:$8 sps:$4 sm:$0xff]  }
 0x4f5   : > { %14222 = vmatpush1.bf16.msra.mxu1 %v20405_v56  ;;  %v20499_v56 = vld [vmem:[%s21927_s22 + $0x13b4] ss:$8 sps:$4 sm:$0xff]  }
 0x4f6   : > { %15534 = vmatpush1.bf16.msra.mxu0 %v20408_v46  ;;  %14223 = vmatprep.subr.bf16.mxu1 %v20413_v11  ;;  %v20502_v46 = vld [vmem:[%s21927_s22 + $0x33b4] ss:$8 sps:$4 sm:$0xff]   ;;  %v20497_v11 = vld [vmem:[%s21927_s22 + $0x13b0] ss:$8 sps:$4 sm:$0xff]  }
 0x4f7   : > { %15535 = vmatprep.subr.bf16.mxu0 %v20416_v31  ;;  %v20500_v31 = vld [vmem:[%s21927_s22 + $0x33b0] ss:$8 sps:$4 sm:$0xff]  }
 0x4f9   : > { %14224 = vmatpush1.bf16.msra.mxu1 %v20411_v18  ;;  %v20505_v18 = vld [vmem:[%s21927_s22 + $0x13c4] ss:$8 sps:$4 sm:$0xff]  }
 0x4fa   : > { %15536 = vmatpush1.bf16.msra.mxu0 %v20414_v55  ;;  %14225 = vmatprep.subr.bf16.mxu1 %v20419_v17  ;;  %v20508_v55 = vld [vmem:[%s21927_s22 + $0x33c4] ss:$8 sps:$4 sm:$0xff]   ;;  %v20503_v17 = vld [vmem:[%s21927_s22 + $0x13c0] ss:$8 sps:$4 sm:$0xff]  }
 0x4fb   : > { %15537 = vmatprep.subr.bf16.mxu0 %v20422_v57  ;;  %v20506_v57 = vld [vmem:[%s21927_s22 + $0x33c0] ss:$8 sps:$4 sm:$0xff]  }
 0x4fd   : > { %14226 = vmatpush1.bf16.msra.mxu1 %v20417_v34  ;;  %v20511_v34 = vld [vmem:[%s21927_s22 + $0x13d4] ss:$8 sps:$4 sm:$0xff]  }
 0x4fe   : > { %15538 = vmatpush1.bf16.msra.mxu0 %v20420_v4  ;;  %14227 = vmatprep.subr.bf16.mxu1 %v20425_v59  ;;  %v20514_v4 = vld [vmem:[%s21927_s22 + $0x33d4] ss:$8 sps:$4 sm:$0xff]   ;;  %v20509_v59 = vld [vmem:[%s21927_s22 + $0x13d0] ss:$8 sps:$4 sm:$0xff]  }
 0x4ff   : > { %15539 = vmatprep.subr.bf16.mxu0 %v20428_v5  ;;  %v20512_v5 = vld [vmem:[%s21927_s22 + $0x33d0] ss:$8 sps:$4 sm:$0xff]  }
 0x501   : > { %14228 = vmatpush1.bf16.msra.mxu1 %v20423_v6  ;;  %v20517_v6 = vld [vmem:[%s21927_s22 + $0x13e4] ss:$8 sps:$4 sm:$0xff]  }
 0x502   : > { %15540 = vmatpush1.bf16.msra.mxu0 %v20426_v7  ;;  %14238 = vmatprep.subr.bf16.mxu1 %v20432_v63  ;;  %v20520_v7 = vld [vmem:[%s21927_s22 + $0x33e4] ss:$8 sps:$4 sm:$0xff]  }
 0x503   : > { %15550 = vmatprep.subr.bf16.mxu0 %v20436_v9  ;;  %v23592_v63 = vld [vmem:[%s21940_s26 + $0x28] sm:$0xff] }
 0x504   : > { %14230 = vmatmul.mubr.bf16.vlgmr.msra.gmra.mrb[0].mxu1 %v23523_v12  ;;  %v23595_v9 = vld [vmem:[%s21940_s26 + $0x68] sm:$0xff] }
 0x505   : > { %15542 = vmatmul.mubr.bf16.vlgmr.msra.gmra.mrb[0].mxu0 %v23527_v13  ;;  %14239 = vmatpush1.bf16.msra.mxu1 %v20430_v20  ;;  %v20515_v20 = vld [vmem:[%s21927_s22 + $0x13e0] ss:$8 sps:$4 sm:$0xff]  }
 0x506   : > { %15551 = vmatpush1.bf16.msra.mxu0 %v20434_v21  ;;  %14240 = vmatprep.subr.bf16.mxu1 %v20439_v35  ;;  %v20518_v21 = vld [vmem:[%s21927_s22 + $0x33e0] ss:$8 sps:$4 sm:$0xff]   ;;  %v20523_v35 = vld [vmem:[%s21927_s22 + $0x13f4] ss:$8 sps:$4 sm:$0xff]  }
 0x507   : > { %15552 = vmatprep.subr.bf16.mxu0 %v20442_v22  ;;  %14270 = vmatprep.mubr.bf16.mxu1 %v2551_v61  ;;  %v20526_v22 = vld [vmem:[%s21927_s22 + $0x33f4] ss:$8 sps:$4 sm:$0xff]   ;;  %v23603_v61 = vrot.slane %v23592_v63, %v21993_v51 }
 0x508   : > { %15582 = vmatprep.mubr.bf16.mxu0 %v2943_v8  ;;  %v23607_v8 = vrot.slane %v23595_v9, %v21993_v51 }
 0x509   : > { %14241 = vmatpush1.bf16.msra.mxu1 %v20437_v2  ;;  %v20521_v2 = vld [vmem:[%s21927_s22 + $0x13f0] ss:$8 sps:$4 sm:$0xff]  }
 0x50a   : > { %15553 = vmatpush1.bf16.msra.mxu0 %v20440_v44  ;;  %14242 = vmatprep.subr.bf16.mxu1 %v20445_v42  ;;  %v20524_v44 = vld [vmem:[%s21927_s22 + $0x33f0] ss:$8 sps:$4 sm:$0xff]   ;;  %v20529_v42 = vld [vmem:[%s21927_s22 + $0x1404] ss:$8 sps:$4 sm:$0xff]  }
 0x50b   : > { %15554 = vmatprep.subr.bf16.mxu0 %v20448_v41  ;;  %v20532_v41 = vld [vmem:[%s21927_s22 + $0x3404] ss:$8 sps:$4 sm:$0xff]  }
 0x50d   : > { %14243 = vmatpush1.bf16.msra.mxu1 %v20443_v62  ;;  %v2567_v62 = vcombine.high %v23603_v61, %v23603_v61 }
 0x50e   : > { %15555 = vmatpush1.bf16.msra.mxu0 %v20446_v24  ;;  %14244 = vmatprep.subr.bf16.mxu1 %v20451_v3  ;;  %v2959_v24 = vcombine.high %v23607_v8, %v23607_v8  ;;  %v2549_v3 = vcombine.high %v23523_v12, %v23523_v12 }
 0x50f   : > { %15556 = vmatprep.subr.bf16.mxu0 %v20454_v25  ;;  %v2941_v25 = vcombine.high %v23527_v13, %v23527_v13  ;;  %v20533_v13 = vld [vmem:[%s21927_s22 + $0x1410] ss:$8 sps:$4 sm:$0xff]  }
 0x510   : > { %v23629_v12 = vrot.slane %v2959_v24, %v21993_v51  ;;  %v20608_v24 = vld [vmem:[%s21927_s22 + $0x34d0] ss:$8 sps:$4 sm:$0xff]  }
 0x511   : > { %14245 = vmatpush1.bf16.msra.mxu1 %v20449_v14  ;;  %v20527_v14 = vld [vmem:[%s21927_s22 + $0x1400] ss:$8 sps:$4 sm:$0xff]  }
 0x512   : > { %15557 = vmatpush1.bf16.msra.mxu0 %v20452_v54  ;;  %14246 = vmatprep.subr.bf16.mxu1 %v20457_v60  ;;  %v20530_v54 = vld [vmem:[%s21927_s22 + $0x3400] ss:$8 sps:$4 sm:$0xff]   ;;  %v20535_v60 = vld [vmem:[%s21927_s22 + $0x1414] ss:$8 sps:$4 sm:$0xff]  }
 0x513   : > { %15558 = vmatprep.subr.bf16.mxu0 %v20460_v58  ;;  %v20538_v58 = vld [vmem:[%s21927_s22 + $0x3414] ss:$8 sps:$4 sm:$0xff]  }
 0x515   : > { %14247 = vmatpush1.bf16.msra.mxu1 %v20455_v28  ;;  %v23626_v28 = vrot.slane %v2567_v62, %v21993_v51  ;;  %v20605_v62 = vld [vmem:[%s21927_s22 + $0x14d0] ss:$8 sps:$4 sm:$0xff]  }
 0x516   : > { %15559 = vmatpush1.bf16.msra.mxu0 %v20458_v29  ;;  %14248 = vmatprep.subr.bf16.mxu1 %v20463_v36  ;;  %v20536_v29 = vld [vmem:[%s21927_s22 + $0x3410] ss:$8 sps:$4 sm:$0xff]   ;;  %v20541_v36 = vld [vmem:[%s21927_s22 + $0x1424] ss:$8 sps:$4 sm:$0xff]  }
 0x517   : > { %15560 = vmatprep.subr.bf16.mxu0 %v20466_v37  ;;  %v20544_v37 = vld [vmem:[%s21927_s22 + $0x3424] ss:$8 sps:$4 sm:$0xff]  }
 0x519   : > { %14249 = vmatpush1.bf16.msra.mxu1 %v20461_v19  ;;  %v20539_v19 = vld [vmem:[%s21927_s22 + $0x1420] ss:$8 sps:$4 sm:$0xff]  }
 0x51a   : > { %15561 = vmatpush1.bf16.msra.mxu0 %v20464_v39  ;;  %14250 = vmatprep.subr.bf16.mxu1 %v20469_v23  ;;  %v20542_v39 = vld [vmem:[%s21927_s22 + $0x3420] ss:$8 sps:$4 sm:$0xff]   ;;  %v20547_v23 = vld [vmem:[%s21927_s22 + $0x1434] ss:$8 sps:$4 sm:$0xff]  }
 0x51b   : > { %15562 = vmatprep.subr.bf16.mxu0 %v20472_v45  ;;  %v20550_v45 = vld [vmem:[%s21927_s22 + $0x3434] ss:$8 sps:$4 sm:$0xff]  }
 0x51d   : > { %14251 = vmatpush1.bf16.msra.mxu1 %v20467_v30  ;;  %v20545_v30 = vld [vmem:[%s21927_s22 + $0x1430] ss:$8 sps:$4 sm:$0xff]  }
 0x51e   : > { %15563 = vmatpush1.bf16.msra.mxu0 %v20470_v32  ;;  %14252 = vmatprep.subr.bf16.mxu1 %v20475_v10  ;;  %v20548_v32 = vld [vmem:[%s21927_s22 + $0x3430] ss:$8 sps:$4 sm:$0xff]   ;;  %v20553_v10 = vld [vmem:[%s21927_s22 + $0x1444] ss:$8 sps:$4 sm:$0xff]  }
 0x51f   : > { %15564 = vmatprep.subr.bf16.mxu0 %v20478_v26  ;;  %v20556_v26 = vld [vmem:[%s21927_s22 + $0x3444] ss:$8 sps:$4 sm:$0xff]  }
 0x521   : > { %14253 = vmatpush1.bf16.msra.mxu1 %v20473_v16  ;;  %v20551_v16 = vld [vmem:[%s21927_s22 + $0x1440] ss:$8 sps:$4 sm:$0xff]  }
 0x522   : > { %15565 = vmatpush1.bf16.msra.mxu0 %v20476_v47  ;;  %14254 = vmatprep.subr.bf16.mxu1 %v20481_v27  ;;  %v20554_v47 = vld [vmem:[%s21927_s22 + $0x3440] ss:$8 sps:$4 sm:$0xff]   ;;  %v20559_v27 = vld [vmem:[%s21927_s22 + $0x1454] ss:$8 sps:$4 sm:$0xff]  }
 0x523   : > { %15566 = vmatprep.subr.bf16.mxu0 %v20484_v48  ;;  %v20562_v48 = vld [vmem:[%s21927_s22 + $0x3454] ss:$8 sps:$4 sm:$0xff]  }
 0x525   : > { %14255 = vmatpush1.bf16.msra.mxu1 %v20479_v38  ;;  %v20557_v38 = vld [vmem:[%s21927_s22 + $0x1450] ss:$8 sps:$4 sm:$0xff]  }
 0x526   : > { %15567 = vmatpush1.bf16.msra.mxu0 %v20482_v49  ;;  %14256 = vmatprep.subr.bf16.mxu1 %v20487_v33  ;;  %v20560_v49 = vld [vmem:[%s21927_s22 + $0x3450] ss:$8 sps:$4 sm:$0xff]   ;;  %v20565_v33 = vld [vmem:[%s21927_s22 + $0x1464] ss:$8 sps:$4 sm:$0xff]  }
 0x527   : > { %15568 = vmatprep.subr.bf16.mxu0 %v20490_v50  ;;  %v20568_v50 = vld [vmem:[%s21927_s22 + $0x3464] ss:$8 sps:$4 sm:$0xff]  }
 0x529   : > { %14257 = vmatpush1.bf16.msra.mxu1 %v20485_v52  ;;  %v20563_v52 = vld [vmem:[%s21927_s22 + $0x1460] ss:$8 sps:$4 sm:$0xff]  }
 0x52a   : > { %15569 = vmatpush1.bf16.msra.mxu0 %v20488_v53  ;;  %14258 = vmatprep.subr.bf16.mxu1 %v20493_v0  ;;  %v20566_v53 = vld [vmem:[%s21927_s22 + $0x3460] ss:$8 sps:$4 sm:$0xff]   ;;  %v20571_v0 = vld [vmem:[%s21927_s22 + $0x1474] ss:$8 sps:$4 sm:$0xff]  }
 0x52b   : > { %15570 = vmatprep.subr.bf16.mxu0 %v20496_v1  ;;  %v20574_v1 = vld [vmem:[%s21927_s22 + $0x3474] ss:$8 sps:$4 sm:$0xff]  }
 0x52d   : > { %14259 = vmatpush1.bf16.msra.mxu1 %v20491_v15  ;;  %v20569_v15 = vld [vmem:[%s21927_s22 + $0x1470] ss:$8 sps:$4 sm:$0xff]  }
 0x52e   : > { %15571 = vmatpush1.bf16.msra.mxu0 %v20494_v43  ;;  %14260 = vmatprep.subr.bf16.mxu1 %v20499_v56  ;;  %v20572_v43 = vld [vmem:[%s21927_s22 + $0x3470] ss:$8 sps:$4 sm:$0xff]   ;;  %v20577_v56 = vld [vmem:[%s21927_s22 + $0x1484] ss:$8 sps:$4 sm:$0xff]  }
 0x52f   : > { %15572 = vmatprep.subr.bf16.mxu0 %v20502_v46  ;;  %v20580_v46 = vld [vmem:[%s21927_s22 + $0x3484] ss:$8 sps:$4 sm:$0xff]  }
 0x531   : > { %14261 = vmatpush1.bf16.msra.mxu1 %v20497_v11  ;;  %v20575_v11 = vld [vmem:[%s21927_s22 + $0x1480] ss:$8 sps:$4 sm:$0xff]  }
 0x532   : > { %15573 = vmatpush1.bf16.msra.mxu0 %v20500_v31  ;;  %14262 = vmatprep.subr.bf16.mxu1 %v20505_v18  ;;  %v20578_v31 = vld [vmem:[%s21927_s22 + $0x3480] ss:$8 sps:$4 sm:$0xff]   ;;  %v20583_v18 = vld [vmem:[%s21927_s22 + $0x1494] ss:$8 sps:$4 sm:$0xff]  }
 0x533   : > { %15574 = vmatprep.subr.bf16.mxu0 %v20508_v55  ;;  %v20586_v55 = vld [vmem:[%s21927_s22 + $0x3494] ss:$8 sps:$4 sm:$0xff]  }
 0x535   : > { %14263 = vmatpush1.bf16.msra.mxu1 %v20503_v17  ;;  %v20581_v17 = vld [vmem:[%s21927_s22 + $0x1490] ss:$8 sps:$4 sm:$0xff]  }
 0x536   : > { %15575 = vmatpush1.bf16.msra.mxu0 %v20506_v57  ;;  %14264 = vmatprep.subr.bf16.mxu1 %v20511_v34  ;;  %v20584_v57 = vld [vmem:[%s21927_s22 + $0x3490] ss:$8 sps:$4 sm:$0xff]   ;;  %v20589_v34 = vld [vmem:[%s21927_s22 + $0x14a4] ss:$8 sps:$4 sm:$0xff]  }
 0x537   : > { %15576 = vmatprep.subr.bf16.mxu0 %v20514_v4  ;;  %v20592_v4 = vld [vmem:[%s21927_s22 + $0x34a4] ss:$8 sps:$4 sm:$0xff]  }
 0x539   : > { %14265 = vmatpush1.bf16.msra.mxu1 %v20509_v59  ;;  %v20587_v59 = vld [vmem:[%s21927_s22 + $0x14a0] ss:$8 sps:$4 sm:$0xff]  }
 0x53a   : > { %15577 = vmatpush1.bf16.msra.mxu0 %v20512_v5  ;;  %14266 = vmatprep.subr.bf16.mxu1 %v20517_v6  ;;  %v20590_v5 = vld [vmem:[%s21927_s22 + $0x34a0] ss:$8 sps:$4 sm:$0xff]   ;;  %v20595_v6 = vld [vmem:[%s21927_s22 + $0x14b4] ss:$8 sps:$4 sm:$0xff]  }
 0x53b   : > { %15578 = vmatprep.subr.bf16.mxu0 %v20520_v7  ;;  %v20598_v7 = vld [vmem:[%s21927_s22 + $0x34b4] ss:$8 sps:$4 sm:$0xff]  }
 0x53d   : > { %14267 = vmatpush1.bf16.msra.mxu1 %v20515_v20  ;;  %v20593_v20 = vld [vmem:[%s21927_s22 + $0x14b0] ss:$8 sps:$4 sm:$0xff]  }
 0x53e   : > { %15579 = vmatpush1.bf16.msra.mxu0 %v20518_v21  ;;  %14268 = vmatprep.subr.bf16.mxu1 %v20523_v35  ;;  %v20596_v21 = vld [vmem:[%s21927_s22 + $0x34b0] ss:$8 sps:$4 sm:$0xff]   ;;  %v20601_v35 = vld [vmem:[%s21927_s22 + $0x14c4] ss:$8 sps:$4 sm:$0xff]  }
 0x53f   : > { %15580 = vmatprep.subr.bf16.mxu0 %v20526_v22  ;;  %v20604_v22 = vld [vmem:[%s21927_s22 + $0x34c4] ss:$8 sps:$4 sm:$0xff]  }
 0x541   : > { %14269 = vmatpush1.bf16.msra.mxu1 %v20521_v2  ;;  %v20599_v2 = vld [vmem:[%s21927_s22 + $0x14c0] ss:$8 sps:$4 sm:$0xff]  }
 0x542   : > { %15581 = vmatpush1.bf16.msra.mxu0 %v20524_v44  ;;  %14279 = vmatprep.subr.bf16.mxu1 %v20529_v42  ;;  %v20602_v44 = vld [vmem:[%s21927_s22 + $0x34c0] ss:$8 sps:$4 sm:$0xff]   ;;  %v20607_v42 = vld [vmem:[%s21927_s22 + $0x14d4] ss:$8 sps:$4 sm:$0xff]  }
 0x543   : > { %15591 = vmatprep.subr.bf16.mxu0 %v20532_v41  ;;  %v20610_v41 = vld [vmem:[%s21927_s22 + $0x34d4] ss:$8 sps:$4 sm:$0xff]  }
 0x544   : > { %14271 = vmatmul.mubr.bf16.vlgmr.msra.gmra.mrb[0].mxu1 %v2549_v3  ;;  %v20613_v3 = vld [vmem:[%s21927_s22 + $0x14e4] ss:$8 sps:$4 sm:$0xff]  }
 0x545   : > { %15583 = vmatmul.mubr.bf16.vlgmr.msra.gmra.mrb[0].mxu0 %v2941_v25  ;;  %14280 = vmatpush1.bf16.msra.mxu1 %v20527_v14  ;;  %v20616_v25 = vld [vmem:[%s21927_s22 + $0x34e4] ss:$8 sps:$4 sm:$0xff]   ;;  %v20611_v14 = vld [vmem:[%s21927_s22 + $0x14e0] ss:$8 sps:$4 sm:$0xff]  }
 0x546   : > { %15592 = vmatpush1.bf16.msra.mxu0 %v20530_v54  ;;  %14281 = vmatprep.subr.bf16.mxu1 %v20535_v60  ;;  %v20614_v54 = vld [vmem:[%s21927_s22 + $0x34e0] ss:$8 sps:$4 sm:$0xff]   ;;  %v20619_v60 = vld [vmem:[%s21927_s22 + $0x14f4] ss:$8 sps:$4 sm:$0xff]  }
 0x547   : > { %15593 = vmatprep.subr.bf16.mxu0 %v20538_v58  ;;  %14311 = vmatprep.mubr.bf16.mxu1 %v23626_v28  ;;  %v20622_v58 = vld [vmem:[%s21927_s22 + $0x34f4] ss:$8 sps:$4 sm:$0xff]  }
 0x548   : > { %15623 = vmatprep.mubr.bf16.mxu0 %v23629_v12 }
 0x549   : > { %14282 = vmatpush1.bf16.msra.mxu1 %v20533_v13  ;;  %v20617_v13 = vld [vmem:[%s21927_s22 + $0x14f0] ss:$8 sps:$4 sm:$0xff]  }
 0x54a   : > { %15594 = vmatpush1.bf16.msra.mxu0 %v20536_v29  ;;  %14283 = vmatprep.subr.bf16.mxu1 %v20541_v36  ;;  %v20620_v29 = vld [vmem:[%s21927_s22 + $0x34f0] ss:$8 sps:$4 sm:$0xff]   ;;  %v20625_v36 = vld [vmem:[%s21927_s22 + $0x1504] ss:$8 sps:$4 sm:$0xff]  }
 0x54b   : > { %15595 = vmatprep.subr.bf16.mxu0 %v20544_v37  ;;  %v20628_v37 = vld [vmem:[%s21927_s22 + $0x3504] ss:$8 sps:$4 sm:$0xff]  }
 0x54d   : > { %14284 = vmatpush1.bf16.msra.mxu1 %v20539_v19  ;;  %v23695_v19 = vrot.slane %v23603_v61, %v21993_v51  ;;  %v2599_v61 = vcombine.high %v23626_v28, %v23626_v28  ;;  %v20637_v28 = vld [vmem:[%s21927_s22 + $0x1524] ss:$8 sps:$4 sm:$0xff]  }
 0x54e   : > { %15596 = vmatpush1.bf16.msra.mxu0 %v20542_v39  ;;  %14285 = vmatprep.subr.bf16.mxu1 %v20547_v23  ;;  %v23699_v39 = vrot.slane %v23607_v8, %v21993_v51  ;;  %v20623_v23 = vld [vmem:[%s21927_s22 + $0x1500] ss:$8 sps:$4 sm:$0xff]   ;;  %v20629_v8 = vld [vmem:[%s21927_s22 + $0x1510] ss:$8 sps:$4 sm:$0xff]  }
 0x54f   : > { %15597 = vmatprep.subr.bf16.mxu0 %v20550_v45  ;;  %v20626_v45 = vld [vmem:[%s21927_s22 + $0x3500] ss:$8 sps:$4 sm:$0xff]  }
 0x551   : > { %14286 = vmatpush1.bf16.msra.mxu1 %v20545_v30  ;;  %v20631_v30 = vld [vmem:[%s21927_s22 + $0x1514] ss:$8 sps:$4 sm:$0xff]  }
 0x552   : > { %15598 = vmatpush1.bf16.msra.mxu0 %v20548_v32  ;;  %14287 = vmatprep.subr.bf16.mxu1 %v20553_v10  ;;  %v20634_v32 = vld [vmem:[%s21927_s22 + $0x3514] ss:$8 sps:$4 sm:$0xff]   ;;  %v2991_v10 = vcombine.high %v23629_v12, %v23629_v12  ;;  %v20635_v12 = vld [vmem:[%s21927_s22 + $0x1520] ss:$8 sps:$4 sm:$0xff]  }
 0x553   : > { %15599 = vmatprep.subr.bf16.mxu0 %v20556_v26  ;;  %v20632_v26 = vld [vmem:[%s21927_s22 + $0x3510] ss:$8 sps:$4 sm:$0xff]  }
 0x555   : > { %14288 = vmatpush1.bf16.msra.mxu1 %v20551_v16  ;;  %v20640_v16 = vld [vmem:[%s21927_s22 + $0x3524] ss:$8 sps:$4 sm:$0xff]  }
 0x556   : > { %15600 = vmatpush1.bf16.msra.mxu0 %v20554_v47  ;;  %14289 = vmatprep.subr.bf16.mxu1 %v20559_v27  ;;  %v20638_v47 = vld [vmem:[%s21927_s22 + $0x3520] ss:$8 sps:$4 sm:$0xff]   ;;  %v20643_v27 = vld [vmem:[%s21927_s22 + $0x1534] ss:$8 sps:$4 sm:$0xff]  }
 0x557   : > { %15601 = vmatprep.subr.bf16.mxu0 %v20562_v48  ;;  %v20646_v48 = vld [vmem:[%s21927_s22 + $0x3534] ss:$8 sps:$4 sm:$0xff]  }
 0x559   : > { %14290 = vmatpush1.bf16.msra.mxu1 %v20557_v38  ;;  %v20641_v38 = vld [vmem:[%s21927_s22 + $0x1530] ss:$8 sps:$4 sm:$0xff]  }
 0x55a   : > { %15602 = vmatpush1.bf16.msra.mxu0 %v20560_v49  ;;  %14291 = vmatprep.subr.bf16.mxu1 %v20565_v33  ;;  %v20644_v49 = vld [vmem:[%s21927_s22 + $0x3530] ss:$8 sps:$4 sm:$0xff]   ;;  %v20649_v33 = vld [vmem:[%s21927_s22 + $0x1544] ss:$8 sps:$4 sm:$0xff]  }
 0x55b   : > { %15603 = vmatprep.subr.bf16.mxu0 %v20568_v50  ;;  %v20652_v50 = vld [vmem:[%s21927_s22 + $0x3544] ss:$8 sps:$4 sm:$0xff]  }
 0x55d   : > { %14292 = vmatpush1.bf16.msra.mxu1 %v20563_v52  ;;  %v20647_v52 = vld [vmem:[%s21927_s22 + $0x1540] ss:$8 sps:$4 sm:$0xff]  }
 0x55e   : > { %15604 = vmatpush1.bf16.msra.mxu0 %v20566_v53  ;;  %14293 = vmatprep.subr.bf16.mxu1 %v20571_v0  ;;  %v20650_v53 = vld [vmem:[%s21927_s22 + $0x3540] ss:$8 sps:$4 sm:$0xff]   ;;  %v20655_v0 = vld [vmem:[%s21927_s22 + $0x1554] ss:$8 sps:$4 sm:$0xff]  }
 0x55f   : > { %15605 = vmatprep.subr.bf16.mxu0 %v20574_v1  ;;  %v20658_v1 = vld [vmem:[%s21927_s22 + $0x3554] ss:$8 sps:$4 sm:$0xff]  }
 0x561   : > { %14294 = vmatpush1.bf16.msra.mxu1 %v20569_v15  ;;  %v20653_v15 = vld [vmem:[%s21927_s22 + $0x1550] ss:$8 sps:$4 sm:$0xff]  }
 0x562   : > { %15606 = vmatpush1.bf16.msra.mxu0 %v20572_v43  ;;  %14295 = vmatprep.subr.bf16.mxu1 %v20577_v56  ;;  %v20656_v43 = vld [vmem:[%s21927_s22 + $0x3550] ss:$8 sps:$4 sm:$0xff]   ;;  %v20661_v56 = vld [vmem:[%s21927_s22 + $0x1564] ss:$8 sps:$4 sm:$0xff]  }
 0x563   : > { %15607 = vmatprep.subr.bf16.mxu0 %v20580_v46  ;;  %v20664_v46 = vld [vmem:[%s21927_s22 + $0x3564] ss:$8 sps:$4 sm:$0xff]  }
 0x565   : > { %14296 = vmatpush1.bf16.msra.mxu1 %v20575_v11  ;;  %v20659_v11 = vld [vmem:[%s21927_s22 + $0x1560] ss:$8 sps:$4 sm:$0xff]  }
 0x566   : > { %15608 = vmatpush1.bf16.msra.mxu0 %v20578_v31  ;;  %14297 = vmatprep.subr.bf16.mxu1 %v20583_v18  ;;  %v20662_v31 = vld [vmem:[%s21927_s22 + $0x3560] ss:$8 sps:$4 sm:$0xff]   ;;  %v20667_v18 = vld [vmem:[%s21927_s22 + $0x1574] ss:$8 sps:$4 sm:$0xff]  }
 0x567   : > { %15609 = vmatprep.subr.bf16.mxu0 %v20586_v55  ;;  %v20670_v55 = vld [vmem:[%s21927_s22 + $0x3574] ss:$8 sps:$4 sm:$0xff]  }
 0x569   : > { %14298 = vmatpush1.bf16.msra.mxu1 %v20581_v17  ;;  %v20665_v17 = vld [vmem:[%s21927_s22 + $0x1570] ss:$8 sps:$4 sm:$0xff]  }
 0x56a   : > { %15610 = vmatpush1.bf16.msra.mxu0 %v20584_v57  ;;  %14299 = vmatprep.subr.bf16.mxu1 %v20589_v34  ;;  %v20668_v57 = vld [vmem:[%s21927_s22 + $0x3570] ss:$8 sps:$4 sm:$0xff]   ;;  %v20673_v34 = vld [vmem:[%s21927_s22 + $0x1584] ss:$8 sps:$4 sm:$0xff]  }
 0x56b   : > { %15611 = vmatprep.subr.bf16.mxu0 %v20592_v4  ;;  %v20676_v4 = vld [vmem:[%s21927_s22 + $0x3584] ss:$8 sps:$4 sm:$0xff]  }
 0x56d   : > { %14300 = vmatpush1.bf16.msra.mxu1 %v20587_v59  ;;  %v20671_v59 = vld [vmem:[%s21927_s22 + $0x1580] ss:$8 sps:$4 sm:$0xff]  }
 0x56e   : > { %15612 = vmatpush1.bf16.msra.mxu0 %v20590_v5  ;;  %14301 = vmatprep.subr.bf16.mxu1 %v20595_v6  ;;  %v20674_v5 = vld [vmem:[%s21927_s22 + $0x3580] ss:$8 sps:$4 sm:$0xff]   ;;  %v20679_v6 = vld [vmem:[%s21927_s22 + $0x1594] ss:$8 sps:$4 sm:$0xff]  }
 0x56f   : > { %15613 = vmatprep.subr.bf16.mxu0 %v20598_v7  ;;  %v20682_v7 = vld [vmem:[%s21927_s22 + $0x3594] ss:$8 sps:$4 sm:$0xff]  }
 0x571   : > { %14302 = vmatpush1.bf16.msra.mxu1 %v20593_v20  ;;  %v20677_v20 = vld [vmem:[%s21927_s22 + $0x1590] ss:$8 sps:$4 sm:$0xff]  }
 0x572   : > { %15614 = vmatpush1.bf16.msra.mxu0 %v20596_v21  ;;  %14303 = vmatprep.subr.bf16.mxu1 %v20601_v35  ;;  %v20680_v21 = vld [vmem:[%s21927_s22 + $0x3590] ss:$8 sps:$4 sm:$0xff]   ;;  %v20685_v35 = vld [vmem:[%s21927_s22 + $0x15a4] ss:$8 sps:$4 sm:$0xff]  }
 0x573   : > { %15615 = vmatprep.subr.bf16.mxu0 %v20604_v22  ;;  %v20688_v22 = vld [vmem:[%s21927_s22 + $0x35a4] ss:$8 sps:$4 sm:$0xff]  }
 0x575   : > { %14304 = vmatpush1.bf16.msra.mxu1 %v20599_v2  ;;  %v20683_v2 = vld [vmem:[%s21927_s22 + $0x15a0] ss:$8 sps:$4 sm:$0xff]  }
 0x576   : > { %15616 = vmatpush1.bf16.msra.mxu0 %v20602_v44  ;;  %14305 = vmatprep.subr.bf16.mxu1 %v20607_v42  ;;  %v20686_v44 = vld [vmem:[%s21927_s22 + $0x35a0] ss:$8 sps:$4 sm:$0xff]   ;;  %v20691_v42 = vld [vmem:[%s21927_s22 + $0x15b4] ss:$8 sps:$4 sm:$0xff]  }
 0x577   : > { %15617 = vmatprep.subr.bf16.mxu0 %v20610_v41  ;;  %v20694_v41 = vld [vmem:[%s21927_s22 + $0x35b4] ss:$8 sps:$4 sm:$0xff]  }
 0x579   : > { %14306 = vmatpush1.bf16.msra.mxu1 %v20605_v62  ;;  %v20689_v62 = vld [vmem:[%s21927_s22 + $0x15b0] ss:$8 sps:$4 sm:$0xff]  }
 0x57a   : > { %15618 = vmatpush1.bf16.msra.mxu0 %v20608_v24  ;;  %14307 = vmatprep.subr.bf16.mxu1 %v20613_v3  ;;  %v20692_v24 = vld [vmem:[%s21927_s22 + $0x35b0] ss:$8 sps:$4 sm:$0xff]   ;;  %v20697_v3 = vld [vmem:[%s21927_s22 + $0x15c4] ss:$8 sps:$4 sm:$0xff]  }
 0x57b   : > { %15619 = vmatprep.subr.bf16.mxu0 %v20616_v25  ;;  %v20700_v25 = vld [vmem:[%s21927_s22 + $0x35c4] ss:$8 sps:$4 sm:$0xff]  }
 0x57d   : > { %14308 = vmatpush1.bf16.msra.mxu1 %v20611_v14  ;;  %v20695_v14 = vld [vmem:[%s21927_s22 + $0x15c0] ss:$8 sps:$4 sm:$0xff]  }
 0x57e   : > { %15620 = vmatpush1.bf16.msra.mxu0 %v20614_v54  ;;  %14309 = vmatprep.subr.bf16.mxu1 %v20619_v60  ;;  %v20698_v54 = vld [vmem:[%s21927_s22 + $0x35c0] ss:$8 sps:$4 sm:$0xff]   ;;  %v20703_v60 = vld [vmem:[%s21927_s22 + $0x15d4] ss:$8 sps:$4 sm:$0xff]  }
 0x57f   : > { %15621 = vmatprep.subr.bf16.mxu0 %v20622_v58  ;;  %v20706_v58 = vld [vmem:[%s21927_s22 + $0x35d4] ss:$8 sps:$4 sm:$0xff]  }
 0x581   : > { %14310 = vmatpush1.bf16.msra.mxu1 %v20617_v13  ;;  %v20701_v13 = vld [vmem:[%s21927_s22 + $0x15d0] ss:$8 sps:$4 sm:$0xff]  }
 0x582   : > { %15622 = vmatpush1.bf16.msra.mxu0 %v20620_v29  ;;  %14320 = vmatprep.subr.bf16.mxu1 %v20625_v36  ;;  %v20704_v29 = vld [vmem:[%s21927_s22 + $0x35d0] ss:$8 sps:$4 sm:$0xff]   ;;  %v20709_v36 = vld [vmem:[%s21927_s22 + $0x15e4] ss:$8 sps:$4 sm:$0xff]  }
 0x583   : > { %15632 = vmatprep.subr.bf16.mxu0 %v20628_v37  ;;  %v20712_v37 = vld [vmem:[%s21927_s22 + $0x35e4] ss:$8 sps:$4 sm:$0xff]  }
 0x584   : > { %14312 = vmatmul.mubr.bf16.vlgmr.msra.gmra.mrb[0].mxu1 %v23695_v19 }
 0x585   : > { %15624 = vmatmul.mubr.bf16.vlgmr.msra.gmra.mrb[0].mxu0 %v23699_v39  ;;  %14321 = vmatpush1.bf16.msra.mxu1 %v20623_v23  ;;  %v2552_v23 = vcombine.high %v23592_v63, %v23592_v63  ;;  %v20713_v63 = vld [vmem:[%s21927_s22 + $0x15f0] ss:$8 sps:$4 sm:$0xff]  }
 0x586   : > { %15633 = vmatpush1.bf16.msra.mxu0 %v20626_v45  ;;  %14322 = vmatprep.subr.bf16.mxu1 %v20631_v30  ;;  %v2944_v45 = vcombine.high %v23595_v9, %v23595_v9  ;;  %v20707_v30 = vld [vmem:[%s21927_s22 + $0x15e0] ss:$8 sps:$4 sm:$0xff]   ;;  %v20716_v9 = vld [vmem:[%s21927_s22 + $0x35f0] ss:$8 sps:$4 sm:$0xff]  }
 0x587   : > { %15634 = vmatprep.subr.bf16.mxu0 %v20634_v32  ;;  %14352 = vmatprep.mubr.bf16.mxu1 %v2599_v61  ;;  %v20710_v32 = vld [vmem:[%s21927_s22 + $0x35e0] ss:$8 sps:$4 sm:$0xff]   ;;  %v20715_v61 = vld [vmem:[%s21927_s22 + $0x15f4] ss:$8 sps:$4 sm:$0xff]  }
 0x588   : > { %15664 = vmatprep.mubr.bf16.mxu0 %v2991_v10  ;;  %v20718_v10 = vld [vmem:[%s21927_s22 + $0x35f4] ss:$8 sps:$4 sm:$0xff]  }
 0x589   : > { %14323 = vmatpush1.bf16.msra.mxu1 %v20629_v8  ;;  %v23772_v8 = vrot.slane %v2552_v23, %v21993_v51  ;;  %v20785_v23 = vld [vmem:[%s21927_s22 + $0x16b0] ss:$8 sps:$4 sm:$0xff]  }
 0x58a   : > { %15635 = vmatpush1.bf16.msra.mxu0 %v20632_v26  ;;  %14324 = vmatprep.subr.bf16.mxu1 %v20637_v28  ;;  %v23775_v26 = vrot.slane %v2944_v45, %v21993_v51  ;;  %v20721_v28 = vld [vmem:[%s21927_s22 + $0x1604] ss:$8 sps:$4 sm:$0xff]   ;;  %v20788_v45 = vld [vmem:[%s21927_s22 + $0x36b0] ss:$8 sps:$4 sm:$0xff]  }
 0x58b   : > { %15636 = vmatprep.subr.bf16.mxu0 %v20640_v16  ;;  %v20724_v16 = vld [vmem:[%s21927_s22 + $0x3604] ss:$8 sps:$4 sm:$0xff]  }
 0x58d   : > { %14325 = vmatpush1.bf16.msra.mxu1 %v20635_v12  ;;  %v2568_v12 = vcombine.high %v23772_v8, %v23772_v8 }
 0x58e   : > { %15637 = vmatpush1.bf16.msra.mxu0 %v20638_v47  ;;  %14326 = vmatprep.subr.bf16.mxu1 %v20643_v27  ;;  %v2960_v47 = vcombine.high %v23775_v26, %v23775_v26  ;;  %v2597_v27 = vcombine.high %v23695_v19, %v23695_v19 }
 0x58f   : > { %15638 = vmatprep.subr.bf16.mxu0 %v20646_v48  ;;  %v2989_v48 = vcombine.high %v23699_v39, %v23699_v39  ;;  %v20725_v39 = vld [vmem:[%s21927_s22 + $0x1610] ss:$8 sps:$4 sm:$0xff]  }
 0x590   : > { %v23797_v19 = vrot.slane %v2960_v47, %v21993_v51  ;;  %v20808_v47 = vld [vmem:[%s21927_s22 + $0x36e4] ss:$8 sps:$4 sm:$0xff]  }
 0x591   : > { %14327 = vmatpush1.bf16.msra.mxu1 %v20641_v38  ;;  %v20719_v38 = vld [vmem:[%s21927_s22 + $0x1600] ss:$8 sps:$4 sm:$0xff]  }
 0x592   : > { %15639 = vmatpush1.bf16.msra.mxu0 %v20644_v49  ;;  %14328 = vmatprep.subr.bf16.mxu1 %v20649_v33  ;;  %v20722_v49 = vld [vmem:[%s21927_s22 + $0x3600] ss:$8 sps:$4 sm:$0xff]   ;;  %v20727_v33 = vld [vmem:[%s21927_s22 + $0x1614] ss:$8 sps:$4 sm:$0xff]  }
 0x593   : > { %15640 = vmatprep.subr.bf16.mxu0 %v20652_v50  ;;  %v20730_v50 = vld [vmem:[%s21927_s22 + $0x3614] ss:$8 sps:$4 sm:$0xff]  }
 0x595   : > { %14329 = vmatpush1.bf16.msra.mxu1 %v20647_v52  ;;  %v23794_v52 = vrot.slane %v2568_v12, %v21993_v51  ;;  %v20805_v12 = vld [vmem:[%s21927_s22 + $0x16e4] ss:$8 sps:$4 sm:$0xff]  }
 0x596   : > { %15641 = vmatpush1.bf16.msra.mxu0 %v20650_v53  ;;  %14330 = vmatprep.subr.bf16.mxu1 %v20655_v0  ;;  %v20728_v53 = vld [vmem:[%s21927_s22 + $0x3610] ss:$8 sps:$4 sm:$0xff]   ;;  %v20733_v0 = vld [vmem:[%s21927_s22 + $0x1624] ss:$8 sps:$4 sm:$0xff]  }
 0x597   : > { %15642 = vmatprep.subr.bf16.mxu0 %v20658_v1  ;;  %v20736_v1 = vld [vmem:[%s21927_s22 + $0x3624] ss:$8 sps:$4 sm:$0xff]  }
 0x599   : > { %14331 = vmatpush1.bf16.msra.mxu1 %v20653_v15  ;;  %v20731_v15 = vld [vmem:[%s21927_s22 + $0x1620] ss:$8 sps:$4 sm:$0xff]  }
 0x59a   : > { %15643 = vmatpush1.bf16.msra.mxu0 %v20656_v43  ;;  %14332 = vmatprep.subr.bf16.mxu1 %v20661_v56  ;;  %v20734_v43 = vld [vmem:[%s21927_s22 + $0x3620] ss:$8 sps:$4 sm:$0xff]   ;;  %v20739_v56 = vld [vmem:[%s21927_s22 + $0x1634] ss:$8 sps:$4 sm:$0xff]  }
 0x59b   : > { %15644 = vmatprep.subr.bf16.mxu0 %v20664_v46  ;;  %v20742_v46 = vld [vmem:[%s21927_s22 + $0x3634] ss:$8 sps:$4 sm:$0xff]  }
 0x59d   : > { %14333 = vmatpush1.bf16.msra.mxu1 %v20659_v11  ;;  %v20737_v11 = vld [vmem:[%s21927_s22 + $0x1630] ss:$8 sps:$4 sm:$0xff]  }
 0x59e   : > { %15645 = vmatpush1.bf16.msra.mxu0 %v20662_v31  ;;  %14334 = vmatprep.subr.bf16.mxu1 %v20667_v18  ;;  %v20740_v31 = vld [vmem:[%s21927_s22 + $0x3630] ss:$8 sps:$4 sm:$0xff]   ;;  %v20745_v18 = vld [vmem:[%s21927_s22 + $0x1644] ss:$8 sps:$4 sm:$0xff]  }
 0x59f   : > { %15646 = vmatprep.subr.bf16.mxu0 %v20670_v55  ;;  %v20748_v55 = vld [vmem:[%s21927_s22 + $0x3644] ss:$8 sps:$4 sm:$0xff]  }
 0x5a1   : > { %14335 = vmatpush1.bf16.msra.mxu1 %v20665_v17  ;;  %v20743_v17 = vld [vmem:[%s21927_s22 + $0x1640] ss:$8 sps:$4 sm:$0xff]  }
 0x5a2   : > { %15647 = vmatpush1.bf16.msra.mxu0 %v20668_v57  ;;  %14336 = vmatprep.subr.bf16.mxu1 %v20673_v34  ;;  %v20746_v57 = vld [vmem:[%s21927_s22 + $0x3640] ss:$8 sps:$4 sm:$0xff]   ;;  %v20751_v34 = vld [vmem:[%s21927_s22 + $0x1654] ss:$8 sps:$4 sm:$0xff]  }
 0x5a3   : > { %15648 = vmatprep.subr.bf16.mxu0 %v20676_v4  ;;  %v20754_v4 = vld [vmem:[%s21927_s22 + $0x3654] ss:$8 sps:$4 sm:$0xff]  }
 0x5a5   : > { %14337 = vmatpush1.bf16.msra.mxu1 %v20671_v59  ;;  %v20749_v59 = vld [vmem:[%s21927_s22 + $0x1650] ss:$8 sps:$4 sm:$0xff]  }
 0x5a6   : > { %15649 = vmatpush1.bf16.msra.mxu0 %v20674_v5  ;;  %14338 = vmatprep.subr.bf16.mxu1 %v20679_v6  ;;  %v20752_v5 = vld [vmem:[%s21927_s22 + $0x3650] ss:$8 sps:$4 sm:$0xff]   ;;  %v20757_v6 = vld [vmem:[%s21927_s22 + $0x1664] ss:$8 sps:$4 sm:$0xff]  }
 0x5a7   : > { %15650 = vmatprep.subr.bf16.mxu0 %v20682_v7  ;;  %v20760_v7 = vld [vmem:[%s21927_s22 + $0x3664] ss:$8 sps:$4 sm:$0xff]  }
 0x5a9   : > { %14339 = vmatpush1.bf16.msra.mxu1 %v20677_v20  ;;  %v20755_v20 = vld [vmem:[%s21927_s22 + $0x1660] ss:$8 sps:$4 sm:$0xff]  }
 0x5aa   : > { %15651 = vmatpush1.bf16.msra.mxu0 %v20680_v21  ;;  %14340 = vmatprep.subr.bf16.mxu1 %v20685_v35  ;;  %v20758_v21 = vld [vmem:[%s21927_s22 + $0x3660] ss:$8 sps:$4 sm:$0xff]   ;;  %v20763_v35 = vld [vmem:[%s21927_s22 + $0x1674] ss:$8 sps:$4 sm:$0xff]  }
 0x5ab   : > { %15652 = vmatprep.subr.bf16.mxu0 %v20688_v22  ;;  %v20766_v22 = vld [vmem:[%s21927_s22 + $0x3674] ss:$8 sps:$4 sm:$0xff]  }
 0x5ad   : > { %14341 = vmatpush1.bf16.msra.mxu1 %v20683_v2  ;;  %v20761_v2 = vld [vmem:[%s21927_s22 + $0x1670] ss:$8 sps:$4 sm:$0xff]  }
 0x5ae   : > { %15653 = vmatpush1.bf16.msra.mxu0 %v20686_v44  ;;  %14342 = vmatprep.subr.bf16.mxu1 %v20691_v42  ;;  %v20764_v44 = vld [vmem:[%s21927_s22 + $0x3670] ss:$8 sps:$4 sm:$0xff]   ;;  %v20769_v42 = vld [vmem:[%s21927_s22 + $0x1684] ss:$8 sps:$4 sm:$0xff]  }
 0x5af   : > { %15654 = vmatprep.subr.bf16.mxu0 %v20694_v41  ;;  %v20772_v41 = vld [vmem:[%s21927_s22 + $0x3684] ss:$8 sps:$4 sm:$0xff]  }
 0x5b1   : > { %14343 = vmatpush1.bf16.msra.mxu1 %v20689_v62  ;;  %v20767_v62 = vld [vmem:[%s21927_s22 + $0x1680] ss:$8 sps:$4 sm:$0xff]  }
 0x5b2   : > { %15655 = vmatpush1.bf16.msra.mxu0 %v20692_v24  ;;  %14344 = vmatprep.subr.bf16.mxu1 %v20697_v3  ;;  %v20770_v24 = vld [vmem:[%s21927_s22 + $0x3680] ss:$8 sps:$4 sm:$0xff]   ;;  %v20775_v3 = vld [vmem:[%s21927_s22 + $0x1694] ss:$8 sps:$4 sm:$0xff]  }
 0x5b3   : > { %15656 = vmatprep.subr.bf16.mxu0 %v20700_v25  ;;  %v20778_v25 = vld [vmem:[%s21927_s22 + $0x3694] ss:$8 sps:$4 sm:$0xff]  }
 0x5b5   : > { %14345 = vmatpush1.bf16.msra.mxu1 %v20695_v14  ;;  %v20773_v14 = vld [vmem:[%s21927_s22 + $0x1690] ss:$8 sps:$4 sm:$0xff]  }
 0x5b6   : > { %15657 = vmatpush1.bf16.msra.mxu0 %v20698_v54  ;;  %14346 = vmatprep.subr.bf16.mxu1 %v20703_v60  ;;  %v20776_v54 = vld [vmem:[%s21927_s22 + $0x3690] ss:$8 sps:$4 sm:$0xff]   ;;  %v20781_v60 = vld [vmem:[%s21927_s22 + $0x16a4] ss:$8 sps:$4 sm:$0xff]  }
 0x5b7   : > { %15658 = vmatprep.subr.bf16.mxu0 %v20706_v58  ;;  %v20784_v58 = vld [vmem:[%s21927_s22 + $0x36a4] ss:$8 sps:$4 sm:$0xff]  }
 0x5b9   : > { %14347 = vmatpush1.bf16.msra.mxu1 %v20701_v13  ;;  %v20779_v13 = vld [vmem:[%s21927_s22 + $0x16a0] ss:$8 sps:$4 sm:$0xff]  }
 0x5ba   : > { %15659 = vmatpush1.bf16.msra.mxu0 %v20704_v29  ;;  %14348 = vmatprep.subr.bf16.mxu1 %v20709_v36  ;;  %v20782_v29 = vld [vmem:[%s21927_s22 + $0x36a0] ss:$8 sps:$4 sm:$0xff]   ;;  %v20787_v36 = vld [vmem:[%s21927_s22 + $0x16b4] ss:$8 sps:$4 sm:$0xff]  }
 0x5bb   : > { %15660 = vmatprep.subr.bf16.mxu0 %v20712_v37  ;;  %v20790_v37 = vld [vmem:[%s21927_s22 + $0x36b4] ss:$8 sps:$4 sm:$0xff]  }
 0x5bd   : > { %14349 = vmatpush1.bf16.msra.mxu1 %v20707_v30  ;;  %v20793_v30 = vld [vmem:[%s21927_s22 + $0x16c4] ss:$8 sps:$4 sm:$0xff]  }
 0x5be   : > { %15661 = vmatpush1.bf16.msra.mxu0 %v20710_v32  ;;  %14350 = vmatprep.subr.bf16.mxu1 %v20715_v61  ;;  %v20796_v32 = vld [vmem:[%s21927_s22 + $0x36c4] ss:$8 sps:$4 sm:$0xff]   ;;  %v20791_v61 = vld [vmem:[%s21927_s22 + $0x16c0] ss:$8 sps:$4 sm:$0xff]  }
 0x5bf   : > { %15662 = vmatprep.subr.bf16.mxu0 %v20718_v10  ;;  %v20794_v10 = vld [vmem:[%s21927_s22 + $0x36c0] ss:$8 sps:$4 sm:$0xff]  }
 0x5c1   : > { %14351 = vmatpush1.bf16.msra.mxu1 %v20713_v63  ;;  %v20799_v63 = vld [vmem:[%s21927_s22 + $0x16d4] ss:$8 sps:$4 sm:$0xff]  }
 0x5c2   : > { %15663 = vmatpush1.bf16.msra.mxu0 %v20716_v9  ;;  %14361 = vmatprep.subr.bf16.mxu1 %v20721_v28  ;;  %v20802_v9 = vld [vmem:[%s21927_s22 + $0x36d4] ss:$8 sps:$4 sm:$0xff]   ;;  %v20797_v28 = vld [vmem:[%s21927_s22 + $0x16d0] ss:$8 sps:$4 sm:$0xff]  }
 0x5c3   : > { %15673 = vmatprep.subr.bf16.mxu0 %v20724_v16  ;;  %v20800_v16 = vld [vmem:[%s21927_s22 + $0x36d0] ss:$8 sps:$4 sm:$0xff]  }
 0x5c4   : > { %14353 = vmatmul.mubr.bf16.vlgmr.msra.gmra.mrb[0].mxu1 %v2597_v27  ;;  %v20803_v27 = vld [vmem:[%s21927_s22 + $0x16e0] ss:$8 sps:$4 sm:$0xff]  }
 0x5c5   : > { %15665 = vmatmul.mubr.bf16.vlgmr.msra.gmra.mrb[0].mxu0 %v2989_v48  ;;  %14362 = vmatpush1.bf16.msra.mxu1 %v20719_v38  ;;  %v20806_v48 = vld [vmem:[%s21927_s22 + $0x36e0] ss:$8 sps:$4 sm:$0xff]   ;;  %v20811_v38 = vld [vmem:[%s21927_s22 + $0x16f4] ss:$8 sps:$4 sm:$0xff]  }
 0x5c6   : > { %15674 = vmatpush1.bf16.msra.mxu0 %v20722_v49  ;;  %14363 = vmatprep.subr.bf16.mxu1 %v20727_v33  ;;  %v20814_v49 = vld [vmem:[%s21927_s22 + $0x36f4] ss:$8 sps:$4 sm:$0xff]   ;;  %v20809_v33 = vld [vmem:[%s21927_s22 + $0x16f0] ss:$8 sps:$4 sm:$0xff]  }
 0x5c7   : > { %15675 = vmatprep.subr.bf16.mxu0 %v20730_v50  ;;  %14393 = vmatprep.mubr.bf16.mxu1 %v23794_v52  ;;  %v20812_v50 = vld [vmem:[%s21927_s22 + $0x36f0] ss:$8 sps:$4 sm:$0xff]  }
 0x5c8   : > { %15705 = vmatprep.mubr.bf16.mxu0 %v23797_v19 }
 0x5c9   : > { %14364 = vmatpush1.bf16.msra.mxu1 %v20725_v39  ;;  %v20818_v39 = vld [vmem:[%s21927_s22 + $0x1704] ss:$8 sps:$4 sm:$0xff]  }
 0x5ca   : > { %15676 = vmatpush1.bf16.msra.mxu0 %v20728_v53  ;;  %14365 = vmatprep.subr.bf16.mxu1 %v20733_v0  ;;  %v20822_v53 = vld [vmem:[%s21927_s22 + $0x3704] ss:$8 sps:$4 sm:$0xff]   ;;  %v23863_v0 = vrot.slane %v23772_v8, %v21993_v51  ;;  %v2600_v8 = vcombine.high %v23794_v52, %v23794_v52 }
 0x5cb   : > { %15677 = vmatprep.subr.bf16.mxu0 %v20736_v1  ;;  %v23867_v1 = vrot.slane %v23775_v26, %v21993_v51  ;;  %v20823_v26 = vld [vmem:[%s21927_s22 + $0x1710] ss:$8 sps:$4 sm:$0xff]   ;;  %v20831_v52 = vld [vmem:[%s21927_s22 + $0x1724] ss:$8 sps:$4 sm:$0xff]  }
 0x5cd   : > { %14366 = vmatpush1.bf16.msra.mxu1 %v20731_v15  ;;  %v20816_v15 = vld [vmem:[%s21927_s22 + $0x1700] ss:$8 sps:$4 sm:$0xff]  }
 0x5ce   : > { %15678 = vmatpush1.bf16.msra.mxu0 %v20734_v43  ;;  %14367 = vmatprep.subr.bf16.mxu1 %v20739_v56  ;;  %v20820_v43 = vld [vmem:[%s21927_s22 + $0x3700] ss:$8 sps:$4 sm:$0xff]   ;;  %v20825_v56 = vld [vmem:[%s21927_s22 + $0x1714] ss:$8 sps:$4 sm:$0xff]  }
 0x5cf   : > { %15679 = vmatprep.subr.bf16.mxu0 %v20742_v46  ;;  %v20828_v46 = vld [vmem:[%s21927_s22 + $0x3714] ss:$8 sps:$4 sm:$0xff]  }
 0x5d1   : > { %14368 = vmatpush1.bf16.msra.mxu1 %v20737_v11  ;;  %v2992_v11 = vcombine.high %v23797_v19, %v23797_v19  ;;  %v20829_v19 = vld [vmem:[%s21927_s22 + $0x1720] ss:$8 sps:$4 sm:$0xff]  }
 0x5d2   : > { %15680 = vmatpush1.bf16.msra.mxu0 %v20740_v31  ;;  %14369 = vmatprep.subr.bf16.mxu1 %v20745_v18  ;;  %v20826_v31 = vld [vmem:[%s21927_s22 + $0x3710] ss:$8 sps:$4 sm:$0xff]   ;;  %v20834_v18 = vld [vmem:[%s21927_s22 + $0x3724] ss:$8 sps:$4 sm:$0xff]  }
 0x5d3   : > { %15681 = vmatprep.subr.bf16.mxu0 %v20748_v55  ;;  %v20832_v55 = vld [vmem:[%s21927_s22 + $0x3720] ss:$8 sps:$4 sm:$0xff]  }
 0x5d5   : > { %14370 = vmatpush1.bf16.msra.mxu1 %v20743_v17  ;;  %v20837_v17 = vld [vmem:[%s21927_s22 + $0x1734] ss:$8 sps:$4 sm:$0xff]  }
 0x5d6   : > { %15682 = vmatpush1.bf16.msra.mxu0 %v20746_v57  ;;  %14371 = vmatprep.subr.bf16.mxu1 %v20751_v34  ;;  %v20840_v57 = vld [vmem:[%s21927_s22 + $0x3734] ss:$8 sps:$4 sm:$0xff]   ;;  %v20835_v34 = vld [vmem:[%s21927_s22 + $0x1730] ss:$8 sps:$4 sm:$0xff]  }
 0x5d7   : > { %15683 = vmatprep.subr.bf16.mxu0 %v20754_v4  ;;  %v20838_v4 = vld [vmem:[%s21927_s22 + $0x3730] ss:$8 sps:$4 sm:$0xff]  }
 0x5d9   : > { %14372 = vmatpush1.bf16.msra.mxu1 %v20749_v59  ;;  %v20843_v59 = vld [vmem:[%s21927_s22 + $0x1744] ss:$8 sps:$4 sm:$0xff]  }
 0x5da   : > { %15684 = vmatpush1.bf16.msra.mxu0 %v20752_v5  ;;  %14373 = vmatprep.subr.bf16.mxu1 %v20757_v6  ;;  %v20846_v5 = vld [vmem:[%s21927_s22 + $0x3744] ss:$8 sps:$4 sm:$0xff]   ;;  %v20841_v6 = vld [vmem:[%s21927_s22 + $0x1740] ss:$8 sps:$4 sm:$0xff]  }
 0x5db   : > { %15685 = vmatprep.subr.bf16.mxu0 %v20760_v7  ;;  %v20844_v7 = vld [vmem:[%s21927_s22 + $0x3740] ss:$8 sps:$4 sm:$0xff]  }
 0x5dd   : > { %14374 = vmatpush1.bf16.msra.mxu1 %v20755_v20  ;;  %v20849_v20 = vld [vmem:[%s21927_s22 + $0x1754] ss:$8 sps:$4 sm:$0xff]  }
 0x5de   : > { %15686 = vmatpush1.bf16.msra.mxu0 %v20758_v21  ;;  %14375 = vmatprep.subr.bf16.mxu1 %v20763_v35  ;;  %v20852_v21 = vld [vmem:[%s21927_s22 + $0x3754] ss:$8 sps:$4 sm:$0xff]   ;;  %v20847_v35 = vld [vmem:[%s21927_s22 + $0x1750] ss:$8 sps:$4 sm:$0xff]  }
 0x5df   : > { %15687 = vmatprep.subr.bf16.mxu0 %v20766_v22  ;;  %v20850_v22 = vld [vmem:[%s21927_s22 + $0x3750] ss:$8 sps:$4 sm:$0xff]  }
 0x5e1   : > { %14376 = vmatpush1.bf16.msra.mxu1 %v20761_v2  ;;  %v20855_v2 = vld [vmem:[%s21927_s22 + $0x1764] ss:$8 sps:$4 sm:$0xff]  }
 0x5e2   : > { %15688 = vmatpush1.bf16.msra.mxu0 %v20764_v44  ;;  %14377 = vmatprep.subr.bf16.mxu1 %v20769_v42  ;;  %v20858_v44 = vld [vmem:[%s21927_s22 + $0x3764] ss:$8 sps:$4 sm:$0xff]   ;;  %v20853_v42 = vld [vmem:[%s21927_s22 + $0x1760] ss:$8 sps:$4 sm:$0xff]  }
 0x5e3   : > { %15689 = vmatprep.subr.bf16.mxu0 %v20772_v41  ;;  %v20856_v41 = vld [vmem:[%s21927_s22 + $0x3760] ss:$8 sps:$4 sm:$0xff]  }
 0x5e5   : > { %14378 = vmatpush1.bf16.msra.mxu1 %v20767_v62  ;;  %v20861_v62 = vld [vmem:[%s21927_s22 + $0x1774] ss:$8 sps:$4 sm:$0xff]  }
 0x5e6   : > { %15690 = vmatpush1.bf16.msra.mxu0 %v20770_v24  ;;  %14379 = vmatprep.subr.bf16.mxu1 %v20775_v3  ;;  %v20864_v24 = vld [vmem:[%s21927_s22 + $0x3774] ss:$8 sps:$4 sm:$0xff]   ;;  %v20859_v3 = vld [vmem:[%s21927_s22 + $0x1770] ss:$8 sps:$4 sm:$0xff]  }
 0x5e7   : > { %15691 = vmatprep.subr.bf16.mxu0 %v20778_v25  ;;  %v20862_v25 = vld [vmem:[%s21927_s22 + $0x3770] ss:$8 sps:$4 sm:$0xff]  }
 0x5e9   : > { %14380 = vmatpush1.bf16.msra.mxu1 %v20773_v14  ;;  %v20867_v14 = vld [vmem:[%s21927_s22 + $0x1784] ss:$8 sps:$4 sm:$0xff]  }
 0x5ea   : > { %15692 = vmatpush1.bf16.msra.mxu0 %v20776_v54  ;;  %14381 = vmatprep.subr.bf16.mxu1 %v20781_v60  ;;  %v20870_v54 = vld [vmem:[%s21927_s22 + $0x3784] ss:$8 sps:$4 sm:$0xff]   ;;  %v20865_v60 = vld [vmem:[%s21927_s22 + $0x1780] ss:$8 sps:$4 sm:$0xff]  }
 0x5eb   : > { %15693 = vmatprep.subr.bf16.mxu0 %v20784_v58  ;;  %v20868_v58 = vld [vmem:[%s21927_s22 + $0x3780] ss:$8 sps:$4 sm:$0xff]  }
 0x5ed   : > { %14382 = vmatpush1.bf16.msra.mxu1 %v20779_v13  ;;  %v20873_v13 = vld [vmem:[%s21927_s22 + $0x1794] ss:$8 sps:$4 sm:$0xff]  }
 0x5ee   : > { %15694 = vmatpush1.bf16.msra.mxu0 %v20782_v29  ;;  %14383 = vmatprep.subr.bf16.mxu1 %v20787_v36  ;;  %v20876_v29 = vld [vmem:[%s21927_s22 + $0x3794] ss:$8 sps:$4 sm:$0xff]   ;;  %v20871_v36 = vld [vmem:[%s21927_s22 + $0x1790] ss:$8 sps:$4 sm:$0xff]  }
 0x5ef   : > { %15695 = vmatprep.subr.bf16.mxu0 %v20790_v37  ;;  %v20874_v37 = vld [vmem:[%s21927_s22 + $0x3790] ss:$8 sps:$4 sm:$0xff]  }
 0x5f1   : > { %14384 = vmatpush1.bf16.msra.mxu1 %v20785_v23  ;;  %v20879_v23 = vld [vmem:[%s21927_s22 + $0x17a4] ss:$8 sps:$4 sm:$0xff]  }
 0x5f2   : > { %15696 = vmatpush1.bf16.msra.mxu0 %v20788_v45  ;;  %14385 = vmatprep.subr.bf16.mxu1 %v20793_v30  ;;  %v20882_v45 = vld [vmem:[%s21927_s22 + $0x37a4] ss:$8 sps:$4 sm:$0xff]   ;;  %v20877_v30 = vld [vmem:[%s21927_s22 + $0x17a0] ss:$8 sps:$4 sm:$0xff]  }
 0x5f3   : > { %15697 = vmatprep.subr.bf16.mxu0 %v20796_v32  ;;  %v20880_v32 = vld [vmem:[%s21927_s22 + $0x37a0] ss:$8 sps:$4 sm:$0xff]  }
 0x5f5   : > { %14386 = vmatpush1.bf16.msra.mxu1 %v20791_v61  ;;  %v20885_v61 = vld [vmem:[%s21927_s22 + $0x17b4] ss:$8 sps:$4 sm:$0xff]  }
 0x5f6   : > { %15698 = vmatpush1.bf16.msra.mxu0 %v20794_v10  ;;  %14387 = vmatprep.subr.bf16.mxu1 %v20799_v63  ;;  %v20888_v10 = vld [vmem:[%s21927_s22 + $0x37b4] ss:$8 sps:$4 sm:$0xff]   ;;  %v20883_v63 = vld [vmem:[%s21927_s22 + $0x17b0] ss:$8 sps:$4 sm:$0xff]  }
 0x5f7   : > { %15699 = vmatprep.subr.bf16.mxu0 %v20802_v9  ;;  %v20886_v9 = vld [vmem:[%s21927_s22 + $0x37b0] ss:$8 sps:$4 sm:$0xff]  }
 0x5f9   : > { %14388 = vmatpush1.bf16.msra.mxu1 %v20797_v28  ;;  %v20891_v28 = vld [vmem:[%s21927_s22 + $0x17c4] ss:$8 sps:$4 sm:$0xff]  }
 0x5fa   : > { %15700 = vmatpush1.bf16.msra.mxu0 %v20800_v16  ;;  %14389 = vmatprep.subr.bf16.mxu1 %v20805_v12  ;;  %v20894_v16 = vld [vmem:[%s21927_s22 + $0x37c4] ss:$8 sps:$4 sm:$0xff]   ;;  %v20889_v12 = vld [vmem:[%s21927_s22 + $0x17c0] ss:$8 sps:$4 sm:$0xff]  }
 0x5fb   : > { %15701 = vmatprep.subr.bf16.mxu0 %v20808_v47  ;;  %v20892_v47 = vld [vmem:[%s21927_s22 + $0x37c0] ss:$8 sps:$4 sm:$0xff]  }
 0x5fd   : > { %14390 = vmatpush1.bf16.msra.mxu1 %v20803_v27  ;;  %v20897_v27 = vld [vmem:[%s21927_s22 + $0x17d4] ss:$8 sps:$4 sm:$0xff]  }
 0x5fe   : > { %15702 = vmatpush1.bf16.msra.mxu0 %v20806_v48  ;;  %14391 = vmatprep.subr.bf16.mxu1 %v20811_v38  ;;  %v20900_v48 = vld [vmem:[%s21927_s22 + $0x37d4] ss:$8 sps:$4 sm:$0xff]   ;;  %v20895_v38 = vld [vmem:[%s21927_s22 + $0x17d0] ss:$8 sps:$4 sm:$0xff]  }
 0x5ff   : > { %15703 = vmatprep.subr.bf16.mxu0 %v20814_v49  ;;  %v20898_v49 = vld [vmem:[%s21927_s22 + $0x37d0] ss:$8 sps:$4 sm:$0xff]  }
 0x601   : > { %14392 = vmatpush1.bf16.msra.mxu1 %v20809_v33  ;;  %v20903_v33 = vld [vmem:[%s21927_s22 + $0x17e4] ss:$8 sps:$4 sm:$0xff]  }
 0x602   : > { %15704 = vmatpush1.bf16.msra.mxu0 %v20812_v50  ;;  %14402 = vmatprep.subr.bf16.mxu1 %v20818_v39  ;;  %v20906_v50 = vld [vmem:[%s21927_s22 + $0x37e4] ss:$8 sps:$4 sm:$0xff]  }
 0x603   : > { %15714 = vmatprep.subr.bf16.mxu0 %v20822_v53  ;;  %v23932_v39 = vld [vmem:[%s21940_s26 + $0x30] sm:$0xff] }
 0x604   : > { %14394 = vmatmul.mubr.bf16.vlgmr.msra.gmra.mrb[0].mxu1 %v23863_v0  ;;  %v23935_v53 = vld [vmem:[%s21940_s26 + $0x70] sm:$0xff] }
 0x605   : > { %15706 = vmatmul.mubr.bf16.vlgmr.msra.gmra.mrb[0].mxu0 %v23867_v1  ;;  %14403 = vmatpush1.bf16.msra.mxu1 %v20816_v15  ;;  %v20901_v15 = vld [vmem:[%s21927_s22 + $0x17e0] ss:$8 sps:$4 sm:$0xff]  }
 0x606   : > { %15715 = vmatpush1.bf16.msra.mxu0 %v20820_v43  ;;  %14404 = vmatprep.subr.bf16.mxu1 %v20825_v56  ;;  %v20904_v43 = vld [vmem:[%s21927_s22 + $0x37e0] ss:$8 sps:$4 sm:$0xff]   ;;  %v20909_v56 = vld [vmem:[%s21927_s22 + $0x17f4] ss:$8 sps:$4 sm:$0xff]  }
 0x607   : > { %15716 = vmatprep.subr.bf16.mxu0 %v20828_v46  ;;  %14434 = vmatprep.mubr.bf16.mxu1 %v2600_v8  ;;  %v20912_v46 = vld [vmem:[%s21927_s22 + $0x37f4] ss:$8 sps:$4 sm:$0xff]   ;;  %v23943_v8 = vrot.slane %v23932_v39, %v21993_v51 }
 0x608   : > { %15746 = vmatprep.mubr.bf16.mxu0 %v2992_v11  ;;  %v23947_v11 = vrot.slane %v23935_v53, %v21993_v51 }
 0x609   : > { %14405 = vmatpush1.bf16.msra.mxu1 %v20823_v26  ;;  %v20907_v26 = vld [vmem:[%s21927_s22 + $0x17f0] ss:$8 sps:$4 sm:$0xff]  }
 0x60a   : > { %15717 = vmatpush1.bf16.msra.mxu0 %v20826_v31  ;;  %14406 = vmatprep.subr.bf16.mxu1 %v20831_v52  ;;  %v20910_v31 = vld [vmem:[%s21927_s22 + $0x37f0] ss:$8 sps:$4 sm:$0xff]   ;;  %v20915_v52 = vld [vmem:[%s21927_s22 + $0x1804] ss:$8 sps:$4 sm:$0xff]  }
 0x60b   : > { %15718 = vmatprep.subr.bf16.mxu0 %v20834_v18  ;;  %v20918_v18 = vld [vmem:[%s21927_s22 + $0x3804] ss:$8 sps:$4 sm:$0xff]  }
 0x60d   : > { %14407 = vmatpush1.bf16.msra.mxu1 %v20829_v19  ;;  %v2616_v19 = vcombine.high %v23943_v8, %v23943_v8 }
 0x60e   : > { %15719 = vmatpush1.bf16.msra.mxu0 %v20832_v55  ;;  %14408 = vmatprep.subr.bf16.mxu1 %v20837_v17  ;;  %v3008_v55 = vcombine.high %v23947_v11, %v23947_v11  ;;  %v2598_v17 = vcombine.high %v23863_v0, %v23863_v0 }
 0x60f   : > { %15720 = vmatprep.subr.bf16.mxu0 %v20840_v57  ;;  %v2990_v57 = vcombine.high %v23867_v1, %v23867_v1  ;;  %v20919_v1 = vld [vmem:[%s21927_s22 + $0x1810] ss:$8 sps:$4 sm:$0xff]  }
 0x610   : > { %v23969_v0 = vrot.slane %v3008_v55, %v21993_v51  ;;  %v20994_v55 = vld [vmem:[%s21927_s22 + $0x38d0] ss:$8 sps:$4 sm:$0xff]  }
 0x611   : > { %14409 = vmatpush1.bf16.msra.mxu1 %v20835_v34  ;;  %v20913_v34 = vld [vmem:[%s21927_s22 + $0x1800] ss:$8 sps:$4 sm:$0xff]  }
 0x612   : > { %15721 = vmatpush1.bf16.msra.mxu0 %v20838_v4  ;;  %14410 = vmatprep.subr.bf16.mxu1 %v20843_v59  ;;  %v20916_v4 = vld [vmem:[%s21927_s22 + $0x3800] ss:$8 sps:$4 sm:$0xff]   ;;  %v20921_v59 = vld [vmem:[%s21927_s22 + $0x1814] ss:$8 sps:$4 sm:$0xff]  }
 0x613   : > { %15722 = vmatprep.subr.bf16.mxu0 %v20846_v5  ;;  %v20924_v5 = vld [vmem:[%s21927_s22 + $0x3814] ss:$8 sps:$4 sm:$0xff]  }
 0x615   : > { %14411 = vmatpush1.bf16.msra.mxu1 %v20841_v6  ;;  %v23966_v6 = vrot.slane %v2616_v19, %v21993_v51  ;;  %v20991_v19 = vld [vmem:[%s21927_s22 + $0x18d0] ss:$8 sps:$4 sm:$0xff]  }
 0x616   : > { %15723 = vmatpush1.bf16.msra.mxu0 %v20844_v7  ;;  %14412 = vmatprep.subr.bf16.mxu1 %v20849_v20  ;;  %v20922_v7 = vld [vmem:[%s21927_s22 + $0x3810] ss:$8 sps:$4 sm:$0xff]   ;;  %v20927_v20 = vld [vmem:[%s21927_s22 + $0x1824] ss:$8 sps:$4 sm:$0xff]  }
 0x617   : > { %15724 = vmatprep.subr.bf16.mxu0 %v20852_v21  ;;  %v20930_v21 = vld [vmem:[%s21927_s22 + $0x3824] ss:$8 sps:$4 sm:$0xff]  }
 0x619   : > { %14413 = vmatpush1.bf16.msra.mxu1 %v20847_v35  ;;  %v20925_v35 = vld [vmem:[%s21927_s22 + $0x1820] ss:$8 sps:$4 sm:$0xff]  }
 0x61a   : > { %15725 = vmatpush1.bf16.msra.mxu0 %v20850_v22  ;;  %14414 = vmatprep.subr.bf16.mxu1 %v20855_v2  ;;  %v20928_v22 = vld [vmem:[%s21927_s22 + $0x3820] ss:$8 sps:$4 sm:$0xff]   ;;  %v20933_v2 = vld [vmem:[%s21927_s22 + $0x1834] ss:$8 sps:$4 sm:$0xff]  }
 0x61b   : > { %15726 = vmatprep.subr.bf16.mxu0 %v20858_v44  ;;  %v20936_v44 = vld [vmem:[%s21927_s22 + $0x3834] ss:$8 sps:$4 sm:$0xff]  }
 0x61d   : > { %14415 = vmatpush1.bf16.msra.mxu1 %v20853_v42  ;;  %v20931_v42 = vld [vmem:[%s21927_s22 + $0x1830] ss:$8 sps:$4 sm:$0xff]  }
 0x61e   : > { %15727 = vmatpush1.bf16.msra.mxu0 %v20856_v41  ;;  %14416 = vmatprep.subr.bf16.mxu1 %v20861_v62  ;;  %v20934_v41 = vld [vmem:[%s21927_s22 + $0x3830] ss:$8 sps:$4 sm:$0xff]   ;;  %v20939_v62 = vld [vmem:[%s21927_s22 + $0x1844] ss:$8 sps:$4 sm:$0xff]  }
 0x61f   : > { %15728 = vmatprep.subr.bf16.mxu0 %v20864_v24  ;;  %v20942_v24 = vld [vmem:[%s21927_s22 + $0x3844] ss:$8 sps:$4 sm:$0xff]  }
 0x621   : > { %14417 = vmatpush1.bf16.msra.mxu1 %v20859_v3  ;;  %v20937_v3 = vld [vmem:[%s21927_s22 + $0x1840] ss:$8 sps:$4 sm:$0xff]  }
 0x622   : > { %15729 = vmatpush1.bf16.msra.mxu0 %v20862_v25  ;;  %14418 = vmatprep.subr.bf16.mxu1 %v20867_v14  ;;  %v20940_v25 = vld [vmem:[%s21927_s22 + $0x3840] ss:$8 sps:$4 sm:$0xff]   ;;  %v20945_v14 = vld [vmem:[%s21927_s22 + $0x1854] ss:$8 sps:$4 sm:$0xff]  }
 0x623   : > { %15730 = vmatprep.subr.bf16.mxu0 %v20870_v54  ;;  %v20948_v54 = vld [vmem:[%s21927_s22 + $0x3854] ss:$8 sps:$4 sm:$0xff]  }
 0x625   : > { %14419 = vmatpush1.bf16.msra.mxu1 %v20865_v60  ;;  %v20943_v60 = vld [vmem:[%s21927_s22 + $0x1850] ss:$8 sps:$4 sm:$0xff]  }
 0x626   : > { %15731 = vmatpush1.bf16.msra.mxu0 %v20868_v58  ;;  %14420 = vmatprep.subr.bf16.mxu1 %v20873_v13  ;;  %v20946_v58 = vld [vmem:[%s21927_s22 + $0x3850] ss:$8 sps:$4 sm:$0xff]   ;;  %v20951_v13 = vld [vmem:[%s21927_s22 + $0x1864] ss:$8 sps:$4 sm:$0xff]  }
 0x627   : > { %15732 = vmatprep.subr.bf16.mxu0 %v20876_v29  ;;  %v20954_v29 = vld [vmem:[%s21927_s22 + $0x3864] ss:$8 sps:$4 sm:$0xff]  }
 0x629   : > { %14421 = vmatpush1.bf16.msra.mxu1 %v20871_v36  ;;  %v20949_v36 = vld [vmem:[%s21927_s22 + $0x1860] ss:$8 sps:$4 sm:$0xff]  }
 0x62a   : > { %15733 = vmatpush1.bf16.msra.mxu0 %v20874_v37  ;;  %14422 = vmatprep.subr.bf16.mxu1 %v20879_v23  ;;  %v20952_v37 = vld [vmem:[%s21927_s22 + $0x3860] ss:$8 sps:$4 sm:$0xff]   ;;  %v20957_v23 = vld [vmem:[%s21927_s22 + $0x1874] ss:$8 sps:$4 sm:$0xff]  }
 0x62b   : > { %15734 = vmatprep.subr.bf16.mxu0 %v20882_v45  ;;  %v20960_v45 = vld [vmem:[%s21927_s22 + $0x3874] ss:$8 sps:$4 sm:$0xff]  }
 0x62d   : > { %14423 = vmatpush1.bf16.msra.mxu1 %v20877_v30  ;;  %v20955_v30 = vld [vmem:[%s21927_s22 + $0x1870] ss:$8 sps:$4 sm:$0xff]  }
 0x62e   : > { %15735 = vmatpush1.bf16.msra.mxu0 %v20880_v32  ;;  %14424 = vmatprep.subr.bf16.mxu1 %v20885_v61  ;;  %v20958_v32 = vld [vmem:[%s21927_s22 + $0x3870] ss:$8 sps:$4 sm:$0xff]   ;;  %v20963_v61 = vld [vmem:[%s21927_s22 + $0x1884] ss:$8 sps:$4 sm:$0xff]  }
 0x62f   : > { %15736 = vmatprep.subr.bf16.mxu0 %v20888_v10  ;;  %v20966_v10 = vld [vmem:[%s21927_s22 + $0x3884] ss:$8 sps:$4 sm:$0xff]  }
 0x631   : > { %14425 = vmatpush1.bf16.msra.mxu1 %v20883_v63  ;;  %v20961_v63 = vld [vmem:[%s21927_s22 + $0x1880] ss:$8 sps:$4 sm:$0xff]  }
 0x632   : > { %15737 = vmatpush1.bf16.msra.mxu0 %v20886_v9  ;;  %14426 = vmatprep.subr.bf16.mxu1 %v20891_v28  ;;  %v20964_v9 = vld [vmem:[%s21927_s22 + $0x3880] ss:$8 sps:$4 sm:$0xff]   ;;  %v20969_v28 = vld [vmem:[%s21927_s22 + $0x1894] ss:$8 sps:$4 sm:$0xff]  }
 0x633   : > { %15738 = vmatprep.subr.bf16.mxu0 %v20894_v16  ;;  %v20972_v16 = vld [vmem:[%s21927_s22 + $0x3894] ss:$8 sps:$4 sm:$0xff]  }
 0x635   : > { %14427 = vmatpush1.bf16.msra.mxu1 %v20889_v12  ;;  %v20967_v12 = vld [vmem:[%s21927_s22 + $0x1890] ss:$8 sps:$4 sm:$0xff]  }
 0x636   : > { %15739 = vmatpush1.bf16.msra.mxu0 %v20892_v47  ;;  %14428 = vmatprep.subr.bf16.mxu1 %v20897_v27  ;;  %v20970_v47 = vld [vmem:[%s21927_s22 + $0x3890] ss:$8 sps:$4 sm:$0xff]   ;;  %v20975_v27 = vld [vmem:[%s21927_s22 + $0x18a4] ss:$8 sps:$4 sm:$0xff]  }
 0x637   : > { %15740 = vmatprep.subr.bf16.mxu0 %v20900_v48  ;;  %v20978_v48 = vld [vmem:[%s21927_s22 + $0x38a4] ss:$8 sps:$4 sm:$0xff]  }
 0x639   : > { %14429 = vmatpush1.bf16.msra.mxu1 %v20895_v38  ;;  %v20973_v38 = vld [vmem:[%s21927_s22 + $0x18a0] ss:$8 sps:$4 sm:$0xff]  }
 0x63a   : > { %15741 = vmatpush1.bf16.msra.mxu0 %v20898_v49  ;;  %14430 = vmatprep.subr.bf16.mxu1 %v20903_v33  ;;  %v20976_v49 = vld [vmem:[%s21927_s22 + $0x38a0] ss:$8 sps:$4 sm:$0xff]   ;;  %v20981_v33 = vld [vmem:[%s21927_s22 + $0x18b4] ss:$8 sps:$4 sm:$0xff]  }
 0x63b   : > { %15742 = vmatprep.subr.bf16.mxu0 %v20906_v50  ;;  %v20984_v50 = vld [vmem:[%s21927_s22 + $0x38b4] ss:$8 sps:$4 sm:$0xff]  }
 0x63d   : > { %14431 = vmatpush1.bf16.msra.mxu1 %v20901_v15  ;;  %v20979_v15 = vld [vmem:[%s21927_s22 + $0x18b0] ss:$8 sps:$4 sm:$0xff]  }
 0x63e   : > { %15743 = vmatpush1.bf16.msra.mxu0 %v20904_v43  ;;  %14432 = vmatprep.subr.bf16.mxu1 %v20909_v56  ;;  %v20982_v43 = vld [vmem:[%s21927_s22 + $0x38b0] ss:$8 sps:$4 sm:$0xff]   ;;  %v20987_v56 = vld [vmem:[%s21927_s22 + $0x18c4] ss:$8 sps:$4 sm:$0xff]  }
 0x63f   : > { %15744 = vmatprep.subr.bf16.mxu0 %v20912_v46  ;;  %v20990_v46 = vld [vmem:[%s21927_s22 + $0x38c4] ss:$8 sps:$4 sm:$0xff]  }
 0x641   : > { %14433 = vmatpush1.bf16.msra.mxu1 %v20907_v26  ;;  %v20985_v26 = vld [vmem:[%s21927_s22 + $0x18c0] ss:$8 sps:$4 sm:$0xff]  }
 0x642   : > { %15745 = vmatpush1.bf16.msra.mxu0 %v20910_v31  ;;  %14443 = vmatprep.subr.bf16.mxu1 %v20915_v52  ;;  %v20988_v31 = vld [vmem:[%s21927_s22 + $0x38c0] ss:$8 sps:$4 sm:$0xff]   ;;  %v20993_v52 = vld [vmem:[%s21927_s22 + $0x18d4] ss:$8 sps:$4 sm:$0xff]  }
 0x643   : > { %15755 = vmatprep.subr.bf16.mxu0 %v20918_v18  ;;  %v20996_v18 = vld [vmem:[%s21927_s22 + $0x38d4] ss:$8 sps:$4 sm:$0xff]  }
 0x644   : > { %14435 = vmatmul.mubr.bf16.vlgmr.msra.gmra.mrb[0].mxu1 %v2598_v17  ;;  %v20999_v17 = vld [vmem:[%s21927_s22 + $0x18e4] ss:$8 sps:$4 sm:$0xff]  }
 0x645   : > { %15747 = vmatmul.mubr.bf16.vlgmr.msra.gmra.mrb[0].mxu0 %v2990_v57  ;;  %14444 = vmatpush1.bf16.msra.mxu1 %v20913_v34  ;;  %v21002_v57 = vld [vmem:[%s21927_s22 + $0x38e4] ss:$8 sps:$4 sm:$0xff]   ;;  %v20997_v34 = vld [vmem:[%s21927_s22 + $0x18e0] ss:$8 sps:$4 sm:$0xff]  }
 0x646   : > { %15756 = vmatpush1.bf16.msra.mxu0 %v20916_v4  ;;  %14445 = vmatprep.subr.bf16.mxu1 %v20921_v59  ;;  %v21000_v4 = vld [vmem:[%s21927_s22 + $0x38e0] ss:$8 sps:$4 sm:$0xff]   ;;  %v21005_v59 = vld [vmem:[%s21927_s22 + $0x18f4] ss:$8 sps:$4 sm:$0xff]  }
 0x647   : > { %15757 = vmatprep.subr.bf16.mxu0 %v20924_v5  ;;  %14475 = vmatprep.mubr.bf16.mxu1 %v23966_v6  ;;  %v21008_v5 = vld [vmem:[%s21927_s22 + $0x38f4] ss:$8 sps:$4 sm:$0xff]  }
 0x648   : > { %15787 = vmatprep.mubr.bf16.mxu0 %v23969_v0 }
 0x649   : > { %14446 = vmatpush1.bf16.msra.mxu1 %v20919_v1  ;;  %v21003_v1 = vld [vmem:[%s21927_s22 + $0x18f0] ss:$8 sps:$4 sm:$0xff]  }
 0x64a   : > { %15758 = vmatpush1.bf16.msra.mxu0 %v20922_v7  ;;  %14447 = vmatprep.subr.bf16.mxu1 %v20927_v20  ;;  %v21006_v7 = vld [vmem:[%s21927_s22 + $0x38f0] ss:$8 sps:$4 sm:$0xff]   ;;  %v21011_v20 = vld [vmem:[%s21927_s22 + $0x1904] ss:$8 sps:$4 sm:$0xff]  }
 0x64b   : > { %15759 = vmatprep.subr.bf16.mxu0 %v20930_v21  ;;  %v21014_v21 = vld [vmem:[%s21927_s22 + $0x3904] ss:$8 sps:$4 sm:$0xff]  }
 0x64d   : > { %14448 = vmatpush1.bf16.msra.mxu1 %v20925_v35  ;;  %v24035_v35 = vrot.slane %v23943_v8, %v21993_v51  ;;  %v2648_v8 = vcombine.high %v23966_v6, %v23966_v6  ;;  %v21023_v6 = vld [vmem:[%s21927_s22 + $0x1924] ss:$8 sps:$4 sm:$0xff]  }
 0x64e   : > { %15760 = vmatpush1.bf16.msra.mxu0 %v20928_v22  ;;  %14449 = vmatprep.subr.bf16.mxu1 %v20933_v2  ;;  %v24039_v22 = vrot.slane %v23947_v11, %v21993_v51  ;;  %v21009_v2 = vld [vmem:[%s21927_s22 + $0x1900] ss:$8 sps:$4 sm:$0xff]   ;;  %v21015_v11 = vld [vmem:[%s21927_s22 + $0x1910] ss:$8 sps:$4 sm:$0xff]  }
 0x64f   : > { %15761 = vmatprep.subr.bf16.mxu0 %v20936_v44  ;;  %v21012_v44 = vld [vmem:[%s21927_s22 + $0x3900] ss:$8 sps:$4 sm:$0xff]  }
 0x651   : > { %14450 = vmatpush1.bf16.msra.mxu1 %v20931_v42  ;;  %v21017_v42 = vld [vmem:[%s21927_s22 + $0x1914] ss:$8 sps:$4 sm:$0xff]  }
 0x652   : > { %15762 = vmatpush1.bf16.msra.mxu0 %v20934_v41  ;;  %14451 = vmatprep.subr.bf16.mxu1 %v20939_v62  ;;  %v21020_v41 = vld [vmem:[%s21927_s22 + $0x3914] ss:$8 sps:$4 sm:$0xff]   ;;  %v3040_v62 = vcombine.high %v23969_v0, %v23969_v0  ;;  %v21021_v0 = vld [vmem:[%s21927_s22 + $0x1920] ss:$8 sps:$4 sm:$0xff]  }
 0x653   : > { %15763 = vmatprep.subr.bf16.mxu0 %v20942_v24  ;;  %v21018_v24 = vld [vmem:[%s21927_s22 + $0x3910] ss:$8 sps:$4 sm:$0xff]  }
 0x655   : > { %14452 = vmatpush1.bf16.msra.mxu1 %v20937_v3  ;;  %v21026_v3 = vld [vmem:[%s21927_s22 + $0x3924] ss:$8 sps:$4 sm:$0xff]  }
 0x656   : > { %15764 = vmatpush1.bf16.msra.mxu0 %v20940_v25  ;;  %14453 = vmatprep.subr.bf16.mxu1 %v20945_v14  ;;  %v21024_v25 = vld [vmem:[%s21927_s22 + $0x3920] ss:$8 sps:$4 sm:$0xff]   ;;  %v21029_v14 = vld [vmem:[%s21927_s22 + $0x1934] ss:$8 sps:$4 sm:$0xff]  }
 0x657   : > { %15765 = vmatprep.subr.bf16.mxu0 %v20948_v54  ;;  %v21032_v54 = vld [vmem:[%s21927_s22 + $0x3934] ss:$8 sps:$4 sm:$0xff]  }
 0x659   : > { %14454 = vmatpush1.bf16.msra.mxu1 %v20943_v60  ;;  %v21027_v60 = vld [vmem:[%s21927_s22 + $0x1930] ss:$8 sps:$4 sm:$0xff]  }
 0x65a   : > { %15766 = vmatpush1.bf16.msra.mxu0 %v20946_v58  ;;  %14455 = vmatprep.subr.bf16.mxu1 %v20951_v13  ;;  %v21030_v58 = vld [vmem:[%s21927_s22 + $0x3930] ss:$8 sps:$4 sm:$0xff]   ;;  %v21035_v13 = vld [vmem:[%s21927_s22 + $0x1944] ss:$8 sps:$4 sm:$0xff]  }
 0x65b   : > { %15767 = vmatprep.subr.bf16.mxu0 %v20954_v29  ;;  %v21038_v29 = vld [vmem:[%s21927_s22 + $0x3944] ss:$8 sps:$4 sm:$0xff]  }
 0x65d   : > { %14456 = vmatpush1.bf16.msra.mxu1 %v20949_v36  ;;  %v21033_v36 = vld [vmem:[%s21927_s22 + $0x1940] ss:$8 sps:$4 sm:$0xff]  }
 0x65e   : > { %15768 = vmatpush1.bf16.msra.mxu0 %v20952_v37  ;;  %14457 = vmatprep.subr.bf16.mxu1 %v20957_v23  ;;  %v21036_v37 = vld [vmem:[%s21927_s22 + $0x3940] ss:$8 sps:$4 sm:$0xff]   ;;  %v21041_v23 = vld [vmem:[%s21927_s22 + $0x1954] ss:$8 sps:$4 sm:$0xff]  }
 0x65f   : > { %15769 = vmatprep.subr.bf16.mxu0 %v20960_v45  ;;  %v21044_v45 = vld [vmem:[%s21927_s22 + $0x3954] ss:$8 sps:$4 sm:$0xff]  }
 0x661   : > { %14458 = vmatpush1.bf16.msra.mxu1 %v20955_v30  ;;  %v21039_v30 = vld [vmem:[%s21927_s22 + $0x1950] ss:$8 sps:$4 sm:$0xff]  }
 0x662   : > { %15770 = vmatpush1.bf16.msra.mxu0 %v20958_v32  ;;  %14459 = vmatprep.subr.bf16.mxu1 %v20963_v61  ;;  %v21042_v32 = vld [vmem:[%s21927_s22 + $0x3950] ss:$8 sps:$4 sm:$0xff]   ;;  %v21047_v61 = vld [vmem:[%s21927_s22 + $0x1964] ss:$8 sps:$4 sm:$0xff]  }
 0x663   : > { %15771 = vmatprep.subr.bf16.mxu0 %v20966_v10  ;;  %v21050_v10 = vld [vmem:[%s21927_s22 + $0x3964] ss:$8 sps:$4 sm:$0xff]  }
 0x665   : > { %14460 = vmatpush1.bf16.msra.mxu1 %v20961_v63  ;;  %v21045_v63 = vld [vmem:[%s21927_s22 + $0x1960] ss:$8 sps:$4 sm:$0xff]  }
 0x666   : > { %15772 = vmatpush1.bf16.msra.mxu0 %v20964_v9  ;;  %14461 = vmatprep.subr.bf16.mxu1 %v20969_v28  ;;  %v21048_v9 = vld [vmem:[%s21927_s22 + $0x3960] ss:$8 sps:$4 sm:$0xff]   ;;  %v21053_v28 = vld [vmem:[%s21927_s22 + $0x1974] ss:$8 sps:$4 sm:$0xff]  }
 0x667   : > { %15773 = vmatprep.subr.bf16.mxu0 %v20972_v16  ;;  %v21056_v16 = vld [vmem:[%s21927_s22 + $0x3974] ss:$8 sps:$4 sm:$0xff]  }
 0x669   : > { %14462 = vmatpush1.bf16.msra.mxu1 %v20967_v12  ;;  %v21051_v12 = vld [vmem:[%s21927_s22 + $0x1970] ss:$8 sps:$4 sm:$0xff]  }
 0x66a   : > { %15774 = vmatpush1.bf16.msra.mxu0 %v20970_v47  ;;  %14463 = vmatprep.subr.bf16.mxu1 %v20975_v27  ;;  %v21054_v47 = vld [vmem:[%s21927_s22 + $0x3970] ss:$8 sps:$4 sm:$0xff]   ;;  %v21059_v27 = vld [vmem:[%s21927_s22 + $0x1984] ss:$8 sps:$4 sm:$0xff]  }
 0x66b   : > { %15775 = vmatprep.subr.bf16.mxu0 %v20978_v48  ;;  %v21062_v48 = vld [vmem:[%s21927_s22 + $0x3984] ss:$8 sps:$4 sm:$0xff]  }
 0x66d   : > { %14464 = vmatpush1.bf16.msra.mxu1 %v20973_v38  ;;  %v21057_v38 = vld [vmem:[%s21927_s22 + $0x1980] ss:$8 sps:$4 sm:$0xff]  }
 0x66e   : > { %15776 = vmatpush1.bf16.msra.mxu0 %v20976_v49  ;;  %14465 = vmatprep.subr.bf16.mxu1 %v20981_v33  ;;  %v21060_v49 = vld [vmem:[%s21927_s22 + $0x3980] ss:$8 sps:$4 sm:$0xff]   ;;  %v21065_v33 = vld [vmem:[%s21927_s22 + $0x1994] ss:$8 sps:$4 sm:$0xff]  }
 0x66f   : > { %15777 = vmatprep.subr.bf16.mxu0 %v20984_v50  ;;  %v21068_v50 = vld [vmem:[%s21927_s22 + $0x3994] ss:$8 sps:$4 sm:$0xff]  }
 0x671   : > { %14466 = vmatpush1.bf16.msra.mxu1 %v20979_v15  ;;  %v21063_v15 = vld [vmem:[%s21927_s22 + $0x1990] ss:$8 sps:$4 sm:$0xff]  }
 0x672   : > { %15778 = vmatpush1.bf16.msra.mxu0 %v20982_v43  ;;  %14467 = vmatprep.subr.bf16.mxu1 %v20987_v56  ;;  %v21066_v43 = vld [vmem:[%s21927_s22 + $0x3990] ss:$8 sps:$4 sm:$0xff]   ;;  %v21071_v56 = vld [vmem:[%s21927_s22 + $0x19a4] ss:$8 sps:$4 sm:$0xff]  }
 0x673   : > { %15779 = vmatprep.subr.bf16.mxu0 %v20990_v46  ;;  %v21074_v46 = vld [vmem:[%s21927_s22 + $0x39a4] ss:$8 sps:$4 sm:$0xff]  }
 0x675   : > { %14468 = vmatpush1.bf16.msra.mxu1 %v20985_v26  ;;  %v21069_v26 = vld [vmem:[%s21927_s22 + $0x19a0] ss:$8 sps:$4 sm:$0xff]  }
 0x676   : > { %15780 = vmatpush1.bf16.msra.mxu0 %v20988_v31  ;;  %14469 = vmatprep.subr.bf16.mxu1 %v20993_v52  ;;  %v21072_v31 = vld [vmem:[%s21927_s22 + $0x39a0] ss:$8 sps:$4 sm:$0xff]   ;;  %v21077_v52 = vld [vmem:[%s21927_s22 + $0x19b4] ss:$8 sps:$4 sm:$0xff]  }
 0x677   : > { %15781 = vmatprep.subr.bf16.mxu0 %v20996_v18  ;;  %v21080_v18 = vld [vmem:[%s21927_s22 + $0x39b4] ss:$8 sps:$4 sm:$0xff]  }
 0x679   : > { %14470 = vmatpush1.bf16.msra.mxu1 %v20991_v19  ;;  %v21075_v19 = vld [vmem:[%s21927_s22 + $0x19b0] ss:$8 sps:$4 sm:$0xff]  }
 0x67a   : > { %15782 = vmatpush1.bf16.msra.mxu0 %v20994_v55  ;;  %14471 = vmatprep.subr.bf16.mxu1 %v20999_v17  ;;  %v21078_v55 = vld [vmem:[%s21927_s22 + $0x39b0] ss:$8 sps:$4 sm:$0xff]   ;;  %v21083_v17 = vld [vmem:[%s21927_s22 + $0x19c4] ss:$8 sps:$4 sm:$0xff]  }
 0x67b   : > { %15783 = vmatprep.subr.bf16.mxu0 %v21002_v57  ;;  %v21086_v57 = vld [vmem:[%s21927_s22 + $0x39c4] ss:$8 sps:$4 sm:$0xff]  }
 0x67d   : > { %14472 = vmatpush1.bf16.msra.mxu1 %v20997_v34  ;;  %v21081_v34 = vld [vmem:[%s21927_s22 + $0x19c0] ss:$8 sps:$4 sm:$0xff]  }
 0x67e   : > { %15784 = vmatpush1.bf16.msra.mxu0 %v21000_v4  ;;  %14473 = vmatprep.subr.bf16.mxu1 %v21005_v59  ;;  %v21084_v4 = vld [vmem:[%s21927_s22 + $0x39c0] ss:$8 sps:$4 sm:$0xff]   ;;  %v21089_v59 = vld [vmem:[%s21927_s22 + $0x19d4] ss:$8 sps:$4 sm:$0xff]  }
 0x67f   : > { %15785 = vmatprep.subr.bf16.mxu0 %v21008_v5  ;;  %v21092_v5 = vld [vmem:[%s21927_s22 + $0x39d4] ss:$8 sps:$4 sm:$0xff]  }
 0x681   : > { %14474 = vmatpush1.bf16.msra.mxu1 %v21003_v1  ;;  %v21087_v1 = vld [vmem:[%s21927_s22 + $0x19d0] ss:$8 sps:$4 sm:$0xff]  }
 0x682   : > { %15786 = vmatpush1.bf16.msra.mxu0 %v21006_v7  ;;  %14484 = vmatprep.subr.bf16.mxu1 %v21011_v20  ;;  %v21090_v7 = vld [vmem:[%s21927_s22 + $0x39d0] ss:$8 sps:$4 sm:$0xff]   ;;  %v21095_v20 = vld [vmem:[%s21927_s22 + $0x19e4] ss:$8 sps:$4 sm:$0xff]  }
 0x683   : > { %15796 = vmatprep.subr.bf16.mxu0 %v21014_v21  ;;  %v21098_v21 = vld [vmem:[%s21927_s22 + $0x39e4] ss:$8 sps:$4 sm:$0xff]  }
 0x684   : > { %14476 = vmatmul.mubr.bf16.vlgmr.msra.gmra.mrb[0].mxu1 %v24035_v35 }
 0x685   : > { %15788 = vmatmul.mubr.bf16.vlgmr.msra.gmra.mrb[0].mxu0 %v24039_v22  ;;  %14485 = vmatpush1.bf16.msra.mxu1 %v21009_v2  ;;  %v2601_v2 = vcombine.high %v23932_v39, %v23932_v39  ;;  %v21099_v39 = vld [vmem:[%s21927_s22 + $0x19f0] ss:$8 sps:$4 sm:$0xff]  }
 0x686   : > { %15797 = vmatpush1.bf16.msra.mxu0 %v21012_v44  ;;  %14486 = vmatprep.subr.bf16.mxu1 %v21017_v42  ;;  %v2993_v44 = vcombine.high %v23935_v53, %v23935_v53  ;;  %v21093_v42 = vld [vmem:[%s21927_s22 + $0x19e0] ss:$8 sps:$4 sm:$0xff]   ;;  %v21102_v53 = vld [vmem:[%s21927_s22 + $0x39f0] ss:$8 sps:$4 sm:$0xff]  }
 0x687   : > { %15798 = vmatprep.subr.bf16.mxu0 %v21020_v41  ;;  %14516 = vmatprep.mubr.bf16.mxu1 %v2648_v8  ;;  %v21096_v41 = vld [vmem:[%s21927_s22 + $0x39e0] ss:$8 sps:$4 sm:$0xff]   ;;  %v21101_v8 = vld [vmem:[%s21927_s22 + $0x19f4] ss:$8 sps:$4 sm:$0xff]  }
 0x688   : > { %15828 = vmatprep.mubr.bf16.mxu0 %v3040_v62  ;;  %v21104_v62 = vld [vmem:[%s21927_s22 + $0x39f4] ss:$8 sps:$4 sm:$0xff]  }
 0x689   : > { %14487 = vmatpush1.bf16.msra.mxu1 %v21015_v11  ;;  %v24112_v11 = vrot.slane %v2601_v2, %v21993_v51  ;;  %v21171_v2 = vld [vmem:[%s21927_s22 + $0x1ab0] ss:$8 sps:$4 sm:$0xff]  }
 0x68a   : > { %15799 = vmatpush1.bf16.msra.mxu0 %v21018_v24  ;;  %14488 = vmatprep.subr.bf16.mxu1 %v21023_v6  ;;  %v24115_v24 = vrot.slane %v2993_v44, %v21993_v51  ;;  %v21107_v6 = vld [vmem:[%s21927_s22 + $0x1a04] ss:$8 sps:$4 sm:$0xff]   ;;  %v21174_v44 = vld [vmem:[%s21927_s22 + $0x3ab0] ss:$8 sps:$4 sm:$0xff]  }
 0x68b   : > { %15800 = vmatprep.subr.bf16.mxu0 %v21026_v3  ;;  %v21110_v3 = vld [vmem:[%s21927_s22 + $0x3a04] ss:$8 sps:$4 sm:$0xff]  }
 0x68d   : > { %14489 = vmatpush1.bf16.msra.mxu1 %v21021_v0  ;;  %v2617_v0 = vcombine.high %v24112_v11, %v24112_v11 }
 0x68e   : > { %15801 = vmatpush1.bf16.msra.mxu0 %v21024_v25  ;;  %14490 = vmatprep.subr.bf16.mxu1 %v21029_v14  ;;  %v3009_v25 = vcombine.high %v24115_v24, %v24115_v24  ;;  %v2646_v14 = vcombine.high %v24035_v35, %v24035_v35 }
 0x68f   : > { %15802 = vmatprep.subr.bf16.mxu0 %v21032_v54  ;;  %v3038_v54 = vcombine.high %v24039_v22, %v24039_v22  ;;  %v21111_v22 = vld [vmem:[%s21927_s22 + $0x1a10] ss:$8 sps:$4 sm:$0xff]  }
 0x690   : > { %v24137_v35 = vrot.slane %v3009_v25, %v21993_v51  ;;  %v21194_v25 = vld [vmem:[%s21927_s22 + $0x3ae4] ss:$8 sps:$4 sm:$0xff]  }
 0x691   : > { %14491 = vmatpush1.bf16.msra.mxu1 %v21027_v60  ;;  %v21105_v60 = vld [vmem:[%s21927_s22 + $0x1a00] ss:$8 sps:$4 sm:$0xff]  }
 0x692   : > { %15803 = vmatpush1.bf16.msra.mxu0 %v21030_v58  ;;  %14492 = vmatprep.subr.bf16.mxu1 %v21035_v13  ;;  %v21108_v58 = vld [vmem:[%s21927_s22 + $0x3a00] ss:$8 sps:$4 sm:$0xff]   ;;  %v21113_v13 = vld [vmem:[%s21927_s22 + $0x1a14] ss:$8 sps:$4 sm:$0xff]  }
 0x693   : > { %15804 = vmatprep.subr.bf16.mxu0 %v21038_v29  ;;  %v21116_v29 = vld [vmem:[%s21927_s22 + $0x3a14] ss:$8 sps:$4 sm:$0xff]  }
 0x695   : > { %14493 = vmatpush1.bf16.msra.mxu1 %v21033_v36  ;;  %v24134_v36 = vrot.slane %v2617_v0, %v21993_v51  ;;  %v21191_v0 = vld [vmem:[%s21927_s22 + $0x1ae4] ss:$8 sps:$4 sm:$0xff]  }
 0x696   : > { %15805 = vmatpush1.bf16.msra.mxu0 %v21036_v37  ;;  %14494 = vmatprep.subr.bf16.mxu1 %v21041_v23  ;;  %v21114_v37 = vld [vmem:[%s21927_s22 + $0x3a10] ss:$8 sps:$4 sm:$0xff]   ;;  %v21119_v23 = vld [vmem:[%s21927_s22 + $0x1a24] ss:$8 sps:$4 sm:$0xff]  }
 0x697   : > { %15806 = vmatprep.subr.bf16.mxu0 %v21044_v45  ;;  %v21122_v45 = vld [vmem:[%s21927_s22 + $0x3a24] ss:$8 sps:$4 sm:$0xff]  }
 0x699   : > { %14495 = vmatpush1.bf16.msra.mxu1 %v21039_v30  ;;  %v21117_v30 = vld [vmem:[%s21927_s22 + $0x1a20] ss:$8 sps:$4 sm:$0xff]  }
 0x69a   : > { %15807 = vmatpush1.bf16.msra.mxu0 %v21042_v32  ;;  %14496 = vmatprep.subr.bf16.mxu1 %v21047_v61  ;;  %v21120_v32 = vld [vmem:[%s21927_s22 + $0x3a20] ss:$8 sps:$4 sm:$0xff]   ;;  %v21125_v61 = vld [vmem:[%s21927_s22 + $0x1a34] ss:$8 sps:$4 sm:$0xff]  }
 0x69b   : > { %15808 = vmatprep.subr.bf16.mxu0 %v21050_v10  ;;  %v21128_v10 = vld [vmem:[%s21927_s22 + $0x3a34] ss:$8 sps:$4 sm:$0xff]  }
 0x69d   : > { %14497 = vmatpush1.bf16.msra.mxu1 %v21045_v63  ;;  %v21123_v63 = vld [vmem:[%s21927_s22 + $0x1a30] ss:$8 sps:$4 sm:$0xff]  }
 0x69e   : > { %15809 = vmatpush1.bf16.msra.mxu0 %v21048_v9  ;;  %14498 = vmatprep.subr.bf16.mxu1 %v21053_v28  ;;  %v21126_v9 = vld [vmem:[%s21927_s22 + $0x3a30] ss:$8 sps:$4 sm:$0xff]   ;;  %v21131_v28 = vld [vmem:[%s21927_s22 + $0x1a44] ss:$8 sps:$4 sm:$0xff]  }
 0x69f   : > { %15810 = vmatprep.subr.bf16.mxu0 %v21056_v16  ;;  %v21134_v16 = vld [vmem:[%s21927_s22 + $0x3a44] ss:$8 sps:$4 sm:$0xff]  }
 0x6a1   : > { %14499 = vmatpush1.bf16.msra.mxu1 %v21051_v12  ;;  %v21129_v12 = vld [vmem:[%s21927_s22 + $0x1a40] ss:$8 sps:$4 sm:$0xff]  }
 0x6a2   : > { %15811 = vmatpush1.bf16.msra.mxu0 %v21054_v47  ;;  %14500 = vmatprep.subr.bf16.mxu1 %v21059_v27  ;;  %v21132_v47 = vld [vmem:[%s21927_s22 + $0x3a40] ss:$8 sps:$4 sm:$0xff]   ;;  %v21137_v27 = vld [vmem:[%s21927_s22 + $0x1a54] ss:$8 sps:$4 sm:$0xff]  }
 0x6a3   : > { %15812 = vmatprep.subr.bf16.mxu0 %v21062_v48  ;;  %v21140_v48 = vld [vmem:[%s21927_s22 + $0x3a54] ss:$8 sps:$4 sm:$0xff]  }
 0x6a5   : > { %14501 = vmatpush1.bf16.msra.mxu1 %v21057_v38  ;;  %v21135_v38 = vld [vmem:[%s21927_s22 + $0x1a50] ss:$8 sps:$4 sm:$0xff]  }
 0x6a6   : > { %15813 = vmatpush1.bf16.msra.mxu0 %v21060_v49  ;;  %14502 = vmatprep.subr.bf16.mxu1 %v21065_v33  ;;  %v21138_v49 = vld [vmem:[%s21927_s22 + $0x3a50] ss:$8 sps:$4 sm:$0xff]   ;;  %v21143_v33 = vld [vmem:[%s21927_s22 + $0x1a64] ss:$8 sps:$4 sm:$0xff]  }
 0x6a7   : > { %15814 = vmatprep.subr.bf16.mxu0 %v21068_v50  ;;  %v21146_v50 = vld [vmem:[%s21927_s22 + $0x3a64] ss:$8 sps:$4 sm:$0xff]  }
 0x6a9   : > { %14503 = vmatpush1.bf16.msra.mxu1 %v21063_v15  ;;  %v21141_v15 = vld [vmem:[%s21927_s22 + $0x1a60] ss:$8 sps:$4 sm:$0xff]  }
 0x6aa   : > { %15815 = vmatpush1.bf16.msra.mxu0 %v21066_v43  ;;  %14504 = vmatprep.subr.bf16.mxu1 %v21071_v56  ;;  %v21144_v43 = vld [vmem:[%s21927_s22 + $0x3a60] ss:$8 sps:$4 sm:$0xff]   ;;  %v21149_v56 = vld [vmem:[%s21927_s22 + $0x1a74] ss:$8 sps:$4 sm:$0xff]  }
 0x6ab   : > { %15816 = vmatprep.subr.bf16.mxu0 %v21074_v46  ;;  %v21152_v46 = vld [vmem:[%s21927_s22 + $0x3a74] ss:$8 sps:$4 sm:$0xff]  }
 0x6ad   : > { %14505 = vmatpush1.bf16.msra.mxu1 %v21069_v26  ;;  %v21147_v26 = vld [vmem:[%s21927_s22 + $0x1a70] ss:$8 sps:$4 sm:$0xff]  }
 0x6ae   : > { %15817 = vmatpush1.bf16.msra.mxu0 %v21072_v31  ;;  %14506 = vmatprep.subr.bf16.mxu1 %v21077_v52  ;;  %v21150_v31 = vld [vmem:[%s21927_s22 + $0x3a70] ss:$8 sps:$4 sm:$0xff]   ;;  %v21155_v52 = vld [vmem:[%s21927_s22 + $0x1a84] ss:$8 sps:$4 sm:$0xff]  }
 0x6af   : > { %15818 = vmatprep.subr.bf16.mxu0 %v21080_v18  ;;  %v21158_v18 = vld [vmem:[%s21927_s22 + $0x3a84] ss:$8 sps:$4 sm:$0xff]  }
 0x6b1   : > { %14507 = vmatpush1.bf16.msra.mxu1 %v21075_v19  ;;  %v21153_v19 = vld [vmem:[%s21927_s22 + $0x1a80] ss:$8 sps:$4 sm:$0xff]  }
 0x6b2   : > { %15819 = vmatpush1.bf16.msra.mxu0 %v21078_v55  ;;  %14508 = vmatprep.subr.bf16.mxu1 %v21083_v17  ;;  %v21156_v55 = vld [vmem:[%s21927_s22 + $0x3a80] ss:$8 sps:$4 sm:$0xff]   ;;  %v21161_v17 = vld [vmem:[%s21927_s22 + $0x1a94] ss:$8 sps:$4 sm:$0xff]  }
 0x6b3   : > { %15820 = vmatprep.subr.bf16.mxu0 %v21086_v57  ;;  %v21164_v57 = vld [vmem:[%s21927_s22 + $0x3a94] ss:$8 sps:$4 sm:$0xff]  }
 0x6b5   : > { %14509 = vmatpush1.bf16.msra.mxu1 %v21081_v34  ;;  %v21159_v34 = vld [vmem:[%s21927_s22 + $0x1a90] ss:$8 sps:$4 sm:$0xff]  }
 0x6b6   : > { %15821 = vmatpush1.bf16.msra.mxu0 %v21084_v4  ;;  %14510 = vmatprep.subr.bf16.mxu1 %v21089_v59  ;;  %v21162_v4 = vld [vmem:[%s21927_s22 + $0x3a90] ss:$8 sps:$4 sm:$0xff]   ;;  %v21167_v59 = vld [vmem:[%s21927_s22 + $0x1aa4] ss:$8 sps:$4 sm:$0xff]  }
 0x6b7   : > { %15822 = vmatprep.subr.bf16.mxu0 %v21092_v5  ;;  %v21170_v5 = vld [vmem:[%s21927_s22 + $0x3aa4] ss:$8 sps:$4 sm:$0xff]  }
 0x6b9   : > { %14511 = vmatpush1.bf16.msra.mxu1 %v21087_v1  ;;  %v21165_v1 = vld [vmem:[%s21927_s22 + $0x1aa0] ss:$8 sps:$4 sm:$0xff]  }
 0x6ba   : > { %15823 = vmatpush1.bf16.msra.mxu0 %v21090_v7  ;;  %14512 = vmatprep.subr.bf16.mxu1 %v21095_v20  ;;  %v21168_v7 = vld [vmem:[%s21927_s22 + $0x3aa0] ss:$8 sps:$4 sm:$0xff]   ;;  %v21173_v20 = vld [vmem:[%s21927_s22 + $0x1ab4] ss:$8 sps:$4 sm:$0xff]  }
 0x6bb   : > { %15824 = vmatprep.subr.bf16.mxu0 %v21098_v21  ;;  %v21176_v21 = vld [vmem:[%s21927_s22 + $0x3ab4] ss:$8 sps:$4 sm:$0xff]  }
 0x6bd   : > { %14513 = vmatpush1.bf16.msra.mxu1 %v21093_v42  ;;  %v21179_v42 = vld [vmem:[%s21927_s22 + $0x1ac4] ss:$8 sps:$4 sm:$0xff]  }
 0x6be   : > { %15825 = vmatpush1.bf16.msra.mxu0 %v21096_v41  ;;  %14514 = vmatprep.subr.bf16.mxu1 %v21101_v8  ;;  %v21182_v41 = vld [vmem:[%s21927_s22 + $0x3ac4] ss:$8 sps:$4 sm:$0xff]   ;;  %v21177_v8 = vld [vmem:[%s21927_s22 + $0x1ac0] ss:$8 sps:$4 sm:$0xff]  }
 0x6bf   : > { %15826 = vmatprep.subr.bf16.mxu0 %v21104_v62  ;;  %v21180_v62 = vld [vmem:[%s21927_s22 + $0x3ac0] ss:$8 sps:$4 sm:$0xff]  }
 0x6c1   : > { %14515 = vmatpush1.bf16.msra.mxu1 %v21099_v39  ;;  %v21185_v39 = vld [vmem:[%s21927_s22 + $0x1ad4] ss:$8 sps:$4 sm:$0xff]  }
 0x6c2   : > { %15827 = vmatpush1.bf16.msra.mxu0 %v21102_v53  ;;  %14525 = vmatprep.subr.bf16.mxu1 %v21107_v6  ;;  %v21188_v53 = vld [vmem:[%s21927_s22 + $0x3ad4] ss:$8 sps:$4 sm:$0xff]   ;;  %v21183_v6 = vld [vmem:[%s21927_s22 + $0x1ad0] ss:$8 sps:$4 sm:$0xff]  }
 0x6c3   : > { %15837 = vmatprep.subr.bf16.mxu0 %v21110_v3  ;;  %v21186_v3 = vld [vmem:[%s21927_s22 + $0x3ad0] ss:$8 sps:$4 sm:$0xff]  }
 0x6c4   : > { %14517 = vmatmul.mubr.bf16.vlgmr.msra.gmra.mrb[0].mxu1 %v2646_v14  ;;  %v21189_v14 = vld [vmem:[%s21927_s22 + $0x1ae0] ss:$8 sps:$4 sm:$0xff]  }
 0x6c5   : > { %15829 = vmatmul.mubr.bf16.vlgmr.msra.gmra.mrb[0].mxu0 %v3038_v54  ;;  %14526 = vmatpush1.bf16.msra.mxu1 %v21105_v60  ;;  %v21192_v54 = vld [vmem:[%s21927_s22 + $0x3ae0] ss:$8 sps:$4 sm:$0xff]   ;;  %v21197_v60 = vld [vmem:[%s21927_s22 + $0x1af4] ss:$8 sps:$4 sm:$0xff]  }
 0x6c6   : > { %15838 = vmatpush1.bf16.msra.mxu0 %v21108_v58  ;;  %14527 = vmatprep.subr.bf16.mxu1 %v21113_v13  ;;  %v21200_v58 = vld [vmem:[%s21927_s22 + $0x3af4] ss:$8 sps:$4 sm:$0xff]   ;;  %v21195_v13 = vld [vmem:[%s21927_s22 + $0x1af0] ss:$8 sps:$4 sm:$0xff]  }
 0x6c7   : > { %15839 = vmatprep.subr.bf16.mxu0 %v21116_v29  ;;  %14557 = vmatprep.mubr.bf16.mxu1 %v24134_v36  ;;  %v21198_v29 = vld [vmem:[%s21927_s22 + $0x3af0] ss:$8 sps:$4 sm:$0xff]  }
 0x6c8   : > { %15869 = vmatprep.mubr.bf16.mxu0 %v24137_v35 }
 0x6c9   : > { %14528 = vmatpush1.bf16.msra.mxu1 %v21111_v22  ;;  %v21204_v22 = vld [vmem:[%s21927_s22 + $0x1b04] ss:$8 sps:$4 sm:$0xff]  }
 0x6ca   : > { %15840 = vmatpush1.bf16.msra.mxu0 %v21114_v37  ;;  %14529 = vmatprep.subr.bf16.mxu1 %v21119_v23  ;;  %v21208_v37 = vld [vmem:[%s21927_s22 + $0x3b04] ss:$8 sps:$4 sm:$0xff]   ;;  %v24203_v23 = vrot.slane %v24112_v11, %v21993_v51  ;;  %v2649_v11 = vcombine.high %v24134_v36, %v24134_v36 }
 0x6cb   : > { %15841 = vmatprep.subr.bf16.mxu0 %v21122_v45  ;;  %v24207_v45 = vrot.slane %v24115_v24, %v21993_v51  ;;  %v21209_v24 = vld [vmem:[%s21927_s22 + $0x1b10] ss:$8 sps:$4 sm:$0xff]   ;;  %v21217_v36 = vld [vmem:[%s21927_s22 + $0x1b24] ss:$8 sps:$4 sm:$0xff]  }
 0x6cd   : > { %14530 = vmatpush1.bf16.msra.mxu1 %v21117_v30  ;;  %v21202_v30 = vld [vmem:[%s21927_s22 + $0x1b00] ss:$8 sps:$4 sm:$0xff]  }
 0x6ce   : > { %15842 = vmatpush1.bf16.msra.mxu0 %v21120_v32  ;;  %14531 = vmatprep.subr.bf16.mxu1 %v21125_v61  ;;  %v21206_v32 = vld [vmem:[%s21927_s22 + $0x3b00] ss:$8 sps:$4 sm:$0xff]   ;;  %v21211_v61 = vld [vmem:[%s21927_s22 + $0x1b14] ss:$8 sps:$4 sm:$0xff]  }
 0x6cf   : > { %15843 = vmatprep.subr.bf16.mxu0 %v21128_v10  ;;  %v21214_v10 = vld [vmem:[%s21927_s22 + $0x3b14] ss:$8 sps:$4 sm:$0xff]  }
 0x6d1   : > { %14532 = vmatpush1.bf16.msra.mxu1 %v21123_v63  ;;  %v3041_v63 = vcombine.high %v24137_v35, %v24137_v35  ;;  %v21215_v35 = vld [vmem:[%s21927_s22 + $0x1b20] ss:$8 sps:$4 sm:$0xff]  }
 0x6d2   : > { %15844 = vmatpush1.bf16.msra.mxu0 %v21126_v9  ;;  %14533 = vmatprep.subr.bf16.mxu1 %v21131_v28  ;;  %v21212_v9 = vld [vmem:[%s21927_s22 + $0x3b10] ss:$8 sps:$4 sm:$0xff]   ;;  %v21220_v28 = vld [vmem:[%s21927_s22 + $0x3b24] ss:$8 sps:$4 sm:$0xff]  }
 0x6d3   : > { %15845 = vmatprep.subr.bf16.mxu0 %v21134_v16  ;;  %v21218_v16 = vld [vmem:[%s21927_s22 + $0x3b20] ss:$8 sps:$4 sm:$0xff]  }
 0x6d5   : > { %14534 = vmatpush1.bf16.msra.mxu1 %v21129_v12  ;;  %v21223_v12 = vld [vmem:[%s21927_s22 + $0x1b34] ss:$8 sps:$4 sm:$0xff]  }
 0x6d6   : > { %15846 = vmatpush1.bf16.msra.mxu0 %v21132_v47  ;;  %14535 = vmatprep.subr.bf16.mxu1 %v21137_v27  ;;  %v21226_v47 = vld [vmem:[%s21927_s22 + $0x3b34] ss:$8 sps:$4 sm:$0xff]   ;;  %v21221_v27 = vld [vmem:[%s21927_s22 + $0x1b30] ss:$8 sps:$4 sm:$0xff]  }
 0x6d7   : > { %15847 = vmatprep.subr.bf16.mxu0 %v21140_v48  ;;  %v21224_v48 = vld [vmem:[%s21927_s22 + $0x3b30] ss:$8 sps:$4 sm:$0xff]  }
 0x6d9   : > { %14536 = vmatpush1.bf16.msra.mxu1 %v21135_v38  ;;  %v21229_v38 = vld [vmem:[%s21927_s22 + $0x1b44] ss:$8 sps:$4 sm:$0xff]  }
 0x6da   : > { %15848 = vmatpush1.bf16.msra.mxu0 %v21138_v49  ;;  %14537 = vmatprep.subr.bf16.mxu1 %v21143_v33  ;;  %v21232_v49 = vld [vmem:[%s21927_s22 + $0x3b44] ss:$8 sps:$4 sm:$0xff]   ;;  %v21227_v33 = vld [vmem:[%s21927_s22 + $0x1b40] ss:$8 sps:$4 sm:$0xff]  }
 0x6db   : > { %15849 = vmatprep.subr.bf16.mxu0 %v21146_v50  ;;  %v21230_v50 = vld [vmem:[%s21927_s22 + $0x3b40] ss:$8 sps:$4 sm:$0xff]  }
 0x6dd   : > { %14538 = vmatpush1.bf16.msra.mxu1 %v21141_v15  ;;  %v21235_v15 = vld [vmem:[%s21927_s22 + $0x1b54] ss:$8 sps:$4 sm:$0xff]  }
 0x6de   : > { %15850 = vmatpush1.bf16.msra.mxu0 %v21144_v43  ;;  %14539 = vmatprep.subr.bf16.mxu1 %v21149_v56  ;;  %v21238_v43 = vld [vmem:[%s21927_s22 + $0x3b54] ss:$8 sps:$4 sm:$0xff]   ;;  %v21233_v56 = vld [vmem:[%s21927_s22 + $0x1b50] ss:$8 sps:$4 sm:$0xff]  }
 0x6df   : > { %15851 = vmatprep.subr.bf16.mxu0 %v21152_v46  ;;  %v21236_v46 = vld [vmem:[%s21927_s22 + $0x3b50] ss:$8 sps:$4 sm:$0xff]  }
 0x6e1   : > { %14540 = vmatpush1.bf16.msra.mxu1 %v21147_v26  ;;  %v21241_v26 = vld [vmem:[%s21927_s22 + $0x1b64] ss:$8 sps:$4 sm:$0xff]  }
 0x6e2   : > { %15852 = vmatpush1.bf16.msra.mxu0 %v21150_v31  ;;  %14541 = vmatprep.subr.bf16.mxu1 %v21155_v52  ;;  %v21244_v31 = vld [vmem:[%s21927_s22 + $0x3b64] ss:$8 sps:$4 sm:$0xff]   ;;  %v21239_v52 = vld [vmem:[%s21927_s22 + $0x1b60] ss:$8 sps:$4 sm:$0xff]  }
 0x6e3   : > { %15853 = vmatprep.subr.bf16.mxu0 %v21158_v18  ;;  %v21242_v18 = vld [vmem:[%s21927_s22 + $0x3b60] ss:$8 sps:$4 sm:$0xff]  }
 0x6e5   : > { %14542 = vmatpush1.bf16.msra.mxu1 %v21153_v19  ;;  %v21247_v19 = vld [vmem:[%s21927_s22 + $0x1b74] ss:$8 sps:$4 sm:$0xff]  }
 0x6e6   : > { %15854 = vmatpush1.bf16.msra.mxu0 %v21156_v55  ;;  %14543 = vmatprep.subr.bf16.mxu1 %v21161_v17  ;;  %v21250_v55 = vld [vmem:[%s21927_s22 + $0x3b74] ss:$8 sps:$4 sm:$0xff]   ;;  %v21245_v17 = vld [vmem:[%s21927_s22 + $0x1b70] ss:$8 sps:$4 sm:$0xff]  }
 0x6e7   : > { %15855 = vmatprep.subr.bf16.mxu0 %v21164_v57  ;;  %v21248_v57 = vld [vmem:[%s21927_s22 + $0x3b70] ss:$8 sps:$4 sm:$0xff]  }
 0x6e9   : > { %14544 = vmatpush1.bf16.msra.mxu1 %v21159_v34  ;;  %v21253_v34 = vld [vmem:[%s21927_s22 + $0x1b84] ss:$8 sps:$4 sm:$0xff]  }
 0x6ea   : > { %15856 = vmatpush1.bf16.msra.mxu0 %v21162_v4  ;;  %14545 = vmatprep.subr.bf16.mxu1 %v21167_v59  ;;  %v21256_v4 = vld [vmem:[%s21927_s22 + $0x3b84] ss:$8 sps:$4 sm:$0xff]   ;;  %v21251_v59 = vld [vmem:[%s21927_s22 + $0x1b80] ss:$8 sps:$4 sm:$0xff]  }
 0x6eb   : > { %15857 = vmatprep.subr.bf16.mxu0 %v21170_v5  ;;  %v21254_v5 = vld [vmem:[%s21927_s22 + $0x3b80] ss:$8 sps:$4 sm:$0xff]  }
 0x6ed   : > { %14546 = vmatpush1.bf16.msra.mxu1 %v21165_v1  ;;  %v21259_v1 = vld [vmem:[%s21927_s22 + $0x1b94] ss:$8 sps:$4 sm:$0xff]  }
 0x6ee   : > { %15858 = vmatpush1.bf16.msra.mxu0 %v21168_v7  ;;  %14547 = vmatprep.subr.bf16.mxu1 %v21173_v20  ;;  %v21262_v7 = vld [vmem:[%s21927_s22 + $0x3b94] ss:$8 sps:$4 sm:$0xff]   ;;  %v21257_v20 = vld [vmem:[%s21927_s22 + $0x1b90] ss:$8 sps:$4 sm:$0xff]  }
 0x6ef   : > { %15859 = vmatprep.subr.bf16.mxu0 %v21176_v21  ;;  %v21260_v21 = vld [vmem:[%s21927_s22 + $0x3b90] ss:$8 sps:$4 sm:$0xff]  }
 0x6f1   : > { %14548 = vmatpush1.bf16.msra.mxu1 %v21171_v2  ;;  %v21265_v2 = vld [vmem:[%s21927_s22 + $0x1ba4] ss:$8 sps:$4 sm:$0xff]  }
 0x6f2   : > { %15860 = vmatpush1.bf16.msra.mxu0 %v21174_v44  ;;  %14549 = vmatprep.subr.bf16.mxu1 %v21179_v42  ;;  %v21268_v44 = vld [vmem:[%s21927_s22 + $0x3ba4] ss:$8 sps:$4 sm:$0xff]   ;;  %v21263_v42 = vld [vmem:[%s21927_s22 + $0x1ba0] ss:$8 sps:$4 sm:$0xff]  }
 0x6f3   : > { %15861 = vmatprep.subr.bf16.mxu0 %v21182_v41  ;;  %v21266_v41 = vld [vmem:[%s21927_s22 + $0x3ba0] ss:$8 sps:$4 sm:$0xff]  }
 0x6f5   : > { %14550 = vmatpush1.bf16.msra.mxu1 %v21177_v8  ;;  %v21271_v8 = vld [vmem:[%s21927_s22 + $0x1bb4] ss:$8 sps:$4 sm:$0xff]  }
 0x6f6   : > { %15862 = vmatpush1.bf16.msra.mxu0 %v21180_v62  ;;  %14551 = vmatprep.subr.bf16.mxu1 %v21185_v39  ;;  %v21274_v62 = vld [vmem:[%s21927_s22 + $0x3bb4] ss:$8 sps:$4 sm:$0xff]   ;;  %v21269_v39 = vld [vmem:[%s21927_s22 + $0x1bb0] ss:$8 sps:$4 sm:$0xff]  }
 0x6f7   : > { %15863 = vmatprep.subr.bf16.mxu0 %v21188_v53  ;;  %v21272_v53 = vld [vmem:[%s21927_s22 + $0x3bb0] ss:$8 sps:$4 sm:$0xff]  }
 0x6f9   : > { %14552 = vmatpush1.bf16.msra.mxu1 %v21183_v6  ;;  %v21277_v6 = vld [vmem:[%s21927_s22 + $0x1bc4] ss:$8 sps:$4 sm:$0xff]  }
 0x6fa   : > { %15864 = vmatpush1.bf16.msra.mxu0 %v21186_v3  ;;  %14553 = vmatprep.subr.bf16.mxu1 %v21191_v0  ;;  %v21280_v3 = vld [vmem:[%s21927_s22 + $0x3bc4] ss:$8 sps:$4 sm:$0xff]   ;;  %v21275_v0 = vld [vmem:[%s21927_s22 + $0x1bc0] ss:$8 sps:$4 sm:$0xff]  }
 0x6fb   : > { %15865 = vmatprep.subr.bf16.mxu0 %v21194_v25  ;;  %v21278_v25 = vld [vmem:[%s21927_s22 + $0x3bc0] ss:$8 sps:$4 sm:$0xff]  }
 0x6fd   : > { %14554 = vmatpush1.bf16.msra.mxu1 %v21189_v14  ;;  %v21283_v14 = vld [vmem:[%s21927_s22 + $0x1bd4] ss:$8 sps:$4 sm:$0xff]  }
 0x6fe   : > { %15866 = vmatpush1.bf16.msra.mxu0 %v21192_v54  ;;  %14555 = vmatprep.subr.bf16.mxu1 %v21197_v60  ;;  %v21286_v54 = vld [vmem:[%s21927_s22 + $0x3bd4] ss:$8 sps:$4 sm:$0xff]   ;;  %v21281_v60 = vld [vmem:[%s21927_s22 + $0x1bd0] ss:$8 sps:$4 sm:$0xff]  }
 0x6ff   : > { %15867 = vmatprep.subr.bf16.mxu0 %v21200_v58  ;;  %v21284_v58 = vld [vmem:[%s21927_s22 + $0x3bd0] ss:$8 sps:$4 sm:$0xff]  }
 0x701   : > { %14556 = vmatpush1.bf16.msra.mxu1 %v21195_v13  ;;  %v21289_v13 = vld [vmem:[%s21927_s22 + $0x1be4] ss:$8 sps:$4 sm:$0xff]  }
 0x702   : > { %15868 = vmatpush1.bf16.msra.mxu0 %v21198_v29  ;;  %14566 = vmatprep.subr.bf16.mxu1 %v21204_v22  ;;  %v21292_v29 = vld [vmem:[%s21927_s22 + $0x3be4] ss:$8 sps:$4 sm:$0xff]   ;;  %v24272_v22 = vld [vmem:[%s21940_s26 + $0x38] sm:$0xff] }
 0x703   : > { %15878 = vmatprep.subr.bf16.mxu0 %v21208_v37  ;;  %v24275_v37 = vld [vmem:[%s21940_s26 + $0x78] sm:$0xff] }
 0x704   : > { %14558 = vmatmul.mubr.bf16.vlgmr.msra.gmra.mrb[0].mxu1 %v24203_v23 }
 0x705   : > { %15870 = vmatmul.mubr.bf16.vlgmr.msra.gmra.mrb[0].mxu0 %v24207_v45  ;;  %14567 = vmatpush1.bf16.msra.mxu1 %v21202_v30  ;;  %v21287_v30 = vld [vmem:[%s21927_s22 + $0x1be0] ss:$8 sps:$4 sm:$0xff]  }
 0x706   : > { %15879 = vmatpush1.bf16.msra.mxu0 %v21206_v32  ;;  %14568 = vmatprep.subr.bf16.mxu1 %v21211_v61  ;;  %v21290_v32 = vld [vmem:[%s21927_s22 + $0x3be0] ss:$8 sps:$4 sm:$0xff]   ;;  %v21295_v61 = vld [vmem:[%s21927_s22 + $0x1bf4] ss:$8 sps:$4 sm:$0xff]  }
 0x707   : > { %15880 = vmatprep.subr.bf16.mxu0 %v21214_v10  ;;  %14598 = vmatprep.mubr.bf16.mxu1 %v2649_v11  ;;  %v21298_v10 = vld [vmem:[%s21927_s22 + $0x3bf4] ss:$8 sps:$4 sm:$0xff]   ;;  %v24283_v11 = vrot.slane %v24272_v22, %v21993_v51 }
 0x708   : > { %15910 = vmatprep.mubr.bf16.mxu0 %v3041_v63  ;;  %v24287_v63 = vrot.slane %v24275_v37, %v21993_v51 }
 0x709   : > { %14569 = vmatpush1.bf16.msra.mxu1 %v21209_v24  ;;  %v21293_v24 = vld [vmem:[%s21927_s22 + $0x1bf0] ss:$8 sps:$4 sm:$0xff]  }
 0x70a   : > { %15881 = vmatpush1.bf16.msra.mxu0 %v21212_v9  ;;  %14570 = vmatprep.subr.bf16.mxu1 %v21217_v36  ;;  %v21296_v9 = vld [vmem:[%s21927_s22 + $0x3bf0] ss:$8 sps:$4 sm:$0xff]   ;;  %v21301_v36 = vld [vmem:[%s21927_s22 + $0x1c04] ss:$8 sps:$4 sm:$0xff]  }
 0x70b   : > { %15882 = vmatprep.subr.bf16.mxu0 %v21220_v28  ;;  %v21304_v28 = vld [vmem:[%s21927_s22 + $0x3c04] ss:$8 sps:$4 sm:$0xff]  }
 0x70d   : > { %14571 = vmatpush1.bf16.msra.mxu1 %v21215_v35  ;;  %v2665_v35 = vcombine.high %v24283_v11, %v24283_v11 }
 0x70e   : > { %15883 = vmatpush1.bf16.msra.mxu0 %v21218_v16  ;;  %14572 = vmatprep.subr.bf16.mxu1 %v21223_v12  ;;  %v3057_v16 = vcombine.high %v24287_v63, %v24287_v63  ;;  %v2647_v12 = vcombine.high %v24203_v23, %v24203_v23 }
 0x70f   : > { %15884 = vmatprep.subr.bf16.mxu0 %v21226_v47  ;;  %v3039_v47 = vcombine.high %v24207_v45, %v24207_v45  ;;  %v21305_v45 = vld [vmem:[%s21927_s22 + $0x1c10] ss:$8 sps:$4 sm:$0xff]  }
 0x710   : > { %v24309_v23 = vrot.slane %v3057_v16, %v21993_v51  ;;  %v21380_v16 = vld [vmem:[%s21927_s22 + $0x3cd0] ss:$8 sps:$4 sm:$0xff]  }
 0x711   : > { %14573 = vmatpush1.bf16.msra.mxu1 %v21221_v27  ;;  %v21299_v27 = vld [vmem:[%s21927_s22 + $0x1c00] ss:$8 sps:$4 sm:$0xff]  }
 0x712   : > { %15885 = vmatpush1.bf16.msra.mxu0 %v21224_v48  ;;  %14574 = vmatprep.subr.bf16.mxu1 %v21229_v38  ;;  %v21302_v48 = vld [vmem:[%s21927_s22 + $0x3c00] ss:$8 sps:$4 sm:$0xff]   ;;  %v21307_v38 = vld [vmem:[%s21927_s22 + $0x1c14] ss:$8 sps:$4 sm:$0xff]  }
 0x713   : > { %15886 = vmatprep.subr.bf16.mxu0 %v21232_v49  ;;  %v21310_v49 = vld [vmem:[%s21927_s22 + $0x3c14] ss:$8 sps:$4 sm:$0xff]  }
 0x715   : > { %14575 = vmatpush1.bf16.msra.mxu1 %v21227_v33  ;;  %v24306_v33 = vrot.slane %v2665_v35, %v21993_v51  ;;  %v21377_v35 = vld [vmem:[%s21927_s22 + $0x1cd0] ss:$8 sps:$4 sm:$0xff]  }
 0x716   : > { %15887 = vmatpush1.bf16.msra.mxu0 %v21230_v50  ;;  %14576 = vmatprep.subr.bf16.mxu1 %v21235_v15  ;;  %v21308_v50 = vld [vmem:[%s21927_s22 + $0x3c10] ss:$8 sps:$4 sm:$0xff]   ;;  %v21313_v15 = vld [vmem:[%s21927_s22 + $0x1c24] ss:$8 sps:$4 sm:$0xff]  }
 0x717   : > { %15888 = vmatprep.subr.bf16.mxu0 %v21238_v43  ;;  %v21316_v43 = vld [vmem:[%s21927_s22 + $0x3c24] ss:$8 sps:$4 sm:$0xff]  }
 0x719   : > { %14577 = vmatpush1.bf16.msra.mxu1 %v21233_v56  ;;  %v21311_v56 = vld [vmem:[%s21927_s22 + $0x1c20] ss:$8 sps:$4 sm:$0xff]  }
 0x71a   : > { %15889 = vmatpush1.bf16.msra.mxu0 %v21236_v46  ;;  %14578 = vmatprep.subr.bf16.mxu1 %v21241_v26  ;;  %v21314_v46 = vld [vmem:[%s21927_s22 + $0x3c20] ss:$8 sps:$4 sm:$0xff]   ;;  %v21319_v26 = vld [vmem:[%s21927_s22 + $0x1c34] ss:$8 sps:$4 sm:$0xff]  }
 0x71b   : > { %15890 = vmatprep.subr.bf16.mxu0 %v21244_v31  ;;  %v21322_v31 = vld [vmem:[%s21927_s22 + $0x3c34] ss:$8 sps:$4 sm:$0xff]  }
 0x71d   : > { %14579 = vmatpush1.bf16.msra.mxu1 %v21239_v52  ;;  %v21317_v52 = vld [vmem:[%s21927_s22 + $0x1c30] ss:$8 sps:$4 sm:$0xff]  }
 0x71e   : > { %15891 = vmatpush1.bf16.msra.mxu0 %v21242_v18  ;;  %14580 = vmatprep.subr.bf16.mxu1 %v21247_v19  ;;  %v21320_v18 = vld [vmem:[%s21927_s22 + $0x3c30] ss:$8 sps:$4 sm:$0xff]   ;;  %v21325_v19 = vld [vmem:[%s21927_s22 + $0x1c44] ss:$8 sps:$4 sm:$0xff]  }
 0x71f   : > { %15892 = vmatprep.subr.bf16.mxu0 %v21250_v55  ;;  %v21328_v55 = vld [vmem:[%s21927_s22 + $0x3c44] ss:$8 sps:$4 sm:$0xff]  }
 0x721   : > { %14581 = vmatpush1.bf16.msra.mxu1 %v21245_v17  ;;  %v21323_v17 = vld [vmem:[%s21927_s22 + $0x1c40] ss:$8 sps:$4 sm:$0xff]  }
 0x722   : > { %15893 = vmatpush1.bf16.msra.mxu0 %v21248_v57  ;;  %14582 = vmatprep.subr.bf16.mxu1 %v21253_v34  ;;  %v21326_v57 = vld [vmem:[%s21927_s22 + $0x3c40] ss:$8 sps:$4 sm:$0xff]   ;;  %v21331_v34 = vld [vmem:[%s21927_s22 + $0x1c54] ss:$8 sps:$4 sm:$0xff]  }
 0x723   : > { %15894 = vmatprep.subr.bf16.mxu0 %v21256_v4  ;;  %v21334_v4 = vld [vmem:[%s21927_s22 + $0x3c54] ss:$8 sps:$4 sm:$0xff]  }
 0x725   : > { %14583 = vmatpush1.bf16.msra.mxu1 %v21251_v59  ;;  %v21329_v59 = vld [vmem:[%s21927_s22 + $0x1c50] ss:$8 sps:$4 sm:$0xff]  }
 0x726   : > { %15895 = vmatpush1.bf16.msra.mxu0 %v21254_v5  ;;  %14584 = vmatprep.subr.bf16.mxu1 %v21259_v1  ;;  %v21332_v5 = vld [vmem:[%s21927_s22 + $0x3c50] ss:$8 sps:$4 sm:$0xff]   ;;  %v21337_v1 = vld [vmem:[%s21927_s22 + $0x1c64] ss:$8 sps:$4 sm:$0xff]  }
 0x727   : > { %15896 = vmatprep.subr.bf16.mxu0 %v21262_v7  ;;  %v21340_v7 = vld [vmem:[%s21927_s22 + $0x3c64] ss:$8 sps:$4 sm:$0xff]  }
 0x729   : > { %14585 = vmatpush1.bf16.msra.mxu1 %v21257_v20  ;;  %v21335_v20 = vld [vmem:[%s21927_s22 + $0x1c60] ss:$8 sps:$4 sm:$0xff]  }
 0x72a   : > { %15897 = vmatpush1.bf16.msra.mxu0 %v21260_v21  ;;  %14586 = vmatprep.subr.bf16.mxu1 %v21265_v2  ;;  %v21338_v21 = vld [vmem:[%s21927_s22 + $0x3c60] ss:$8 sps:$4 sm:$0xff]   ;;  %v21343_v2 = vld [vmem:[%s21927_s22 + $0x1c74] ss:$8 sps:$4 sm:$0xff]  }
 0x72b   : > { %15898 = vmatprep.subr.bf16.mxu0 %v21268_v44  ;;  %v21346_v44 = vld [vmem:[%s21927_s22 + $0x3c74] ss:$8 sps:$4 sm:$0xff]  }
 0x72d   : > { %14587 = vmatpush1.bf16.msra.mxu1 %v21263_v42  ;;  %v21341_v42 = vld [vmem:[%s21927_s22 + $0x1c70] ss:$8 sps:$4 sm:$0xff]  }
 0x72e   : > { %15899 = vmatpush1.bf16.msra.mxu0 %v21266_v41  ;;  %14588 = vmatprep.subr.bf16.mxu1 %v21271_v8  ;;  %v21344_v41 = vld [vmem:[%s21927_s22 + $0x3c70] ss:$8 sps:$4 sm:$0xff]   ;;  %v21349_v8 = vld [vmem:[%s21927_s22 + $0x1c84] ss:$8 sps:$4 sm:$0xff]  }
 0x72f   : > { %15900 = vmatprep.subr.bf16.mxu0 %v21274_v62  ;;  %v21352_v62 = vld [vmem:[%s21927_s22 + $0x3c84] ss:$8 sps:$4 sm:$0xff]  }
 0x731   : > { %14589 = vmatpush1.bf16.msra.mxu1 %v21269_v39  ;;  %v21347_v39 = vld [vmem:[%s21927_s22 + $0x1c80] ss:$8 sps:$4 sm:$0xff]  }
 0x732   : > { %15901 = vmatpush1.bf16.msra.mxu0 %v21272_v53  ;;  %14590 = vmatprep.subr.bf16.mxu1 %v21277_v6  ;;  %v21350_v53 = vld [vmem:[%s21927_s22 + $0x3c80] ss:$8 sps:$4 sm:$0xff]   ;;  %v21355_v6 = vld [vmem:[%s21927_s22 + $0x1c94] ss:$8 sps:$4 sm:$0xff]  }
 0x733   : > { %15902 = vmatprep.subr.bf16.mxu0 %v21280_v3  ;;  %v21358_v3 = vld [vmem:[%s21927_s22 + $0x3c94] ss:$8 sps:$4 sm:$0xff]  }
 0x735   : > { %14591 = vmatpush1.bf16.msra.mxu1 %v21275_v0  ;;  %v21353_v0 = vld [vmem:[%s21927_s22 + $0x1c90] ss:$8 sps:$4 sm:$0xff]  }
 0x736   : > { %15903 = vmatpush1.bf16.msra.mxu0 %v21278_v25  ;;  %14592 = vmatprep.subr.bf16.mxu1 %v21283_v14  ;;  %v21356_v25 = vld [vmem:[%s21927_s22 + $0x3c90] ss:$8 sps:$4 sm:$0xff]   ;;  %v21361_v14 = vld [vmem:[%s21927_s22 + $0x1ca4] ss:$8 sps:$4 sm:$0xff]  }
 0x737   : > { %15904 = vmatprep.subr.bf16.mxu0 %v21286_v54  ;;  %v21364_v54 = vld [vmem:[%s21927_s22 + $0x3ca4] ss:$8 sps:$4 sm:$0xff]  }
 0x739   : > { %14593 = vmatpush1.bf16.msra.mxu1 %v21281_v60  ;;  %v21359_v60 = vld [vmem:[%s21927_s22 + $0x1ca0] ss:$8 sps:$4 sm:$0xff]  }
 0x73a   : > { %15905 = vmatpush1.bf16.msra.mxu0 %v21284_v58  ;;  %14594 = vmatprep.subr.bf16.mxu1 %v21289_v13  ;;  %v21362_v58 = vld [vmem:[%s21927_s22 + $0x3ca0] ss:$8 sps:$4 sm:$0xff]   ;;  %v21367_v13 = vld [vmem:[%s21927_s22 + $0x1cb4] ss:$8 sps:$4 sm:$0xff]  }
 0x73b   : > { %15906 = vmatprep.subr.bf16.mxu0 %v21292_v29  ;;  %v21370_v29 = vld [vmem:[%s21927_s22 + $0x3cb4] ss:$8 sps:$4 sm:$0xff]  }
 0x73d   : > { %14595 = vmatpush1.bf16.msra.mxu1 %v21287_v30  ;;  %v21365_v30 = vld [vmem:[%s21927_s22 + $0x1cb0] ss:$8 sps:$4 sm:$0xff]  }
 0x73e   : > { %15907 = vmatpush1.bf16.msra.mxu0 %v21290_v32  ;;  %14596 = vmatprep.subr.bf16.mxu1 %v21295_v61  ;;  %v21368_v32 = vld [vmem:[%s21927_s22 + $0x3cb0] ss:$8 sps:$4 sm:$0xff]   ;;  %v21373_v61 = vld [vmem:[%s21927_s22 + $0x1cc4] ss:$8 sps:$4 sm:$0xff]  }
 0x73f   : > { %15908 = vmatprep.subr.bf16.mxu0 %v21298_v10  ;;  %v21376_v10 = vld [vmem:[%s21927_s22 + $0x3cc4] ss:$8 sps:$4 sm:$0xff]  }
 0x741   : > { %14597 = vmatpush1.bf16.msra.mxu1 %v21293_v24  ;;  %v21371_v24 = vld [vmem:[%s21927_s22 + $0x1cc0] ss:$8 sps:$4 sm:$0xff]  }
 0x742   : > { %15909 = vmatpush1.bf16.msra.mxu0 %v21296_v9  ;;  %14607 = vmatprep.subr.bf16.mxu1 %v21301_v36  ;;  %v21374_v9 = vld [vmem:[%s21927_s22 + $0x3cc0] ss:$8 sps:$4 sm:$0xff]   ;;  %v21379_v36 = vld [vmem:[%s21927_s22 + $0x1cd4] ss:$8 sps:$4 sm:$0xff]  }
 0x743   : > { %15919 = vmatprep.subr.bf16.mxu0 %v21304_v28  ;;  %v21382_v28 = vld [vmem:[%s21927_s22 + $0x3cd4] ss:$8 sps:$4 sm:$0xff]  }
 0x744   : > { %14599 = vmatmul.mubr.bf16.vlgmr.msra.gmra.mrb[0].mxu1 %v2647_v12  ;;  %v21385_v12 = vld [vmem:[%s21927_s22 + $0x1ce4] ss:$8 sps:$4 sm:$0xff]  }
 0x745   : > { %15911 = vmatmul.mubr.bf16.vlgmr.msra.gmra.mrb[0].mxu0 %v3039_v47  ;;  %14608 = vmatpush1.bf16.msra.mxu1 %v21299_v27  ;;  %v21388_v47 = vld [vmem:[%s21927_s22 + $0x3ce4] ss:$8 sps:$4 sm:$0xff]   ;;  %v21383_v27 = vld [vmem:[%s21927_s22 + $0x1ce0] ss:$8 sps:$4 sm:$0xff]  }
 0x746   : > { %15920 = vmatpush1.bf16.msra.mxu0 %v21302_v48  ;;  %14609 = vmatprep.subr.bf16.mxu1 %v21307_v38  ;;  %v21386_v48 = vld [vmem:[%s21927_s22 + $0x3ce0] ss:$8 sps:$4 sm:$0xff]   ;;  %v21391_v38 = vld [vmem:[%s21927_s22 + $0x1cf4] ss:$8 sps:$4 sm:$0xff]  }
 0x747   : > { %15921 = vmatprep.subr.bf16.mxu0 %v21310_v49  ;;  %14639 = vmatprep.mubr.bf16.mxu1 %v24306_v33  ;;  %v21394_v49 = vld [vmem:[%s21927_s22 + $0x3cf4] ss:$8 sps:$4 sm:$0xff]  }
 0x748   : > { %15951 = vmatprep.mubr.bf16.mxu0 %v24309_v23 }
 0x749   : > { %14610 = vmatpush1.bf16.msra.mxu1 %v21305_v45  ;;  %v21389_v45 = vld [vmem:[%s21927_s22 + $0x1cf0] ss:$8 sps:$4 sm:$0xff]  }
 0x74a   : > { %15922 = vmatpush1.bf16.msra.mxu0 %v21308_v50  ;;  %14611 = vmatprep.subr.bf16.mxu1 %v21313_v15  ;;  %v21392_v50 = vld [vmem:[%s21927_s22 + $0x3cf0] ss:$8 sps:$4 sm:$0xff]   ;;  %v21397_v15 = vld [vmem:[%s21927_s22 + $0x1d04] ss:$8 sps:$4 sm:$0xff]  }
 0x74b   : > { %15923 = vmatprep.subr.bf16.mxu0 %v21316_v43  ;;  %v21400_v43 = vld [vmem:[%s21927_s22 + $0x3d04] ss:$8 sps:$4 sm:$0xff]  }
 0x74d   : > { %14612 = vmatpush1.bf16.msra.mxu1 %v21311_v56  ;;  %v24375_v56 = vrot.slane %v24283_v11, %v21993_v51  ;;  %v2697_v11 = vcombine.high %v24306_v33, %v24306_v33  ;;  %v21409_v33 = vld [vmem:[%s21927_s22 + $0x1d24] ss:$8 sps:$4 sm:$0xff]  }
 0x74e   : > { %15924 = vmatpush1.bf16.msra.mxu0 %v21314_v46  ;;  %14613 = vmatprep.subr.bf16.mxu1 %v21319_v26  ;;  %v24379_v46 = vrot.slane %v24287_v63, %v21993_v51  ;;  %v21395_v26 = vld [vmem:[%s21927_s22 + $0x1d00] ss:$8 sps:$4 sm:$0xff]   ;;  %v21401_v63 = vld [vmem:[%s21927_s22 + $0x1d10] ss:$8 sps:$4 sm:$0xff]  }
 0x74f   : > { %15925 = vmatprep.subr.bf16.mxu0 %v21322_v31  ;;  %v21398_v31 = vld [vmem:[%s21927_s22 + $0x3d00] ss:$8 sps:$4 sm:$0xff]  }
 0x751   : > { %14614 = vmatpush1.bf16.msra.mxu1 %v21317_v52  ;;  %v21403_v52 = vld [vmem:[%s21927_s22 + $0x1d14] ss:$8 sps:$4 sm:$0xff]  }
 0x752   : > { %15926 = vmatpush1.bf16.msra.mxu0 %v21320_v18  ;;  %14615 = vmatprep.subr.bf16.mxu1 %v21325_v19  ;;  %v21406_v18 = vld [vmem:[%s21927_s22 + $0x3d14] ss:$8 sps:$4 sm:$0xff]   ;;  %v3089_v19 = vcombine.high %v24309_v23, %v24309_v23  ;;  %v21407_v23 = vld [vmem:[%s21927_s22 + $0x1d20] ss:$8 sps:$4 sm:$0xff]  }
 0x753   : > { %15927 = vmatprep.subr.bf16.mxu0 %v21328_v55  ;;  %v21404_v55 = vld [vmem:[%s21927_s22 + $0x3d10] ss:$8 sps:$4 sm:$0xff]  }
 0x755   : > { %14616 = vmatpush1.bf16.msra.mxu1 %v21323_v17  ;;  %v21412_v17 = vld [vmem:[%s21927_s22 + $0x3d24] ss:$8 sps:$4 sm:$0xff]  }
 0x756   : > { %15928 = vmatpush1.bf16.msra.mxu0 %v21326_v57  ;;  %14617 = vmatprep.subr.bf16.mxu1 %v21331_v34  ;;  %v21410_v57 = vld [vmem:[%s21927_s22 + $0x3d20] ss:$8 sps:$4 sm:$0xff]   ;;  %v21415_v34 = vld [vmem:[%s21927_s22 + $0x1d34] ss:$8 sps:$4 sm:$0xff]  }
 0x757   : > { %15929 = vmatprep.subr.bf16.mxu0 %v21334_v4  ;;  %v21418_v4 = vld [vmem:[%s21927_s22 + $0x3d34] ss:$8 sps:$4 sm:$0xff]  }
 0x759   : > { %14618 = vmatpush1.bf16.msra.mxu1 %v21329_v59  ;;  %v21413_v59 = vld [vmem:[%s21927_s22 + $0x1d30] ss:$8 sps:$4 sm:$0xff]  }
 0x75a   : > { %15930 = vmatpush1.bf16.msra.mxu0 %v21332_v5  ;;  %14619 = vmatprep.subr.bf16.mxu1 %v21337_v1  ;;  %v21416_v5 = vld [vmem:[%s21927_s22 + $0x3d30] ss:$8 sps:$4 sm:$0xff]   ;;  %v21421_v1 = vld [vmem:[%s21927_s22 + $0x1d44] ss:$8 sps:$4 sm:$0xff]  }
 0x75b   : > { %15931 = vmatprep.subr.bf16.mxu0 %v21340_v7  ;;  %v21424_v7 = vld [vmem:[%s21927_s22 + $0x3d44] ss:$8 sps:$4 sm:$0xff]  }
 0x75d   : > { %14620 = vmatpush1.bf16.msra.mxu1 %v21335_v20  ;;  %v21419_v20 = vld [vmem:[%s21927_s22 + $0x1d40] ss:$8 sps:$4 sm:$0xff]  }
 0x75e   : > { %15932 = vmatpush1.bf16.msra.mxu0 %v21338_v21  ;;  %14621 = vmatprep.subr.bf16.mxu1 %v21343_v2  ;;  %v21422_v21 = vld [vmem:[%s21927_s22 + $0x3d40] ss:$8 sps:$4 sm:$0xff]   ;;  %v21427_v2 = vld [vmem:[%s21927_s22 + $0x1d54] ss:$8 sps:$4 sm:$0xff]  }
 0x75f   : > { %15933 = vmatprep.subr.bf16.mxu0 %v21346_v44  ;;  %v21430_v44 = vld [vmem:[%s21927_s22 + $0x3d54] ss:$8 sps:$4 sm:$0xff]  }
 0x761   : > { %14622 = vmatpush1.bf16.msra.mxu1 %v21341_v42  ;;  %v21425_v42 = vld [vmem:[%s21927_s22 + $0x1d50] ss:$8 sps:$4 sm:$0xff]  }
 0x762   : > { %15934 = vmatpush1.bf16.msra.mxu0 %v21344_v41  ;;  %14623 = vmatprep.subr.bf16.mxu1 %v21349_v8  ;;  %v21428_v41 = vld [vmem:[%s21927_s22 + $0x3d50] ss:$8 sps:$4 sm:$0xff]   ;;  %v21433_v8 = vld [vmem:[%s21927_s22 + $0x1d64] ss:$8 sps:$4 sm:$0xff]  }
 0x763   : > { %15935 = vmatprep.subr.bf16.mxu0 %v21352_v62  ;;  %v21436_v62 = vld [vmem:[%s21927_s22 + $0x3d64] ss:$8 sps:$4 sm:$0xff]  }
 0x765   : > { %14624 = vmatpush1.bf16.msra.mxu1 %v21347_v39  ;;  %v21431_v39 = vld [vmem:[%s21927_s22 + $0x1d60] ss:$8 sps:$4 sm:$0xff]  }
 0x766   : > { %15936 = vmatpush1.bf16.msra.mxu0 %v21350_v53  ;;  %14625 = vmatprep.subr.bf16.mxu1 %v21355_v6  ;;  %v21434_v53 = vld [vmem:[%s21927_s22 + $0x3d60] ss:$8 sps:$4 sm:$0xff]   ;;  %v21439_v6 = vld [vmem:[%s21927_s22 + $0x1d74] ss:$8 sps:$4 sm:$0xff]  }
 0x767   : > { %15937 = vmatprep.subr.bf16.mxu0 %v21358_v3  ;;  %v21442_v3 = vld [vmem:[%s21927_s22 + $0x3d74] ss:$8 sps:$4 sm:$0xff]  }
 0x769   : > { %14626 = vmatpush1.bf16.msra.mxu1 %v21353_v0  ;;  %v21437_v0 = vld [vmem:[%s21927_s22 + $0x1d70] ss:$8 sps:$4 sm:$0xff]  }
 0x76a   : > { %15938 = vmatpush1.bf16.msra.mxu0 %v21356_v25  ;;  %14627 = vmatprep.subr.bf16.mxu1 %v21361_v14  ;;  %v21440_v25 = vld [vmem:[%s21927_s22 + $0x3d70] ss:$8 sps:$4 sm:$0xff]   ;;  %v21445_v14 = vld [vmem:[%s21927_s22 + $0x1d84] ss:$8 sps:$4 sm:$0xff]  }
 0x76b   : > { %15939 = vmatprep.subr.bf16.mxu0 %v21364_v54  ;;  %v21448_v54 = vld [vmem:[%s21927_s22 + $0x3d84] ss:$8 sps:$4 sm:$0xff]  }
 0x76d   : > { %14628 = vmatpush1.bf16.msra.mxu1 %v21359_v60  ;;  %v21443_v60 = vld [vmem:[%s21927_s22 + $0x1d80] ss:$8 sps:$4 sm:$0xff]  }
 0x76e   : > { %15940 = vmatpush1.bf16.msra.mxu0 %v21362_v58  ;;  %14629 = vmatprep.subr.bf16.mxu1 %v21367_v13  ;;  %v21446_v58 = vld [vmem:[%s21927_s22 + $0x3d80] ss:$8 sps:$4 sm:$0xff]   ;;  %v21451_v13 = vld [vmem:[%s21927_s22 + $0x1d94] ss:$8 sps:$4 sm:$0xff]  }
 0x76f   : > { %15941 = vmatprep.subr.bf16.mxu0 %v21370_v29  ;;  %v21454_v29 = vld [vmem:[%s21927_s22 + $0x3d94] ss:$8 sps:$4 sm:$0xff]  }
 0x771   : > { %14630 = vmatpush1.bf16.msra.mxu1 %v21365_v30  ;;  %v21449_v30 = vld [vmem:[%s21927_s22 + $0x1d90] ss:$8 sps:$4 sm:$0xff]  }
 0x772   : > { %15942 = vmatpush1.bf16.msra.mxu0 %v21368_v32  ;;  %14631 = vmatprep.subr.bf16.mxu1 %v21373_v61  ;;  %v21452_v32 = vld [vmem:[%s21927_s22 + $0x3d90] ss:$8 sps:$4 sm:$0xff]   ;;  %v21457_v61 = vld [vmem:[%s21927_s22 + $0x1da4] ss:$8 sps:$4 sm:$0xff]  }
 0x773   : > { %15943 = vmatprep.subr.bf16.mxu0 %v21376_v10  ;;  %v21460_v10 = vld [vmem:[%s21927_s22 + $0x3da4] ss:$8 sps:$4 sm:$0xff]  }
 0x775   : > { %14632 = vmatpush1.bf16.msra.mxu1 %v21371_v24  ;;  %v21455_v24 = vld [vmem:[%s21927_s22 + $0x1da0] ss:$8 sps:$4 sm:$0xff]  }
 0x776   : > { %15944 = vmatpush1.bf16.msra.mxu0 %v21374_v9  ;;  %14633 = vmatprep.subr.bf16.mxu1 %v21379_v36  ;;  %v21458_v9 = vld [vmem:[%s21927_s22 + $0x3da0] ss:$8 sps:$4 sm:$0xff]   ;;  %v21463_v36 = vld [vmem:[%s21927_s22 + $0x1db4] ss:$8 sps:$4 sm:$0xff]  }
 0x777   : > { %15945 = vmatprep.subr.bf16.mxu0 %v21382_v28  ;;  %v21466_v28 = vld [vmem:[%s21927_s22 + $0x3db4] ss:$8 sps:$4 sm:$0xff]  }
 0x779   : > { %14634 = vmatpush1.bf16.msra.mxu1 %v21377_v35  ;;  %v21461_v35 = vld [vmem:[%s21927_s22 + $0x1db0] ss:$8 sps:$4 sm:$0xff]  }
 0x77a   : > { %15946 = vmatpush1.bf16.msra.mxu0 %v21380_v16  ;;  %14635 = vmatprep.subr.bf16.mxu1 %v21385_v12  ;;  %v21464_v16 = vld [vmem:[%s21927_s22 + $0x3db0] ss:$8 sps:$4 sm:$0xff]   ;;  %v21469_v12 = vld [vmem:[%s21927_s22 + $0x1dc4] ss:$8 sps:$4 sm:$0xff]  }
 0x77b   : > { %15947 = vmatprep.subr.bf16.mxu0 %v21388_v47  ;;  %v21472_v47 = vld [vmem:[%s21927_s22 + $0x3dc4] ss:$8 sps:$4 sm:$0xff]  }
 0x77d   : > { %14636 = vmatpush1.bf16.msra.mxu1 %v21383_v27  ;;  %v21467_v27 = vld [vmem:[%s21927_s22 + $0x1dc0] ss:$8 sps:$4 sm:$0xff]  }
 0x77e   : > { %15948 = vmatpush1.bf16.msra.mxu0 %v21386_v48  ;;  %14637 = vmatprep.subr.bf16.mxu1 %v21391_v38  ;;  %v21470_v48 = vld [vmem:[%s21927_s22 + $0x3dc0] ss:$8 sps:$4 sm:$0xff]   ;;  %v21475_v38 = vld [vmem:[%s21927_s22 + $0x1dd4] ss:$8 sps:$4 sm:$0xff]  }
 0x77f   : > { %15949 = vmatprep.subr.bf16.mxu0 %v21394_v49  ;;  %v21478_v49 = vld [vmem:[%s21927_s22 + $0x3dd4] ss:$8 sps:$4 sm:$0xff]  }
 0x781   : > { %14638 = vmatpush1.bf16.msra.mxu1 %v21389_v45  ;;  %v21473_v45 = vld [vmem:[%s21927_s22 + $0x1dd0] ss:$8 sps:$4 sm:$0xff]  }
 0x782   : > { %15950 = vmatpush1.bf16.msra.mxu0 %v21392_v50  ;;  %14648 = vmatprep.subr.bf16.mxu1 %v21397_v15  ;;  %v21476_v50 = vld [vmem:[%s21927_s22 + $0x3dd0] ss:$8 sps:$4 sm:$0xff]   ;;  %v21481_v15 = vld [vmem:[%s21927_s22 + $0x1de4] ss:$8 sps:$4 sm:$0xff]  }
 0x783   : > { %15960 = vmatprep.subr.bf16.mxu0 %v21400_v43  ;;  %v21484_v43 = vld [vmem:[%s21927_s22 + $0x3de4] ss:$8 sps:$4 sm:$0xff]  }
 0x784   : > { %14640 = vmatmul.mubr.bf16.vlgmr.msra.gmra.mrb[0].mxu1 %v24375_v56 }
 0x785   : > { %15952 = vmatmul.mubr.bf16.vlgmr.msra.gmra.mrb[0].mxu0 %v24379_v46  ;;  %14649 = vmatpush1.bf16.msra.mxu1 %v21395_v26  ;;  %v2650_v26 = vcombine.high %v24272_v22, %v24272_v22  ;;  %v21485_v22 = vld [vmem:[%s21927_s22 + $0x1df0] ss:$8 sps:$4 sm:$0xff]  }
 0x786   : > { %15961 = vmatpush1.bf16.msra.mxu0 %v21398_v31  ;;  %14650 = vmatprep.subr.bf16.mxu1 %v21403_v52  ;;  %v3042_v31 = vcombine.high %v24275_v37, %v24275_v37  ;;  %v21479_v52 = vld [vmem:[%s21927_s22 + $0x1de0] ss:$8 sps:$4 sm:$0xff]   ;;  %v21488_v37 = vld [vmem:[%s21927_s22 + $0x3df0] ss:$8 sps:$4 sm:$0xff]  }
 0x787   : > { %15962 = vmatprep.subr.bf16.mxu0 %v21406_v18  ;;  %14680 = vmatprep.mubr.bf16.mxu1 %v2697_v11  ;;  %v21482_v18 = vld [vmem:[%s21927_s22 + $0x3de0] ss:$8 sps:$4 sm:$0xff]   ;;  %v21487_v11 = vld [vmem:[%s21927_s22 + $0x1df4] ss:$8 sps:$4 sm:$0xff]  }
 0x788   : > { %15992 = vmatprep.mubr.bf16.mxu0 %v3089_v19  ;;  %v21490_v19 = vld [vmem:[%s21927_s22 + $0x3df4] ss:$8 sps:$4 sm:$0xff]  }
 0x789   : > { %14651 = vmatpush1.bf16.msra.mxu1 %v21401_v63  ;;  %v24452_v63 = vrot.slane %v2650_v26, %v21993_v51  ;;  %v21557_v26 = vld [vmem:[%s21927_s22 + $0x1eb0] ss:$8 sps:$4 sm:$0xff]  }
 0x78a   : > { %15963 = vmatpush1.bf16.msra.mxu0 %v21404_v55  ;;  %14652 = vmatprep.subr.bf16.mxu1 %v21409_v33  ;;  %v24455_v55 = vrot.slane %v3042_v31, %v21993_v51  ;;  %v21493_v33 = vld [vmem:[%s21927_s22 + $0x1e04] ss:$8 sps:$4 sm:$0xff]   ;;  %v21560_v31 = vld [vmem:[%s21927_s22 + $0x3eb0] ss:$8 sps:$4 sm:$0xff]  }
 0x78b   : > { %15964 = vmatprep.subr.bf16.mxu0 %v21412_v17  ;;  %v21496_v17 = vld [vmem:[%s21927_s22 + $0x3e04] ss:$8 sps:$4 sm:$0xff]  }
 0x78d   : > { %14653 = vmatpush1.bf16.msra.mxu1 %v21407_v23  ;;  %v2666_v23 = vcombine.high %v24452_v63, %v24452_v63 }
 0x78e   : > { %15965 = vmatpush1.bf16.msra.mxu0 %v21410_v57  ;;  %14654 = vmatprep.subr.bf16.mxu1 %v21415_v34  ;;  %v3058_v57 = vcombine.high %v24455_v55, %v24455_v55  ;;  %v2695_v34 = vcombine.high %v24375_v56, %v24375_v56 }
 0x78f   : > { %15966 = vmatprep.subr.bf16.mxu0 %v21418_v4  ;;  %v3087_v4 = vcombine.high %v24379_v46, %v24379_v46  ;;  %v21497_v46 = vld [vmem:[%s21927_s22 + $0x1e10] ss:$8 sps:$4 sm:$0xff]  }
 0x790   : > { %v24477_v56 = vrot.slane %v3058_v57, %v21993_v51  ;;  %v21580_v57 = vld [vmem:[%s21927_s22 + $0x3ee4] ss:$8 sps:$4 sm:$0xff]  }
 0x791   : > { %14655 = vmatpush1.bf16.msra.mxu1 %v21413_v59  ;;  %v21491_v59 = vld [vmem:[%s21927_s22 + $0x1e00] ss:$8 sps:$4 sm:$0xff]  }
 0x792   : > { %15967 = vmatpush1.bf16.msra.mxu0 %v21416_v5  ;;  %14656 = vmatprep.subr.bf16.mxu1 %v21421_v1  ;;  %v21494_v5 = vld [vmem:[%s21927_s22 + $0x3e00] ss:$8 sps:$4 sm:$0xff]   ;;  %v21499_v1 = vld [vmem:[%s21927_s22 + $0x1e14] ss:$8 sps:$4 sm:$0xff]  }
 0x793   : > { %15968 = vmatprep.subr.bf16.mxu0 %v21424_v7  ;;  %v21502_v7 = vld [vmem:[%s21927_s22 + $0x3e14] ss:$8 sps:$4 sm:$0xff]  }
 0x795   : > { %14657 = vmatpush1.bf16.msra.mxu1 %v21419_v20  ;;  %v24474_v20 = vrot.slane %v2666_v23, %v21993_v51  ;;  %v21577_v23 = vld [vmem:[%s21927_s22 + $0x1ee4] ss:$8 sps:$4 sm:$0xff]  }
 0x796   : > { %15969 = vmatpush1.bf16.msra.mxu0 %v21422_v21  ;;  %14658 = vmatprep.subr.bf16.mxu1 %v21427_v2  ;;  %v21500_v21 = vld [vmem:[%s21927_s22 + $0x3e10] ss:$8 sps:$4 sm:$0xff]   ;;  %v21505_v2 = vld [vmem:[%s21927_s22 + $0x1e24] ss:$8 sps:$4 sm:$0xff]  }
 0x797   : > { %15970 = vmatprep.subr.bf16.mxu0 %v21430_v44  ;;  %v21508_v44 = vld [vmem:[%s21927_s22 + $0x3e24] ss:$8 sps:$4 sm:$0xff]  }
 0x799   : > { %14659 = vmatpush1.bf16.msra.mxu1 %v21425_v42  ;;  %v21503_v42 = vld [vmem:[%s21927_s22 + $0x1e20] ss:$8 sps:$4 sm:$0xff]  }
 0x79a   : > { %15971 = vmatpush1.bf16.msra.mxu0 %v21428_v41  ;;  %14660 = vmatprep.subr.bf16.mxu1 %v21433_v8  ;;  %v21506_v41 = vld [vmem:[%s21927_s22 + $0x3e20] ss:$8 sps:$4 sm:$0xff]   ;;  %v21511_v8 = vld [vmem:[%s21927_s22 + $0x1e34] ss:$8 sps:$4 sm:$0xff]  }
 0x79b   : > { %15972 = vmatprep.subr.bf16.mxu0 %v21436_v62  ;;  %v21514_v62 = vld [vmem:[%s21927_s22 + $0x3e34] ss:$8 sps:$4 sm:$0xff]  }
 0x79d   : > { %14661 = vmatpush1.bf16.msra.mxu1 %v21431_v39  ;;  %v21509_v39 = vld [vmem:[%s21927_s22 + $0x1e30] ss:$8 sps:$4 sm:$0xff]  }
 0x79e   : > { %15973 = vmatpush1.bf16.msra.mxu0 %v21434_v53  ;;  %14662 = vmatprep.subr.bf16.mxu1 %v21439_v6  ;;  %v21512_v53 = vld [vmem:[%s21927_s22 + $0x3e30] ss:$8 sps:$4 sm:$0xff]   ;;  %v21517_v6 = vld [vmem:[%s21927_s22 + $0x1e44] ss:$8 sps:$4 sm:$0xff]  }
 0x79f   : > { %15974 = vmatprep.subr.bf16.mxu0 %v21442_v3  ;;  %v21520_v3 = vld [vmem:[%s21927_s22 + $0x3e44] ss:$8 sps:$4 sm:$0xff]  }
 0x7a1   : > { %14663 = vmatpush1.bf16.msra.mxu1 %v21437_v0  ;;  %v21515_v0 = vld [vmem:[%s21927_s22 + $0x1e40] ss:$8 sps:$4 sm:$0xff]  }
 0x7a2   : > { %15975 = vmatpush1.bf16.msra.mxu0 %v21440_v25  ;;  %14664 = vmatprep.subr.bf16.mxu1 %v21445_v14  ;;  %v21518_v25 = vld [vmem:[%s21927_s22 + $0x3e40] ss:$8 sps:$4 sm:$0xff]   ;;  %v21523_v14 = vld [vmem:[%s21927_s22 + $0x1e54] ss:$8 sps:$4 sm:$0xff]  }
 0x7a3   : > { %15976 = vmatprep.subr.bf16.mxu0 %v21448_v54  ;;  %v21526_v54 = vld [vmem:[%s21927_s22 + $0x3e54] ss:$8 sps:$4 sm:$0xff]  }
 0x7a5   : > { %14665 = vmatpush1.bf16.msra.mxu1 %v21443_v60  ;;  %v21521_v60 = vld [vmem:[%s21927_s22 + $0x1e50] ss:$8 sps:$4 sm:$0xff]  }
 0x7a6   : > { %15977 = vmatpush1.bf16.msra.mxu0 %v21446_v58  ;;  %14666 = vmatprep.subr.bf16.mxu1 %v21451_v13  ;;  %v21524_v58 = vld [vmem:[%s21927_s22 + $0x3e50] ss:$8 sps:$4 sm:$0xff]   ;;  %v21529_v13 = vld [vmem:[%s21927_s22 + $0x1e64] ss:$8 sps:$4 sm:$0xff]  }
 0x7a7   : > { %15978 = vmatprep.subr.bf16.mxu0 %v21454_v29  ;;  %v21532_v29 = vld [vmem:[%s21927_s22 + $0x3e64] ss:$8 sps:$4 sm:$0xff]  }
 0x7a9   : > { %14667 = vmatpush1.bf16.msra.mxu1 %v21449_v30  ;;  %v21527_v30 = vld [vmem:[%s21927_s22 + $0x1e60] ss:$8 sps:$4 sm:$0xff]  }
 0x7aa   : > { %15979 = vmatpush1.bf16.msra.mxu0 %v21452_v32  ;;  %14668 = vmatprep.subr.bf16.mxu1 %v21457_v61  ;;  %v21530_v32 = vld [vmem:[%s21927_s22 + $0x3e60] ss:$8 sps:$4 sm:$0xff]   ;;  %v21535_v61 = vld [vmem:[%s21927_s22 + $0x1e74] ss:$8 sps:$4 sm:$0xff]  }
 0x7ab   : > { %15980 = vmatprep.subr.bf16.mxu0 %v21460_v10  ;;  %v21538_v10 = vld [vmem:[%s21927_s22 + $0x3e74] ss:$8 sps:$4 sm:$0xff]  }
 0x7ad   : > { %14669 = vmatpush1.bf16.msra.mxu1 %v21455_v24  ;;  %v21533_v24 = vld [vmem:[%s21927_s22 + $0x1e70] ss:$8 sps:$4 sm:$0xff]  }
 0x7ae   : > { %15981 = vmatpush1.bf16.msra.mxu0 %v21458_v9  ;;  %14670 = vmatprep.subr.bf16.mxu1 %v21463_v36  ;;  %v21536_v9 = vld [vmem:[%s21927_s22 + $0x3e70] ss:$8 sps:$4 sm:$0xff]   ;;  %v21541_v36 = vld [vmem:[%s21927_s22 + $0x1e84] ss:$8 sps:$4 sm:$0xff]  }
 0x7af   : > { %15982 = vmatprep.subr.bf16.mxu0 %v21466_v28  ;;  %v21544_v28 = vld [vmem:[%s21927_s22 + $0x3e84] ss:$8 sps:$4 sm:$0xff]  }
 0x7b1   : > { %14671 = vmatpush1.bf16.msra.mxu1 %v21461_v35  ;;  %v21539_v35 = vld [vmem:[%s21927_s22 + $0x1e80] ss:$8 sps:$4 sm:$0xff]  }
 0x7b2   : > { %15983 = vmatpush1.bf16.msra.mxu0 %v21464_v16  ;;  %14672 = vmatprep.subr.bf16.mxu1 %v21469_v12  ;;  %v21542_v16 = vld [vmem:[%s21927_s22 + $0x3e80] ss:$8 sps:$4 sm:$0xff]   ;;  %v21547_v12 = vld [vmem:[%s21927_s22 + $0x1e94] ss:$8 sps:$4 sm:$0xff]  }
 0x7b3   : > { %15984 = vmatprep.subr.bf16.mxu0 %v21472_v47  ;;  %v21550_v47 = vld [vmem:[%s21927_s22 + $0x3e94] ss:$8 sps:$4 sm:$0xff]  }
 0x7b5   : > { %14673 = vmatpush1.bf16.msra.mxu1 %v21467_v27  ;;  %v21545_v27 = vld [vmem:[%s21927_s22 + $0x1e90] ss:$8 sps:$4 sm:$0xff]  }
 0x7b6   : > { %15985 = vmatpush1.bf16.msra.mxu0 %v21470_v48  ;;  %14674 = vmatprep.subr.bf16.mxu1 %v21475_v38  ;;  %v21548_v48 = vld [vmem:[%s21927_s22 + $0x3e90] ss:$8 sps:$4 sm:$0xff]   ;;  %v21553_v38 = vld [vmem:[%s21927_s22 + $0x1ea4] ss:$8 sps:$4 sm:$0xff]  }
 0x7b7   : > { %15986 = vmatprep.subr.bf16.mxu0 %v21478_v49  ;;  %v21556_v49 = vld [vmem:[%s21927_s22 + $0x3ea4] ss:$8 sps:$4 sm:$0xff]  }
 0x7b9   : > { %14675 = vmatpush1.bf16.msra.mxu1 %v21473_v45  ;;  %v21551_v45 = vld [vmem:[%s21927_s22 + $0x1ea0] ss:$8 sps:$4 sm:$0xff]  }
 0x7ba   : > { %15987 = vmatpush1.bf16.msra.mxu0 %v21476_v50  ;;  %14676 = vmatprep.subr.bf16.mxu1 %v21481_v15  ;;  %v21554_v50 = vld [vmem:[%s21927_s22 + $0x3ea0] ss:$8 sps:$4 sm:$0xff]   ;;  %v21559_v15 = vld [vmem:[%s21927_s22 + $0x1eb4] ss:$8 sps:$4 sm:$0xff]  }
 0x7bb   : > { %15988 = vmatprep.subr.bf16.mxu0 %v21484_v43  ;;  %v21562_v43 = vld [vmem:[%s21927_s22 + $0x3eb4] ss:$8 sps:$4 sm:$0xff]  }
 0x7bd   : > { %14677 = vmatpush1.bf16.msra.mxu1 %v21479_v52  ;;  %v21565_v52 = vld [vmem:[%s21927_s22 + $0x1ec4] ss:$8 sps:$4 sm:$0xff]  }
 0x7be   : > { %15989 = vmatpush1.bf16.msra.mxu0 %v21482_v18  ;;  %14678 = vmatprep.subr.bf16.mxu1 %v21487_v11  ;;  %v21568_v18 = vld [vmem:[%s21927_s22 + $0x3ec4] ss:$8 sps:$4 sm:$0xff]   ;;  %v21563_v11 = vld [vmem:[%s21927_s22 + $0x1ec0] ss:$8 sps:$4 sm:$0xff]  }
 0x7bf   : > { %15990 = vmatprep.subr.bf16.mxu0 %v21490_v19  ;;  %v21566_v19 = vld [vmem:[%s21927_s22 + $0x3ec0] ss:$8 sps:$4 sm:$0xff]  }
 0x7c1   : > { %14679 = vmatpush1.bf16.msra.mxu1 %v21485_v22  ;;  %v21571_v22 = vld [vmem:[%s21927_s22 + $0x1ed4] ss:$8 sps:$4 sm:$0xff]  }
 0x7c2   : > { %15991 = vmatpush1.bf16.msra.mxu0 %v21488_v37  ;;  %14689 = vmatprep.subr.bf16.mxu1 %v21493_v33  ;;  %v21574_v37 = vld [vmem:[%s21927_s22 + $0x3ed4] ss:$8 sps:$4 sm:$0xff]   ;;  %v21569_v33 = vld [vmem:[%s21927_s22 + $0x1ed0] ss:$8 sps:$4 sm:$0xff]  }
 0x7c3   : > { %16001 = vmatprep.subr.bf16.mxu0 %v21496_v17  ;;  %v21572_v17 = vld [vmem:[%s21927_s22 + $0x3ed0] ss:$8 sps:$4 sm:$0xff]  }
 0x7c4   : > { %14681 = vmatmul.mubr.bf16.vlgmr.msra.gmra.mrb[0].mxu1 %v2695_v34  ;;  %v21575_v34 = vld [vmem:[%s21927_s22 + $0x1ee0] ss:$8 sps:$4 sm:$0xff]  }
 0x7c5   : > { %15993 = vmatmul.mubr.bf16.vlgmr.msra.gmra.mrb[0].mxu0 %v3087_v4  ;;  %14690 = vmatpush1.bf16.msra.mxu1 %v21491_v59  ;;  %v21578_v4 = vld [vmem:[%s21927_s22 + $0x3ee0] ss:$8 sps:$4 sm:$0xff]   ;;  %v21583_v59 = vld [vmem:[%s21927_s22 + $0x1ef4] ss:$8 sps:$4 sm:$0xff]  }
 0x7c6   : > { %16002 = vmatpush1.bf16.msra.mxu0 %v21494_v5  ;;  %14691 = vmatprep.subr.bf16.mxu1 %v21499_v1  ;;  %v21586_v5 = vld [vmem:[%s21927_s22 + $0x3ef4] ss:$8 sps:$4 sm:$0xff]   ;;  %v21581_v1 = vld [vmem:[%s21927_s22 + $0x1ef0] ss:$8 sps:$4 sm:$0xff]  }
 0x7c7   : > { %16003 = vmatprep.subr.bf16.mxu0 %v21502_v7  ;;  %14721 = vmatprep.mubr.bf16.mxu1 %v24474_v20  ;;  %v21584_v7 = vld [vmem:[%s21927_s22 + $0x3ef0] ss:$8 sps:$4 sm:$0xff]  }
 0x7c8   : > { %16033 = vmatprep.mubr.bf16.mxu0 %v24477_v56 }
 0x7c9   : > { %14692 = vmatpush1.bf16.msra.mxu1 %v21497_v46  ;;  %v21590_v46 = vld [vmem:[%s21927_s22 + $0x1f04] ss:$8 sps:$4 sm:$0xff]  }
 0x7ca   : > { %16004 = vmatpush1.bf16.msra.mxu0 %v21500_v21  ;;  %14693 = vmatprep.subr.bf16.mxu1 %v21505_v2  ;;  %v21594_v21 = vld [vmem:[%s21927_s22 + $0x3f04] ss:$8 sps:$4 sm:$0xff]   ;;  %v24543_v2 = vrot.slane %v24452_v63, %v21993_v51  ;;  %v2698_v63 = vcombine.high %v24474_v20, %v24474_v20 }
 0x7cb   : > { %16005 = vmatprep.subr.bf16.mxu0 %v21508_v44  ;;  %v24547_v44 = vrot.slane %v24455_v55, %v21993_v51  ;;  %v21595_v55 = vld [vmem:[%s21927_s22 + $0x1f10] ss:$8 sps:$4 sm:$0xff]   ;;  %v21603_v20 = vld [vmem:[%s21927_s22 + $0x1f24] ss:$8 sps:$4 sm:$0xff]  }
 0x7cd   : > { %14694 = vmatpush1.bf16.msra.mxu1 %v21503_v42  ;;  %v21588_v42 = vld [vmem:[%s21927_s22 + $0x1f00] ss:$8 sps:$4 sm:$0xff]  }
 0x7ce   : > { %16006 = vmatpush1.bf16.msra.mxu0 %v21506_v41  ;;  %14695 = vmatprep.subr.bf16.mxu1 %v21511_v8  ;;  %v21592_v41 = vld [vmem:[%s21927_s22 + $0x3f00] ss:$8 sps:$4 sm:$0xff]   ;;  %v21597_v8 = vld [vmem:[%s21927_s22 + $0x1f14] ss:$8 sps:$4 sm:$0xff]  }
 0x7cf   : > { %16007 = vmatprep.subr.bf16.mxu0 %v21514_v62  ;;  %v21600_v62 = vld [vmem:[%s21927_s22 + $0x3f14] ss:$8 sps:$4 sm:$0xff]  }
 0x7d1   : > { %14696 = vmatpush1.bf16.msra.mxu1 %v21509_v39  ;;  %v3090_v39 = vcombine.high %v24477_v56, %v24477_v56  ;;  %v21601_v56 = vld [vmem:[%s21927_s22 + $0x1f20] ss:$8 sps:$4 sm:$0xff]  }
 0x7d2   : > { %16008 = vmatpush1.bf16.msra.mxu0 %v21512_v53  ;;  %14697 = vmatprep.subr.bf16.mxu1 %v21517_v6  ;;  %v21598_v53 = vld [vmem:[%s21927_s22 + $0x3f10] ss:$8 sps:$4 sm:$0xff]   ;;  %v21606_v6 = vld [vmem:[%s21927_s22 + $0x3f24] ss:$8 sps:$4 sm:$0xff]  }
 0x7d3   : > { %16009 = vmatprep.subr.bf16.mxu0 %v21520_v3  ;;  %v21604_v3 = vld [vmem:[%s21927_s22 + $0x3f20] ss:$8 sps:$4 sm:$0xff]  }
 0x7d5   : > { %14698 = vmatpush1.bf16.msra.mxu1 %v21515_v0  ;;  %v21609_v0 = vld [vmem:[%s21927_s22 + $0x1f34] ss:$8 sps:$4 sm:$0xff]  }
 0x7d6   : > { %16010 = vmatpush1.bf16.msra.mxu0 %v21518_v25  ;;  %14699 = vmatprep.subr.bf16.mxu1 %v21523_v14  ;;  %v21612_v25 = vld [vmem:[%s21927_s22 + $0x3f34] ss:$8 sps:$4 sm:$0xff]   ;;  %v21607_v14 = vld [vmem:[%s21927_s22 + $0x1f30] ss:$8 sps:$4 sm:$0xff]  }
 0x7d7   : > { %16011 = vmatprep.subr.bf16.mxu0 %v21526_v54  ;;  %v21610_v54 = vld [vmem:[%s21927_s22 + $0x3f30] ss:$8 sps:$4 sm:$0xff]  }
 0x7d9   : > { %14700 = vmatpush1.bf16.msra.mxu1 %v21521_v60  ;;  %v21615_v60 = vld [vmem:[%s21927_s22 + $0x1f44] ss:$8 sps:$4 sm:$0xff]  }
 0x7da   : > { %16012 = vmatpush1.bf16.msra.mxu0 %v21524_v58  ;;  %14701 = vmatprep.subr.bf16.mxu1 %v21529_v13  ;;  %v21618_v58 = vld [vmem:[%s21927_s22 + $0x3f44] ss:$8 sps:$4 sm:$0xff]   ;;  %v21613_v13 = vld [vmem:[%s21927_s22 + $0x1f40] ss:$8 sps:$4 sm:$0xff]  }
 0x7db   : > { %16013 = vmatprep.subr.bf16.mxu0 %v21532_v29  ;;  %v21616_v29 = vld [vmem:[%s21927_s22 + $0x3f40] ss:$8 sps:$4 sm:$0xff]  }
 0x7dd   : > { %14702 = vmatpush1.bf16.msra.mxu1 %v21527_v30  ;;  %v21621_v30 = vld [vmem:[%s21927_s22 + $0x1f54] ss:$8 sps:$4 sm:$0xff]  }
 0x7de   : > { %16014 = vmatpush1.bf16.msra.mxu0 %v21530_v32  ;;  %14703 = vmatprep.subr.bf16.mxu1 %v21535_v61  ;;  %v21624_v32 = vld [vmem:[%s21927_s22 + $0x3f54] ss:$8 sps:$4 sm:$0xff]   ;;  %v21619_v61 = vld [vmem:[%s21927_s22 + $0x1f50] ss:$8 sps:$4 sm:$0xff]  }
 0x7df   : > { %16015 = vmatprep.subr.bf16.mxu0 %v21538_v10  ;;  %v21622_v10 = vld [vmem:[%s21927_s22 + $0x3f50] ss:$8 sps:$4 sm:$0xff]  }
 0x7e1   : > { %14704 = vmatpush1.bf16.msra.mxu1 %v21533_v24  ;;  %v21627_v24 = vld [vmem:[%s21927_s22 + $0x1f64] ss:$8 sps:$4 sm:$0xff]  }
 0x7e2   : > { %16016 = vmatpush1.bf16.msra.mxu0 %v21536_v9  ;;  %14705 = vmatprep.subr.bf16.mxu1 %v21541_v36  ;;  %v21630_v9 = vld [vmem:[%s21927_s22 + $0x3f64] ss:$8 sps:$4 sm:$0xff]   ;;  %v21625_v36 = vld [vmem:[%s21927_s22 + $0x1f60] ss:$8 sps:$4 sm:$0xff]  }
 0x7e3   : > { %16017 = vmatprep.subr.bf16.mxu0 %v21544_v28  ;;  %v21628_v28 = vld [vmem:[%s21927_s22 + $0x3f60] ss:$8 sps:$4 sm:$0xff]  }
 0x7e5   : > { %14706 = vmatpush1.bf16.msra.mxu1 %v21539_v35  ;;  %v21633_v35 = vld [vmem:[%s21927_s22 + $0x1f74] ss:$8 sps:$4 sm:$0xff]  }
 0x7e6   : > { %16018 = vmatpush1.bf16.msra.mxu0 %v21542_v16  ;;  %14707 = vmatprep.subr.bf16.mxu1 %v21547_v12  ;;  %v21636_v16 = vld [vmem:[%s21927_s22 + $0x3f74] ss:$8 sps:$4 sm:$0xff]   ;;  %v21631_v12 = vld [vmem:[%s21927_s22 + $0x1f70] ss:$8 sps:$4 sm:$0xff]  }
 0x7e7   : > { %16019 = vmatprep.subr.bf16.mxu0 %v21550_v47  ;;  %v21634_v47 = vld [vmem:[%s21927_s22 + $0x3f70] ss:$8 sps:$4 sm:$0xff]  }
 0x7e9   : > { %14708 = vmatpush1.bf16.msra.mxu1 %v21545_v27  ;;  %v21639_v27 = vld [vmem:[%s21927_s22 + $0x1f84] ss:$8 sps:$4 sm:$0xff]  }
 0x7ea   : > { %16020 = vmatpush1.bf16.msra.mxu0 %v21548_v48  ;;  %14709 = vmatprep.subr.bf16.mxu1 %v21553_v38  ;;  %v21642_v48 = vld [vmem:[%s21927_s22 + $0x3f84] ss:$8 sps:$4 sm:$0xff]   ;;  %v21637_v38 = vld [vmem:[%s21927_s22 + $0x1f80] ss:$8 sps:$4 sm:$0xff]  }
 0x7eb   : > { %16021 = vmatprep.subr.bf16.mxu0 %v21556_v49  ;;  %v21640_v49 = vld [vmem:[%s21927_s22 + $0x3f80] ss:$8 sps:$4 sm:$0xff]  }
 0x7ed   : > { %14710 = vmatpush1.bf16.msra.mxu1 %v21551_v45  ;;  %v21645_v45 = vld [vmem:[%s21927_s22 + $0x1f94] ss:$8 sps:$4 sm:$0xff]  }
 0x7ee   : > { %16022 = vmatpush1.bf16.msra.mxu0 %v21554_v50  ;;  %14711 = vmatprep.subr.bf16.mxu1 %v21559_v15  ;;  %v21648_v50 = vld [vmem:[%s21927_s22 + $0x3f94] ss:$8 sps:$4 sm:$0xff]   ;;  %v21643_v15 = vld [vmem:[%s21927_s22 + $0x1f90] ss:$8 sps:$4 sm:$0xff]  }
 0x7ef   : > { %16023 = vmatprep.subr.bf16.mxu0 %v21562_v43  ;;  %v21646_v43 = vld [vmem:[%s21927_s22 + $0x3f90] ss:$8 sps:$4 sm:$0xff]  }
 0x7f1   : > { %14712 = vmatpush1.bf16.msra.mxu1 %v21557_v26  ;;  %v21651_v26 = vld [vmem:[%s21927_s22 + $0x1fa4] ss:$8 sps:$4 sm:$0xff]  }
 0x7f2   : > { %16024 = vmatpush1.bf16.msra.mxu0 %v21560_v31  ;;  %14713 = vmatprep.subr.bf16.mxu1 %v21565_v52  ;;  %v21654_v31 = vld [vmem:[%s21927_s22 + $0x3fa4] ss:$8 sps:$4 sm:$0xff]   ;;  %v21649_v52 = vld [vmem:[%s21927_s22 + $0x1fa0] ss:$8 sps:$4 sm:$0xff]  }
 0x7f3   : > { %16025 = vmatprep.subr.bf16.mxu0 %v21568_v18  ;;  %v21652_v18 = vld [vmem:[%s21927_s22 + $0x3fa0] ss:$8 sps:$4 sm:$0xff]  }
 0x7f5   : > { %14714 = vmatpush1.bf16.msra.mxu1 %v21563_v11  ;;  %v21657_v11 = vld [vmem:[%s21927_s22 + $0x1fb4] ss:$8 sps:$4 sm:$0xff]  }
 0x7f6   : > { %16026 = vmatpush1.bf16.msra.mxu0 %v21566_v19  ;;  %14715 = vmatprep.subr.bf16.mxu1 %v21571_v22  ;;  %v21660_v19 = vld [vmem:[%s21927_s22 + $0x3fb4] ss:$8 sps:$4 sm:$0xff]   ;;  %v21655_v22 = vld [vmem:[%s21927_s22 + $0x1fb0] ss:$8 sps:$4 sm:$0xff]  }
 0x7f7   : > { %16027 = vmatprep.subr.bf16.mxu0 %v21574_v37  ;;  %v21658_v37 = vld [vmem:[%s21927_s22 + $0x3fb0] ss:$8 sps:$4 sm:$0xff]  }
 0x7f9   : > { %14716 = vmatpush1.bf16.msra.mxu1 %v21569_v33  ;;  %v21663_v33 = vld [vmem:[%s21927_s22 + $0x1fc4] ss:$8 sps:$4 sm:$0xff]  }
 0x7fa   : > { %16028 = vmatpush1.bf16.msra.mxu0 %v21572_v17  ;;  %14717 = vmatprep.subr.bf16.mxu1 %v21577_v23  ;;  %v21666_v17 = vld [vmem:[%s21927_s22 + $0x3fc4] ss:$8 sps:$4 sm:$0xff]   ;;  %v21661_v23 = vld [vmem:[%s21927_s22 + $0x1fc0] ss:$8 sps:$4 sm:$0xff]  }
 0x7fb   : > { %16029 = vmatprep.subr.bf16.mxu0 %v21580_v57  ;;  %v21664_v57 = vld [vmem:[%s21927_s22 + $0x3fc0] ss:$8 sps:$4 sm:$0xff]  }
 0x7fd   : > { %14718 = vmatpush1.bf16.msra.mxu1 %v21575_v34  ;;  %v21669_v34 = vld [vmem:[%s21927_s22 + $0x1fd4] ss:$8 sps:$4 sm:$0xff]  }
 0x7fe   : > { %16030 = vmatpush1.bf16.msra.mxu0 %v21578_v4  ;;  %14719 = vmatprep.subr.bf16.mxu1 %v21583_v59  ;;  %v21672_v4 = vld [vmem:[%s21927_s22 + $0x3fd4] ss:$8 sps:$4 sm:$0xff]   ;;  %v21667_v59 = vld [vmem:[%s21927_s22 + $0x1fd0] ss:$8 sps:$4 sm:$0xff]  }
 0x7ff   : > { %16031 = vmatprep.subr.bf16.mxu0 %v21586_v5  ;;  %v21670_v5 = vld [vmem:[%s21927_s22 + $0x3fd0] ss:$8 sps:$4 sm:$0xff]  }
 0x801   : > { %14720 = vmatpush1.bf16.msra.mxu1 %v21581_v1  ;;  %v21675_v1 = vld [vmem:[%s21927_s22 + $0x1fe4] ss:$8 sps:$4 sm:$0xff]  }
 0x802   : > { %16032 = vmatpush1.bf16.msra.mxu0 %v21584_v7  ;;  %14730 = vmatprep.subr.bf16.mxu1 %v21590_v46  ;;  %v21678_v7 = vld [vmem:[%s21927_s22 + $0x3fe4] ss:$8 sps:$4 sm:$0xff]   ;;  %v21673_v46 = vld [vmem:[%s21927_s22 + $0x1fe0] ss:$8 sps:$4 sm:$0xff]  }
 0x803   : > { %16042 = vmatprep.subr.bf16.mxu0 %v21594_v21  ;;  %v21676_v21 = vld [vmem:[%s21927_s22 + $0x3fe0] ss:$8 sps:$4 sm:$0xff]  }
 0x804   : > { %14722 = vmatmul.mubr.bf16.vlgmr.msra.gmra.mrb[0].mxu1 %v24543_v2 }
 0x805   : > { %16034 = vmatmul.mubr.bf16.vlgmr.msra.gmra.mrb[0].mxu0 %v24547_v44  ;;  %14731 = vmatpush1.bf16.msra.mxu1 %v21588_v42  ;;  %v21681_v42 = vld [vmem:[%s21927_s22 + $0x1ff4] ss:$8 sps:$4 sm:$0xff]  }
 0x806   : > { %16043 = vmatpush1.bf16.msra.mxu0 %v21592_v41  ;;  %14732 = vmatprep.subr.bf16.mxu1 %v21597_v8  ;;  %v21684_v41 = vld [vmem:[%s21927_s22 + $0x3ff4] ss:$8 sps:$4 sm:$0xff]   ;;  %v21679_v8 = vld [vmem:[%s21927_s22 + $0x1ff0] ss:$8 sps:$4 sm:$0xff]  }
 0x807   : > { %16044 = vmatprep.subr.bf16.mxu0 %v21600_v62  ;;  %14762 = vmatprep.mubr.bf16.mxu1 %v2698_v63  ;;  %v21682_v62 = vld [vmem:[%s21927_s22 + $0x3ff0] ss:$8 sps:$4 sm:$0xff]   ;;  %v2696_v63 = vcombine.high %v24543_v2, %v24543_v2 }
 0x808   : > { %16074 = vmatprep.mubr.bf16.mxu0 %v3090_v39  ;;  %v3088_v39 = vcombine.high %v24547_v44, %v24547_v44 }
 0x809   : > { %14733 = vmatpush1.bf16.msra.mxu1 %v21595_v55 }
 0x80a   : > { %16045 = vmatpush1.bf16.msra.mxu0 %v21598_v53  ;;  %14734 = vmatprep.subr.bf16.mxu1 %v21603_v20 }
 0x80b   : > { %16046 = vmatprep.subr.bf16.mxu0 %v21606_v6 }
 0x80d   : > { %14735 = vmatpush1.bf16.msra.mxu1 %v21601_v56 }
 0x80e   : > { %16047 = vmatpush1.bf16.msra.mxu0 %v21604_v3  ;;  %14736 = vmatprep.subr.bf16.mxu1 %v21609_v0 }
 0x80f   : > { %16048 = vmatprep.subr.bf16.mxu0 %v21612_v25 }
 0x811   : > { %14737 = vmatpush1.bf16.msra.mxu1 %v21607_v14 }
 0x812   : > { %16049 = vmatpush1.bf16.msra.mxu0 %v21610_v54  ;;  %14738 = vmatprep.subr.bf16.mxu1 %v21615_v60 }
 0x813   : > { %16050 = vmatprep.subr.bf16.mxu0 %v21618_v58  ;;  %v226_v58 = vld [vmem:[#allocation2] sm:$0x3] }
 0x815   : > { %14739 = vmatpush1.bf16.msra.mxu1 %v21613_v13 }
 0x816   : > { %16051 = vmatpush1.bf16.msra.mxu0 %v21616_v29  ;;  %14740 = vmatprep.subr.bf16.mxu1 %v21621_v30 }
 0x817   : > { %16052 = vmatprep.subr.bf16.mxu0 %v21624_v32 }
 0x819   : > { %14741 = vmatpush1.bf16.msra.mxu1 %v21619_v61 }
 0x81a   : > { %16053 = vmatpush1.bf16.msra.mxu0 %v21622_v10  ;;  %14742 = vmatprep.subr.bf16.mxu1 %v21627_v24 }
 0x81b   : > { %16054 = vmatprep.subr.bf16.mxu0 %v21630_v9 }
 0x81d   : > { %14743 = vmatpush1.bf16.msra.mxu1 %v21625_v36 }
 0x81e   : > { %16055 = vmatpush1.bf16.msra.mxu0 %v21628_v28  ;;  %14744 = vmatprep.subr.bf16.mxu1 %v21633_v35 }
 0x81f   : > { %16056 = vmatprep.subr.bf16.mxu0 %v21636_v16 }
 0x821   : > { %14745 = vmatpush1.bf16.msra.mxu1 %v21631_v12 }
 0x822   : > { %16057 = vmatpush1.bf16.msra.mxu0 %v21634_v47  ;;  %14746 = vmatprep.subr.bf16.mxu1 %v21639_v27 }
 0x823   : > { %16058 = vmatprep.subr.bf16.mxu0 %v21642_v48 }
 0x825   : > { %14747 = vmatpush1.bf16.msra.mxu1 %v21637_v38 }
 0x826   : > { %16059 = vmatpush1.bf16.msra.mxu0 %v21640_v49  ;;  %14748 = vmatprep.subr.bf16.mxu1 %v21645_v45 }
 0x827   : > { %16060 = vmatprep.subr.bf16.mxu0 %v21648_v50 }
 0x829   : > { %14749 = vmatpush1.bf16.msra.mxu1 %v21643_v15 }
 0x82a   : > { %16061 = vmatpush1.bf16.msra.mxu0 %v21646_v43  ;;  %14750 = vmatprep.subr.bf16.mxu1 %v21651_v26 }
 0x82b   : > { %16062 = vmatprep.subr.bf16.mxu0 %v21654_v31 }
 0x82d   : > { %14751 = vmatpush1.bf16.msra.mxu1 %v21649_v52 }
 0x82e   : > { %16063 = vmatpush1.bf16.msra.mxu0 %v21652_v18  ;;  %14752 = vmatprep.subr.bf16.mxu1 %v21657_v11 }
 0x82f   : > { %16064 = vmatprep.subr.bf16.mxu0 %v21660_v19 }
 0x831   : > { %14753 = vmatpush1.bf16.msra.mxu1 %v21655_v22 }
 0x832   : > { %16065 = vmatpush1.bf16.msra.mxu0 %v21658_v37  ;;  %14754 = vmatprep.subr.bf16.mxu1 %v21663_v33 }
 0x833   : > { %16066 = vmatprep.subr.bf16.mxu0 %v21666_v17 }
 0x835   : > { %14755 = vmatpush1.bf16.msra.mxu1 %v21661_v23 }
 0x836   : > { %16067 = vmatpush1.bf16.msra.mxu0 %v21664_v57  ;;  %14756 = vmatprep.subr.bf16.mxu1 %v21669_v34 }
 0x837   : > { %16068 = vmatprep.subr.bf16.mxu0 %v21672_v4 }
 0x839   : > { %14757 = vmatpush1.bf16.msra.mxu1 %v21667_v59 }
 0x83a   : > { %16069 = vmatpush1.bf16.msra.mxu0 %v21670_v5  ;;  %14758 = vmatprep.subr.bf16.mxu1 %v21675_v1 }
 0x83b   : > { %16070 = vmatprep.subr.bf16.mxu0 %v21678_v7 }
 0x83d   : > { %14759 = vmatpush1.bf16.msra.mxu1 %v21673_v46 }
 0x83e   : > { %16071 = vmatpush1.bf16.msra.mxu0 %v21676_v21  ;;  %14760 = vmatprep.subr.bf16.mxu1 %v21681_v42 }
 0x83f   : > { %16072 = vmatprep.subr.bf16.mxu0 %v21684_v41 }
 0x841   : > { %14761 = vmatpush1.bf16.msra.mxu1 %v21679_v8 }
 0x842   : > { %16073 = vmatpush1.bf16.msra.mxu0 %v21682_v62 }
 0x844   : > { %14763 = vmatmul.mubr.bf16.vlgmr.msra.gmra.mrb[0].mxu1 %v2696_v63 }
 0x845   : > { %16075 = vmatmul.mubr.bf16.vlgmr.msra.gmra.mrb[0].mxu0 %v3088_v39 }
 0x917   : > { %v14764_v55 = vpop.f32.mrb[0].mxu1 }
 0x918   : > { %v16076_v53 = vpop.f32.mrb[0].mxu0  ;;  %v14766_v6 = vpop.f32.mrb[1].mxu1 }
 0x919   : > { %v18272_v20 = vadd.f32 %v16076_v53, %v14764_v55  ;;  %v16078_v56 = vpop.f32.mrb[1].mxu0  ;;  %v14768_v0 = vpop.f32.mrb[2].mxu1 }
 0x91a   : > { %v18273_v3 = vadd.f32 %v16078_v56, %v14766_v6  ;;  %v16080_v25 = vpop.f32.mrb[2].mxu0  ;;  %v14769_v14 = vpop.f32.mrb[3].mxu1 }
 0x91b   : > { %v16081_v54 = vpop.f32.mrb[3].mxu0 }
 0x91c   : > { %v16085_v60 = vcombine.low %v18272_v20, %v18273_v3 }
 0x91e   : > { %v16092_v2 = vrot.slane %v16085_v60, %v21993_v51  ;;  %16110 = sbr.rel (%p18267_p6) target bundleno = 2349 (0x92d), region = 40 }
 0x920   : > { %v16099_v44 = vrot.slane %v16092_v2, %v21993_v51 }
 0x922   : > { %v16101_v13 = vadd.f32 %v16099_v44, %v226_v58 }
 0x924   : > { %16106 = vst.msk [vmem:[#allocation2] sm:$0x3] %vm16104_vm1, %v16101_v13 }
 0x92b   : > { %v16111_v29 = vld [vmem:[#allocation2] sm:$0x3] }
 0x92c   : > { %16112 = vst.msk [vmem:[%s21945_s28] sm:$0x3] %vm16104_vm1, %v16111_v29 }
 0x92d PF: > { %s15_s16 = sadd.s32 1, %s21793_s16   ;;  %s24656_s9 = smov %s21769_s10 }
 0x92e   : > { %p12_p8 = scmp.ge.s32.totalorder %s15_s16, 6   ;;  %s24657_s10 = smov %s21773_s11 }
 0x92f   : > { %s24658_s11 = smov %s21881_s3  ;;  %s24659_s12 = smov %s21785_s14 }
 0x930   : > { %s24660_s13 = smov %s21789_s15  ;;  %s24661_s14 = smov %s24664_s18 }
 0x931   : > { %s24662_s15 = smov %s24668_s19  ;;  %14 = sbr.rel (!%p12_p8) target bundleno = 5 (0x5), region = 79 }
 0x938   :  { %16132 = vsyncpa [#allocation4], 1 }
 0x939   :  { %16134 = vsyncpa [#allocation4 + $0x1], 1 }

</bundles_post_ra>
